<compile_context>
chip_gen: v7x
topology: tpu7x:2x2x1
jax: 0.10.0
libtpu: 0.0.40
codegen_flags: <defaults>
</compile_context>

<pallas_src>
import jax
import jax.numpy as jnp
from jax import lax
from jax.experimental import pallas as pl
from jax.experimental.pallas import tpu as pltpu

_CHUNK = 128          # rows per in-kernel sub-chunk == output lane width
_BATCH_TILE = 1024    # rows per grid step (must be a multiple of 8 * _CHUNK)


def _leaky_relu(x, slope=0.2):
    return jnp.where(x > 0, x, slope * x)


def energy_model_kernel(x_ref,
                        w1_ref, b1_ref,
                        w2_ref, b2_ref,
                        w3_ref, b3_ref,
                        w4_ref, b4_ref,
                        out_ref):
    nchunks = x_ref.shape[0] // _CHUNK

    # Hoist weight/bias loads out of the chunk loop.
    w1 = w1_ref[...]; b1 = b1_ref[...]
    w2 = w2_ref[...]; b2 = b2_ref[...]
    w3 = w3_ref[...]; b3 = b3_ref[...]
    w4 = w4_ref[...]; b4 = b4_ref[...]

    def chunk_body(c, carry):
        r = pl.multiple_of(c * _CHUNK, _CHUNK)
        xc = x_ref[pl.ds(r, _CHUNK), :]                                    # (128,128) bf16

        h = jnp.dot(xc, w1, preferred_element_type=jnp.float32) + b1      # (128,256) f32
        h = _leaky_relu(h)
        h = jnp.dot(h.astype(jnp.bfloat16), w2,
                    preferred_element_type=jnp.float32) + b2              # (128,128) f32
        h = _leaky_relu(h)
        h = jnp.dot(h.astype(jnp.bfloat16), w3,
                    preferred_element_type=jnp.float32) + b3              # (128,128) f32
        h = _leaky_relu(h)

        # Final Linear(128 -> 1), produced lane-dense: contract the feature axis
        # of h against w4's feature axis -> (8, 128) with the real result in row 0
        # (w4 rows 1..7 are zero padding) and batch on the lane axis.
        e = lax.dot_general(w4, h, (((1,), (1,)), ((), ())),
                            preferred_element_type=jnp.float32)           # (8,128) f32
        out_ref[pl.ds(c, 1), :] = e[0:1, :] + b4
        return carry

    lax.fori_loop(0, nchunks, chunk_body, 0, unroll=True)


def energy_model_forward(x, params, *, batch_tile=_BATCH_TILE):
    """x: (B, 121) float32. params: dict of PyTorch-convention weights/biases.
    Returns (B,) float32, matching `self.main(x).squeeze(-1)`."""
    B, F = x.shape
    assert F == 121
    assert batch_tile % (8 * _CHUNK) == 0  # output block is (batch_tile/128, 128)

    num_tiles = pl.cdiv(B, batch_tile)
    B_pad = num_tiles * batch_tile

    # --- wrapper glue: pad batch + contraction dims, transpose to (in,out), cast ---
    x_p = jnp.pad(x, ((0, B_pad - B), (0, 128 - F))).astype(jnp.bfloat16)       # (B_pad,128)

    w1 = jnp.pad(params["w1"].T, ((0, 128 - F), (0, 0))).astype(jnp.bfloat16)   # (128,256)
    w2 = params["w2"].T.astype(jnp.bfloat16)                                    # (256,128)
    w3 = params["w3"].T.astype(jnp.bfloat16)                                    # (128,128)
    # w4 as an (8,128) f32 block (row 0 real, rows 1..7 zero) so the final
    # transposed-contraction matmul has an (8,128)-aligned LHS.
    w4 = jnp.zeros((8, 128), jnp.float32).at[0].set(params["w4"][0].astype(jnp.float32))

    b1 = params["b1"].astype(jnp.float32).reshape(1, -1)    # (1,256)
    b2 = params["b2"].astype(jnp.float32).reshape(1, -1)    # (1,128)
    b3 = params["b3"].astype(jnp.float32).reshape(1, -1)    # (1,128)
    b4 = params["b4"].astype(jnp.float32).reshape(1, 1)     # (1,1)

    def resident(arr):
        # Whole-array block, same block every grid step -> stays resident in VMEM.
        return pl.BlockSpec(arr.shape, lambda i: (0, 0))

    out = pl.pallas_call(
        energy_model_kernel,
        out_shape=jax.ShapeDtypeStruct((B_pad // _CHUNK, _CHUNK), jnp.float32),
        grid_spec=pltpu.PrefetchScalarGridSpec(
            num_scalar_prefetch=0,
            grid=(num_tiles,),
            in_specs=[
                pl.BlockSpec((batch_tile, 128), lambda i: (i, 0)),   # x tile
                resident(w1), resident(b1),
                resident(w2), resident(b2),
                resident(w3), resident(b3),
                resident(w4), resident(b4),
            ],
            out_specs=pl.BlockSpec((batch_tile // _CHUNK, _CHUNK), lambda i: (i, 0)),
        ),
        compiler_params=pltpu.CompilerParams(
            dimension_semantics=("parallel",)),
    )(x_p, w1, b1, w2, b2, w3, b3, w4, b4)

    # Lane-dense (B_pad/128, 128) -> (B,); row-major flatten preserves batch order.
    return out.reshape(-1)[:B]


def init_params(key):
    """Deterministic synthetic parameters with the shapes from __init__
    (PyTorch nn.Linear convention: weight (out, in), bias (out,))."""
    dims = [(256, 121), (128, 256), (128, 128), (1, 128)]
    params = {}
    for idx, (out_d, in_d) in enumerate(dims, start=1):
        key, kw, kb = jax.random.split(key, 3)
        bound = 1.0 / jnp.sqrt(in_d)
        params[f"w{idx}"] = jax.random.uniform(
            kw, (out_d, in_d), jnp.float32, -bound, bound)
        params[f"b{idx}"] = jax.random.uniform(
            kb, (out_d,), jnp.float32, -bound, bound)
    return params


def reference_forward(x, params):
    h = x
    for i in range(1, 4):
        h = h @ params[f"w{i}"].T + params[f"b{i}"]
        h = jnp.where(h > 0, h, 0.2 * h)
    h = h @ params["w4"].T + params["b4"]
    return h[..., 0]


if __name__ == "__main__":
    key = jax.random.PRNGKey(0)
    kx, kp = jax.random.split(key)

    B = 300  # small, not a multiple of the tile -> exercises the padding path
    x = jax.random.normal(kx, (B, 121), jnp.float32)
    params = init_params(kp)

    y = energy_model_forward(x, params)
    y = jax.block_until_ready(y)

    y_ref = reference_forward(x, params)
    assert y.shape == (B,)
    # bf16 matmul operands with f32 accumulation -> loosen tolerance vs pure-f32 ref.
    assert jnp.allclose(y, y_ref, atol=5e-2, rtol=5e-2), float(jnp.max(jnp.abs(y - y_ref)))

    print("KERNEL_OK")
</pallas_src>

<mosaic_0001>
module attributes {stable_mosaic.version = 11 : i64} {
  func.func @energy_model_kernel(%arg0: i32, %arg1: memref<1024x128xbf16, #tpu.memory_space<vmem>>, %arg2: memref<128x256xbf16, #tpu.memory_space<vmem>>, %arg3: memref<1x256xf32, #tpu.memory_space<vmem>>, %arg4: memref<256x128xbf16, #tpu.memory_space<vmem>>, %arg5: memref<1x128xf32, #tpu.memory_space<vmem>>, %arg6: memref<128x128xbf16, #tpu.memory_space<vmem>>, %arg7: memref<1x128xf32, #tpu.memory_space<vmem>>, %arg8: memref<8x128xf32, #tpu.memory_space<vmem>>, %arg9: memref<1x1xf32, #tpu.memory_space<vmem>>, %arg10: memref<8x128xf32, #tpu.memory_space<vmem>>) attributes {dimension_semantics = [#tpu.dimension_semantics<parallel>], iteration_bounds = array<i64: 1>, scalar_prefetch = 0 : i64, scratch_operands = 0 : i64, tpu.core_type = #tpu.core_type<tc>, window_params = [{transform_indices = @transform_0, window_bounds = array<i64: 1024, 128>}, {pipeline_mode = #tpu.pipeline_mode<synchronous>, transform_indices = @transform_1, window_bounds = array<i64: 128, 256>}, {pipeline_mode = #tpu.pipeline_mode<synchronous>, transform_indices = @transform_2, window_bounds = array<i64: 1, 256>}, {pipeline_mode = #tpu.pipeline_mode<synchronous>, transform_indices = @transform_3, window_bounds = array<i64: 256, 128>}, {pipeline_mode = #tpu.pipeline_mode<synchronous>, transform_indices = @transform_4, window_bounds = array<i64: 1, 128>}, {pipeline_mode = #tpu.pipeline_mode<synchronous>, transform_indices = @transform_5, window_bounds = array<i64: 128, 128>}, {pipeline_mode = #tpu.pipeline_mode<synchronous>, transform_indices = @transform_6, window_bounds = array<i64: 1, 128>}, {pipeline_mode = #tpu.pipeline_mode<synchronous>, transform_indices = @transform_7, window_bounds = array<i64: 8, 128>}, {pipeline_mode = #tpu.pipeline_mode<synchronous>, transform_indices = @transform_8, window_bounds = array<i64: 1, 1>}, {transform_indices = @transform_9, window_bounds = array<i64: 8, 128>}]} {
    %c0 = arith.constant 0 : index
    %c0_0 = arith.constant 0 : index
    %0 = vector.load %arg2[%c0, %c0_0] : memref<128x256xbf16, #tpu.memory_space<vmem>>, vector<128x256xbf16>
    %c0_1 = arith.constant 0 : index
    %c0_2 = arith.constant 0 : index
    %1 = vector.load %arg3[%c0_1, %c0_2] : memref<1x256xf32, #tpu.memory_space<vmem>>, vector<1x256xf32>
    %c0_3 = arith.constant 0 : index
    %c0_4 = arith.constant 0 : index
    %2 = vector.load %arg4[%c0_3, %c0_4] : memref<256x128xbf16, #tpu.memory_space<vmem>>, vector<256x128xbf16>
    %c0_5 = arith.constant 0 : index
    %c0_6 = arith.constant 0 : index
    %3 = vector.load %arg5[%c0_5, %c0_6] : memref<1x128xf32, #tpu.memory_space<vmem>>, vector<1x128xf32>
    %c0_7 = arith.constant 0 : index
    %c0_8 = arith.constant 0 : index
    %4 = vector.load %arg6[%c0_7, %c0_8] : memref<128x128xbf16, #tpu.memory_space<vmem>>, vector<128x128xbf16>
    %c0_9 = arith.constant 0 : index
    %c0_10 = arith.constant 0 : index
    %5 = vector.load %arg7[%c0_9, %c0_10] : memref<1x128xf32, #tpu.memory_space<vmem>>, vector<1x128xf32>
    %c0_11 = arith.constant 0 : index
    %c0_12 = arith.constant 0 : index
    %6 = vector.load %arg8[%c0_11, %c0_12] : memref<8x128xf32, #tpu.memory_space<vmem>>, vector<8x128xf32>
    %c0_13 = arith.constant 0 : index
    %c0_14 = arith.constant 0 : index
    %7 = vector.load %arg9[%c0_13, %c0_14] : memref<1x1xf32, #tpu.memory_space<vmem>>, vector<1x1xf32>
    %c0_i32 = arith.constant 0 : i32
    %c128_i32 = arith.constant 128 : i32
    %8 = arith.muli %c0_i32, %c128_i32 : i32
    %9 = tpu.assume_multiple %8, 128 : i32
    %10 = arith.index_cast %9 : i32 to index
    %c0_15 = arith.constant 0 : index
    %11 = vector.load %arg1[%10, %c0_15] : memref<1024x128xbf16, #tpu.memory_space<vmem>>, vector<128x128xbf16>
    %cst = arith.constant dense<0.000000e+00> : vector<128x256xf32>
    %12 = tpu.matmul %11, %0, %cst {dimension_numbers = #tpu.dot_dimension_numbers<[1], [0], [0], [1], [0, 0, 1, 1], [], []>} : vector<128x128xbf16>, vector<128x256xbf16>, vector<128x256xf32> -> vector<128x256xf32>
    %13 = vector.broadcast %1 : vector<1x256xf32> to vector<128x256xf32>
    %14 = arith.addf %12, %13 : vector<128x256xf32>
    %cst_16 = arith.constant 0.000000e+00 : f32
    %15 = vector.broadcast %cst_16 : f32 to vector<128x256xf32>
    %16 = arith.cmpf ogt, %14, %15 : vector<128x256xf32>
    %cst_17 = arith.constant 2.000000e-01 : f32
    %17 = vector.broadcast %cst_17 : f32 to vector<128x256xf32>
    %18 = arith.mulf %17, %14 : vector<128x256xf32>
    %19 = arith.select %16, %14, %18 : vector<128x256xi1>, vector<128x256xf32>
    %20 = arith.truncf %19 : vector<128x256xf32> to vector<128x256xbf16>
    %cst_18 = arith.constant dense<0.000000e+00> : vector<128x128xf32>
    %21 = tpu.matmul %20, %2, %cst_18 {dimension_numbers = #tpu.dot_dimension_numbers<[1], [0], [0], [1], [0, 0, 1, 1], [], []>} : vector<128x256xbf16>, vector<256x128xbf16>, vector<128x128xf32> -> vector<128x128xf32>
    %22 = vector.broadcast %3 : vector<1x128xf32> to vector<128x128xf32>
    %23 = arith.addf %21, %22 : vector<128x128xf32>
    %cst_19 = arith.constant 0.000000e+00 : f32
    %24 = vector.broadcast %cst_19 : f32 to vector<128x128xf32>
    %25 = arith.cmpf ogt, %23, %24 : vector<128x128xf32>
    %cst_20 = arith.constant 2.000000e-01 : f32
    %26 = vector.broadcast %cst_20 : f32 to vector<128x128xf32>
    %27 = arith.mulf %26, %23 : vector<128x128xf32>
    %28 = arith.select %25, %23, %27 : vector<128x128xi1>, vector<128x128xf32>
    %29 = arith.truncf %28 : vector<128x128xf32> to vector<128x128xbf16>
    %cst_21 = arith.constant dense<0.000000e+00> : vector<128x128xf32>
    %30 = tpu.matmul %29, %4, %cst_21 {dimension_numbers = #tpu.dot_dimension_numbers<[1], [0], [0], [1], [0, 0, 1, 1], [], []>} : vector<128x128xbf16>, vector<128x128xbf16>, vector<128x128xf32> -> vector<128x128xf32>
    %31 = vector.broadcast %5 : vector<1x128xf32> to vector<128x128xf32>
    %32 = arith.addf %30, %31 : vector<128x128xf32>
    %cst_22 = arith.constant 0.000000e+00 : f32
    %33 = vector.broadcast %cst_22 : f32 to vector<128x128xf32>
    %34 = arith.cmpf ogt, %32, %33 : vector<128x128xf32>
    %cst_23 = arith.constant 2.000000e-01 : f32
    %35 = vector.broadcast %cst_23 : f32 to vector<128x128xf32>
    %36 = arith.mulf %35, %32 : vector<128x128xf32>
    %37 = arith.select %34, %32, %36 : vector<128x128xi1>, vector<128x128xf32>
    %cst_24 = arith.constant dense<0.000000e+00> : vector<8x128xf32>
    %38 = tpu.matmul %6, %37, %cst_24 {dimension_numbers = #tpu.dot_dimension_numbers<[1], [1], [0], [0], [0, 0, 1, 0], [], []>} : vector<8x128xf32>, vector<128x128xf32>, vector<8x128xf32> -> vector<8x128xf32>
    %39 = vector.extract_strided_slice %38 {offsets = [0, 0], sizes = [1, 128], strides = [1, 1]} : vector<8x128xf32> to vector<1x128xf32>
    %40 = vector.broadcast %7 : vector<1x1xf32> to vector<1x128xf32>
    %41 = arith.addf %39, %40 : vector<1x128xf32>
    %42 = arith.index_cast %c0_i32 : i32 to index
    %c0_25 = arith.constant 0 : index
    %43 = vector.load %arg10[%42, %c0_25] : memref<8x128xf32, #tpu.memory_space<vmem>>, vector<1x128xf32>
    tpu.vector_store %arg10[%42, %c0_25], %41 {strides = array<i32>} : memref<8x128xf32, #tpu.memory_space<vmem>>, vector<1x128xf32>,
    %c1_i32 = arith.constant 1 : i32
    %c128_i32_26 = arith.constant 128 : i32
    %44 = arith.muli %c1_i32, %c128_i32_26 : i32
    %45 = tpu.assume_multiple %44, 128 : i32
    %46 = arith.index_cast %45 : i32 to index
    %c0_27 = arith.constant 0 : index
    %47 = vector.load %arg1[%46, %c0_27] : memref<1024x128xbf16, #tpu.memory_space<vmem>>, vector<128x128xbf16>
    %cst_28 = arith.constant dense<0.000000e+00> : vector<128x256xf32>
    %48 = tpu.matmul %47, %0, %cst_28 {dimension_numbers = #tpu.dot_dimension_numbers<[1], [0], [0], [1], [0, 0, 1, 1], [], []>} : vector<128x128xbf16>, vector<128x256xbf16>, vector<128x256xf32> -> vector<128x256xf32>
    %49 = vector.broadcast %1 : vector<1x256xf32> to vector<128x256xf32>
    %50 = arith.addf %48, %49 : vector<128x256xf32>
    %cst_29 = arith.constant 0.000000e+00 : f32
    %51 = vector.broadcast %cst_29 : f32 to vector<128x256xf32>
    %52 = arith.cmpf ogt, %50, %51 : vector<128x256xf32>
    %cst_30 = arith.constant 2.000000e-01 : f32
    %53 = vector.broadcast %cst_30 : f32 to vector<128x256xf32>
    %54 = arith.mulf %53, %50 : vector<128x256xf32>
    %55 = arith.select %52, %50, %54 : vector<128x256xi1>, vector<128x256xf32>
    %56 = arith.truncf %55 : vector<128x256xf32> to vector<128x256xbf16>
    %cst_31 = arith.constant dense<0.000000e+00> : vector<128x128xf32>
    %57 = tpu.matmul %56, %2, %cst_31 {dimension_numbers = #tpu.dot_dimension_numbers<[1], [0], [0], [1], [0, 0, 1, 1], [], []>} : vector<128x256xbf16>, vector<256x128xbf16>, vector<128x128xf32> -> vector<128x128xf32>
    %58 = vector.broadcast %3 : vector<1x128xf32> to vector<128x128xf32>
    %59 = arith.addf %57, %58 : vector<128x128xf32>
    %cst_32 = arith.constant 0.000000e+00 : f32
    %60 = vector.broadcast %cst_32 : f32 to vector<128x128xf32>
    %61 = arith.cmpf ogt, %59, %60 : vector<128x128xf32>
    %cst_33 = arith.constant 2.000000e-01 : f32
    %62 = vector.broadcast %cst_33 : f32 to vector<128x128xf32>
    %63 = arith.mulf %62, %59 : vector<128x128xf32>
    %64 = arith.select %61, %59, %63 : vector<128x128xi1>, vector<128x128xf32>
    %65 = arith.truncf %64 : vector<128x128xf32> to vector<128x128xbf16>
    %cst_34 = arith.constant dense<0.000000e+00> : vector<128x128xf32>
    %66 = tpu.matmul %65, %4, %cst_34 {dimension_numbers = #tpu.dot_dimension_numbers<[1], [0], [0], [1], [0, 0, 1, 1], [], []>} : vector<128x128xbf16>, vector<128x128xbf16>, vector<128x128xf32> -> vector<128x128xf32>
    %67 = vector.broadcast %5 : vector<1x128xf32> to vector<128x128xf32>
    %68 = arith.addf %66, %67 : vector<128x128xf32>
    %cst_35 = arith.constant 0.000000e+00 : f32
    %69 = vector.broadcast %cst_35 : f32 to vector<128x128xf32>
    %70 = arith.cmpf ogt, %68, %69 : vector<128x128xf32>
    %cst_36 = arith.constant 2.000000e-01 : f32
    %71 = vector.broadcast %cst_36 : f32 to vector<128x128xf32>
    %72 = arith.mulf %71, %68 : vector<128x128xf32>
    %73 = arith.select %70, %68, %72 : vector<128x128xi1>, vector<128x128xf32>
    %cst_37 = arith.constant dense<0.000000e+00> : vector<8x128xf32>
    %74 = tpu.matmul %6, %73, %cst_37 {dimension_numbers = #tpu.dot_dimension_numbers<[1], [1], [0], [0], [0, 0, 1, 0], [], []>} : vector<8x128xf32>, vector<128x128xf32>, vector<8x128xf32> -> vector<8x128xf32>
    %75 = vector.extract_strided_slice %74 {offsets = [0, 0], sizes = [1, 128], strides = [1, 1]} : vector<8x128xf32> to vector<1x128xf32>
    %76 = vector.broadcast %7 : vector<1x1xf32> to vector<1x128xf32>
    %77 = arith.addf %75, %76 : vector<1x128xf32>
    %78 = arith.index_cast %c1_i32 : i32 to index
    %c0_38 = arith.constant 0 : index
    %79 = vector.load %arg10[%78, %c0_38] : memref<8x128xf32, #tpu.memory_space<vmem>>, vector<1x128xf32>
    tpu.vector_store %arg10[%78, %c0_38], %77 {strides = array<i32>} : memref<8x128xf32, #tpu.memory_space<vmem>>, vector<1x128xf32>,
    %c2_i32 = arith.constant 2 : i32
    %c128_i32_39 = arith.constant 128 : i32
    %80 = arith.muli %c2_i32, %c128_i32_39 : i32
    %81 = tpu.assume_multiple %80, 128 : i32
    %82 = arith.index_cast %81 : i32 to index
    %c0_40 = arith.constant 0 : index
    %83 = vector.load %arg1[%82, %c0_40] : memref<1024x128xbf16, #tpu.memory_space<vmem>>, vector<128x128xbf16>
    %cst_41 = arith.constant dense<0.000000e+00> : vector<128x256xf32>
    %84 = tpu.matmul %83, %0, %cst_41 {dimension_numbers = #tpu.dot_dimension_numbers<[1], [0], [0], [1], [0, 0, 1, 1], [], []>} : vector<128x128xbf16>, vector<128x256xbf16>, vector<128x256xf32> -> vector<128x256xf32>
    %85 = vector.broadcast %1 : vector<1x256xf32> to vector<128x256xf32>
    %86 = arith.addf %84, %85 : vector<128x256xf32>
    %cst_42 = arith.constant 0.000000e+00 : f32
    %87 = vector.broadcast %cst_42 : f32 to vector<128x256xf32>
    %88 = arith.cmpf ogt, %86, %87 : vector<128x256xf32>
    %cst_43 = arith.constant 2.000000e-01 : f32
    %89 = vector.broadcast %cst_43 : f32 to vector<128x256xf32>
    %90 = arith.mulf %89, %86 : vector<128x256xf32>
    %91 = arith.select %88, %86, %90 : vector<128x256xi1>, vector<128x256xf32>
    %92 = arith.truncf %91 : vector<128x256xf32> to vector<128x256xbf16>
    %cst_44 = arith.constant dense<0.000000e+00> : vector<128x128xf32>
    %93 = tpu.matmul %92, %2, %cst_44 {dimension_numbers = #tpu.dot_dimension_numbers<[1], [0], [0], [1], [0, 0, 1, 1], [], []>} : vector<128x256xbf16>, vector<256x128xbf16>, vector<128x128xf32> -> vector<128x128xf32>
    %94 = vector.broadcast %3 : vector<1x128xf32> to vector<128x128xf32>
    %95 = arith.addf %93, %94 : vector<128x128xf32>
    %cst_45 = arith.constant 0.000000e+00 : f32
    %96 = vector.broadcast %cst_45 : f32 to vector<128x128xf32>
    %97 = arith.cmpf ogt, %95, %96 : vector<128x128xf32>
    %cst_46 = arith.constant 2.000000e-01 : f32
    %98 = vector.broadcast %cst_46 : f32 to vector<128x128xf32>
    %99 = arith.mulf %98, %95 : vector<128x128xf32>
    %100 = arith.select %97, %95, %99 : vector<128x128xi1>, vector<128x128xf32>
    %101 = arith.truncf %100 : vector<128x128xf32> to vector<128x128xbf16>
    %cst_47 = arith.constant dense<0.000000e+00> : vector<128x128xf32>
    %102 = tpu.matmul %101, %4, %cst_47 {dimension_numbers = #tpu.dot_dimension_numbers<[1], [0], [0], [1], [0, 0, 1, 1], [], []>} : vector<128x128xbf16>, vector<128x128xbf16>, vector<128x128xf32> -> vector<128x128xf32>
    %103 = vector.broadcast %5 : vector<1x128xf32> to vector<128x128xf32>
    %104 = arith.addf %102, %103 : vector<128x128xf32>
    %cst_48 = arith.constant 0.000000e+00 : f32
    %105 = vector.broadcast %cst_48 : f32 to vector<128x128xf32>
    %106 = arith.cmpf ogt, %104, %105 : vector<128x128xf32>
    %cst_49 = arith.constant 2.000000e-01 : f32
    %107 = vector.broadcast %cst_49 : f32 to vector<128x128xf32>
    %108 = arith.mulf %107, %104 : vector<128x128xf32>
    %109 = arith.select %106, %104, %108 : vector<128x128xi1>, vector<128x128xf32>
    %cst_50 = arith.constant dense<0.000000e+00> : vector<8x128xf32>
    %110 = tpu.matmul %6, %109, %cst_50 {dimension_numbers = #tpu.dot_dimension_numbers<[1], [1], [0], [0], [0, 0, 1, 0], [], []>} : vector<8x128xf32>, vector<128x128xf32>, vector<8x128xf32> -> vector<8x128xf32>
    %111 = vector.extract_strided_slice %110 {offsets = [0, 0], sizes = [1, 128], strides = [1, 1]} : vector<8x128xf32> to vector<1x128xf32>
    %112 = vector.broadcast %7 : vector<1x1xf32> to vector<1x128xf32>
    %113 = arith.addf %111, %112 : vector<1x128xf32>
    %114 = arith.index_cast %c2_i32 : i32 to index
    %c0_51 = arith.constant 0 : index
    %115 = vector.load %arg10[%114, %c0_51] : memref<8x128xf32, #tpu.memory_space<vmem>>, vector<1x128xf32>
    tpu.vector_store %arg10[%114, %c0_51], %113 {strides = array<i32>} : memref<8x128xf32, #tpu.memory_space<vmem>>, vector<1x128xf32>,
    %c3_i32 = arith.constant 3 : i32
    %c128_i32_52 = arith.constant 128 : i32
    %116 = arith.muli %c3_i32, %c128_i32_52 : i32
    %117 = tpu.assume_multiple %116, 128 : i32
    %118 = arith.index_cast %117 : i32 to index
    %c0_53 = arith.constant 0 : index
    %119 = vector.load %arg1[%118, %c0_53] : memref<1024x128xbf16, #tpu.memory_space<vmem>>, vector<128x128xbf16>
    %cst_54 = arith.constant dense<0.000000e+00> : vector<128x256xf32>
    %120 = tpu.matmul %119, %0, %cst_54 {dimension_numbers = #tpu.dot_dimension_numbers<[1], [0], [0], [1], [0, 0, 1, 1], [], []>} : vector<128x128xbf16>, vector<128x256xbf16>, vector<128x256xf32> -> vector<128x256xf32>
    %121 = vector.broadcast %1 : vector<1x256xf32> to vector<128x256xf32>
    %122 = arith.addf %120, %121 : vector<128x256xf32>
    %cst_55 = arith.constant 0.000000e+00 : f32
    %123 = vector.broadcast %cst_55 : f32 to vector<128x256xf32>
    %124 = arith.cmpf ogt, %122, %123 : vector<128x256xf32>
    %cst_56 = arith.constant 2.000000e-01 : f32
    %125 = vector.broadcast %cst_56 : f32 to vector<128x256xf32>
    %126 = arith.mulf %125, %122 : vector<128x256xf32>
    %127 = arith.select %124, %122, %126 : vector<128x256xi1>, vector<128x256xf32>
    %128 = arith.truncf %127 : vector<128x256xf32> to vector<128x256xbf16>
    %cst_57 = arith.constant dense<0.000000e+00> : vector<128x128xf32>
    %129 = tpu.matmul %128, %2, %cst_57 {dimension_numbers = #tpu.dot_dimension_numbers<[1], [0], [0], [1], [0, 0, 1, 1], [], []>} : vector<128x256xbf16>, vector<256x128xbf16>, vector<128x128xf32> -> vector<128x128xf32>
    %130 = vector.broadcast %3 : vector<1x128xf32> to vector<128x128xf32>
    %131 = arith.addf %129, %130 : vector<128x128xf32>
    %cst_58 = arith.constant 0.000000e+00 : f32
    %132 = vector.broadcast %cst_58 : f32 to vector<128x128xf32>
    %133 = arith.cmpf ogt, %131, %132 : vector<128x128xf32>
    %cst_59 = arith.constant 2.000000e-01 : f32
    %134 = vector.broadcast %cst_59 : f32 to vector<128x128xf32>
    %135 = arith.mulf %134, %131 : vector<128x128xf32>
    %136 = arith.select %133, %131, %135 : vector<128x128xi1>, vector<128x128xf32>
    %137 = arith.truncf %136 : vector<128x128xf32> to vector<128x128xbf16>
    %cst_60 = arith.constant dense<0.000000e+00> : vector<128x128xf32>
    %138 = tpu.matmul %137, %4, %cst_60 {dimension_numbers = #tpu.dot_dimension_numbers<[1], [0], [0], [1], [0, 0, 1, 1], [], []>} : vector<128x128xbf16>, vector<128x128xbf16>, vector<128x128xf32> -> vector<128x128xf32>
    %139 = vector.broadcast %5 : vector<1x128xf32> to vector<128x128xf32>
    %140 = arith.addf %138, %139 : vector<128x128xf32>
    %cst_61 = arith.constant 0.000000e+00 : f32
    %141 = vector.broadcast %cst_61 : f32 to vector<128x128xf32>
    %142 = arith.cmpf ogt, %140, %141 : vector<128x128xf32>
    %cst_62 = arith.constant 2.000000e-01 : f32
    %143 = vector.broadcast %cst_62 : f32 to vector<128x128xf32>
    %144 = arith.mulf %143, %140 : vector<128x128xf32>
    %145 = arith.select %142, %140, %144 : vector<128x128xi1>, vector<128x128xf32>
    %cst_63 = arith.constant dense<0.000000e+00> : vector<8x128xf32>
    %146 = tpu.matmul %6, %145, %cst_63 {dimension_numbers = #tpu.dot_dimension_numbers<[1], [1], [0], [0], [0, 0, 1, 0], [], []>} : vector<8x128xf32>, vector<128x128xf32>, vector<8x128xf32> -> vector<8x128xf32>
    %147 = vector.extract_strided_slice %146 {offsets = [0, 0], sizes = [1, 128], strides = [1, 1]} : vector<8x128xf32> to vector<1x128xf32>
    %148 = vector.broadcast %7 : vector<1x1xf32> to vector<1x128xf32>
    %149 = arith.addf %147, %148 : vector<1x128xf32>
    %150 = arith.index_cast %c3_i32 : i32 to index
    %c0_64 = arith.constant 0 : index
    %151 = vector.load %arg10[%150, %c0_64] : memref<8x128xf32, #tpu.memory_space<vmem>>, vector<1x128xf32>
    tpu.vector_store %arg10[%150, %c0_64], %149 {strides = array<i32>} : memref<8x128xf32, #tpu.memory_space<vmem>>, vector<1x128xf32>,
    %c4_i32 = arith.constant 4 : i32
    %c128_i32_65 = arith.constant 128 : i32
    %152 = arith.muli %c4_i32, %c128_i32_65 : i32
    %153 = tpu.assume_multiple %152, 128 : i32
    %154 = arith.index_cast %153 : i32 to index
    %c0_66 = arith.constant 0 : index
    %155 = vector.load %arg1[%154, %c0_66] : memref<1024x128xbf16, #tpu.memory_space<vmem>>, vector<128x128xbf16>
    %cst_67 = arith.constant dense<0.000000e+00> : vector<128x256xf32>
    %156 = tpu.matmul %155, %0, %cst_67 {dimension_numbers = #tpu.dot_dimension_numbers<[1], [0], [0], [1], [0, 0, 1, 1], [], []>} : vector<128x128xbf16>, vector<128x256xbf16>, vector<128x256xf32> -> vector<128x256xf32>
    %157 = vector.broadcast %1 : vector<1x256xf32> to vector<128x256xf32>
    %158 = arith.addf %156, %157 : vector<128x256xf32>
    %cst_68 = arith.constant 0.000000e+00 : f32
    %159 = vector.broadcast %cst_68 : f32 to vector<128x256xf32>
    %160 = arith.cmpf ogt, %158, %159 : vector<128x256xf32>
    %cst_69 = arith.constant 2.000000e-01 : f32
    %161 = vector.broadcast %cst_69 : f32 to vector<128x256xf32>
    %162 = arith.mulf %161, %158 : vector<128x256xf32>
    %163 = arith.select %160, %158, %162 : vector<128x256xi1>, vector<128x256xf32>
    %164 = arith.truncf %163 : vector<128x256xf32> to vector<128x256xbf16>
    %cst_70 = arith.constant dense<0.000000e+00> : vector<128x128xf32>
    %165 = tpu.matmul %164, %2, %cst_70 {dimension_numbers = #tpu.dot_dimension_numbers<[1], [0], [0], [1], [0, 0, 1, 1], [], []>} : vector<128x256xbf16>, vector<256x128xbf16>, vector<128x128xf32> -> vector<128x128xf32>
    %166 = vector.broadcast %3 : vector<1x128xf32> to vector<128x128xf32>
    %167 = arith.addf %165, %166 : vector<128x128xf32>
    %cst_71 = arith.constant 0.000000e+00 : f32
    %168 = vector.broadcast %cst_71 : f32 to vector<128x128xf32>
    %169 = arith.cmpf ogt, %167, %168 : vector<128x128xf32>
    %cst_72 = arith.constant 2.000000e-01 : f32
    %170 = vector.broadcast %cst_72 : f32 to vector<128x128xf32>
    %171 = arith.mulf %170, %167 : vector<128x128xf32>
    %172 = arith.select %169, %167, %171 : vector<128x128xi1>, vector<128x128xf32>
    %173 = arith.truncf %172 : vector<128x128xf32> to vector<128x128xbf16>
    %cst_73 = arith.constant dense<0.000000e+00> : vector<128x128xf32>
    %174 = tpu.matmul %173, %4, %cst_73 {dimension_numbers = #tpu.dot_dimension_numbers<[1], [0], [0], [1], [0, 0, 1, 1], [], []>} : vector<128x128xbf16>, vector<128x128xbf16>, vector<128x128xf32> -> vector<128x128xf32>
    %175 = vector.broadcast %5 : vector<1x128xf32> to vector<128x128xf32>
    %176 = arith.addf %174, %175 : vector<128x128xf32>
    %cst_74 = arith.constant 0.000000e+00 : f32
    %177 = vector.broadcast %cst_74 : f32 to vector<128x128xf32>
    %178 = arith.cmpf ogt, %176, %177 : vector<128x128xf32>
    %cst_75 = arith.constant 2.000000e-01 : f32
    %179 = vector.broadcast %cst_75 : f32 to vector<128x128xf32>
    %180 = arith.mulf %179, %176 : vector<128x128xf32>
    %181 = arith.select %178, %176, %180 : vector<128x128xi1>, vector<128x128xf32>
    %cst_76 = arith.constant dense<0.000000e+00> : vector<8x128xf32>
    %182 = tpu.matmul %6, %181, %cst_76 {dimension_numbers = #tpu.dot_dimension_numbers<[1], [1], [0], [0], [0, 0, 1, 0], [], []>} : vector<8x128xf32>, vector<128x128xf32>, vector<8x128xf32> -> vector<8x128xf32>
    %183 = vector.extract_strided_slice %182 {offsets = [0, 0], sizes = [1, 128], strides = [1, 1]} : vector<8x128xf32> to vector<1x128xf32>
    %184 = vector.broadcast %7 : vector<1x1xf32> to vector<1x128xf32>
    %185 = arith.addf %183, %184 : vector<1x128xf32>
    %186 = arith.index_cast %c4_i32 : i32 to index
    %c0_77 = arith.constant 0 : index
    %187 = vector.load %arg10[%186, %c0_77] : memref<8x128xf32, #tpu.memory_space<vmem>>, vector<1x128xf32>
    tpu.vector_store %arg10[%186, %c0_77], %185 {strides = array<i32>} : memref<8x128xf32, #tpu.memory_space<vmem>>, vector<1x128xf32>,
    %c5_i32 = arith.constant 5 : i32
    %c128_i32_78 = arith.constant 128 : i32
    %188 = arith.muli %c5_i32, %c128_i32_78 : i32
    %189 = tpu.assume_multiple %188, 128 : i32
    %190 = arith.index_cast %189 : i32 to index
    %c0_79 = arith.constant 0 : index
    %191 = vector.load %arg1[%190, %c0_79] : memref<1024x128xbf16, #tpu.memory_space<vmem>>, vector<128x128xbf16>
    %cst_80 = arith.constant dense<0.000000e+00> : vector<128x256xf32>
    %192 = tpu.matmul %191, %0, %cst_80 {dimension_numbers = #tpu.dot_dimension_numbers<[1], [0], [0], [1], [0, 0, 1, 1], [], []>} : vector<128x128xbf16>, vector<128x256xbf16>, vector<128x256xf32> -> vector<128x256xf32>
    %193 = vector.broadcast %1 : vector<1x256xf32> to vector<128x256xf32>
    %194 = arith.addf %192, %193 : vector<128x256xf32>
    %cst_81 = arith.constant 0.000000e+00 : f32
    %195 = vector.broadcast %cst_81 : f32 to vector<128x256xf32>
    %196 = arith.cmpf ogt, %194, %195 : vector<128x256xf32>
    %cst_82 = arith.constant 2.000000e-01 : f32
    %197 = vector.broadcast %cst_82 : f32 to vector<128x256xf32>
    %198 = arith.mulf %197, %194 : vector<128x256xf32>
    %199 = arith.select %196, %194, %198 : vector<128x256xi1>, vector<128x256xf32>
    %200 = arith.truncf %199 : vector<128x256xf32> to vector<128x256xbf16>
    %cst_83 = arith.constant dense<0.000000e+00> : vector<128x128xf32>
    %201 = tpu.matmul %200, %2, %cst_83 {dimension_numbers = #tpu.dot_dimension_numbers<[1], [0], [0], [1], [0, 0, 1, 1], [], []>} : vector<128x256xbf16>, vector<256x128xbf16>, vector<128x128xf32> -> vector<128x128xf32>
    %202 = vector.broadcast %3 : vector<1x128xf32> to vector<128x128xf32>
    %203 = arith.addf %201, %202 : vector<128x128xf32>
    %cst_84 = arith.constant 0.000000e+00 : f32
    %204 = vector.broadcast %cst_84 : f32 to vector<128x128xf32>
    %205 = arith.cmpf ogt, %203, %204 : vector<128x128xf32>
    %cst_85 = arith.constant 2.000000e-01 : f32
    %206 = vector.broadcast %cst_85 : f32 to vector<128x128xf32>
    %207 = arith.mulf %206, %203 : vector<128x128xf32>
    %208 = arith.select %205, %203, %207 : vector<128x128xi1>, vector<128x128xf32>
    %209 = arith.truncf %208 : vector<128x128xf32> to vector<128x128xbf16>
    %cst_86 = arith.constant dense<0.000000e+00> : vector<128x128xf32>
    %210 = tpu.matmul %209, %4, %cst_86 {dimension_numbers = #tpu.dot_dimension_numbers<[1], [0], [0], [1], [0, 0, 1, 1], [], []>} : vector<128x128xbf16>, vector<128x128xbf16>, vector<128x128xf32> -> vector<128x128xf32>
    %211 = vector.broadcast %5 : vector<1x128xf32> to vector<128x128xf32>
    %212 = arith.addf %210, %211 : vector<128x128xf32>
    %cst_87 = arith.constant 0.000000e+00 : f32
    %213 = vector.broadcast %cst_87 : f32 to vector<128x128xf32>
    %214 = arith.cmpf ogt, %212, %213 : vector<128x128xf32>
    %cst_88 = arith.constant 2.000000e-01 : f32
    %215 = vector.broadcast %cst_88 : f32 to vector<128x128xf32>
    %216 = arith.mulf %215, %212 : vector<128x128xf32>
    %217 = arith.select %214, %212, %216 : vector<128x128xi1>, vector<128x128xf32>
    %cst_89 = arith.constant dense<0.000000e+00> : vector<8x128xf32>
    %218 = tpu.matmul %6, %217, %cst_89 {dimension_numbers = #tpu.dot_dimension_numbers<[1], [1], [0], [0], [0, 0, 1, 0], [], []>} : vector<8x128xf32>, vector<128x128xf32>, vector<8x128xf32> -> vector<8x128xf32>
    %219 = vector.extract_strided_slice %218 {offsets = [0, 0], sizes = [1, 128], strides = [1, 1]} : vector<8x128xf32> to vector<1x128xf32>
    %220 = vector.broadcast %7 : vector<1x1xf32> to vector<1x128xf32>
    %221 = arith.addf %219, %220 : vector<1x128xf32>
    %222 = arith.index_cast %c5_i32 : i32 to index
    %c0_90 = arith.constant 0 : index
    %223 = vector.load %arg10[%222, %c0_90] : memref<8x128xf32, #tpu.memory_space<vmem>>, vector<1x128xf32>
    tpu.vector_store %arg10[%222, %c0_90], %221 {strides = array<i32>} : memref<8x128xf32, #tpu.memory_space<vmem>>, vector<1x128xf32>,
    %c6_i32 = arith.constant 6 : i32
    %c128_i32_91 = arith.constant 128 : i32
    %224 = arith.muli %c6_i32, %c128_i32_91 : i32
    %225 = tpu.assume_multiple %224, 128 : i32
    %226 = arith.index_cast %225 : i32 to index
    %c0_92 = arith.constant 0 : index
    %227 = vector.load %arg1[%226, %c0_92] : memref<1024x128xbf16, #tpu.memory_space<vmem>>, vector<128x128xbf16>
    %cst_93 = arith.constant dense<0.000000e+00> : vector<128x256xf32>
    %228 = tpu.matmul %227, %0, %cst_93 {dimension_numbers = #tpu.dot_dimension_numbers<[1], [0], [0], [1], [0, 0, 1, 1], [], []>} : vector<128x128xbf16>, vector<128x256xbf16>, vector<128x256xf32> -> vector<128x256xf32>
    %229 = vector.broadcast %1 : vector<1x256xf32> to vector<128x256xf32>
    %230 = arith.addf %228, %229 : vector<128x256xf32>
    %cst_94 = arith.constant 0.000000e+00 : f32
    %231 = vector.broadcast %cst_94 : f32 to vector<128x256xf32>
    %232 = arith.cmpf ogt, %230, %231 : vector<128x256xf32>
    %cst_95 = arith.constant 2.000000e-01 : f32
    %233 = vector.broadcast %cst_95 : f32 to vector<128x256xf32>
    %234 = arith.mulf %233, %230 : vector<128x256xf32>
    %235 = arith.select %232, %230, %234 : vector<128x256xi1>, vector<128x256xf32>
    %236 = arith.truncf %235 : vector<128x256xf32> to vector<128x256xbf16>
    %cst_96 = arith.constant dense<0.000000e+00> : vector<128x128xf32>
    %237 = tpu.matmul %236, %2, %cst_96 {dimension_numbers = #tpu.dot_dimension_numbers<[1], [0], [0], [1], [0, 0, 1, 1], [], []>} : vector<128x256xbf16>, vector<256x128xbf16>, vector<128x128xf32> -> vector<128x128xf32>
    %238 = vector.broadcast %3 : vector<1x128xf32> to vector<128x128xf32>
    %239 = arith.addf %237, %238 : vector<128x128xf32>
    %cst_97 = arith.constant 0.000000e+00 : f32
    %240 = vector.broadcast %cst_97 : f32 to vector<128x128xf32>
    %241 = arith.cmpf ogt, %239, %240 : vector<128x128xf32>
    %cst_98 = arith.constant 2.000000e-01 : f32
    %242 = vector.broadcast %cst_98 : f32 to vector<128x128xf32>
    %243 = arith.mulf %242, %239 : vector<128x128xf32>
    %244 = arith.select %241, %239, %243 : vector<128x128xi1>, vector<128x128xf32>
    %245 = arith.truncf %244 : vector<128x128xf32> to vector<128x128xbf16>
    %cst_99 = arith.constant dense<0.000000e+00> : vector<128x128xf32>
    %246 = tpu.matmul %245, %4, %cst_99 {dimension_numbers = #tpu.dot_dimension_numbers<[1], [0], [0], [1], [0, 0, 1, 1], [], []>} : vector<128x128xbf16>, vector<128x128xbf16>, vector<128x128xf32> -> vector<128x128xf32>
    %247 = vector.broadcast %5 : vector<1x128xf32> to vector<128x128xf32>
    %248 = arith.addf %246, %247 : vector<128x128xf32>
    %cst_100 = arith.constant 0.000000e+00 : f32
    %249 = vector.broadcast %cst_100 : f32 to vector<128x128xf32>
    %250 = arith.cmpf ogt, %248, %249 : vector<128x128xf32>
    %cst_101 = arith.constant 2.000000e-01 : f32
    %251 = vector.broadcast %cst_101 : f32 to vector<128x128xf32>
    %252 = arith.mulf %251, %248 : vector<128x128xf32>
    %253 = arith.select %250, %248, %252 : vector<128x128xi1>, vector<128x128xf32>
    %cst_102 = arith.constant dense<0.000000e+00> : vector<8x128xf32>
    %254 = tpu.matmul %6, %253, %cst_102 {dimension_numbers = #tpu.dot_dimension_numbers<[1], [1], [0], [0], [0, 0, 1, 0], [], []>} : vector<8x128xf32>, vector<128x128xf32>, vector<8x128xf32> -> vector<8x128xf32>
    %255 = vector.extract_strided_slice %254 {offsets = [0, 0], sizes = [1, 128], strides = [1, 1]} : vector<8x128xf32> to vector<1x128xf32>
    %256 = vector.broadcast %7 : vector<1x1xf32> to vector<1x128xf32>
    %257 = arith.addf %255, %256 : vector<1x128xf32>
    %258 = arith.index_cast %c6_i32 : i32 to index
    %c0_103 = arith.constant 0 : index
    %259 = vector.load %arg10[%258, %c0_103] : memref<8x128xf32, #tpu.memory_space<vmem>>, vector<1x128xf32>
    tpu.vector_store %arg10[%258, %c0_103], %257 {strides = array<i32>} : memref<8x128xf32, #tpu.memory_space<vmem>>, vector<1x128xf32>,
    %c7_i32 = arith.constant 7 : i32
    %c128_i32_104 = arith.constant 128 : i32
    %260 = arith.muli %c7_i32, %c128_i32_104 : i32
    %261 = tpu.assume_multiple %260, 128 : i32
    %262 = arith.index_cast %261 : i32 to index
    %c0_105 = arith.constant 0 : index
    %263 = vector.load %arg1[%262, %c0_105] : memref<1024x128xbf16, #tpu.memory_space<vmem>>, vector<128x128xbf16>
    %cst_106 = arith.constant dense<0.000000e+00> : vector<128x256xf32>
    %264 = tpu.matmul %263, %0, %cst_106 {dimension_numbers = #tpu.dot_dimension_numbers<[1], [0], [0], [1], [0, 0, 1, 1], [], []>} : vector<128x128xbf16>, vector<128x256xbf16>, vector<128x256xf32> -> vector<128x256xf32>
    %265 = vector.broadcast %1 : vector<1x256xf32> to vector<128x256xf32>
    %266 = arith.addf %264, %265 : vector<128x256xf32>
    %cst_107 = arith.constant 0.000000e+00 : f32
    %267 = vector.broadcast %cst_107 : f32 to vector<128x256xf32>
    %268 = arith.cmpf ogt, %266, %267 : vector<128x256xf32>
    %cst_108 = arith.constant 2.000000e-01 : f32
    %269 = vector.broadcast %cst_108 : f32 to vector<128x256xf32>
    %270 = arith.mulf %269, %266 : vector<128x256xf32>
    %271 = arith.select %268, %266, %270 : vector<128x256xi1>, vector<128x256xf32>
    %272 = arith.truncf %271 : vector<128x256xf32> to vector<128x256xbf16>
    %cst_109 = arith.constant dense<0.000000e+00> : vector<128x128xf32>
    %273 = tpu.matmul %272, %2, %cst_109 {dimension_numbers = #tpu.dot_dimension_numbers<[1], [0], [0], [1], [0, 0, 1, 1], [], []>} : vector<128x256xbf16>, vector<256x128xbf16>, vector<128x128xf32> -> vector<128x128xf32>
    %274 = vector.broadcast %3 : vector<1x128xf32> to vector<128x128xf32>
    %275 = arith.addf %273, %274 : vector<128x128xf32>
    %cst_110 = arith.constant 0.000000e+00 : f32
    %276 = vector.broadcast %cst_110 : f32 to vector<128x128xf32>
    %277 = arith.cmpf ogt, %275, %276 : vector<128x128xf32>
    %cst_111 = arith.constant 2.000000e-01 : f32
    %278 = vector.broadcast %cst_111 : f32 to vector<128x128xf32>
    %279 = arith.mulf %278, %275 : vector<128x128xf32>
    %280 = arith.select %277, %275, %279 : vector<128x128xi1>, vector<128x128xf32>
    %281 = arith.truncf %280 : vector<128x128xf32> to vector<128x128xbf16>
    %cst_112 = arith.constant dense<0.000000e+00> : vector<128x128xf32>
    %282 = tpu.matmul %281, %4, %cst_112 {dimension_numbers = #tpu.dot_dimension_numbers<[1], [0], [0], [1], [0, 0, 1, 1], [], []>} : vector<128x128xbf16>, vector<128x128xbf16>, vector<128x128xf32> -> vector<128x128xf32>
    %283 = vector.broadcast %5 : vector<1x128xf32> to vector<128x128xf32>
    %284 = arith.addf %282, %283 : vector<128x128xf32>
    %cst_113 = arith.constant 0.000000e+00 : f32
    %285 = vector.broadcast %cst_113 : f32 to vector<128x128xf32>
    %286 = arith.cmpf ogt, %284, %285 : vector<128x128xf32>
    %cst_114 = arith.constant 2.000000e-01 : f32
    %287 = vector.broadcast %cst_114 : f32 to vector<128x128xf32>
    %288 = arith.mulf %287, %284 : vector<128x128xf32>
    %289 = arith.select %286, %284, %288 : vector<128x128xi1>, vector<128x128xf32>
    %cst_115 = arith.constant dense<0.000000e+00> : vector<8x128xf32>
    %290 = tpu.matmul %6, %289, %cst_115 {dimension_numbers = #tpu.dot_dimension_numbers<[1], [1], [0], [0], [0, 0, 1, 0], [], []>} : vector<8x128xf32>, vector<128x128xf32>, vector<8x128xf32> -> vector<8x128xf32>
    %291 = vector.extract_strided_slice %290 {offsets = [0, 0], sizes = [1, 128], strides = [1, 1]} : vector<8x128xf32> to vector<1x128xf32>
    %292 = vector.broadcast %7 : vector<1x1xf32> to vector<1x128xf32>
    %293 = arith.addf %291, %292 : vector<1x128xf32>
    %294 = arith.index_cast %c7_i32 : i32 to index
    %c0_116 = arith.constant 0 : index
    %295 = vector.load %arg10[%294, %c0_116] : memref<8x128xf32, #tpu.memory_space<vmem>>, vector<1x128xf32>
    tpu.vector_store %arg10[%294, %c0_116], %293 {strides = array<i32>} : memref<8x128xf32, #tpu.memory_space<vmem>>, vector<1x128xf32>,
    %c8_i32 = arith.constant 8 : i32
    return
  }
  func.func @transform_0(%arg0: i32) -> (i32, i32) {
    %c0_i32 = arith.constant 0 : i32
    %c0_i32_0 = arith.constant 0 : i32
    return %arg0, %c0_i32 : i32, i32
  }
  func.func @transform_1(%arg0: i32) -> (i32, i32) {
    %c0_i32 = arith.constant 0 : i32
    %c0_i32_0 = arith.constant 0 : i32
    %c0_i32_1 = arith.constant 0 : i32
    return %c0_i32, %c0_i32_0 : i32, i32
  }
  func.func @transform_2(%arg0: i32) -> (i32, i32) {
    %c0_i32 = arith.constant 0 : i32
    %c0_i32_0 = arith.constant 0 : i32
    %c0_i32_1 = arith.constant 0 : i32
    return %c0_i32, %c0_i32_0 : i32, i32
  }
  func.func @transform_3(%arg0: i32) -> (i32, i32) {
    %c0_i32 = arith.constant 0 : i32
    %c0_i32_0 = arith.constant 0 : i32
    %c0_i32_1 = arith.constant 0 : i32
    return %c0_i32, %c0_i32_0 : i32, i32
  }
  func.func @transform_4(%arg0: i32) -> (i32, i32) {
    %c0_i32 = arith.constant 0 : i32
    %c0_i32_0 = arith.constant 0 : i32
    %c0_i32_1 = arith.constant 0 : i32
    return %c0_i32, %c0_i32_0 : i32, i32
  }
  func.func @transform_5(%arg0: i32) -> (i32, i32) {
    %c0_i32 = arith.constant 0 : i32
    %c0_i32_0 = arith.constant 0 : i32
    %c0_i32_1 = arith.constant 0 : i32
    return %c0_i32, %c0_i32_0 : i32, i32
  }
  func.func @transform_6(%arg0: i32) -> (i32, i32) {
    %c0_i32 = arith.constant 0 : i32
    %c0_i32_0 = arith.constant 0 : i32
    %c0_i32_1 = arith.constant 0 : i32
    return %c0_i32, %c0_i32_0 : i32, i32
  }
  func.func @transform_7(%arg0: i32) -> (i32, i32) {
    %c0_i32 = arith.constant 0 : i32
    %c0_i32_0 = arith.constant 0 : i32
    %c0_i32_1 = arith.constant 0 : i32
    return %c0_i32, %c0_i32_0 : i32, i32
  }
  func.func @transform_8(%arg0: i32) -> (i32, i32) {
    %c0_i32 = arith.constant 0 : i32
    %c0_i32_0 = arith.constant 0 : i32
    %c0_i32_1 = arith.constant 0 : i32
    return %c0_i32, %c0_i32_0 : i32, i32
  }
  func.func @transform_9(%arg0: i32) -> (i32, i32) {
    %c0_i32 = arith.constant 0 : i32
    %c0_i32_0 = arith.constant 0 : i32
    return %arg0, %c0_i32 : i32, i32
  }
}

</mosaic_0001>

<bundles_post_ra>
// kernel: tpu_custom_call.1
= control target key start
LH: loop header
LB: loop body
LE: loop exit
PB: predicated region body
PF: predicated region fallthrough
CT: control target
= control target key end

     0   :  { %s9824_s0 = inlined_call_operand.hbm [shape: bf16[1024,128], index: 0, kind: input, shape index: {}]   ;;  %s9825_s1 = inlined_call_operand.hbm [shape: bf16[128,256], index: 1, kind: input, shape index: {}]   ;;  %s9826_s2 = inlined_call_operand.vmem [shape: f32[1,256], index: 2, kind: input, shape index: {}]   ;;  %s9827_s3 = inlined_call_operand.hbm [shape: bf16[256,128], index: 3, kind: input, shape index: {}]   ;;  %s9828_s4 = inlined_call_operand.vmem [shape: f32[1,128], index: 4, kind: input, shape index: {}]   ;;  %s9829_s5 = inlined_call_operand.hbm [shape: bf16[128,128], index: 5, kind: input, shape index: {}]   ;;  %s9830_s6 = inlined_call_operand.vmem [shape: f32[1,128], index: 6, kind: input, shape index: {}]   ;;  %s9831_s7 = inlined_call_operand.vmem [shape: f32[8,128], index: 7, kind: input, shape index: {}]   ;;  %s9832_s8 = inlined_call_operand.<no memory space> [shape: f32[1,1], index: 8, kind: input, shape index: {}]   ;;  %s9833_s9 = inlined_call_operand.hbm [shape: f32[8,128], index: 9, kind: output, shape index: {}]  }
   0x1   :  { %v14_v0 = vstv %s9832_s8 }
   0x2   :  { %15 = vst [vmem:[#allocation2] sm:$0x1] %v14_v0 }
   0x3   :  { %16 = vsyncpa [#allocation4], 0 }
   0x4   :  { %17 = vsyncpa [#allocation7], 0 }
   0x5   :  { %18 = vsyncpa [#allocation10], 0 }
   0x6   :  { %19 = vsyncpa [#allocation5], 0  ;;  %s7736_s11 = smov [#allocation6]   ;;  %s7618_s15 = scalar_lea.hbm %s9825_s1, 2048 }
   0x7   :  { %s37_s12 = sshll.u32 %s7736_s11, 4  ;;  %p7619_p0 = scmp.ne.s32.totalorder %s9825_s1, %s7618_s15  ;;  %s38_s12 = int_to_ptr.vmem [resolvable:$true] %s37_s12 }
   0x8   :  { %p7622_p1 = scmp.lt.u32.totalorder %s7618_s15, %s9825_s1 }
   0xa   :  { %p7624_p2 = pnand %p7622_p1, %p7619_p0 }
   0xc   :  { %7627 = shalt.err (!%p7624_p2)
}
   0xd   :  { %s7628_s8 = scalar_lea.vmem %s38_s12, 2048  ;;  %p7633_p4 = scmp.lt.s32.totalorder %s38_s12, %s38_s12 }
   0xe   :  { %p7629_p3 = scmp.ne.s32.totalorder %s38_s12, %s7628_s8  ;;  %p7634_p5 = scmp.lt.s32.totalorder %s7628_s8, %s7628_s8 }
  0x10   :  { %p7635_p6 = por %p7634_p5, %p7633_p4 }
  0x12   :  { %p7636_p7 = pnand %p7635_p6, %p7629_p3 }
  0x14   :  { %7639 = shalt.err (!%p7636_p7)
}
  0x15   :  { %s7737_s20 = smov 128   ;;  %s7738_s21 = smov 8  }
  0x16   :  { %43 = dma.hbm_to_vmem [thread:$0]  %s9825_s1, 2048, %s38_s12, [#allocation7], %s7737_s20, %s7737_s20, %s7738_s21  }
  0x17   :  { %s7739_s24 = smov [#allocation3]   ;;  %s7640_s28 = scalar_lea.hbm %s9824_s0, 8192 }
  0x18   :  { %s25_s25 = sshll.u32 %s7739_s24, 4  ;;  %p7641_p8 = scmp.ne.s32.totalorder %s9824_s0, %s7640_s28  ;;  %s26_s25 = int_to_ptr.vmem [resolvable:$true] %s25_s25 }
  0x19   :  { %p7644_p9 = scmp.lt.u32.totalorder %s7640_s28, %s9824_s0 }
  0x1b   :  { %p7646_p10 = pnand %p7644_p9, %p7641_p8 }
  0x1d   :  { %7649 = shalt.err (!%p7646_p10)
}
  0x1e   :  { %s7650_s13 = scalar_lea.vmem %s26_s25, 8192  ;;  %p7655_p12 = scmp.lt.s32.totalorder %s26_s25, %s26_s25 }
  0x1f   :  { %p7651_p11 = scmp.ne.s32.totalorder %s26_s25, %s7650_s13  ;;  %p7656_p13 = scmp.lt.s32.totalorder %s7650_s13, %s7650_s13 }
  0x21   :  { %p7657_p0 = por %p7656_p13, %p7655_p12 }
  0x23   :  { %p7658_p1 = pnand %p7657_p0, %p7651_p11 }
  0x25   :  { %7661 = shalt.err (!%p7658_p1)
}
  0x26   :  { %s7740_s1 = smov 64   ;;  %s7741_s12 = smov 4  }
  0x27   :  { %31 = dma.hbm_to_vmem [thread:$0]  %s9824_s0, 8192, %s26_s25, [#allocation4], %s7740_s1, %s7740_s1, %s7741_s12  }
  0x28   :  { %s7742_s16 = smov [#allocation8]   ;;  %s7743_s18 = smov [#allocation9]  }
  0x29   :  { %s51_s17 = sshll.u32 %s7742_s16, 4  ;;  %s65_s19 = sshll.u32 %s7743_s18, 4  ;;  %s52_s17 = int_to_ptr.vmem [resolvable:$true] %s51_s17  ;;  %s7829_s19 = int_to_ptr.vmem [resolvable:$true] %s65_s19 }
  0x2a   :  { %s7662_s21 = scalar_lea.hbm %s9827_s3, 2048 }
  0x2b   :  { %p7663_p2 = scmp.ne.s32.totalorder %s9827_s3, %s7662_s21  ;;  %p7666_p3 = scmp.lt.u32.totalorder %s7662_s21, %s9827_s3 }
  0x2d   :  { %p7668_p4 = pnand %p7666_p3, %p7663_p2 }
  0x2f   :  { %7671 = shalt.err (!%p7668_p4)
}
  0x30   :  { %s7672_s0 = scalar_lea.vmem %s52_s17, 2048  ;;  %p7677_p6 = scmp.lt.s32.totalorder %s52_s17, %s52_s17 }
  0x31   :  { %p7673_p5 = scmp.ne.s32.totalorder %s52_s17, %s7672_s0  ;;  %p7678_p7 = scmp.lt.s32.totalorder %s7672_s0, %s7672_s0 }
  0x33   :  { %p7679_p8 = por %p7678_p7, %p7677_p6 }
  0x35   :  { %p7680_p9 = pnand %p7679_p8, %p7673_p5 }
  0x37   :  { %7683 = shalt.err (!%p7680_p9)
}
  0x38   :  { %57 = dma.hbm_to_vmem [thread:$0]  %s9827_s3, 2048, %s52_s17, [#allocation7], %s7740_s1, %s7740_s1, %s7741_s12  }
  0x39   :  { %s7684_s30 = scalar_lea.hbm %s9829_s5, 1024 }
  0x3a   :  { %p7685_p10 = scmp.ne.s32.totalorder %s9829_s5, %s7684_s30  ;;  %p7688_p11 = scmp.lt.u32.totalorder %s7684_s30, %s9829_s5 }
  0x3c   :  { %p7690_p12 = pnand %p7688_p11, %p7685_p10 }
  0x3e   :  { %7693 = shalt.err (!%p7690_p12)
}
  0x3f   :  { %s7694_s15 = scalar_lea.vmem %s7829_s19, 1024  ;;  %p7699_p0 = scmp.lt.s32.totalorder %s7829_s19, %s7829_s19 }
  0x40   :  { %p7695_p13 = scmp.ne.s32.totalorder %s7829_s19, %s7694_s15  ;;  %p7700_p1 = scmp.lt.s32.totalorder %s7694_s15, %s7694_s15 }
  0x42   :  { %p7701_p2 = por %p7700_p1, %p7699_p0 }
  0x44   :  { %p7702_p3 = pnand %p7701_p2, %p7695_p13 }
  0x46   :  { %7705 = shalt.err (!%p7702_p3)
}
  0x47   :  { %71 = dma.hbm_to_vmem [thread:$0]  %s9829_s5, 1024, %s7829_s19, [#allocation10], %s7740_s1, %s7740_s1, %s7741_s12  }
  0x48   :  { %7728 = dma.done.wait [#allocation4], 8192  }
  0x49   :  { %7729 = vsyncadd [#allocation4], 4294959104 }
  0x4a   :  { %7730 = dma.done.wait [#allocation7], 4096  }
  0x4b   :  { %7731 = vsyncadd [#allocation7], 4294963200 }
  0x4c   :  { %7732 = dma.done.wait [#allocation10], 1024  }
  0x4d   :  { %7733 = vsyncadd [#allocation10], 4294966272  ;;  %v9834_v1 = vmov 0   ;;  %v7868_v2 = vld [vmem:[#allocation6 + $0x4] ss:$8 sps:$4 sm:$0xff]   ;;  %v7372_v20 = vld [vmem:[#allocation8 + $0x50] sm:$0xff]   ;;  %v177_v48 = vlaneseq }
  0x4e   :  { %347 = vmatprep.mubr.bf16.mxu0 %v9834_v1  ;;  %7335 = vset.pattern.permute.xlu0 %v9834_v1  ;;  %v7338_v3 = vld [vmem:[#allocation6] ss:$8 sps:$4 sm:$0xff]   ;;  %v7339_v4 = vld [vmem:[#allocation6 + $0x14] ss:$8 sps:$4 sm:$0xff]   ;;  %v7341_v5 = vld [vmem:[#allocation6 + $0x10] ss:$8 sps:$4 sm:$0xff]  }
  0x4f   :  { %315 = vmatprep.subr.bf16.mxu0 %v7868_v2  ;;  %v7342_v6 = vld [vmem:[#allocation6 + $0x24] ss:$8 sps:$4 sm:$0xff]   ;;  %v7344_v7 = vld [vmem:[#allocation6 + $0x20] ss:$8 sps:$4 sm:$0xff]   ;;  %v7345_v8 = vld [vmem:[#allocation6 + $0x34] ss:$8 sps:$4 sm:$0xff]  }
  0x50   :  { %316 = vmatpush1.bf16.msra.mxu0 %v7338_v3  ;;  %v7347_v9 = vld [vmem:[#allocation6 + $0x30] ss:$8 sps:$4 sm:$0xff]   ;;  %v7348_v10 = vld [vmem:[#allocation6 + $0x44] ss:$8 sps:$4 sm:$0xff]   ;;  %v7350_v11 = vld [vmem:[#allocation6 + $0x40] ss:$8 sps:$4 sm:$0xff]  }
  0x51   :  { %317 = vmatprep.subr.bf16.mxu0 %v7339_v4  ;;  %v7351_v12 = vld [vmem:[#allocation6 + $0x54] ss:$8 sps:$4 sm:$0xff]   ;;  %v7353_v13 = vld [vmem:[#allocation6 + $0x50] ss:$8 sps:$4 sm:$0xff]   ;;  %v7354_v14 = vld [vmem:[#allocation6 + $0x64] ss:$8 sps:$4 sm:$0xff]  }
  0x52   :  { %v7368_v15 = vld [vmem:[#allocation8 + $0x40] sm:$0xff]   ;;  %v7370_v18 = vld [vmem:[#allocation8 + $0x48] sm:$0xff]   ;;  %v7357_v21 = vld [vmem:[#allocation6 + $0x74] ss:$8 sps:$4 sm:$0xff]   ;;  %v7902_v49 = vshrl.u32 %v177_v48, 7  ;;  %s7748_s26 = smov [#allocation11]  }
  0x53   :  { %v7369_v16 = vld [vmem:[#allocation8] sm:$0xff]   ;;  %5818 = vmatprep.subr.bf16.mxu1 %v7368_v15  ;;  %v7371_v19 = vld [vmem:[#allocation8 + $0x8] sm:$0xff]   ;;  %v7359_v22 = vld [vmem:[#allocation6 + $0x70] ss:$8 sps:$4 sm:$0xff]   ;;  %s5701_s0 = sshll.u32 %s7748_s26, 4  ;;  %s5702_s0 = int_to_ptr.vmem [resolvable:$true] %s5701_s0 }
  0x54   :  { %318 = vmatpush1.bf16.msra.mxu0 %v7341_v5  ;;  %v7356_v17 = vld [vmem:[#allocation6 + $0x60] ss:$8 sps:$4 sm:$0xff]   ;;  %5819 = vmatpush3.bf16.msra.mxu1 %v7369_v16  ;;  %v7373_v23 = vld [vmem:[#allocation8 + $0x10] sm:$0xff]   ;;  %v7374_v24 = vld [vmem:[#allocation8 + $0x58] sm:$0xff]   ;;  %v9836_v50 = vsub.s32 0, %v7902_v49  ;;  %v183_v52 = vsub.s32 1, %v7902_v49  ;;  %p7711_p5 = scmp.lt.s32.totalorder %s5702_s0, %s5702_s0 }
  0x55   :  { %319 = vmatprep.subr.bf16.mxu0 %v7342_v6  ;;  %5820 = vmatprep.subr.bf16.mxu1 %v7370_v18  ;;  %v7360_v25 = vld [vmem:[#allocation3] sm:$0xff]   ;;  %v7375_v26 = vld [vmem:[#allocation8 + $0x18] sm:$0xff]   ;;  %v7361_v29 = vld [vmem:[#allocation3 + $0x8] sm:$0xff]   ;;  %s7706_s25 = scalar_lea.vmem %s5702_s0, 128 }
  0x56   :  { %v7376_v27 = vld [vmem:[#allocation8 + $0x60] sm:$0xff]   ;;  %v7362_v30 = vld [vmem:[#allocation3 + $0x10] sm:$0xff]   ;;  %v7363_v31 = vld [vmem:[#allocation3 + $0x18] sm:$0xff]   ;;  %p7707_p4 = scmp.ne.s32.totalorder %s5702_s0, %s7706_s25  ;;  %p7712_p6 = scmp.lt.s32.totalorder %s7706_s25, %s7706_s25 }
  0x57   :  { %v7377_v28 = vld [vmem:[#allocation8 + $0x20] sm:$0xff]   ;;  %v7365_v33 = vld [vmem:[#allocation3 + $0x28] sm:$0xff]   ;;  %v7366_v34 = vld [vmem:[#allocation3 + $0x30] sm:$0xff]  }
  0x58   :  { %320 = vmatpush1.bf16.msra.mxu0 %v7344_v7  ;;  %5821 = vmatpush3.bf16.msra.mxu1 %v7371_v19  ;;  %v7364_v32 = vld [vmem:[#allocation3 + $0x20] sm:$0xff]   ;;  %v7367_v35 = vld [vmem:[#allocation3 + $0x38] sm:$0xff]   ;;  %v7378_v36 = vld [vmem:[#allocation8 + $0x68] sm:$0xff]   ;;  %p7713_p7 = por %p7712_p6, %p7711_p5 }
  0x59   :  { %321 = vmatprep.subr.bf16.mxu0 %v7345_v8  ;;  %5822 = vmatprep.subr.bf16.mxu1 %v7372_v20  ;;  %v7379_v37 = vld [vmem:[#allocation8 + $0x28] sm:$0xff]   ;;  %v7380_v38 = vld [vmem:[#allocation8 + $0x70] sm:$0xff]   ;;  %v7382_v40 = vld [vmem:[#allocation8 + $0x78] sm:$0xff]  }
  0x5a   :  { %v7381_v39 = vld [vmem:[#allocation8 + $0x30] sm:$0xff]   ;;  %v7383_v41 = vld [vmem:[#allocation8 + $0x38] sm:$0xff]   ;;  %v7878_v42 = vld [vmem:[#allocation9] sm:$0xff]   ;;  %p7714_p8 = pnand %p7713_p7, %p7707_p4 }
  0x5b   :  { %v7880_v43 = vld [vmem:[#allocation9 + $0x8] sm:$0xff]   ;;  %v7885_v44 = vld [vmem:[#allocation9 + $0x10] sm:$0xff]   ;;  %v7889_v45 = vld [vmem:[#allocation9 + $0x18] sm:$0xff]  }
  0x5c   :  { %322 = vmatpush1.bf16.msra.mxu0 %v7347_v9  ;;  %5823 = vmatpush3.bf16.msra.mxu1 %v7373_v23  ;;  %v7893_v46 = vld [vmem:[#allocation9 + $0x20] sm:$0xff]   ;;  %v7897_v47 = vld [vmem:[#allocation9 + $0x28] sm:$0xff]  }
  0x5d   :  { %323 = vmatprep.subr.bf16.mxu0 %v7348_v10  ;;  %5824 = vmatprep.subr.bf16.mxu1 %v7374_v24  ;;  %v107_v51 = vld [vmem:[%s9826_s2] sm:$0x3] }
  0x5e   :  { %v7911_v53 = vrot.slane %v107_v51, %v9836_v50  ;;  %v7913_v54 = vrot.slane %v107_v51, %v183_v52 }
  0x60   :  { %324 = vmatpush1.bf16.msra.mxu0 %v7350_v11  ;;  %5825 = vmatpush3.bf16.msra.mxu1 %v7375_v26 }
  0x61   :  { %325 = vmatprep.subr.bf16.mxu0 %v7351_v12  ;;  %5826 = vmatprep.subr.bf16.mxu1 %v7376_v27 }
  0x64   :  { %326 = vmatpush1.bf16.msra.mxu0 %v7353_v13  ;;  %5827 = vmatpush3.bf16.msra.mxu1 %v7377_v28 }
  0x65   :  { %327 = vmatprep.subr.bf16.mxu0 %v7354_v14  ;;  %5828 = vmatprep.subr.bf16.mxu1 %v7378_v36 }
  0x68   :  { %328 = vmatpush1.bf16.msra.mxu0 %v7356_v17  ;;  %5829 = vmatpush3.bf16.msra.mxu1 %v7379_v37 }
  0x69   :  { %329 = vmatprep.subr.bf16.mxu0 %v7357_v21  ;;  %5830 = vmatprep.subr.bf16.mxu1 %v7380_v38 }
  0x6c   :  { %330 = vmatpush1.bf16.msra.mxu0 %v7359_v22  ;;  %5831 = vmatpush3.bf16.msra.mxu1 %v7381_v39 }
  0x6d   :  { %5832 = vmatprep.subr.bf16.mxu1 %v7382_v40  ;;  %6594 = vmatprep.subr.bf16.mxu0 %v7878_v42 }
  0x6f   :  { %348 = vmatmul.mubr.bf16.vlgmr.msra.gmra.mrb[0].mxu0 %v7360_v25 }
  0x70   :  { %357 = vmatprep.mubr.bf16.mxu0 %v9834_v1  ;;  %5833 = vmatpush3.bf16.msra.mxu1 %v7383_v41 }
  0x71   :  { %6595 = vmatpush3.bf16.msra.mxu0 %v7878_v42 }
  0x72   :  { %6596 = vmatprep.subr.bf16.mxu0 %v7880_v43 }
  0x75   :  { %6597 = vmatpush3.bf16.msra.mxu0 %v7880_v43 }
  0x76   :  { %6598 = vmatprep.subr.bf16.mxu0 %v7885_v44 }
  0x77   :  { %358 = vmatmul.mubr.bf16.gmra.mrb[4].mxu0 %v7361_v29 }
  0x78   :  { %367 = vmatprep.mubr.bf16.mxu0 %v9834_v1 }
  0x79   :  { %6599 = vmatpush3.bf16.msra.mxu0 %v7885_v44 }
  0x7a   :  { %6600 = vmatprep.subr.bf16.mxu0 %v7889_v45 }
  0x7d   :  { %6601 = vmatpush3.bf16.msra.mxu0 %v7889_v45 }
  0x7e   :  { %6602 = vmatprep.subr.bf16.mxu0 %v7893_v46 }
  0x7f   :  { %368 = vmatmul.mubr.bf16.gmra.mrb[8].mxu0 %v7362_v30 }
  0x80   :  { %377 = vmatprep.mubr.bf16.mxu0 %v9834_v1 }
  0x81   :  { %6603 = vmatpush3.bf16.msra.mxu0 %v7893_v46 }
  0x82   :  { %6604 = vmatprep.subr.bf16.mxu0 %v7897_v47 }
  0x85   :  { %6605 = vmatpush3.bf16.msra.mxu0 %v7897_v47 }
  0x87   :  { %378 = vmatmul.mubr.bf16.gmra.mrb[12].mxu0 %v7363_v31 }
  0x88   :  { %387 = vmatprep.mubr.bf16.mxu0 %v9834_v1 }
  0x8f   :  { %388 = vmatmul.mubr.bf16.gmra.mrb[16].mxu0 %v7364_v32 }
  0x90   :  { %397 = vmatprep.mubr.bf16.mxu0 %v9834_v1 }
  0x97   :  { %398 = vmatmul.mubr.bf16.gmra.mrb[20].mxu0 %v7365_v33 }
  0x98   :  { %407 = vmatprep.mubr.bf16.mxu0 %v9834_v1 }
  0x9f   :  { %408 = vmatmul.mubr.bf16.gmra.mrb[24].mxu0 %v7366_v34 }
  0xa0   :  { %417 = vmatprep.mubr.bf16.mxu0 %v9834_v1 }
  0xa7   :  { %418 = vmatmul.mubr.bf16.gmra.mrb[28].mxu0 %v7367_v35 }
 0x142   :  { %v349_v55 = vpop.f32.mrb[0].mxu0 }
 0x143   :  { %v350_v56 = vadd.f32 %v349_v55, %v7911_v53  ;;  %v351_v57 = vpop.f32.mrb[1].mxu0 }
 0x144   :  { %v352_v58 = vadd.f32 %v351_v57, %v7913_v54  ;;  %v353_v59 = vpop.f32.mrb[2].mxu0 }
 0x145   :  { %v460_v60 = vmul.f32 0.2, %v350_v56  ;;  %v354_v61 = vadd.f32 %v353_v59, %v7911_v53  ;;  %v355_v62 = vpop.f32.mrb[3].mxu0  ;;  %vm428_vm0 = vcmp.gt.f32.partialorder %v350_v56, 0.0 }
 0x146   :  { %v356_v63 = vadd.f32 %v355_v62, %v7913_v54  ;;  %v461_v0 = vmul.f32 0.2, %v352_v58  ;;  %vm429_vm1 = vcmp.gt.f32.partialorder %v352_v58, 0.0 }
 0x147   :  { %v462_v3 = vmul.f32 0.2, %v354_v61  ;;  %vm430_vm2 = vcmp.gt.f32.partialorder %v354_v61, 0.0  ;;  %v492_v5 = vsel %vm428_vm0, %v350_v56, %v460_v60 }
 0x148   :  { %vm431_vm3 = vcmp.gt.f32.partialorder %v356_v63, 0.0  ;;  %v463_v4 = vmul.f32 0.2, %v356_v63  ;;  %v493_v8 = vsel %vm429_vm1, %v352_v58, %v461_v0 }
 0x149   :  { %v494_v6 = vsel %vm430_vm2, %v354_v61, %v462_v3 }
 0x14a   :  { %v359_v7 = vpop.f32.mrb[4].mxu0  ;;  %v495_v9 = vsel %vm431_vm3, %v356_v63, %v463_v4  ;;  %v524_v10 = vpack.c.bf16 %v494_v6, %v492_v5 }
 0x14b   :  { %v360_v11 = vadd.f32 %v359_v7, %v7911_v53  ;;  %v361_v12 = vpop.f32.mrb[5].mxu0  ;;  %v525_v13 = vpack.c.bf16 %v495_v9, %v493_v8 }
 0x14c   :  { %v362_v14 = vadd.f32 %v361_v12, %v7913_v54  ;;  %v363_v15 = vpop.f32.mrb[6].mxu0 }
 0x14d   :  { %v464_v16 = vmul.f32 0.2, %v360_v11  ;;  %v364_v17 = vadd.f32 %v363_v15, %v7911_v53  ;;  %v365_v18 = vpop.f32.mrb[7].mxu0  ;;  %674 = vmatprep.mubr.bf16.mxu1 %v525_v13  ;;  %vm432_vm4 = vcmp.gt.f32.partialorder %v360_v11, 0.0 }
 0x14e   :  { %v465_v19 = vmul.f32 0.2, %v362_v14  ;;  %v366_v20 = vadd.f32 %v365_v18, %v7913_v54  ;;  %675 = vmatmul.mubr.bf16.vlgmr.msra.gmra.mrb[0].mxu1 %v524_v10  ;;  %vm433_vm5 = vcmp.gt.f32.partialorder %v362_v14, 0.0 }
 0x14f   :  { %v466_v21 = vmul.f32 0.2, %v364_v17  ;;  %vm434_vm6 = vcmp.gt.f32.partialorder %v364_v17, 0.0  ;;  %v496_v23 = vsel %vm432_vm4, %v360_v11, %v464_v16 }
 0x150   :  { %v467_v22 = vmul.f32 0.2, %v366_v20  ;;  %vm435_vm7 = vcmp.gt.f32.partialorder %v366_v20, 0.0  ;;  %v497_v26 = vsel %vm433_vm5, %v362_v14, %v465_v19 }
 0x151   :  { %v498_v24 = vsel %vm434_vm6, %v364_v17, %v466_v21 }
 0x152   :  { %v369_v25 = vpop.f32.mrb[8].mxu0  ;;  %v499_v27 = vsel %vm435_vm7, %v366_v20, %v467_v22  ;;  %v526_v28 = vpack.c.bf16 %v498_v24, %v496_v23 }
 0x153   :  { %v370_v29 = vadd.f32 %v369_v25, %v7911_v53  ;;  %v371_v30 = vpop.f32.mrb[9].mxu0  ;;  %v527_v31 = vpack.c.bf16 %v499_v27, %v497_v26 }
 0x154   :  { %v372_v32 = vadd.f32 %v371_v30, %v7913_v54  ;;  %v373_v33 = vpop.f32.mrb[10].mxu0 }
 0x155   :  { %v468_v34 = vmul.f32 0.2, %v370_v29  ;;  %v374_v35 = vadd.f32 %v373_v33, %v7911_v53  ;;  %v375_v36 = vpop.f32.mrb[11].mxu0  ;;  %682 = vmatprep.mubr.bf16.mxu1 %v527_v31  ;;  %vm436_vm8 = vcmp.gt.f32.partialorder %v370_v29, 0.0 }
 0x156   :  { %v469_v37 = vmul.f32 0.2, %v372_v32  ;;  %v376_v38 = vadd.f32 %v375_v36, %v7913_v54  ;;  %683 = vmatmul.mubr.bf16.gmra.mrb[4].mxu1 %v526_v28  ;;  %vm437_vm9 = vcmp.gt.f32.partialorder %v372_v32, 0.0 }
 0x157   :  { %v470_v39 = vmul.f32 0.2, %v374_v35  ;;  %vm438_vm10 = vcmp.gt.f32.partialorder %v374_v35, 0.0  ;;  %v500_v41 = vsel %vm436_vm8, %v370_v29, %v468_v34 }
 0x158   :  { %v471_v40 = vmul.f32 0.2, %v376_v38  ;;  %vm439_vm11 = vcmp.gt.f32.partialorder %v376_v38, 0.0  ;;  %v501_v52 = vsel %vm437_vm9, %v372_v32, %v469_v37 }
 0x159   :  { %v502_v48 = vsel %vm438_vm10, %v374_v35, %v470_v39 }
 0x15a   :  { %v379_v51 = vpop.f32.mrb[12].mxu0  ;;  %v503_v55 = vsel %vm439_vm11, %v376_v38, %v471_v40  ;;  %v528_v56 = vpack.c.bf16 %v502_v48, %v500_v41 }
 0x15b   :  { %v380_v57 = vadd.f32 %v379_v51, %v7911_v53  ;;  %v381_v58 = vpop.f32.mrb[13].mxu0  ;;  %v529_v59 = vpack.c.bf16 %v503_v55, %v501_v52 }
 0x15c   :  { %v382_v60 = vadd.f32 %v381_v58, %v7913_v54  ;;  %v383_v61 = vpop.f32.mrb[14].mxu0 }
 0x15d   :  { %v472_v62 = vmul.f32 0.2, %v380_v57  ;;  %v384_v63 = vadd.f32 %v383_v61, %v7911_v53  ;;  %v385_v0 = vpop.f32.mrb[15].mxu0  ;;  %690 = vmatprep.mubr.bf16.mxu1 %v529_v59  ;;  %vm440_vm12 = vcmp.gt.f32.partialorder %v380_v57, 0.0 }
 0x15e   :  { %v473_v3 = vmul.f32 0.2, %v382_v60  ;;  %v386_v4 = vadd.f32 %v385_v0, %v7913_v54  ;;  %691 = vmatmul.mubr.bf16.gmra.mrb[8].mxu1 %v528_v56  ;;  %vm441_vm13 = vcmp.gt.f32.partialorder %v382_v60, 0.0 }
 0x15f   :  { %v474_v5 = vmul.f32 0.2, %v384_v63  ;;  %vm442_vm14 = vcmp.gt.f32.partialorder %v384_v63, 0.0  ;;  %v504_v7 = vsel %vm440_vm12, %v380_v57, %v472_v62 }
 0x160   :  { %v475_v6 = vmul.f32 0.2, %v386_v4  ;;  %vm443_vm15 = vcmp.gt.f32.partialorder %v386_v4, 0.0  ;;  %v505_v10 = vsel %vm441_vm13, %v382_v60, %v473_v3 }
 0x161   :  { %v506_v8 = vsel %vm442_vm14, %v384_v63, %v474_v5 }
 0x162   :  { %v389_v9 = vpop.f32.mrb[16].mxu0  ;;  %v507_v11 = vsel %vm443_vm15, %v386_v4, %v475_v6  ;;  %v530_v12 = vpack.c.bf16 %v506_v8, %v504_v7 }
 0x163   :  { %v390_v13 = vadd.f32 %v389_v9, %v7911_v53  ;;  %v391_v14 = vpop.f32.mrb[17].mxu0  ;;  %v531_v15 = vpack.c.bf16 %v507_v11, %v505_v10 }
 0x164   :  { %v392_v16 = vadd.f32 %v391_v14, %v7913_v54  ;;  %v393_v17 = vpop.f32.mrb[18].mxu0 }
 0x165   :  { %v476_v18 = vmul.f32 0.2, %v390_v13  ;;  %v394_v19 = vadd.f32 %v393_v17, %v7911_v53  ;;  %v395_v20 = vpop.f32.mrb[19].mxu0  ;;  %698 = vmatprep.mubr.bf16.mxu1 %v531_v15  ;;  %vm444_vm0 = vcmp.gt.f32.partialorder %v390_v13, 0.0 }
 0x166   :  { %v477_v21 = vmul.f32 0.2, %v392_v16  ;;  %v396_v22 = vadd.f32 %v395_v20, %v7913_v54  ;;  %699 = vmatmul.mubr.bf16.gmra.mrb[12].mxu1 %v530_v12  ;;  %vm445_vm1 = vcmp.gt.f32.partialorder %v392_v16, 0.0 }
 0x167   :  { %v478_v23 = vmul.f32 0.2, %v394_v19  ;;  %vm446_vm2 = vcmp.gt.f32.partialorder %v394_v19, 0.0  ;;  %v508_v25 = vsel %vm444_vm0, %v390_v13, %v476_v18 }
 0x168   :  { %v479_v24 = vmul.f32 0.2, %v396_v22  ;;  %vm447_vm3 = vcmp.gt.f32.partialorder %v396_v22, 0.0  ;;  %v509_v28 = vsel %vm445_vm1, %v392_v16, %v477_v21 }
 0x169   :  { %v510_v26 = vsel %vm446_vm2, %v394_v19, %v478_v23 }
 0x16a   :  { %v399_v27 = vpop.f32.mrb[20].mxu0  ;;  %v511_v29 = vsel %vm447_vm3, %v396_v22, %v479_v24  ;;  %v532_v30 = vpack.c.bf16 %v510_v26, %v508_v25 }
 0x16b   :  { %v400_v31 = vadd.f32 %v399_v27, %v7911_v53  ;;  %v401_v32 = vpop.f32.mrb[21].mxu0  ;;  %v533_v33 = vpack.c.bf16 %v511_v29, %v509_v28 }
 0x16c   :  { %v402_v34 = vadd.f32 %v401_v32, %v7913_v54  ;;  %v403_v35 = vpop.f32.mrb[22].mxu0 }
 0x16d   :  { %v480_v36 = vmul.f32 0.2, %v400_v31  ;;  %v404_v37 = vadd.f32 %v403_v35, %v7911_v53  ;;  %v405_v38 = vpop.f32.mrb[23].mxu0  ;;  %706 = vmatprep.mubr.bf16.mxu1 %v533_v33  ;;  %vm448_vm4 = vcmp.gt.f32.partialorder %v400_v31, 0.0  ;;  %v7947_v33 = vld [vmem:[#allocation9 + $0x30] sm:$0xff]  }
 0x16e   :  { %v481_v39 = vmul.f32 0.2, %v402_v34  ;;  %v406_v40 = vadd.f32 %v405_v38, %v7913_v54  ;;  %707 = vmatmul.mubr.bf16.gmra.mrb[16].mxu1 %v532_v30  ;;  %vm449_vm5 = vcmp.gt.f32.partialorder %v402_v34, 0.0  ;;  %6606 = vmatprep.subr.bf16.mxu0 %v7947_v33 }
 0x16f   :  { %v482_v41 = vmul.f32 0.2, %v404_v37  ;;  %vm450_vm6 = vcmp.gt.f32.partialorder %v404_v37, 0.0  ;;  %v512_v51 = vsel %vm448_vm4, %v400_v31, %v480_v36  ;;  %6607 = vmatpush3.bf16.msra.mxu0 %v7947_v33  ;;  %v7959_v36 = vld [vmem:[%s9828_s4] ss:$0 sm:$0xff] }
 0x170   :  { %v483_v48 = vmul.f32 0.2, %v406_v40  ;;  %vm451_vm7 = vcmp.gt.f32.partialorder %v406_v40, 0.0  ;;  %v513_v56 = vsel %vm449_vm5, %v402_v34, %v481_v39  ;;  %v7951_v34 = vld [vmem:[#allocation9 + $0x38] sm:$0xff]  }
 0x171   :  { %v514_v52 = vsel %vm450_vm6, %v404_v37, %v482_v41  ;;  %6608 = vmatprep.subr.bf16.mxu0 %v7951_v34 }
 0x172   :  { %v409_v55 = vpop.f32.mrb[24].mxu0  ;;  %v515_v57 = vsel %vm451_vm7, %v406_v40, %v483_v48  ;;  %v534_v58 = vpack.c.bf16 %v514_v52, %v512_v51 }
 0x173   :  { %v410_v59 = vadd.f32 %v409_v55, %v7911_v53  ;;  %v411_v60 = vpop.f32.mrb[25].mxu0  ;;  %v535_v61 = vpack.c.bf16 %v515_v57, %v513_v56  ;;  %6609 = vmatpush3.bf16.msra.mxu0 %v7951_v34 }
 0x174   :  { %v412_v62 = vadd.f32 %v411_v60, %v7913_v54  ;;  %v413_v63 = vpop.f32.mrb[26].mxu0  ;;  %1140 = vmatprep.subr.bf16.mxu0 %v7868_v2 }
 0x175   :  { %v484_v0 = vmul.f32 0.2, %v410_v59  ;;  %v414_v3 = vadd.f32 %v413_v63, %v7911_v53  ;;  %v415_v4 = vpop.f32.mrb[27].mxu0  ;;  %714 = vmatprep.mubr.bf16.mxu1 %v535_v61  ;;  %vm452_vm8 = vcmp.gt.f32.partialorder %v410_v59, 0.0 }
 0x176   :  { %v485_v5 = vmul.f32 0.2, %v412_v62  ;;  %v416_v6 = vadd.f32 %v415_v4, %v7913_v54  ;;  %715 = vmatmul.mubr.bf16.gmra.mrb[20].mxu1 %v534_v58  ;;  %vm453_vm9 = vcmp.gt.f32.partialorder %v412_v62, 0.0 }
 0x177   :  { %v486_v7 = vmul.f32 0.2, %v414_v3  ;;  %vm454_vm10 = vcmp.gt.f32.partialorder %v414_v3, 0.0  ;;  %v516_v9 = vsel %vm452_vm8, %v410_v59, %v484_v0 }
 0x178   :  { %v487_v8 = vmul.f32 0.2, %v416_v6  ;;  %vm455_vm11 = vcmp.gt.f32.partialorder %v416_v6, 0.0  ;;  %v517_v12 = vsel %vm453_vm9, %v412_v62, %v485_v5 }
 0x179   :  { %v518_v10 = vsel %vm454_vm10, %v414_v3, %v486_v7 }
 0x17a   :  { %v419_v11 = vpop.f32.mrb[28].mxu0  ;;  %v519_v13 = vsel %vm455_vm11, %v416_v6, %v487_v8  ;;  %v536_v14 = vpack.c.bf16 %v518_v10, %v516_v9 }
 0x17b   :  { %v420_v15 = vadd.f32 %v419_v11, %v7911_v53  ;;  %v421_v16 = vpop.f32.mrb[29].mxu0  ;;  %v537_v17 = vpack.c.bf16 %v519_v13, %v517_v12 }
 0x17c   :  { %v422_v18 = vadd.f32 %v421_v16, %v7913_v54  ;;  %v423_v19 = vpop.f32.mrb[30].mxu0 }
 0x17d   :  { %v488_v20 = vmul.f32 0.2, %v420_v15  ;;  %v424_v21 = vadd.f32 %v423_v19, %v7911_v53  ;;  %v425_v22 = vpop.f32.mrb[31].mxu0  ;;  %722 = vmatprep.mubr.bf16.mxu1 %v537_v17  ;;  %vm456_vm12 = vcmp.gt.f32.partialorder %v420_v15, 0.0  ;;  %v7449_v19 = vld [vmem:[#allocation6 + $0x14] ss:$8 sps:$4 sm:$0xff]  }
 0x17e   :  { %v489_v23 = vmul.f32 0.2, %v422_v18  ;;  %v426_v24 = vadd.f32 %v425_v22, %v7913_v54  ;;  %723 = vmatmul.mubr.bf16.gmra.mrb[24].mxu1 %v536_v14  ;;  %vm457_vm13 = vcmp.gt.f32.partialorder %v422_v18, 0.0 }
 0x17f   :  { %v490_v25 = vmul.f32 0.2, %v424_v21  ;;  %vm458_vm14 = vcmp.gt.f32.partialorder %v424_v21, 0.0  ;;  %v520_v27 = vsel %vm456_vm12, %v420_v15, %v488_v20 }
 0x180   :  { %v491_v26 = vmul.f32 0.2, %v426_v24  ;;  %vm459_vm15 = vcmp.gt.f32.partialorder %v426_v24, 0.0  ;;  %v521_v29 = vsel %vm457_vm13, %v422_v18, %v489_v23  ;;  %v7448_v18 = vld [vmem:[#allocation6] ss:$8 sps:$4 sm:$0xff]  }
 0x181   :  { %v522_v28 = vsel %vm458_vm14, %v424_v21, %v490_v25 }
 0x182   :  { %v523_v30 = vsel %vm459_vm15, %v426_v24, %v491_v26  ;;  %v538_v31 = vpack.c.bf16 %v522_v28, %v520_v27  ;;  %v7450_v27 = vld [vmem:[#allocation6 + $0x10] ss:$8 sps:$4 sm:$0xff]  }
 0x183   :  { %v539_v32 = vpack.c.bf16 %v523_v30, %v521_v29  ;;  %v7451_v30 = vld [vmem:[#allocation6 + $0x24] ss:$8 sps:$4 sm:$0xff]  }
 0x185   :  { %730 = vmatprep.mubr.bf16.mxu1 %v539_v32 }
 0x186   :  { %731 = vmatmul.mubr.bf16.gmra.mrb[28].mxu1 %v538_v31 }
 0x221   :  { %v5834_v35 = vpop.f32.mrb[0].mxu1 }
 0x222   :  { %v5835_v37 = vpop.f32.mrb[1].mxu1 }
 0x223   :  { %v5836_v38 = vadd.f32 %v5835_v37, %v5834_v35  ;;  %v5837_v39 = vpop.f32.mrb[2].mxu1 }
 0x224   :  { %v5838_v40 = vpop.f32.mrb[3].mxu1 }
 0x225   :  { %v677_v41 = vadd.f32 %v5836_v38, %v7959_v36  ;;  %v5839_v48 = vadd.f32 %v5838_v40, %v5837_v39  ;;  %v7452_v38 = vld [vmem:[#allocation6 + $0x20] ss:$8 sps:$4 sm:$0xff]   ;;  %v7453_v39 = vld [vmem:[#allocation6 + $0x34] ss:$8 sps:$4 sm:$0xff]  }
 0x227   :  { %v680_v51 = vadd.f32 %v5839_v48, %v7959_v36  ;;  %v755_v52 = vmul.f32 0.2, %v677_v41  ;;  %vm739_vm0 = vcmp.gt.f32.partialorder %v677_v41, 0.0 }
 0x229   :  { %v5840_v55 = vpop.f32.mrb[4].mxu1  ;;  %vm740_vm1 = vcmp.gt.f32.partialorder %v680_v51, 0.0  ;;  %v756_v2 = vmul.f32 0.2, %v680_v51  ;;  %v771_v59 = vsel %vm739_vm0, %v677_v41, %v755_v52  ;;  %vm7746_vm0 = vmmov 0  }
 0x22a   :  { %v5841_v56 = vpop.f32.mrb[5].mxu1 }
 0x22b   :  { %v5842_v57 = vadd.f32 %v5841_v56, %v5840_v55  ;;  %v5843_v58 = vpop.f32.mrb[6].mxu1  ;;  %v772_v60 = vsel %vm740_vm1, %v680_v51, %v756_v2  ;;  %v7454_v56 = vld [vmem:[#allocation6 + $0x30] ss:$8 sps:$4 sm:$0xff]  }
 0x22c   :  { %v5844_v61 = vpop.f32.mrb[7].mxu1  ;;  %v787_v62 = vpack.c.bf16 %v772_v60, %v771_v59  ;;  %v7455_v59 = vld [vmem:[#allocation6 + $0x44] ss:$8 sps:$4 sm:$0xff]  }
 0x22d   :  { %v685_v63 = vadd.f32 %v5842_v57, %v7959_v36  ;;  %v5845_v0 = vadd.f32 %v5844_v61, %v5843_v58 }
 0x22e   :  { %6610 = vmatprep.mubr.bf16.mxu0 %v787_v62 }
 0x22f   :  { %v757_v3 = vmul.f32 0.2, %v685_v63  ;;  %v688_v4 = vadd.f32 %v5845_v0, %v7959_v36  ;;  %vm741_vm2 = vcmp.gt.f32.partialorder %v685_v63, 0.0  ;;  %v7456_v0 = vld [vmem:[#allocation6 + $0x40] ss:$8 sps:$4 sm:$0xff]  }
 0x231   :  { %vm742_vm3 = vcmp.gt.f32.partialorder %v688_v4, 0.0  ;;  %v758_v5 = vmul.f32 0.2, %v688_v4  ;;  %v5846_v6 = vpop.f32.mrb[8].mxu1  ;;  %v773_v8 = vsel %vm741_vm2, %v685_v63, %v757_v3  ;;  %v7457_v3 = vld [vmem:[#allocation6 + $0x54] ss:$8 sps:$4 sm:$0xff]  }
 0x232   :  { %v5847_v7 = vpop.f32.mrb[9].mxu1 }
 0x233   :  { %v774_v9 = vsel %vm742_vm3, %v688_v4, %v758_v5  ;;  %v5848_v10 = vadd.f32 %v5847_v7, %v5846_v6  ;;  %v5849_v11 = vpop.f32.mrb[10].mxu1 }
 0x234   :  { %v788_v12 = vpack.c.bf16 %v774_v9, %v773_v8  ;;  %v5850_v13 = vpop.f32.mrb[11].mxu1 }
 0x235   :  { %v693_v14 = vadd.f32 %v5848_v10, %v7959_v36  ;;  %v5851_v15 = vadd.f32 %v5850_v13, %v5849_v11  ;;  %v7458_v11 = vld [vmem:[#allocation6 + $0x50] ss:$8 sps:$4 sm:$0xff]  }
 0x236   :  { %6611 = vmatmul.mubr.bf16.vlgmr.msra.gmra.mrb[32].mxu0 %v788_v12 }
 0x237   :  { %v696_v16 = vadd.f32 %v5851_v15, %v7959_v36  ;;  %v759_v17 = vmul.f32 0.2, %v693_v14  ;;  %1141 = vmatpush1.bf16.msra.mxu0 %v7448_v18  ;;  %vm743_vm4 = vcmp.gt.f32.partialorder %v693_v14, 0.0 }
 0x238   :  { %1142 = vmatprep.subr.bf16.mxu0 %v7449_v19  ;;  %v7460_v19 = vld [vmem:[#allocation6 + $0x60] ss:$8 sps:$4 sm:$0xff]  }
 0x239   :  { %v5852_v20 = vpop.f32.mrb[12].mxu1  ;;  %vm744_vm5 = vcmp.gt.f32.partialorder %v696_v16, 0.0  ;;  %v760_v21 = vmul.f32 0.2, %v696_v16  ;;  %v775_v25 = vsel %vm743_vm4, %v693_v14, %v759_v17  ;;  %v7459_v14 = vld [vmem:[#allocation6 + $0x64] ss:$8 sps:$4 sm:$0xff]  }
 0x23a   :  { %v5853_v22 = vpop.f32.mrb[13].mxu1 }
 0x23b   :  { %v5854_v23 = vadd.f32 %v5853_v22, %v5852_v20  ;;  %v5855_v24 = vpop.f32.mrb[14].mxu1  ;;  %v776_v26 = vsel %vm744_vm5, %v696_v16, %v760_v21  ;;  %1143 = vmatpush1.bf16.msra.mxu0 %v7450_v27  ;;  %v7461_v20 = vld [vmem:[#allocation6 + $0x74] ss:$8 sps:$4 sm:$0xff]  }
 0x23c   :  { %v5856_v28 = vpop.f32.mrb[15].mxu1  ;;  %v789_v29 = vpack.c.bf16 %v776_v26, %v775_v25  ;;  %1144 = vmatprep.subr.bf16.mxu0 %v7451_v30 }
 0x23d   :  { %v701_v31 = vadd.f32 %v5854_v23, %v7959_v36  ;;  %v5857_v32 = vadd.f32 %v5856_v28, %v5855_v24  ;;  %v7462_v28 = vld [vmem:[#allocation6 + $0x70] ss:$8 sps:$4 sm:$0xff]  }
 0x23e   :  { %6614 = vmatprep.mubr.bf16.mxu0 %v789_v29 }
 0x23f   :  { %v704_v35 = vadd.f32 %v5857_v32, %v7959_v36  ;;  %v761_v37 = vmul.f32 0.2, %v701_v31  ;;  %1145 = vmatpush1.bf16.msra.mxu0 %v7452_v38  ;;  %vm745_vm6 = vcmp.gt.f32.partialorder %v701_v31, 0.0 }
 0x240   :  { %1146 = vmatprep.subr.bf16.mxu0 %v7453_v39 }
 0x241   :  { %v5858_v40 = vpop.f32.mrb[16].mxu1  ;;  %vm746_vm7 = vcmp.gt.f32.partialorder %v704_v35, 0.0  ;;  %v762_v41 = vmul.f32 0.2, %v704_v35  ;;  %v777_v55 = vsel %vm745_vm6, %v701_v31, %v761_v37 }
 0x242   :  { %v5859_v48 = vpop.f32.mrb[17].mxu1 }
 0x243   :  { %v5860_v51 = vadd.f32 %v5859_v48, %v5858_v40  ;;  %v5861_v52 = vpop.f32.mrb[18].mxu1  ;;  %v778_v2 = vsel %vm746_vm7, %v704_v35, %v762_v41  ;;  %1147 = vmatpush1.bf16.msra.mxu0 %v7454_v56 }
 0x244   :  { %v5862_v57 = vpop.f32.mrb[19].mxu1  ;;  %v790_v58 = vpack.c.bf16 %v778_v2, %v777_v55  ;;  %1148 = vmatprep.subr.bf16.mxu0 %v7455_v59 }
 0x245   :  { %v709_v60 = vadd.f32 %v5860_v51, %v7959_v36  ;;  %v5863_v61 = vadd.f32 %v5862_v57, %v5861_v52 }
 0x246   :  { %6615 = vmatmul.mubr.bf16.gmra.mrb[36].mxu0 %v790_v58 }
 0x247   :  { %v763_v62 = vmul.f32 0.2, %v709_v60  ;;  %v712_v63 = vadd.f32 %v5863_v61, %v7959_v36  ;;  %1149 = vmatpush1.bf16.msra.mxu0 %v7456_v0  ;;  %vm747_vm8 = vcmp.gt.f32.partialorder %v709_v60, 0.0  ;;  %v7392_v0 = vld [vmem:[#allocation3 + $0x40] sm:$0xff]  }
 0x248   :  { %1150 = vmatprep.subr.bf16.mxu0 %v7457_v3  ;;  %v7393_v3 = vld [vmem:[#allocation3 + $0x48] sm:$0xff]  }
 0x249   :  { %vm748_vm9 = vcmp.gt.f32.partialorder %v712_v63, 0.0  ;;  %v764_v4 = vmul.f32 0.2, %v712_v63  ;;  %v5864_v5 = vpop.f32.mrb[20].mxu1  ;;  %v779_v9 = vsel %vm747_vm8, %v709_v60, %v763_v62 }
 0x24a   :  { %v5865_v6 = vpop.f32.mrb[21].mxu1 }
 0x24b   :  { %v5866_v7 = vadd.f32 %v5865_v6, %v5864_v5  ;;  %v5867_v8 = vpop.f32.mrb[22].mxu1  ;;  %v780_v10 = vsel %vm748_vm9, %v712_v63, %v764_v4  ;;  %1151 = vmatpush1.bf16.msra.mxu0 %v7458_v11  ;;  %v8007_v4 = vld [vmem:[%s9830_s6] ss:$0 sm:$0xff] }
 0x24c   :  { %v5868_v12 = vpop.f32.mrb[23].mxu1  ;;  %v791_v13 = vpack.c.bf16 %v780_v10, %v779_v9  ;;  %1152 = vmatprep.subr.bf16.mxu0 %v7459_v14 }
 0x24d   :  { %v717_v15 = vadd.f32 %v5866_v7, %v7959_v36  ;;  %v5869_v16 = vadd.f32 %v5868_v12, %v5867_v8 }
 0x24e   :  { %6618 = vmatprep.mubr.bf16.mxu0 %v791_v13 }
 0x24f   :  { %v765_v17 = vmul.f32 0.2, %v717_v15  ;;  %v720_v18 = vadd.f32 %v5869_v16, %v7959_v36  ;;  %1153 = vmatpush1.bf16.msra.mxu0 %v7460_v19  ;;  %vm749_vm10 = vcmp.gt.f32.partialorder %v717_v15, 0.0 }
 0x250   :  { %1154 = vmatprep.subr.bf16.mxu0 %v7461_v20 }
 0x251   :  { %vm750_vm11 = vcmp.gt.f32.partialorder %v720_v18, 0.0  ;;  %v766_v21 = vmul.f32 0.2, %v720_v18  ;;  %v5870_v22 = vpop.f32.mrb[24].mxu1  ;;  %v781_v26 = vsel %vm749_vm10, %v717_v15, %v765_v17 }
 0x252   :  { %v5871_v23 = vpop.f32.mrb[25].mxu1 }
 0x253   :  { %v5872_v24 = vadd.f32 %v5871_v23, %v5870_v22  ;;  %v5873_v25 = vpop.f32.mrb[26].mxu1  ;;  %v782_v27 = vsel %vm750_vm11, %v720_v18, %v766_v21  ;;  %1155 = vmatpush1.bf16.msra.mxu0 %v7462_v28 }
 0x254   :  { %v5874_v29 = vpop.f32.mrb[27].mxu1  ;;  %v792_v30 = vpack.c.bf16 %v782_v27, %v781_v26  ;;  %6661 = vmatprep.subr.bf16.mxu0 %v7878_v42 }
 0x255   :  { %v725_v31 = vadd.f32 %v5872_v24, %v7959_v36  ;;  %v5875_v32 = vadd.f32 %v5874_v29, %v5873_v25 }
 0x256   :  { %6619 = vmatmul.mubr.bf16.gmra.mrb[40].mxu0 %v792_v30 }
 0x257   :  { %v767_v35 = vmul.f32 0.2, %v725_v31  ;;  %v728_v37 = vadd.f32 %v5875_v32, %v7959_v36  ;;  %vm751_vm12 = vcmp.gt.f32.partialorder %v725_v31, 0.0 }
 0x259   :  { %vm752_vm13 = vcmp.gt.f32.partialorder %v728_v37, 0.0  ;;  %v768_v38 = vmul.f32 0.2, %v728_v37  ;;  %v5876_v39 = vpop.f32.mrb[28].mxu1  ;;  %v783_v51 = vsel %vm751_vm12, %v725_v31, %v767_v35 }
 0x25a   :  { %v5877_v40 = vpop.f32.mrb[29].mxu1 }
 0x25b   :  { %v5878_v41 = vadd.f32 %v5877_v40, %v5876_v39  ;;  %v5879_v48 = vpop.f32.mrb[30].mxu1  ;;  %v784_v52 = vsel %vm752_vm13, %v728_v37, %v768_v38 }
 0x25c   :  { %v5880_v55 = vpop.f32.mrb[31].mxu1  ;;  %v793_v2 = vpack.c.bf16 %v784_v52, %v783_v51  ;;  %v159_v52 = vld [vmem:[#allocation2] sm:$0x1] }
 0x25d   :  { %v733_v56 = vadd.f32 %v5878_v41, %v7959_v36  ;;  %v5881_v57 = vadd.f32 %v5880_v55, %v5879_v48  ;;  %1066 = vperm.xlu0 %7335, %v159_v52  }
 0x25e   :  { %6622 = vmatprep.mubr.bf16.mxu0 %v793_v2 }
 0x25f   :  { %v769_v58 = vmul.f32 0.2, %v733_v56  ;;  %v736_v59 = vadd.f32 %v5881_v57, %v7959_v36  ;;  %vm753_vm14 = vcmp.gt.f32.partialorder %v733_v56, 0.0  ;;  %v7394_v36 = vld [vmem:[#allocation3 + $0x50] sm:$0xff]  }
 0x261   :  { %vm754_vm15 = vcmp.gt.f32.partialorder %v736_v59, 0.0  ;;  %v770_v60 = vmul.f32 0.2, %v736_v59  ;;  %v785_v61 = vsel %vm753_vm14, %v733_v56, %v769_v58 }
 0x263   :  { %v786_v62 = vsel %vm754_vm15, %v736_v59, %v770_v60 }
 0x264   :  { %v794_v63 = vpack.c.bf16 %v786_v62, %v785_v61 }
 0x266   :  { %6623 = vmatmul.mubr.bf16.gmra.mrb[44].mxu0 %v794_v63 }
 0x267   :  { %1172 = vmatprep.mubr.bf16.mxu0 %v9834_v1 }
 0x26e   :  { %1173 = vmatmul.mubr.bf16.vlgmr.msra.gmra.mrb[48].mxu0 %v7392_v0 }
 0x26f   :  { %1182 = vmatprep.mubr.bf16.mxu0 %v9834_v1  ;;  %6662 = vmatpush3.bf16.msra.mxu0 %v7878_v42  ;;  %v7395_v42 = vld [vmem:[#allocation3 + $0x58] sm:$0xff]  }
 0x270   :  { %6663 = vmatprep.subr.bf16.mxu0 %v7880_v43 }
 0x273   :  { %6664 = vmatpush3.bf16.msra.mxu0 %v7880_v43  ;;  %v7396_v43 = vld [vmem:[#allocation3 + $0x60] sm:$0xff]  }
 0x274   :  { %6665 = vmatprep.subr.bf16.mxu0 %v7885_v44 }
 0x276   :  { %1183 = vmatmul.mubr.bf16.gmra.mrb[52].mxu0 %v7393_v3 }
 0x277   :  { %1192 = vmatprep.mubr.bf16.mxu0 %v9834_v1  ;;  %6666 = vmatpush3.bf16.msra.mxu0 %v7885_v44  ;;  %v7463_v44 = vld [vmem:[#allocation6 + $0x4] ss:$8 sps:$4 sm:$0xff]  }
 0x278   :  { %6667 = vmatprep.subr.bf16.mxu0 %v7889_v45 }
 0x27b   :  { %6668 = vmatpush3.bf16.msra.mxu0 %v7889_v45  ;;  %v7397_v45 = vld [vmem:[#allocation3 + $0x68] sm:$0xff]  }
 0x27c   :  { %6669 = vmatprep.subr.bf16.mxu0 %v7893_v46 }
 0x27e   :  { %1193 = vmatmul.mubr.bf16.gmra.mrb[56].mxu0 %v7394_v36 }
 0x27f   :  { %1202 = vmatprep.mubr.bf16.mxu0 %v9834_v1  ;;  %6670 = vmatpush3.bf16.msra.mxu0 %v7893_v46  ;;  %v7745_v46 = vmov 0.0|0.0  }
 0x280   :  { %6671 = vmatprep.subr.bf16.mxu0 %v7897_v47  ;;  %7130 = vmatprep.subr.bf16.mxu1 %v7745_v46 }
 0x283   :  { %6672 = vmatpush3.bf16.msra.mxu0 %v7897_v47  ;;  %v7398_v47 = vld [vmem:[#allocation3 + $0x70] sm:$0xff]  }
 0x284   :  { %6673 = vmatprep.subr.bf16.mxu0 %v7947_v33 }
 0x286   :  { %1203 = vmatmul.mubr.bf16.gmra.mrb[60].mxu0 %v7395_v42 }
 0x287   :  { %1212 = vmatprep.mubr.bf16.mxu0 %v9834_v1  ;;  %6674 = vmatpush3.bf16.msra.mxu0 %v7947_v33  ;;  %v7399_v33 = vld [vmem:[#allocation3 + $0x78] sm:$0xff]  }
 0x288   :  { %6675 = vmatprep.subr.bf16.mxu0 %v7951_v34 }
 0x28b   :  { %6676 = vmatpush3.bf16.msra.mxu0 %v7951_v34  ;;  %v9837_v34 = vmov 0.0  }
 0x28c   :  { %1800 = vmatprep.subr.bf16.mxu0 %v7463_v44  ;;  %6658 = vmatprep.mubr.msk.f32.mxu1 %vm7746_vm0, %v9837_v34 }
 0x28e   :  { %1213 = vmatmul.mubr.bf16.gmra.mrb[64].mxu0 %v7396_v43 }
 0x28f   :  { %1222 = vmatprep.mubr.bf16.mxu0 %v9834_v1 }
 0x296   :  { %1223 = vmatmul.mubr.bf16.gmra.mrb[68].mxu0 %v7397_v45 }
 0x297   :  { %1232 = vmatprep.mubr.bf16.mxu0 %v9834_v1 }
 0x29e   :  { %1233 = vmatmul.mubr.bf16.gmra.mrb[72].mxu0 %v7398_v47 }
 0x29f   :  { %1242 = vmatprep.mubr.bf16.mxu0 %v9834_v1 }
 0x2a6   :  { %1243 = vmatmul.mubr.bf16.gmra.mrb[76].mxu0 %v7399_v33 }
 0x309   :  { %v6612_v5 = vpop.f32.mrb[32].mxu0 }
 0x30a   :  { %v892_v6 = vadd.f32 %v6612_v5, %v8007_v4  ;;  %v883_v7 = vpop.f32.mrb[33].mxu0 }
 0x30b   :  { %v884_v8 = vadd.f32 %v8007_v4, %v883_v7  ;;  %v6613_v9 = vpop.f32.mrb[34].mxu0 }
 0x30c   :  { %v964_v10 = vmul.f32 0.2, %v892_v6  ;;  %v895_v11 = vadd.f32 %v6613_v9, %v8007_v4  ;;  %v886_v12 = vpop.f32.mrb[35].mxu0  ;;  %vm948_vm1 = vcmp.gt.f32.partialorder %v892_v6, 0.0 }
 0x30d   :  { %v962_v13 = vmul.f32 0.2, %v884_v8  ;;  %v887_v14 = vadd.f32 %v8007_v4, %v886_v12  ;;  %vm946_vm2 = vcmp.gt.f32.partialorder %v884_v8, 0.0 }
 0x30e   :  { %vm949_vm3 = vcmp.gt.f32.partialorder %v895_v11, 0.0  ;;  %v965_v15 = vmul.f32 0.2, %v895_v11  ;;  %v980_v17 = vsel %vm948_vm1, %v892_v6, %v964_v10 }
 0x30f   :  { %vm947_vm4 = vcmp.gt.f32.partialorder %v887_v14, 0.0  ;;  %v963_v16 = vmul.f32 0.2, %v887_v14  ;;  %v978_v19 = vsel %vm946_vm2, %v884_v8, %v962_v13 }
 0x310   :  { %v981_v18 = vsel %vm949_vm3, %v895_v11, %v965_v15 }
 0x311   :  { %v979_v20 = vsel %vm947_vm4, %v887_v14, %v963_v16  ;;  %v7134_v21 = vpack.c.bf16 %v981_v18, %v980_v17 }
 0x312   :  { %v7131_v22 = vpack.c.bf16 %v979_v20, %v978_v19 }
 0x314   :  { %7132 = vmatpush3.bf16.xpose.msra.mxu1 %v7131_v22 }
 0x315   :  { %7133 = vmatprep.subr.bf16.mxu1 %v7745_v46 }
 0x319   :  { %v6616_v23 = vpop.f32.mrb[36].mxu0 }
 0x31a   :  { %v908_v24 = vadd.f32 %v6616_v23, %v8007_v4  ;;  %v899_v25 = vpop.f32.mrb[37].mxu0 }
 0x31b   :  { %v900_v26 = vadd.f32 %v8007_v4, %v899_v25  ;;  %v6617_v27 = vpop.f32.mrb[38].mxu0 }
 0x31c   :  { %v968_v28 = vmul.f32 0.2, %v908_v24  ;;  %v911_v29 = vadd.f32 %v6617_v27, %v8007_v4  ;;  %v902_v30 = vpop.f32.mrb[39].mxu0  ;;  %7135 = vmatpush3.bf16.xpose.msra.mxu1 %v7134_v21  ;;  %vm952_vm5 = vcmp.gt.f32.partialorder %v908_v24, 0.0 }
 0x31d   :  { %v966_v31 = vmul.f32 0.2, %v900_v26  ;;  %v903_v32 = vadd.f32 %v8007_v4, %v902_v30  ;;  %7136 = vmatprep.subr.bf16.mxu1 %v7745_v46  ;;  %vm950_vm6 = vcmp.gt.f32.partialorder %v900_v26, 0.0 }
 0x31e   :  { %vm953_vm7 = vcmp.gt.f32.partialorder %v911_v29, 0.0  ;;  %v969_v35 = vmul.f32 0.2, %v911_v29  ;;  %v984_v38 = vsel %vm952_vm5, %v908_v24, %v968_v28 }
 0x31f   :  { %vm951_vm8 = vcmp.gt.f32.partialorder %v903_v32, 0.0  ;;  %v967_v37 = vmul.f32 0.2, %v903_v32  ;;  %v982_v40 = vsel %vm950_vm6, %v900_v26, %v966_v31 }
 0x320   :  { %v985_v39 = vsel %vm953_vm7, %v911_v29, %v969_v35 }
 0x321   :  { %v983_v41 = vsel %vm951_vm8, %v903_v32, %v967_v37  ;;  %v7140_v48 = vpack.c.bf16 %v985_v39, %v984_v38 }
 0x322   :  { %v7137_v51 = vpack.c.bf16 %v983_v41, %v982_v40 }
 0x324   :  { %7138 = vmatpush3.bf16.xpose.msra.mxu1 %v7137_v51 }
 0x325   :  { %7139 = vmatprep.subr.bf16.mxu1 %v7745_v46 }
 0x329   :  { %v6620_v55 = vpop.f32.mrb[40].mxu0 }
 0x32a   :  { %v924_v2 = vadd.f32 %v6620_v55, %v8007_v4  ;;  %v915_v56 = vpop.f32.mrb[41].mxu0 }
 0x32b   :  { %v916_v57 = vadd.f32 %v8007_v4, %v915_v56  ;;  %v6621_v58 = vpop.f32.mrb[42].mxu0 }
 0x32c   :  { %v972_v59 = vmul.f32 0.2, %v924_v2  ;;  %v927_v60 = vadd.f32 %v6621_v58, %v8007_v4  ;;  %v918_v61 = vpop.f32.mrb[43].mxu0  ;;  %7141 = vmatpush3.bf16.xpose.msra.mxu1 %v7140_v48  ;;  %vm956_vm9 = vcmp.gt.f32.partialorder %v924_v2, 0.0 }
 0x32d   :  { %v970_v62 = vmul.f32 0.2, %v916_v57  ;;  %v919_v63 = vadd.f32 %v8007_v4, %v918_v61  ;;  %7142 = vmatprep.subr.bf16.mxu1 %v7745_v46  ;;  %vm954_vm10 = vcmp.gt.f32.partialorder %v916_v57, 0.0 }
 0x32e   :  { %vm957_vm11 = vcmp.gt.f32.partialorder %v927_v60, 0.0  ;;  %v973_v0 = vmul.f32 0.2, %v927_v60  ;;  %v988_v36 = vsel %vm956_vm9, %v924_v2, %v972_v59 }
 0x32f   :  { %vm955_vm12 = vcmp.gt.f32.partialorder %v919_v63, 0.0  ;;  %v971_v3 = vmul.f32 0.2, %v919_v63  ;;  %v986_v43 = vsel %vm954_vm10, %v916_v57, %v970_v62 }
 0x330   :  { %v989_v42 = vsel %vm957_vm11, %v927_v60, %v973_v0  ;;  %v8045_v60 = vld [vmem:[#allocation8 + $0x40] sm:$0xff]  }
 0x331   :  { %v987_v44 = vsel %vm955_vm12, %v919_v63, %v971_v3  ;;  %v7146_v45 = vpack.c.bf16 %v989_v42, %v988_v36  ;;  %v158_v42 = vld [vmem:[%s9831_s7] sm:$0xff] }
 0x332   :  { %v7143_v47 = vpack.c.bf16 %v987_v44, %v986_v43 }
 0x334   :  { %7144 = vmatpush3.bf16.xpose.msra.mxu1 %v7143_v47 }
 0x335   :  { %7145 = vmatprep.subr.bf16.mxu1 %v7745_v46 }
 0x339   :  { %v6624_v33 = vpop.f32.mrb[44].mxu0 }
 0x33a   :  { %v940_v5 = vadd.f32 %v6624_v33, %v8007_v4  ;;  %v931_v6 = vpop.f32.mrb[45].mxu0 }
 0x33b   :  { %v932_v7 = vadd.f32 %v8007_v4, %v931_v6  ;;  %v6625_v8 = vpop.f32.mrb[46].mxu0 }
 0x33c   :  { %v976_v9 = vmul.f32 0.2, %v940_v5  ;;  %v943_v10 = vadd.f32 %v6625_v8, %v8007_v4  ;;  %v934_v11 = vpop.f32.mrb[47].mxu0  ;;  %7147 = vmatpush3.bf16.xpose.msra.mxu1 %v7146_v45  ;;  %vm960_vm13 = vcmp.gt.f32.partialorder %v940_v5, 0.0 }
 0x33d   :  { %v974_v12 = vmul.f32 0.2, %v932_v7  ;;  %v935_v13 = vadd.f32 %v8007_v4, %v934_v11  ;;  %7148 = vmatprep.subr.bf16.mxu1 %v7745_v46  ;;  %vm958_vm14 = vcmp.gt.f32.partialorder %v932_v7, 0.0 }
 0x33e   :  { %vm961_vm15 = vcmp.gt.f32.partialorder %v943_v10, 0.0  ;;  %v977_v14 = vmul.f32 0.2, %v943_v10  ;;  %v992_v16 = vsel %vm960_vm13, %v940_v5, %v976_v9  ;;  %v8066_v9 = vld [vmem:[#allocation8] sm:$0xff]  }
 0x33f   :  { %vm959_vm1 = vcmp.gt.f32.partialorder %v935_v13, 0.0  ;;  %v975_v15 = vmul.f32 0.2, %v935_v13  ;;  %v990_v18 = vsel %vm958_vm14, %v932_v7, %v974_v12 }
 0x340   :  { %v993_v17 = vsel %vm961_vm15, %v943_v10, %v977_v14 }
 0x341   :  { %v991_v19 = vsel %vm959_vm1, %v935_v13, %v975_v15  ;;  %v7152_v20 = vpack.c.bf16 %v993_v17, %v992_v16  ;;  %v1174_v21 = vpop.f32.mrb[48].mxu0  ;;  %v8070_v13 = vld [vmem:[#allocation8 + $0x48] sm:$0xff]  }
 0x342   :  { %v7149_v22 = vpack.c.bf16 %v991_v19, %v990_v18  ;;  %v1175_v23 = vadd.f32 %v1174_v21, %v7911_v53  ;;  %v1176_v24 = vpop.f32.mrb[49].mxu0 }
 0x343   :  { %v1177_v25 = vadd.f32 %v1176_v24, %v7913_v54  ;;  %v1178_v26 = vpop.f32.mrb[50].mxu0 }
 0x344   :  { %7150 = vmatpush3.bf16.xpose.msra.mxu1 %v7149_v22  ;;  %vm1253_vm2 = vcmp.gt.f32.partialorder %v1175_v23, 0.0  ;;  %v1285_v27 = vmul.f32 0.2, %v1175_v23  ;;  %v1179_v28 = vadd.f32 %v1178_v26, %v7911_v53  ;;  %v1180_v29 = vpop.f32.mrb[51].mxu0  ;;  %v8083_v22 = vld [vmem:[#allocation8 + $0x50] sm:$0xff]  }
 0x345   :  { %7151 = vmatprep.subr.bf16.mxu1 %v7745_v46  ;;  %v1286_v30 = vmul.f32 0.2, %v1177_v25  ;;  %v1181_v31 = vadd.f32 %v1180_v29, %v7913_v54  ;;  %vm1254_vm3 = vcmp.gt.f32.partialorder %v1177_v25, 0.0 }
 0x346   :  { %v8036_v32 = vsel %vm1253_vm2, %v1175_v23, %v1285_v27  ;;  %vm1255_vm4 = vcmp.gt.f32.partialorder %v1179_v28, 0.0  ;;  %v1287_v35 = vmul.f32 0.2, %v1179_v28 }
 0x347   :  { %v1288_v37 = vmul.f32 0.2, %v1181_v31  ;;  %vm1256_vm5 = vcmp.gt.f32.partialorder %v1181_v31, 0.0  ;;  %v1318_v38 = vsel %vm1254_vm3, %v1177_v25, %v1286_v30 }
 0x348   :  { %v8038_v39 = vsel %vm1255_vm4, %v1179_v28, %v1287_v35 }
 0x349   :  { %v1184_v40 = vpop.f32.mrb[52].mxu0  ;;  %v1320_v41 = vsel %vm1256_vm5, %v1181_v31, %v1288_v37  ;;  %v1349_v48 = vpack.c.bf16 %v8038_v39, %v8036_v32  ;;  %v8094_v31 = vld [vmem:[#allocation8 + $0x10] sm:$0xff]  }
 0x34a   :  { %v1185_v51 = vadd.f32 %v1184_v40, %v7911_v53  ;;  %v1186_v52 = vpop.f32.mrb[53].mxu0  ;;  %v1350_v55 = vpack.c.bf16 %v1320_v41, %v1318_v38  ;;  %v8098_v40 = vld [vmem:[#allocation8 + $0x58] sm:$0xff]  }
 0x34b   :  { %v1187_v2 = vadd.f32 %v1186_v52, %v7913_v54  ;;  %v1188_v56 = vpop.f32.mrb[54].mxu0 }
 0x34c   :  { %7153 = vmatpush3.bf16.xpose.msra.mxu1 %v7152_v20  ;;  %v1289_v57 = vmul.f32 0.2, %v1185_v51  ;;  %v1189_v58 = vadd.f32 %v1188_v56, %v7911_v53  ;;  %v1190_v59 = vpop.f32.mrb[55].mxu0  ;;  %vm1257_vm6 = vcmp.gt.f32.partialorder %v1185_v51, 0.0  ;;  %v8078_v20 = vld [vmem:[#allocation8 + $0x8] sm:$0xff]  }
 0x34d   :  { %5915 = vmatprep.subr.bf16.mxu1 %v8045_v60  ;;  %v1290_v61 = vmul.f32 0.2, %v1187_v2  ;;  %v1191_v62 = vadd.f32 %v1190_v59, %v7913_v54  ;;  %vm1258_vm7 = vcmp.gt.f32.partialorder %v1187_v2, 0.0  ;;  %v8111_v59 = vld [vmem:[#allocation8 + $0x60] sm:$0xff]  }
 0x34e   :  { %v1291_v63 = vmul.f32 0.2, %v1189_v58  ;;  %vm1259_vm8 = vcmp.gt.f32.partialorder %v1189_v58, 0.0  ;;  %v8049_v0 = vsel %vm1257_vm6, %v1185_v51, %v1289_v57  ;;  %v8106_v57 = vld [vmem:[#allocation8 + $0x18] sm:$0xff]  }
 0x34f   :  { %v1292_v3 = vmul.f32 0.2, %v1191_v62  ;;  %vm1260_vm9 = vcmp.gt.f32.partialorder %v1191_v62, 0.0  ;;  %v8051_v36 = vsel %vm1258_vm7, %v1187_v2, %v1290_v61 }
 0x350   :  { %v8056_v43 = vsel %vm1259_vm8, %v1189_v58, %v1291_v63 }
 0x351   :  { %v1194_v44 = vpop.f32.mrb[56].mxu0  ;;  %v8058_v45 = vsel %vm1260_vm9, %v1191_v62, %v1292_v3  ;;  %v1351_v47 = vpack.c.bf16 %v8056_v43, %v8049_v0 }
 0x352   :  { %v1195_v33 = vadd.f32 %v1194_v44, %v7911_v53  ;;  %v1196_v5 = vpop.f32.mrb[57].mxu0  ;;  %v1352_v6 = vpack.c.bf16 %v8058_v45, %v8051_v36 }
 0x353   :  { %6659 = vmatmul.mubr.f32.vlgmr.msra.gmra.mrb[32].mxu1 %v158_v42  ;;  %v1197_v7 = vadd.f32 %v1196_v5, %v7913_v54  ;;  %v1198_v8 = vpop.f32.mrb[58].mxu0 }
 0x354   :  { %5916 = vmatpush3.bf16.msra.mxu1 %v8066_v9  ;;  %1397 = vmatprep.mubr.bf16.mxu1 %v1350_v55  ;;  %v1293_v10 = vmul.f32 0.2, %v1195_v33  ;;  %v1199_v11 = vadd.f32 %v1198_v8, %v7911_v53  ;;  %v1200_v12 = vpop.f32.mrb[59].mxu0  ;;  %vm1261_vm10 = vcmp.gt.f32.partialorder %v1195_v33, 0.0 }
 0x355   :  { %5917 = vmatprep.subr.bf16.mxu1 %v8070_v13  ;;  %v1294_v14 = vmul.f32 0.2, %v1197_v7  ;;  %v1201_v15 = vadd.f32 %v1200_v12, %v7913_v54  ;;  %vm1262_vm11 = vcmp.gt.f32.partialorder %v1197_v7, 0.0  ;;  %v8126_v12 = vld [vmem:[#allocation8 + $0x68] sm:$0xff]  }
 0x356   :  { %v1295_v16 = vmul.f32 0.2, %v1199_v11  ;;  %vm1263_vm12 = vcmp.gt.f32.partialorder %v1199_v11, 0.0  ;;  %v8074_v17 = vsel %vm1261_vm10, %v1195_v33, %v1293_v10 }
 0x357   :  { %v1296_v18 = vmul.f32 0.2, %v1201_v15  ;;  %vm1264_vm13 = vcmp.gt.f32.partialorder %v1201_v15, 0.0  ;;  %v8076_v19 = vsel %vm1262_vm11, %v1197_v7, %v1294_v14  ;;  %v8122_v7 = vld [vmem:[#allocation8 + $0x20] sm:$0xff]  }
 0x358   :  { %5918 = vmatpush3.bf16.msra.mxu1 %v8078_v20  ;;  %v8081_v21 = vsel %vm1263_vm12, %v1199_v11, %v1295_v16 }
 0x359   :  { %5919 = vmatprep.subr.bf16.mxu1 %v8083_v22  ;;  %v1204_v23 = vpop.f32.mrb[60].mxu0  ;;  %v8086_v24 = vsel %vm1264_vm13, %v1201_v15, %v1296_v18  ;;  %v1353_v25 = vpack.c.bf16 %v8081_v21, %v8074_v17  ;;  %v9870_v17 = vmov 0.0   ;;  %v1067_v21 = vpop.permute.xlu0 %1066 }
 0x35a   :  { %v1205_v26 = vadd.f32 %v1204_v23, %v7911_v53  ;;  %v1206_v27 = vpop.f32.mrb[61].mxu0  ;;  %v1354_v28 = vpack.c.bf16 %v8086_v24, %v8076_v19 }
 0x35b   :  { %v1207_v29 = vadd.f32 %v1206_v27, %v7913_v54  ;;  %v1208_v30 = vpop.f32.mrb[62].mxu0  ;;  %v8134_v27 = vld [vmem:[#allocation8 + $0x28] sm:$0xff]  }
 0x35c   :  { %5920 = vmatpush3.bf16.msra.mxu1 %v8094_v31  ;;  %v1297_v35 = vmul.f32 0.2, %v1205_v26  ;;  %v1209_v37 = vadd.f32 %v1208_v30, %v7911_v53  ;;  %v1210_v38 = vpop.f32.mrb[63].mxu0  ;;  %vm1265_vm14 = vcmp.gt.f32.partialorder %v1205_v26, 0.0  ;;  %v8139_v30 = vld [vmem:[#allocation8 + $0x70] sm:$0xff]  }
 0x35d   :  { %5921 = vmatprep.subr.bf16.mxu1 %v8098_v40  ;;  %v1298_v41 = vmul.f32 0.2, %v1207_v29  ;;  %v1211_v51 = vadd.f32 %v1210_v38, %v7913_v54  ;;  %vm1266_vm15 = vcmp.gt.f32.partialorder %v1207_v29, 0.0 }
 0x35e   :  { %v1299_v52 = vmul.f32 0.2, %v1209_v37  ;;  %vm1267_vm1 = vcmp.gt.f32.partialorder %v1209_v37, 0.0  ;;  %v8102_v55 = vsel %vm1265_vm14, %v1205_v26, %v1297_v35 }
 0x35f   :  { %v1300_v2 = vmul.f32 0.2, %v1211_v51  ;;  %vm1268_vm2 = vcmp.gt.f32.partialorder %v1211_v51, 0.0  ;;  %v8104_v56 = vsel %vm1266_vm15, %v1207_v29, %v1298_v41 }
 0x360   :  { %5922 = vmatpush3.bf16.msra.mxu1 %v8106_v57  ;;  %v8109_v58 = vsel %vm1267_vm1, %v1209_v37, %v1299_v52 }
 0x361   :  { %5923 = vmatprep.subr.bf16.mxu1 %v8111_v59  ;;  %v1214_v61 = vpop.f32.mrb[64].mxu0  ;;  %v8114_v62 = vsel %vm1268_vm2, %v1211_v51, %v1300_v2  ;;  %v1355_v63 = vpack.c.bf16 %v8109_v58, %v8102_v55 }
 0x362   :  { %v1215_v3 = vadd.f32 %v1214_v61, %v7911_v53  ;;  %v1216_v42 = vpop.f32.mrb[65].mxu0  ;;  %v1356_v44 = vpack.c.bf16 %v8114_v62, %v8104_v56 }
 0x363   :  { %v1217_v33 = vadd.f32 %v1216_v42, %v7913_v54  ;;  %v1218_v5 = vpop.f32.mrb[66].mxu0 }
 0x364   :  { %5924 = vmatpush3.bf16.msra.mxu1 %v8122_v7  ;;  %v1301_v8 = vmul.f32 0.2, %v1215_v3  ;;  %v1219_v10 = vadd.f32 %v1218_v5, %v7911_v53  ;;  %v1220_v11 = vpop.f32.mrb[67].mxu0  ;;  %vm1269_vm3 = vcmp.gt.f32.partialorder %v1215_v3, 0.0 }
 0x365   :  { %5925 = vmatprep.subr.bf16.mxu1 %v8126_v12  ;;  %v1302_v14 = vmul.f32 0.2, %v1217_v33  ;;  %v1221_v15 = vadd.f32 %v1220_v11, %v7913_v54  ;;  %vm1270_vm4 = vcmp.gt.f32.partialorder %v1217_v33, 0.0 }
 0x366   :  { %v1303_v16 = vmul.f32 0.2, %v1219_v10  ;;  %vm1271_vm5 = vcmp.gt.f32.partialorder %v1219_v10, 0.0  ;;  %v8130_v18 = vsel %vm1269_vm3, %v1215_v3, %v1301_v8  ;;  %v8150_v3 = vld [vmem:[#allocation8 + $0x30] sm:$0xff]   ;;  %v8154_v8 = vld [vmem:[#allocation8 + $0x78] sm:$0xff]  }
 0x367   :  { %v1304_v23 = vmul.f32 0.2, %v1221_v15  ;;  %vm1272_vm6 = vcmp.gt.f32.partialorder %v1221_v15, 0.0  ;;  %v8132_v26 = vsel %vm1270_vm4, %v1217_v33, %v1302_v14 }
 0x368   :  { %5926 = vmatpush3.bf16.msra.mxu1 %v8134_v27  ;;  %v8137_v29 = vsel %vm1271_vm5, %v1219_v10, %v1303_v16 }
 0x369   :  { %5927 = vmatprep.subr.bf16.mxu1 %v8139_v30  ;;  %v1224_v35 = vpop.f32.mrb[68].mxu0  ;;  %v8142_v37 = vsel %vm1272_vm6, %v1221_v15, %v1304_v23  ;;  %v9869_v24 = vpack.c.bf16 %v8137_v29, %v8130_v18 }
 0x36a   :  { %v1225_v41 = vadd.f32 %v1224_v35, %v7911_v53  ;;  %v1226_v51 = vpop.f32.mrb[69].mxu0  ;;  %v1358_v52 = vpack.c.bf16 %v8142_v37, %v8132_v26  ;;  %v8160_v35 = vld [vmem:[#allocation8 + $0x38] sm:$0xff]  }
 0x36b   :  { %v1227_v2 = vadd.f32 %v1226_v51, %v7913_v54  ;;  %v1228_v61 = vpop.f32.mrb[70].mxu0  ;;  %v8210_v26 = vld [vmem:[%s9828_s4] ss:$0 sm:$0xff] }
 0x36c   :  { %5928 = vmatpush3.bf16.msra.mxu1 %v8150_v3  ;;  %v1305_v42 = vmul.f32 0.2, %v1225_v41  ;;  %v1229_v33 = vadd.f32 %v1228_v61, %v7911_v53  ;;  %v1230_v5 = vpop.f32.mrb[71].mxu0  ;;  %vm1273_vm7 = vcmp.gt.f32.partialorder %v1225_v41, 0.0 }
 0x36d   :  { %5929 = vmatprep.subr.bf16.mxu1 %v8154_v8  ;;  %v1306_v10 = vmul.f32 0.2, %v1227_v2  ;;  %v1231_v11 = vadd.f32 %v1230_v5, %v7913_v54  ;;  %vm1274_vm8 = vcmp.gt.f32.partialorder %v1227_v2, 0.0 }
 0x36e   :  { %v1307_v14 = vmul.f32 0.2, %v1229_v33  ;;  %vm1275_vm9 = vcmp.gt.f32.partialorder %v1229_v33, 0.0  ;;  %v8158_v15 = vsel %vm1273_vm7, %v1225_v41, %v1305_v42 }
 0x36f   :  { %v1308_v16 = vmul.f32 0.2, %v1231_v11  ;;  %vm1276_vm10 = vcmp.gt.f32.partialorder %v1231_v11, 0.0  ;;  %v1338_v23 = vsel %vm1274_vm8, %v1227_v2, %v1306_v10 }
 0x370   :  { %5930 = vmatpush3.bf16.msra.mxu1 %v8160_v35  ;;  %v1339_v51 = vsel %vm1275_vm9, %v1229_v33, %v1307_v14 }
 0x371   :  { %v1234_v61 = vpop.f32.mrb[72].mxu0  ;;  %v1340_v1 = vsel %vm1276_vm10, %v1231_v11, %v1308_v16  ;;  %v1359_v50 = vpack.c.bf16 %v1339_v51, %v8158_v15  ;;  %7154 = vmatprep.subr.bf16.mxu1 %v7745_v46 }
 0x372   :  { %v1235_v5 = vadd.f32 %v1234_v61, %v7911_v53  ;;  %v1236_v34 = vpop.f32.mrb[73].mxu0  ;;  %v1360_v38 = vpack.c.bf16 %v1340_v1, %v1338_v23 }
 0x373   :  { %1398 = vmatmul.mubr.bf16.vlgmr.msra.gmra.mrb[36].mxu1 %v1349_v48  ;;  %v1237_v41 = vadd.f32 %v1236_v34, %v7913_v54  ;;  %v1238_v2 = vpop.f32.mrb[74].mxu0 }
 0x374   :  { %1405 = vmatprep.mubr.bf16.mxu1 %v1352_v6  ;;  %v1309_v42 = vmul.f32 0.2, %v1235_v5  ;;  %v1239_v33 = vadd.f32 %v1238_v2, %v7911_v53  ;;  %v1240_v10 = vpop.f32.mrb[75].mxu0  ;;  %vm1277_vm11 = vcmp.gt.f32.partialorder %v1235_v5, 0.0 }
 0x375   :  { %v1310_v11 = vmul.f32 0.2, %v1237_v41  ;;  %v1241_v14 = vadd.f32 %v1240_v10, %v7913_v54  ;;  %vm1278_vm12 = vcmp.gt.f32.partialorder %v1237_v41, 0.0 }
 0x376   :  { %v1311_v1 = vmul.f32 0.2, %v1239_v33  ;;  %vm1279_vm13 = vcmp.gt.f32.partialorder %v1239_v33, 0.0  ;;  %v1341_v32 = vsel %vm1277_vm11, %v1235_v5, %v1309_v42 }
 0x377   :  { %v1312_v39 = vmul.f32 0.2, %v1241_v14  ;;  %vm1280_vm14 = vcmp.gt.f32.partialorder %v1241_v14, 0.0  ;;  %v1342_v34 = vsel %vm1278_vm12, %v1237_v41, %v1310_v11 }
 0x378   :  { %v1343_v48 = vsel %vm1279_vm13, %v1239_v33, %v1311_v1 }
 0x379   :  { %v1244_v15 = vpop.f32.mrb[76].mxu0  ;;  %v1344_v16 = vsel %vm1280_vm14, %v1241_v14, %v1312_v39  ;;  %v1361_v36 = vpack.c.bf16 %v1343_v48, %v1341_v32 }
 0x37a   :  { %v1245_v45 = vadd.f32 %v1244_v15, %v7911_v53  ;;  %v1246_v6 = vpop.f32.mrb[77].mxu0  ;;  %v1362_v23 = vpack.c.bf16 %v1344_v16, %v1342_v34 }
 0x37b   :  { %1406 = vmatmul.mubr.bf16.gmra.mrb[40].mxu1 %v1351_v47  ;;  %v1247_v51 = vadd.f32 %v1246_v6, %v7913_v54  ;;  %v1248_v61 = vpop.f32.mrb[78].mxu0 }
 0x37c   :  { %1413 = vmatprep.mubr.bf16.mxu1 %v1354_v28  ;;  %v1313_v5 = vmul.f32 0.2, %v1245_v45  ;;  %v1249_v41 = vadd.f32 %v1248_v61, %v7911_v53  ;;  %v1250_v2 = vpop.f32.mrb[79].mxu0  ;;  %vm1281_vm15 = vcmp.gt.f32.partialorder %v1245_v45, 0.0 }
 0x37d   :  { %v1314_v42 = vmul.f32 0.2, %v1247_v51  ;;  %v1251_v33 = vadd.f32 %v1250_v2, %v7913_v54  ;;  %vm1282_vm1 = vcmp.gt.f32.partialorder %v1247_v51, 0.0 }
 0x37e   :  { %v1315_v10 = vmul.f32 0.2, %v1249_v41  ;;  %vm1283_vm2 = vcmp.gt.f32.partialorder %v1249_v41, 0.0  ;;  %v1345_v0 = vsel %vm1281_vm15, %v1245_v45, %v1313_v5 }
 0x37f   :  { %v1316_v43 = vmul.f32 0.2, %v1251_v33  ;;  %vm1284_vm3 = vcmp.gt.f32.partialorder %v1251_v33, 0.0  ;;  %v1346_v47 = vsel %vm1282_vm1, %v1247_v51, %v1314_v42 }
 0x380   :  { %v1347_v11 = vsel %vm1283_vm2, %v1249_v41, %v1315_v10 }
 0x381   :  { %v1348_v14 = vsel %vm1284_vm3, %v1251_v33, %v1316_v43  ;;  %v1363_v1 = vpack.c.bf16 %v1347_v11, %v1345_v0 }
 0x382   :  { %v1364_v19 = vpack.c.bf16 %v1348_v14, %v1346_v47 }
 0x383   :  { %1414 = vmatmul.mubr.bf16.gmra.mrb[44].mxu1 %v1353_v25  ;;  %v9871_v25 = vsub.s32 0, %v7902_v49 }
 0x384   :  { %1421 = vmatprep.mubr.bf16.mxu1 %v1356_v44 }
 0x385   :  { %v8204_v28 = vrot.slane %v1067_v21, %v9871_v25  ;;  %v8221_v21 = vld [vmem:[#allocation6 + $0x14] ss:$8 sps:$4 sm:$0xff]  }
 0x38b   :  { %1422 = vmatmul.mubr.bf16.gmra.mrb[48].mxu1 %v1355_v63 }
 0x38c   :  { %1429 = vmatprep.mubr.bf16.mxu1 %v1358_v52 }
 0x393   :  { %1430 = vmatmul.mubr.bf16.gmra.mrb[52].mxu1 %v9869_v24  ;;  %v8218_v24 = vld [vmem:[#allocation6] ss:$8 sps:$4 sm:$0xff]  }
 0x394   :  { %1437 = vmatprep.mubr.bf16.mxu1 %v1360_v38 }
 0x39b   :  { %1438 = vmatmul.mubr.bf16.gmra.mrb[56].mxu1 %v1359_v50 }
 0x39c   :  { %1445 = vmatprep.mubr.bf16.mxu1 %v1362_v23 }
 0x3a3   :  { %1446 = vmatmul.mubr.bf16.gmra.mrb[60].mxu1 %v1361_v36 }
 0x3a4   :  { %1453 = vmatprep.mubr.bf16.mxu1 %v1364_v19 }
 0x3ab   :  { %1454 = vmatmul.mubr.bf16.gmra.mrb[64].mxu1 %v1363_v1 }
 0x3ac   :  { %6725 = vmatprep.mubr.msk.f32.mxu1 %vm7746_vm0, %v9870_v17 }
 0x426   :  { %v1060_v55 = vpop.f32.mrb[32].mxu1 }
 0x427   :  { %v1073_v56 = vadd.f32 %v8204_v28, %v1060_v55  ;;  %v6660_v58 = vpop.f32.mrb[33].mxu1 }
 0x429   :  { %1074 = vst [vmem:[#allocation11] sm:$0x1] %v1073_v56 }
 0x446   :  { %v5931_v62 = vpop.f32.mrb[36].mxu1 }
 0x447   :  { %v5932_v63 = vpop.f32.mrb[37].mxu1 }
 0x448   :  { %v5933_v50 = vadd.f32 %v5932_v63, %v5931_v62  ;;  %v5934_v44 = vpop.f32.mrb[38].mxu1 }
 0x449   :  { %v5935_v18 = vpop.f32.mrb[39].mxu1 }
 0x44a   :  { %v1400_v29 = vadd.f32 %v8210_v26, %v5933_v50  ;;  %v5936_v49 = vadd.f32 %v5935_v18, %v5934_v44  ;;  %v8224_v44 = vld [vmem:[#allocation6 + $0x10] ss:$8 sps:$4 sm:$0xff]  }
 0x44c   :  { %v1478_v37 = vmul.f32 0.2, %v1400_v29  ;;  %v1403_v38 = vadd.f32 %v8210_v26, %v5936_v49  ;;  %vm1462_vm4 = vcmp.gt.f32.partialorder %v1400_v29, 0.0  ;;  %v8227_v49 = vld [vmem:[#allocation6 + $0x24] ss:$8 sps:$4 sm:$0xff]  }
 0x44e   :  { %vm1463_vm5 = vcmp.gt.f32.partialorder %v1403_v38, 0.0  ;;  %v1479_v52 = vmul.f32 0.2, %v1403_v38  ;;  %v5937_v32 = vpop.f32.mrb[40].mxu1  ;;  %v1494_v15 = vsel %vm1462_vm4, %v1400_v29, %v1478_v37 }
 0x44f   :  { %v5938_v39 = vpop.f32.mrb[41].mxu1 }
 0x450   :  { %v5939_v34 = vadd.f32 %v5938_v39, %v5937_v32  ;;  %v5940_v48 = vpop.f32.mrb[42].mxu1  ;;  %v1495_v16 = vsel %vm1463_vm5, %v1403_v38, %v1479_v52  ;;  %v8232_v39 = vld [vmem:[#allocation6 + $0x20] ss:$8 sps:$4 sm:$0xff]  }
 0x451   :  { %v5941_v36 = vpop.f32.mrb[43].mxu1  ;;  %v1510_v45 = vpack.c.bf16 %v1495_v16, %v1494_v15 }
 0x452   :  { %v1408_v6 = vadd.f32 %v8210_v26, %v5939_v34  ;;  %v5942_v23 = vadd.f32 %v5941_v36, %v5940_v48  ;;  %v8235_v34 = vld [vmem:[#allocation6 + $0x34] ss:$8 sps:$4 sm:$0xff]  }
 0x453   :  { %6677 = vmatprep.mubr.bf16.mxu0 %v1510_v45 }
 0x454   :  { %v1480_v51 = vmul.f32 0.2, %v1408_v6  ;;  %v1411_v61 = vadd.f32 %v8210_v26, %v5942_v23  ;;  %vm1464_vm6 = vcmp.gt.f32.partialorder %v1408_v6, 0.0 }
 0x456   :  { %vm1465_vm7 = vcmp.gt.f32.partialorder %v1411_v61, 0.0  ;;  %v1481_v5 = vmul.f32 0.2, %v1411_v61  ;;  %v5943_v41 = vpop.f32.mrb[44].mxu1  ;;  %v1496_v42 = vsel %vm1464_vm6, %v1408_v6, %v1480_v51  ;;  %v8238_v51 = vld [vmem:[#allocation6 + $0x30] ss:$8 sps:$4 sm:$0xff]  }
 0x457   :  { %v5944_v2 = vpop.f32.mrb[45].mxu1 }
 0x458   :  { %v1497_v33 = vsel %vm1465_vm7, %v1411_v61, %v1481_v5  ;;  %v5945_v10 = vadd.f32 %v5944_v2, %v5943_v41  ;;  %v5946_v0 = vpop.f32.mrb[46].mxu1  ;;  %v8241_v41 = vld [vmem:[#allocation6 + $0x44] ss:$8 sps:$4 sm:$0xff]  }
 0x459   :  { %v1511_v43 = vpack.c.bf16 %v1497_v33, %v1496_v42  ;;  %v5947_v47 = vpop.f32.mrb[47].mxu1 }
 0x45a   :  { %v1416_v11 = vadd.f32 %v8210_v26, %v5945_v10  ;;  %v5948_v14 = vadd.f32 %v5947_v47, %v5946_v0  ;;  %v8246_v0 = vld [vmem:[#allocation6 + $0x40] ss:$8 sps:$4 sm:$0xff]  }
 0x45b   :  { %6678 = vmatmul.mubr.bf16.vlgmr.msra.gmra.mrb[80].mxu0 %v1511_v43  ;;  %v8249_v43 = vld [vmem:[#allocation6 + $0x54] ss:$8 sps:$4 sm:$0xff]  }
 0x45c   :  { %v1482_v1 = vmul.f32 0.2, %v1416_v11  ;;  %v1419_v19 = vadd.f32 %v8210_v26, %v5948_v14  ;;  %1801 = vmatpush1.bf16.msra.mxu0 %v8218_v24  ;;  %vm1466_vm8 = vcmp.gt.f32.partialorder %v1416_v11, 0.0 }
 0x45d   :  { %1802 = vmatprep.subr.bf16.mxu0 %v8221_v21 }
 0x45e   :  { %vm1467_vm9 = vcmp.gt.f32.partialorder %v1419_v19, 0.0  ;;  %v1483_v25 = vmul.f32 0.2, %v1419_v19  ;;  %v5949_v55 = vpop.f32.mrb[48].mxu1  ;;  %v1498_v63 = vsel %vm1466_vm8, %v1416_v11, %v1482_v1 }
 0x45f   :  { %v5950_v56 = vpop.f32.mrb[49].mxu1 }
 0x460   :  { %v5951_v58 = vadd.f32 %v5950_v56, %v5949_v55  ;;  %v5952_v62 = vpop.f32.mrb[50].mxu1  ;;  %v1499_v50 = vsel %vm1467_vm9, %v1419_v19, %v1483_v25  ;;  %1803 = vmatpush1.bf16.msra.mxu0 %v8224_v44  ;;  %v8252_v56 = vld [vmem:[#allocation6 + $0x50] ss:$8 sps:$4 sm:$0xff]  }
 0x461   :  { %v5953_v18 = vpop.f32.mrb[51].mxu1  ;;  %v1512_v29 = vpack.c.bf16 %v1499_v50, %v1498_v63  ;;  %1804 = vmatprep.subr.bf16.mxu0 %v8227_v49  ;;  %v8255_v63 = vld [vmem:[#allocation6 + $0x64] ss:$8 sps:$4 sm:$0xff]  }
 0x462   :  { %v1424_v37 = vadd.f32 %v8210_v26, %v5951_v58  ;;  %v5954_v38 = vadd.f32 %v5953_v18, %v5952_v62 }
 0x463   :  { %6681 = vmatprep.mubr.bf16.mxu0 %v1512_v29 }
 0x464   :  { %v1484_v52 = vmul.f32 0.2, %v1424_v37  ;;  %v1427_v32 = vadd.f32 %v8210_v26, %v5954_v38  ;;  %1805 = vmatpush1.bf16.msra.mxu0 %v8232_v39  ;;  %vm1468_vm10 = vcmp.gt.f32.partialorder %v1424_v37, 0.0  ;;  %v8260_v38 = vld [vmem:[#allocation6 + $0x60] ss:$8 sps:$4 sm:$0xff]  }
 0x465   :  { %1806 = vmatprep.subr.bf16.mxu0 %v8235_v34 }
 0x466   :  { %vm1469_vm11 = vcmp.gt.f32.partialorder %v1427_v32, 0.0  ;;  %v1485_v48 = vmul.f32 0.2, %v1427_v32  ;;  %v5955_v15 = vpop.f32.mrb[52].mxu1  ;;  %v1500_v6 = vsel %vm1468_vm10, %v1424_v37, %v1484_v52  ;;  %v8263_v52 = vld [vmem:[#allocation6 + $0x74] ss:$8 sps:$4 sm:$0xff]  }
 0x467   :  { %v5956_v16 = vpop.f32.mrb[53].mxu1 }
 0x468   :  { %v5957_v36 = vadd.f32 %v5956_v16, %v5955_v15  ;;  %v5958_v45 = vpop.f32.mrb[54].mxu1  ;;  %v1501_v23 = vsel %vm1469_vm11, %v1427_v32, %v1485_v48  ;;  %1807 = vmatpush1.bf16.msra.mxu0 %v8238_v51 }
 0x469   :  { %v5959_v61 = vpop.f32.mrb[55].mxu1  ;;  %v1513_v5 = vpack.c.bf16 %v1501_v23, %v1500_v6  ;;  %1808 = vmatprep.subr.bf16.mxu0 %v8241_v41  ;;  %v8266_v23 = vld [vmem:[#allocation6 + $0x70] ss:$8 sps:$4 sm:$0xff]  }
 0x46a   :  { %v1432_v2 = vadd.f32 %v8210_v26, %v5957_v36  ;;  %v5960_v42 = vadd.f32 %v5959_v61, %v5958_v45 }
 0x46b   :  { %6682 = vmatmul.mubr.bf16.gmra.mrb[84].mxu0 %v1513_v5 }
 0x46c   :  { %v1486_v33 = vmul.f32 0.2, %v1432_v2  ;;  %v1435_v10 = vadd.f32 %v8210_v26, %v5960_v42  ;;  %1809 = vmatpush1.bf16.msra.mxu0 %v8246_v0  ;;  %vm1470_vm12 = vcmp.gt.f32.partialorder %v1432_v2, 0.0 }
 0x46d   :  { %1810 = vmatprep.subr.bf16.mxu0 %v8249_v43 }
 0x46e   :  { %vm1471_vm13 = vcmp.gt.f32.partialorder %v1435_v10, 0.0  ;;  %v1487_v47 = vmul.f32 0.2, %v1435_v10  ;;  %v5961_v11 = vpop.f32.mrb[56].mxu1  ;;  %v1502_v25 = vsel %vm1470_vm12, %v1432_v2, %v1486_v33  ;;  %v8269_v2 = vld [vmem:[#allocation9] sm:$0xff]  }
 0x46f   :  { %v5962_v14 = vpop.f32.mrb[57].mxu1 }
 0x470   :  { %v5963_v1 = vadd.f32 %v5962_v14, %v5961_v11  ;;  %v5964_v19 = vpop.f32.mrb[58].mxu1  ;;  %v1503_v55 = vsel %vm1471_vm13, %v1435_v10, %v1487_v47  ;;  %1811 = vmatpush1.bf16.msra.mxu0 %v8252_v56 }
 0x471   :  { %v5965_v58 = vpop.f32.mrb[59].mxu1  ;;  %v1514_v62 = vpack.c.bf16 %v1503_v55, %v1502_v25  ;;  %1812 = vmatprep.subr.bf16.mxu0 %v8255_v63 }
 0x472   :  { %v1440_v50 = vadd.f32 %v8210_v26, %v5963_v1  ;;  %v5966_v18 = vadd.f32 %v5965_v58, %v5964_v19 }
 0x473   :  { %6685 = vmatprep.mubr.bf16.mxu0 %v1514_v62 }
 0x474   :  { %v1488_v29 = vmul.f32 0.2, %v1440_v50  ;;  %v1443_v37 = vadd.f32 %v8210_v26, %v5966_v18  ;;  %1813 = vmatpush1.bf16.msra.mxu0 %v8260_v38  ;;  %vm1472_vm14 = vcmp.gt.f32.partialorder %v1440_v50, 0.0 }
 0x475   :  { %1814 = vmatprep.subr.bf16.mxu0 %v8263_v52 }
 0x476   :  { %vm1473_vm15 = vcmp.gt.f32.partialorder %v1443_v37, 0.0  ;;  %v1489_v32 = vmul.f32 0.2, %v1443_v37  ;;  %v5967_v48 = vpop.f32.mrb[60].mxu1  ;;  %v1504_v45 = vsel %vm1472_vm14, %v1440_v50, %v1488_v29 }
 0x477   :  { %v5968_v15 = vpop.f32.mrb[61].mxu1 }
 0x478   :  { %v5969_v16 = vadd.f32 %v5968_v15, %v5967_v48  ;;  %v5970_v36 = vpop.f32.mrb[62].mxu1  ;;  %v1505_v6 = vsel %vm1473_vm15, %v1443_v37, %v1489_v32  ;;  %1815 = vmatpush1.bf16.msra.mxu0 %v8266_v23 }
 0x479   :  { %v5971_v61 = vpop.f32.mrb[63].mxu1  ;;  %v1515_v5 = vpack.c.bf16 %v1505_v6, %v1504_v45  ;;  %6728 = vmatprep.subr.bf16.mxu0 %v8269_v2  ;;  %v9872_v45 = vmov 0   ;;  %v7400_v6 = vld [vmem:[#allocation3 + $0x80] sm:$0xff]  }
 0x47a   :  { %v1448_v42 = vadd.f32 %v8210_v26, %v5969_v16  ;;  %v5972_v33 = vadd.f32 %v5971_v61, %v5970_v36  ;;  %v8279_v61 = vld [vmem:[#allocation9 + $0x8] sm:$0xff]  }
 0x47b   :  { %6686 = vmatmul.mubr.bf16.gmra.mrb[88].mxu0 %v1515_v5  ;;  %v7401_v5 = vld [vmem:[#allocation3 + $0x88] sm:$0xff]  }
 0x47c   :  { %v1490_v10 = vmul.f32 0.2, %v1448_v42  ;;  %v1451_v47 = vadd.f32 %v8210_v26, %v5972_v33  ;;  %vm1474_vm1 = vcmp.gt.f32.partialorder %v1448_v42, 0.0  ;;  %v8288_v33 = vld [vmem:[#allocation9 + $0x18] sm:$0xff]  }
 0x47d   :  { %9873 = vst [vmem:[#allocation16_spill] sm:$0xff] %v8288_v33 }
 0x47e   :  { %vm1475_vm2 = vcmp.gt.f32.partialorder %v1451_v47, 0.0  ;;  %v1491_v11 = vmul.f32 0.2, %v1451_v47  ;;  %v5973_v14 = vpop.f32.mrb[64].mxu1  ;;  %v1506_v55 = vsel %vm1474_vm1, %v1448_v42, %v1490_v10  ;;  %v8283_v42 = vld [vmem:[#allocation9 + $0x10] sm:$0xff]  }
 0x47f   :  { %v5974_v1 = vpop.f32.mrb[65].mxu1  ;;  %v7402_v10 = vld [vmem:[#allocation3 + $0x90] sm:$0xff]  }
 0x480   :  { %v5975_v19 = vadd.f32 %v5974_v1, %v5973_v14  ;;  %v5976_v25 = vpop.f32.mrb[66].mxu1  ;;  %v1507_v58 = vsel %vm1475_vm2, %v1451_v47, %v1491_v11  ;;  %v8292_v47 = vld [vmem:[#allocation9 + $0x20] sm:$0xff]   ;;  %v8297_v11 = vld [vmem:[#allocation9 + $0x28] sm:$0xff]   ;;  %v7403_v14 = vld [vmem:[#allocation3 + $0x98] sm:$0xff]  }
 0x481   :  { %v5977_v62 = vpop.f32.mrb[67].mxu1  ;;  %v1516_v50 = vpack.c.bf16 %v1507_v58, %v1506_v55  ;;  %9874 = vst [vmem:[#allocation17_spill] sm:$0xff] %v8292_v47  ;;  %9875 = vst [vmem:[#allocation18_spill] sm:$0xff] %v8297_v11  ;;  %v8301_v1 = vld [vmem:[#allocation9 + $0x30] sm:$0xff]   ;;  %v8310_v55 = vld [vmem:[#allocation6 + $0x4] ss:$8 sps:$4 sm:$0xff]  }
 0x482   :  { %v1456_v18 = vadd.f32 %v8210_v26, %v5975_v19  ;;  %v5978_v29 = vadd.f32 %v5977_v62, %v5976_v25  ;;  %9876 = vst [vmem:[#allocation19_spill] sm:$0xff] %v8301_v1  ;;  %v8306_v19 = vld [vmem:[#allocation9 + $0x38] sm:$0xff]   ;;  %v7404_v25 = vld [vmem:[#allocation3 + $0xa0] sm:$0xff]   ;;  %9878 = vst [vmem:[#allocation21_spill] sm:$0xff] %v8310_v55 }
 0x483   :  { %6689 = vmatprep.mubr.bf16.mxu0 %v1516_v50  ;;  %9877 = vst [vmem:[#allocation20_spill] sm:$0xff] %v8306_v19  ;;  %v7405_v58 = vld [vmem:[#allocation3 + $0xa8] sm:$0xff]   ;;  %v7406_v62 = vld [vmem:[#allocation3 + $0xb0] sm:$0xff]   ;;  %v7407_v50 = vld [vmem:[#allocation3 + $0xb8] sm:$0xff]  }
 0x484   :  { %v1492_v37 = vmul.f32 0.2, %v1456_v18  ;;  %v1459_v32 = vadd.f32 %v8210_v26, %v5978_v29  ;;  %vm1476_vm3 = vcmp.gt.f32.partialorder %v1456_v18, 0.0 }
 0x486   :  { %vm1477_vm4 = vcmp.gt.f32.partialorder %v1459_v32, 0.0  ;;  %v1493_v48 = vmul.f32 0.2, %v1459_v32  ;;  %v1508_v15 = vsel %vm1476_vm3, %v1456_v18, %v1492_v37 }
 0x488   :  { %v1509_v16 = vsel %vm1477_vm4, %v1459_v32, %v1493_v48 }
 0x489   :  { %v1517_v36 = vpack.c.bf16 %v1509_v16, %v1508_v15  ;;  %v8321_v16 = vld [vmem:[%s9830_s6] ss:$0 sm:$0xff] }
 0x48b   :  { %6690 = vmatmul.mubr.bf16.gmra.mrb[92].mxu0 %v1517_v36 }
 0x48c   :  { %1832 = vmatprep.mubr.bf16.mxu0 %v9872_v45 }
 0x493   :  { %1833 = vmatmul.mubr.bf16.vlgmr.msra.gmra.mrb[96].mxu0 %v7400_v6 }
 0x494   :  { %1842 = vmatprep.mubr.bf16.mxu0 %v9872_v45  ;;  %6729 = vmatpush3.bf16.msra.mxu0 %v8269_v2 }
 0x495   :  { %6730 = vmatprep.subr.bf16.mxu0 %v8279_v61 }
 0x498   :  { %6731 = vmatpush3.bf16.msra.mxu0 %v8279_v61 }
 0x499   :  { %6732 = vmatprep.subr.bf16.mxu0 %v8283_v42 }
 0x49b   :  { %1843 = vmatmul.mubr.bf16.gmra.mrb[100].mxu0 %v7401_v5 }
 0x49c   :  { %1852 = vmatprep.mubr.bf16.mxu0 %v9872_v45  ;;  %6733 = vmatpush3.bf16.msra.mxu0 %v8283_v42 }
 0x49d   :  { %6734 = vmatprep.subr.bf16.mxu0 %v8288_v33 }
 0x4a0   :  { %6735 = vmatpush3.bf16.msra.mxu0 %v8288_v33 }
 0x4a1   :  { %6736 = vmatprep.subr.bf16.mxu0 %v8292_v47 }
 0x4a3   :  { %1853 = vmatmul.mubr.bf16.gmra.mrb[104].mxu0 %v7402_v10 }
 0x4a4   :  { %1862 = vmatprep.mubr.bf16.mxu0 %v9872_v45  ;;  %6737 = vmatpush3.bf16.msra.mxu0 %v8292_v47 }
 0x4a5   :  { %6738 = vmatprep.subr.bf16.mxu0 %v8297_v11 }
 0x4a8   :  { %6739 = vmatpush3.bf16.msra.mxu0 %v8297_v11 }
 0x4a9   :  { %6740 = vmatprep.subr.bf16.mxu0 %v8301_v1 }
 0x4ab   :  { %1863 = vmatmul.mubr.bf16.gmra.mrb[108].mxu0 %v7403_v14 }
 0x4ac   :  { %1872 = vmatprep.mubr.bf16.mxu0 %v9872_v45  ;;  %6741 = vmatpush3.bf16.msra.mxu0 %v8301_v1 }
 0x4ad   :  { %6742 = vmatprep.subr.bf16.mxu0 %v8306_v19 }
 0x4b0   :  { %6743 = vmatpush3.bf16.msra.mxu0 %v8306_v19 }
 0x4b1   :  { %2460 = vmatprep.subr.bf16.mxu0 %v8310_v55 }
 0x4b3   :  { %1873 = vmatmul.mubr.bf16.gmra.mrb[112].mxu0 %v7404_v25 }
 0x4b4   :  { %1882 = vmatprep.mubr.bf16.mxu0 %v9872_v45 }
 0x4bb   :  { %1883 = vmatmul.mubr.bf16.gmra.mrb[116].mxu0 %v7405_v58 }
 0x4bc   :  { %1892 = vmatprep.mubr.bf16.mxu0 %v9872_v45 }
 0x4c3   :  { %1893 = vmatmul.mubr.bf16.gmra.mrb[120].mxu0 %v7406_v62 }
 0x4c4   :  { %1902 = vmatprep.mubr.bf16.mxu0 %v9872_v45 }
 0x4cb   :  { %1903 = vmatmul.mubr.bf16.gmra.mrb[124].mxu0 %v7407_v50 }
 0x52e   :  { %v6679_v18 = vpop.f32.mrb[80].mxu0 }
 0x52f   :  { %v1561_v29 = vadd.f32 %v6679_v18, %v8007_v4  ;;  %v1552_v37 = vpop.f32.mrb[81].mxu0 }
 0x530   :  { %v1553_v32 = vadd.f32 %v8007_v4, %v1552_v37  ;;  %v6680_v48 = vpop.f32.mrb[82].mxu0 }
 0x531   :  { %v1633_v15 = vmul.f32 0.2, %v1561_v29  ;;  %v1564_v36 = vadd.f32 %v8321_v16, %v6680_v48  ;;  %v1555_v6 = vpop.f32.mrb[83].mxu0  ;;  %vm1617_vm5 = vcmp.gt.f32.partialorder %v1561_v29, 0.0 }
 0x532   :  { %v1631_v5 = vmul.f32 0.2, %v1553_v32  ;;  %v1556_v10 = vadd.f32 %v8321_v16, %v1555_v6  ;;  %vm1615_vm6 = vcmp.gt.f32.partialorder %v1553_v32, 0.0 }
 0x533   :  { %vm1618_vm7 = vcmp.gt.f32.partialorder %v1564_v36, 0.0  ;;  %v1634_v14 = vmul.f32 0.2, %v1564_v36  ;;  %v1649_v4 = vsel %vm1617_vm5, %v1561_v29, %v1633_v15 }
 0x534   :  { %vm1616_vm8 = vcmp.gt.f32.partialorder %v1556_v10, 0.0  ;;  %v1632_v25 = vmul.f32 0.2, %v1556_v10  ;;  %v1647_v62 = vsel %vm1615_vm6, %v1553_v32, %v1631_v5 }
 0x535   :  { %v1650_v58 = vsel %vm1618_vm7, %v1564_v36, %v1634_v14 }
 0x536   :  { %v1648_v50 = vsel %vm1616_vm8, %v1556_v10, %v1632_v25  ;;  %v7158_v18 = vpack.c.bf16 %v1650_v58, %v1649_v4 }
 0x537   :  { %v7155_v37 = vpack.c.bf16 %v1648_v50, %v1647_v62 }
 0x539   :  { %7156 = vmatpush3.bf16.xpose.msra.mxu1 %v7155_v37 }
 0x53a   :  { %7157 = vmatprep.subr.bf16.mxu1 %v7745_v46 }
 0x53e   :  { %v6683_v48 = vpop.f32.mrb[84].mxu0 }
 0x53f   :  { %v1577_v55 = vadd.f32 %v8321_v16, %v6683_v48  ;;  %v1568_v19 = vpop.f32.mrb[85].mxu0 }
 0x540   :  { %v1569_v6 = vadd.f32 %v8321_v16, %v1568_v19  ;;  %v6684_v1 = vpop.f32.mrb[86].mxu0 }
 0x541   :  { %v1637_v11 = vmul.f32 0.2, %v1577_v55  ;;  %v1580_v47 = vadd.f32 %v8321_v16, %v6684_v1  ;;  %v1571_v33 = vpop.f32.mrb[87].mxu0  ;;  %7159 = vmatpush3.bf16.xpose.msra.mxu1 %v7158_v18  ;;  %vm1621_vm9 = vcmp.gt.f32.partialorder %v1577_v55, 0.0 }
 0x542   :  { %v1635_v29 = vmul.f32 0.2, %v1569_v6  ;;  %v1572_v32 = vadd.f32 %v8321_v16, %v1571_v33  ;;  %7160 = vmatprep.subr.bf16.mxu1 %v7745_v46  ;;  %vm1619_vm10 = vcmp.gt.f32.partialorder %v1569_v6, 0.0 }
 0x543   :  { %vm1622_vm11 = vcmp.gt.f32.partialorder %v1580_v47, 0.0  ;;  %v1638_v15 = vmul.f32 0.2, %v1580_v47  ;;  %v1653_v5 = vsel %vm1621_vm9, %v1577_v55, %v1637_v11 }
 0x544   :  { %vm1620_vm12 = vcmp.gt.f32.partialorder %v1572_v32, 0.0  ;;  %v1636_v36 = vmul.f32 0.2, %v1572_v32  ;;  %v1651_v19 = vsel %vm1619_vm10, %v1569_v6, %v1635_v29 }
 0x545   :  { %v1654_v10 = vsel %vm1622_vm11, %v1580_v47, %v1638_v15 }
 0x546   :  { %v1652_v14 = vsel %vm1620_vm12, %v1572_v32, %v1636_v36  ;;  %v7164_v25 = vpack.c.bf16 %v1654_v10, %v1653_v5 }
 0x547   :  { %v7161_v4 = vpack.c.bf16 %v1652_v14, %v1651_v19 }
 0x549   :  { %7162 = vmatpush3.bf16.xpose.msra.mxu1 %v7161_v4 }
 0x54a   :  { %7163 = vmatprep.subr.bf16.mxu1 %v7745_v46 }
 0x54e   :  { %v6687_v1 = vpop.f32.mrb[88].mxu0 }
 0x54f   :  { %v1593_v58 = vadd.f32 %v8321_v16, %v6687_v1  ;;  %v1584_v33 = vpop.f32.mrb[89].mxu0 }
 0x550   :  { %v1585_v62 = vadd.f32 %v8321_v16, %v1584_v33  ;;  %v6688_v50 = vpop.f32.mrb[90].mxu0 }
 0x551   :  { %v1641_v18 = vmul.f32 0.2, %v1593_v58  ;;  %v1596_v37 = vadd.f32 %v8321_v16, %v6688_v50  ;;  %v1587_v48 = vpop.f32.mrb[91].mxu0  ;;  %7165 = vmatpush3.bf16.xpose.msra.mxu1 %v7164_v25  ;;  %vm1625_vm13 = vcmp.gt.f32.partialorder %v1593_v58, 0.0 }
 0x552   :  { %v1639_v47 = vmul.f32 0.2, %v1585_v62  ;;  %v1588_v11 = vadd.f32 %v8321_v16, %v1587_v48  ;;  %7166 = vmatprep.subr.bf16.mxu1 %v7745_v46  ;;  %vm1623_vm14 = vcmp.gt.f32.partialorder %v1585_v62, 0.0 }
 0x553   :  { %vm1626_vm15 = vcmp.gt.f32.partialorder %v1596_v37, 0.0  ;;  %v1642_v55 = vmul.f32 0.2, %v1596_v37  ;;  %v1657_v29 = vsel %vm1625_vm13, %v1593_v58, %v1641_v18 }
 0x554   :  { %vm1624_vm1 = vcmp.gt.f32.partialorder %v1588_v11, 0.0  ;;  %v1640_v6 = vmul.f32 0.2, %v1588_v11  ;;  %v1655_v15 = vsel %vm1623_vm14, %v1585_v62, %v1639_v47 }
 0x555   :  { %v1658_v32 = vsel %vm1626_vm15, %v1596_v37, %v1642_v55 }
 0x556   :  { %v1656_v36 = vsel %vm1624_vm1, %v1588_v11, %v1640_v6  ;;  %v7170_v5 = vpack.c.bf16 %v1658_v32, %v1657_v29 }
 0x557   :  { %v7167_v10 = vpack.c.bf16 %v1656_v36, %v1655_v15 }
 0x559   :  { %7168 = vmatpush3.bf16.xpose.msra.mxu1 %v7167_v10 }
 0x55a   :  { %7169 = vmatprep.subr.bf16.mxu1 %v7745_v46 }
 0x55e   :  { %v6691_v19 = vpop.f32.mrb[92].mxu0 }
 0x55f   :  { %v1609_v14 = vadd.f32 %v8321_v16, %v6691_v19  ;;  %v1600_v25 = vpop.f32.mrb[93].mxu0 }
 0x560   :  { %v1601_v4 = vadd.f32 %v8321_v16, %v1600_v25  ;;  %v6692_v1 = vpop.f32.mrb[94].mxu0 }
 0x561   :  { %v1645_v33 = vmul.f32 0.2, %v1609_v14  ;;  %v1612_v50 = vadd.f32 %v8321_v16, %v6692_v1  ;;  %v1603_v48 = vpop.f32.mrb[95].mxu0  ;;  %7171 = vmatpush3.bf16.xpose.msra.mxu1 %v7170_v5  ;;  %vm1629_vm2 = vcmp.gt.f32.partialorder %v1609_v14, 0.0 }
 0x562   :  { %v1643_v58 = vmul.f32 0.2, %v1601_v4  ;;  %v1604_v62 = vadd.f32 %v8321_v16, %v1603_v48  ;;  %7172 = vmatprep.subr.bf16.mxu1 %v7745_v46  ;;  %vm1627_vm3 = vcmp.gt.f32.partialorder %v1601_v4, 0.0 }
 0x563   :  { %vm1630_vm4 = vcmp.gt.f32.partialorder %v1612_v50, 0.0  ;;  %v1646_v18 = vmul.f32 0.2, %v1612_v50  ;;  %v1661_v47 = vsel %vm1629_vm2, %v1609_v14, %v1645_v33 }
 0x564   :  { %vm1628_vm5 = vcmp.gt.f32.partialorder %v1604_v62, 0.0  ;;  %v1644_v37 = vmul.f32 0.2, %v1604_v62  ;;  %v1659_v55 = vsel %vm1627_vm3, %v1601_v4, %v1643_v58 }
 0x565   :  { %v1662_v11 = vsel %vm1630_vm4, %v1612_v50, %v1646_v18 }
 0x566   :  { %v1660_v6 = vsel %vm1628_vm5, %v1604_v62, %v1644_v37  ;;  %v7176_v29 = vpack.c.bf16 %v1662_v11, %v1661_v47  ;;  %v1834_v32 = vpop.f32.mrb[96].mxu0 }
 0x567   :  { %v7173_v15 = vpack.c.bf16 %v1660_v6, %v1659_v55  ;;  %v1835_v36 = vadd.f32 %v1834_v32, %v7911_v53  ;;  %v1836_v5 = vpop.f32.mrb[97].mxu0 }
 0x568   :  { %v1837_v10 = vadd.f32 %v1836_v5, %v7913_v54  ;;  %v1838_v19 = vpop.f32.mrb[98].mxu0 }
 0x569   :  { %7174 = vmatpush3.bf16.xpose.msra.mxu1 %v7173_v15  ;;  %vm1913_vm6 = vcmp.gt.f32.partialorder %v1835_v36, 0.0  ;;  %v1945_v25 = vmul.f32 0.2, %v1835_v36  ;;  %v1839_v1 = vadd.f32 %v1838_v19, %v7911_v53  ;;  %v1840_v48 = vpop.f32.mrb[99].mxu0 }
 0x56a   :  { %7175 = vmatprep.subr.bf16.mxu1 %v7745_v46  ;;  %v1946_v14 = vmul.f32 0.2, %v1837_v10  ;;  %v1841_v4 = vadd.f32 %v1840_v48, %v7913_v54  ;;  %vm1914_vm7 = vcmp.gt.f32.partialorder %v1837_v10, 0.0 }
 0x56b   :  { %v8348_v33 = vsel %vm1913_vm6, %v1835_v36, %v1945_v25  ;;  %vm1915_vm8 = vcmp.gt.f32.partialorder %v1839_v1, 0.0  ;;  %v1947_v50 = vmul.f32 0.2, %v1839_v1 }
 0x56c   :  { %v1948_v58 = vmul.f32 0.2, %v1841_v4  ;;  %vm1916_vm9 = vcmp.gt.f32.partialorder %v1841_v4, 0.0  ;;  %v1978_v62 = vsel %vm1914_vm7, %v1837_v10, %v1946_v14 }
 0x56d   :  { %v8350_v18 = vsel %vm1915_vm8, %v1839_v1, %v1947_v50 }
 0x56e   :  { %v1844_v37 = vpop.f32.mrb[100].mxu0  ;;  %v1980_v47 = vsel %vm1916_vm9, %v1841_v4, %v1948_v58  ;;  %v2009_v11 = vpack.c.bf16 %v8350_v18, %v8348_v33 }
 0x56f   :  { %v1845_v55 = vadd.f32 %v1844_v37, %v7911_v53  ;;  %v1846_v6 = vpop.f32.mrb[101].mxu0  ;;  %v2010_v32 = vpack.c.bf16 %v1980_v47, %v1978_v62 }
 0x570   :  { %v1847_v15 = vadd.f32 %v1846_v6, %v7913_v54  ;;  %v1848_v36 = vpop.f32.mrb[102].mxu0 }
 0x571   :  { %7177 = vmatpush3.bf16.xpose.msra.mxu1 %v7176_v29  ;;  %v1949_v5 = vmul.f32 0.2, %v1845_v55  ;;  %v1849_v19 = vadd.f32 %v1848_v36, %v7911_v53  ;;  %v1850_v25 = vpop.f32.mrb[103].mxu0  ;;  %vm1917_vm10 = vcmp.gt.f32.partialorder %v1845_v55, 0.0 }
 0x572   :  { %6012 = vmatprep.subr.bf16.mxu1 %v8045_v60  ;;  %v1950_v10 = vmul.f32 0.2, %v1847_v15  ;;  %v1851_v1 = vadd.f32 %v1850_v25, %v7913_v54  ;;  %vm1918_vm11 = vcmp.gt.f32.partialorder %v1847_v15, 0.0 }
 0x573   :  { %v1951_v48 = vmul.f32 0.2, %v1849_v19  ;;  %vm1919_vm12 = vcmp.gt.f32.partialorder %v1849_v19, 0.0  ;;  %v8359_v14 = vsel %vm1917_vm10, %v1845_v55, %v1949_v5  ;;  %v8375_v55 = vld [vmem:[%s9831_s7] sm:$0xff] }
 0x574   :  { %v1952_v4 = vmul.f32 0.2, %v1851_v1  ;;  %vm1920_vm13 = vcmp.gt.f32.partialorder %v1851_v1, 0.0  ;;  %v8361_v50 = vsel %vm1918_vm11, %v1847_v15, %v1950_v10 }
 0x575   :  { %v8363_v29 = vsel %vm1919_vm12, %v1849_v19, %v1951_v48 }
 0x576   :  { %v1854_v58 = vpop.f32.mrb[104].mxu0  ;;  %v8365_v62 = vsel %vm1920_vm13, %v1851_v1, %v1952_v4 }
 0x577   :  { %v1855_v37 = vadd.f32 %v1854_v58, %v7911_v53  ;;  %v1856_v47 = vpop.f32.mrb[105].mxu0 }
 0x578   :  { %6726 = vmatmul.mubr.f32.vlgmr.msra.gmra.mrb[34].mxu1 %v8375_v55  ;;  %v1857_v15 = vadd.f32 %v1856_v47, %v7913_v54  ;;  %v1858_v36 = vpop.f32.mrb[106].mxu0 }
 0x579   :  { %6013 = vmatpush3.bf16.msra.mxu1 %v8066_v9  ;;  %2057 = vmatprep.mubr.bf16.mxu1 %v2010_v32  ;;  %v1953_v5 = vmul.f32 0.2, %v1855_v37  ;;  %v1859_v19 = vadd.f32 %v1858_v36, %v7911_v53  ;;  %v1860_v25 = vpop.f32.mrb[107].mxu0  ;;  %vm1921_vm14 = vcmp.gt.f32.partialorder %v1855_v37, 0.0 }
 0x57a   :  { %6014 = vmatprep.subr.bf16.mxu1 %v8070_v13  ;;  %v1954_v10 = vmul.f32 0.2, %v1857_v15  ;;  %v1861_v1 = vadd.f32 %v1860_v25, %v7913_v54  ;;  %vm1922_vm15 = vcmp.gt.f32.partialorder %v1857_v15, 0.0 }
 0x57b   :  { %v1955_v48 = vmul.f32 0.2, %v1859_v19  ;;  %vm1923_vm1 = vcmp.gt.f32.partialorder %v1859_v19, 0.0  ;;  %v8383_v4 = vsel %vm1921_vm14, %v1855_v37, %v1953_v5 }
 0x57c   :  { %v1956_v58 = vmul.f32 0.2, %v1861_v1  ;;  %vm1924_vm2 = vcmp.gt.f32.partialorder %v1861_v1, 0.0  ;;  %v8385_v47 = vsel %vm1922_vm15, %v1857_v15, %v1954_v10 }
 0x57d   :  { %6015 = vmatpush3.bf16.msra.mxu1 %v8078_v20  ;;  %v8388_v9 = vsel %vm1923_vm1, %v1859_v19, %v1955_v48 }
 0x57e   :  { %6016 = vmatprep.subr.bf16.mxu1 %v8083_v22  ;;  %v1864_v32 = vpop.f32.mrb[108].mxu0  ;;  %v8391_v13 = vsel %vm1924_vm2, %v1861_v1, %v1956_v58 }
 0x57f   :  { %v1865_v25 = vadd.f32 %v1864_v32, %v7911_v53  ;;  %v1866_v37 = vpop.f32.mrb[109].mxu0 }
 0x580   :  { %v1867_v15 = vadd.f32 %v1866_v37, %v7913_v54  ;;  %v1868_v10 = vpop.f32.mrb[110].mxu0 }
 0x581   :  { %6017 = vmatpush3.bf16.msra.mxu1 %v8094_v31  ;;  %v1957_v20 = vmul.f32 0.2, %v1865_v25  ;;  %v1869_v22 = vadd.f32 %v1868_v10, %v7911_v53  ;;  %v1870_v19 = vpop.f32.mrb[111].mxu0  ;;  %vm1925_vm3 = vcmp.gt.f32.partialorder %v1865_v25, 0.0 }
 0x582   :  { %6018 = vmatprep.subr.bf16.mxu1 %v8098_v40  ;;  %v1958_v1 = vmul.f32 0.2, %v1867_v15  ;;  %v1871_v48 = vadd.f32 %v1870_v19, %v7913_v54  ;;  %vm1926_vm4 = vcmp.gt.f32.partialorder %v1867_v15, 0.0 }
 0x583   :  { %v1959_v58 = vmul.f32 0.2, %v1869_v22  ;;  %vm1927_vm5 = vcmp.gt.f32.partialorder %v1869_v22, 0.0  ;;  %v8403_v32 = vsel %vm1925_vm3, %v1865_v25, %v1957_v20 }
 0x584   :  { %v1960_v36 = vmul.f32 0.2, %v1871_v48  ;;  %vm1928_vm6 = vcmp.gt.f32.partialorder %v1871_v48, 0.0  ;;  %v8405_v37 = vsel %vm1926_vm4, %v1867_v15, %v1958_v1 }
 0x585   :  { %6019 = vmatpush3.bf16.msra.mxu1 %v8106_v57  ;;  %v8408_v31 = vsel %vm1927_vm5, %v1869_v22, %v1959_v58 }
 0x586   :  { %6020 = vmatprep.subr.bf16.mxu1 %v8111_v59  ;;  %v1874_v10 = vpop.f32.mrb[112].mxu0  ;;  %v8411_v40 = vsel %vm1928_vm6, %v1871_v48, %v1960_v36 }
 0x587   :  { %v1875_v5 = vadd.f32 %v1874_v10, %v7911_v53  ;;  %v1876_v25 = vpop.f32.mrb[113].mxu0 }
 0x588   :  { %v1877_v15 = vadd.f32 %v1876_v25, %v7913_v54  ;;  %v1878_v1 = vpop.f32.mrb[114].mxu0 }
 0x589   :  { %6021 = vmatpush3.bf16.msra.mxu1 %v8122_v7  ;;  %v1961_v57 = vmul.f32 0.2, %v1875_v5  ;;  %v1879_v59 = vadd.f32 %v1878_v1, %v7911_v53  ;;  %v1880_v22 = vpop.f32.mrb[115].mxu0  ;;  %vm1929_vm7 = vcmp.gt.f32.partialorder %v1875_v5, 0.0 }
 0x58a   :  { %6022 = vmatprep.subr.bf16.mxu1 %v8126_v12  ;;  %v1962_v36 = vmul.f32 0.2, %v1877_v15  ;;  %v1881_v48 = vadd.f32 %v1880_v22, %v7913_v54  ;;  %vm1930_vm8 = vcmp.gt.f32.partialorder %v1877_v15, 0.0 }
 0x58b   :  { %v1963_v58 = vmul.f32 0.2, %v1879_v59  ;;  %vm1931_vm9 = vcmp.gt.f32.partialorder %v1879_v59, 0.0  ;;  %v8423_v10 = vsel %vm1929_vm7, %v1875_v5, %v1961_v57 }
 0x58c   :  { %v1964_v19 = vmul.f32 0.2, %v1881_v48  ;;  %vm1932_vm10 = vcmp.gt.f32.partialorder %v1881_v48, 0.0  ;;  %v8425_v25 = vsel %vm1930_vm8, %v1877_v15, %v1962_v36 }
 0x58d   :  { %6023 = vmatpush3.bf16.msra.mxu1 %v8134_v27  ;;  %v8428_v7 = vsel %vm1931_vm9, %v1879_v59, %v1963_v58 }
 0x58e   :  { %6024 = vmatprep.subr.bf16.mxu1 %v8139_v30  ;;  %v1884_v1 = vpop.f32.mrb[116].mxu0  ;;  %v8431_v12 = vsel %vm1932_vm10, %v1881_v48, %v1964_v19 }
 0x58f   :  { %v1885_v20 = vadd.f32 %v1884_v1, %v7911_v53  ;;  %v1886_v5 = vpop.f32.mrb[117].mxu0 }
 0x590   :  { %v1887_v15 = vadd.f32 %v1886_v5, %v7913_v54  ;;  %v1888_v36 = vpop.f32.mrb[118].mxu0 }
 0x591   :  { %6025 = vmatpush3.bf16.msra.mxu1 %v8150_v3  ;;  %v1965_v27 = vmul.f32 0.2, %v1885_v20  ;;  %v1889_v30 = vadd.f32 %v1888_v36, %v7911_v53  ;;  %v1890_v59 = vpop.f32.mrb[119].mxu0  ;;  %vm1933_vm11 = vcmp.gt.f32.partialorder %v1885_v20, 0.0 }
 0x592   :  { %6026 = vmatprep.subr.bf16.mxu1 %v8154_v8  ;;  %v1966_v19 = vmul.f32 0.2, %v1887_v15  ;;  %v1891_v48 = vadd.f32 %v1890_v59, %v7913_v54  ;;  %vm1934_vm12 = vcmp.gt.f32.partialorder %v1887_v15, 0.0 }
 0x593   :  { %v1967_v58 = vmul.f32 0.2, %v1889_v30  ;;  %vm1935_vm13 = vcmp.gt.f32.partialorder %v1889_v30, 0.0  ;;  %v8443_v1 = vsel %vm1933_vm11, %v1885_v20, %v1965_v27 }
 0x594   :  { %v1968_v22 = vmul.f32 0.2, %v1891_v48  ;;  %vm1936_vm14 = vcmp.gt.f32.partialorder %v1891_v48, 0.0  ;;  %v1998_v5 = vsel %vm1934_vm12, %v1887_v15, %v1966_v19 }
 0x595   :  { %6027 = vmatpush3.bf16.msra.mxu1 %v8160_v35  ;;  %v1999_v3 = vsel %vm1935_vm13, %v1889_v30, %v1967_v58  ;;  %v9879_v35 = vpack.c.bf16 %v8365_v62, %v8361_v50 }
 0x596   :  { %v1894_v57 = vpop.f32.mrb[120].mxu0  ;;  %v2000_v36 = vsel %vm1936_vm14, %v1891_v48, %v1968_v22  ;;  %v2019_v60 = vpack.c.bf16 %v1999_v3, %v8443_v1  ;;  %7178 = vmatprep.subr.bf16.mxu1 %v7745_v46 }
 0x597   :  { %v1895_v8 = vadd.f32 %v1894_v57, %v7911_v53  ;;  %v1896_v59 = vpop.f32.mrb[121].mxu0  ;;  %v2020_v6 = vpack.c.bf16 %v2000_v36, %v1998_v5 }
 0x598   :  { %2058 = vmatmul.mubr.bf16.vlgmr.msra.gmra.mrb[68].mxu1 %v2009_v11  ;;  %v1897_v20 = vadd.f32 %v1896_v59, %v7913_v54  ;;  %v1898_v15 = vpop.f32.mrb[122].mxu0  ;;  %v9880_v59 = vpack.c.bf16 %v8363_v29, %v8359_v14 }
 0x599   :  { %2065 = vmatprep.mubr.bf16.mxu1 %v9879_v35  ;;  %v1969_v22 = vmul.f32 0.2, %v1895_v8  ;;  %v1899_v27 = vadd.f32 %v1898_v15, %v7911_v53  ;;  %v1900_v30 = vpop.f32.mrb[123].mxu0  ;;  %vm1937_vm15 = vcmp.gt.f32.partialorder %v1895_v8, 0.0 }
 0x59a   :  { %v1970_v19 = vmul.f32 0.2, %v1897_v20  ;;  %v1901_v57 = vadd.f32 %v1900_v30, %v7913_v54  ;;  %vm1938_vm1 = vcmp.gt.f32.partialorder %v1897_v20, 0.0 }
 0x59b   :  { %v1971_v48 = vmul.f32 0.2, %v1899_v27  ;;  %vm1939_vm2 = vcmp.gt.f32.partialorder %v1899_v27, 0.0  ;;  %v2001_v33 = vsel %vm1937_vm15, %v1895_v8, %v1969_v22  ;;  %v9881_v8 = vpack.c.bf16 %v8391_v13, %v8385_v47 }
 0x59c   :  { %v1972_v18 = vmul.f32 0.2, %v1901_v57  ;;  %vm1940_vm3 = vcmp.gt.f32.partialorder %v1901_v57, 0.0  ;;  %v2002_v11 = vsel %vm1938_vm1, %v1897_v20, %v1970_v19  ;;  %v9882_v13 = vpack.c.bf16 %v8388_v9, %v8383_v4 }
 0x59d   :  { %v2003_v58 = vsel %vm1939_vm2, %v1899_v27, %v1971_v48 }
 0x59e   :  { %v1904_v1 = vpop.f32.mrb[124].mxu0  ;;  %v2004_v5 = vsel %vm1940_vm3, %v1901_v57, %v1972_v18  ;;  %v2021_v50 = vpack.c.bf16 %v2003_v58, %v2001_v33  ;;  %v9883_v58 = vpack.c.bf16 %v8411_v40, %v8405_v37 }
 0x59f   :  { %v1905_v62 = vadd.f32 %v1904_v1, %v7911_v53  ;;  %v1906_v3 = vpop.f32.mrb[125].mxu0  ;;  %v2022_v36 = vpack.c.bf16 %v2004_v5, %v2002_v11  ;;  %v9884_v1 = vpack.c.bf16 %v8408_v31, %v8403_v32  ;;  %v9885_v5 = vpack.c.bf16 %v8431_v12, %v8425_v25 }
 0x5a0   :  { %2066 = vmatmul.mubr.bf16.gmra.mrb[72].mxu1 %v9880_v59  ;;  %v1907_v15 = vadd.f32 %v1906_v3, %v7913_v54  ;;  %v1908_v35 = vpop.f32.mrb[126].mxu0 }
 0x5a1   :  { %2073 = vmatprep.mubr.bf16.mxu1 %v9881_v8  ;;  %v1973_v20 = vmul.f32 0.2, %v1905_v62  ;;  %v1909_v22 = vadd.f32 %v1908_v35, %v7911_v53  ;;  %v1910_v27 = vpop.f32.mrb[127].mxu0  ;;  %vm1941_vm4 = vcmp.gt.f32.partialorder %v1905_v62, 0.0 }
 0x5a2   :  { %v1974_v30 = vmul.f32 0.2, %v1907_v15  ;;  %v1911_v19 = vadd.f32 %v1910_v27, %v7913_v54  ;;  %vm1942_vm5 = vcmp.gt.f32.partialorder %v1907_v15, 0.0  ;;  %v8491_v27 = vld [vmem:[%s9828_s4] ss:$0 sm:$0xff] }
 0x5a3   :  { %v1975_v57 = vmul.f32 0.2, %v1909_v22  ;;  %vm1943_vm6 = vcmp.gt.f32.partialorder %v1909_v22, 0.0  ;;  %v2005_v14 = vsel %vm1941_vm4, %v1905_v62, %v1973_v20  ;;  %v9886_v62 = vpack.c.bf16 %v8428_v7, %v8423_v10 }
 0x5a4   :  { %v1976_v29 = vmul.f32 0.2, %v1911_v19  ;;  %vm1944_vm7 = vcmp.gt.f32.partialorder %v1911_v19, 0.0  ;;  %v2006_v48 = vsel %vm1942_vm5, %v1907_v15, %v1974_v30 }
 0x5a5   :  { %v2007_v33 = vsel %vm1943_vm6, %v1909_v22, %v1975_v57 }
 0x5a6   :  { %v2008_v18 = vsel %vm1944_vm7, %v1911_v19, %v1976_v29  ;;  %v2023_v11 = vpack.c.bf16 %v2007_v33, %v2005_v14 }
 0x5a7   :  { %v2024_v47 = vpack.c.bf16 %v2008_v18, %v2006_v48 }
 0x5a8   :  { %2074 = vmatmul.mubr.bf16.gmra.mrb[76].mxu1 %v9882_v13 }
 0x5a9   :  { %2081 = vmatprep.mubr.bf16.mxu1 %v9883_v58 }
 0x5b0   :  { %2082 = vmatmul.mubr.bf16.gmra.mrb[80].mxu1 %v9884_v1 }
 0x5b1   :  { %2089 = vmatprep.mubr.bf16.mxu1 %v9885_v5 }
 0x5b8   :  { %2090 = vmatmul.mubr.bf16.gmra.mrb[84].mxu1 %v9886_v62 }
 0x5b9   :  { %2097 = vmatprep.mubr.bf16.mxu1 %v2020_v6 }
 0x5c0   :  { %2098 = vmatmul.mubr.bf16.gmra.mrb[88].mxu1 %v2019_v60 }
 0x5c1   :  { %2105 = vmatprep.mubr.bf16.mxu1 %v2022_v36 }
 0x5c8   :  { %2106 = vmatmul.mubr.bf16.gmra.mrb[92].mxu1 %v2021_v50 }
 0x5c9   :  { %2113 = vmatprep.mubr.bf16.mxu1 %v2024_v47 }
 0x5d0   :  { %2114 = vmatmul.mubr.bf16.gmra.mrb[96].mxu1 %v2023_v11 }
 0x5d1   :  { %6792 = vmatprep.mubr.msk.f32.mxu1 %vm7746_vm0, %v9870_v17 }
 0x64b   :  { %v1729_v4 = vpop.f32.mrb[34].mxu1 }
 0x64c   :  { %v1733_v9 = vadd.f32 %v1729_v4, %v8204_v28  ;;  %v6727_v32 = vpop.f32.mrb[35].mxu1 }
 0x64e   :  { %1734 = vst [vmem:[#allocation11 + $0x1] sm:$0x1] %v1733_v9 }
 0x66b   :  { %v6028_v37 = vpop.f32.mrb[68].mxu1 }
 0x66c   :  { %v6029_v31 = vpop.f32.mrb[69].mxu1 }
 0x66d   :  { %v6030_v40 = vadd.f32 %v6029_v31, %v6028_v37  ;;  %v6031_v25 = vpop.f32.mrb[70].mxu1 }
 0x66e   :  { %v6032_v10 = vpop.f32.mrb[71].mxu1 }
 0x66f   :  { %v2060_v6 = vadd.f32 %v8210_v26, %v6030_v40  ;;  %v6033_v60 = vadd.f32 %v6032_v10, %v6031_v25 }
 0x671   :  { %v2138_v7 = vmul.f32 0.2, %v2060_v6  ;;  %v2063_v12 = vadd.f32 %v8210_v26, %v6033_v60  ;;  %vm2122_vm8 = vcmp.gt.f32.partialorder %v2060_v6, 0.0 }
 0x673   :  { %vm2123_vm9 = vcmp.gt.f32.partialorder %v2063_v12, 0.0  ;;  %v2139_v50 = vmul.f32 0.2, %v2063_v12  ;;  %v6034_v3 = vpop.f32.mrb[72].mxu1  ;;  %v2154_v35 = vsel %vm2122_vm8, %v2060_v6, %v2138_v7 }
 0x674   :  { %v6035_v36 = vpop.f32.mrb[73].mxu1 }
 0x675   :  { %v6036_v59 = vadd.f32 %v6035_v36, %v6034_v3  ;;  %v6037_v15 = vpop.f32.mrb[74].mxu1  ;;  %v2155_v8 = vsel %vm2123_vm9, %v2063_v12, %v2139_v50 }
 0x676   :  { %v6038_v20 = vpop.f32.mrb[75].mxu1  ;;  %v2170_v22 = vpack.c.bf16 %v2155_v8, %v2154_v35 }
 0x677   :  { %v2068_v30 = vadd.f32 %v8491_v27, %v6036_v59  ;;  %v6039_v19 = vadd.f32 %v6038_v20, %v6037_v15 }
 0x678   :  { %6744 = vmatprep.mubr.bf16.mxu0 %v2170_v22 }
 0x679   :  { %v2140_v26 = vmul.f32 0.2, %v2068_v30  ;;  %v2071_v57 = vadd.f32 %v8491_v27, %v6039_v19  ;;  %vm2124_vm10 = vcmp.gt.f32.partialorder %v2068_v30, 0.0 }
 0x67b   :  { %vm2125_vm11 = vcmp.gt.f32.partialorder %v2071_v57, 0.0  ;;  %v2141_v14 = vmul.f32 0.2, %v2071_v57  ;;  %v6040_v29 = vpop.f32.mrb[76].mxu1  ;;  %v2156_v33 = vsel %vm2124_vm10, %v2068_v30, %v2140_v26 }
 0x67c   :  { %v6041_v48 = vpop.f32.mrb[77].mxu1 }
 0x67d   :  { %v2157_v18 = vsel %vm2125_vm11, %v2071_v57, %v2141_v14  ;;  %v6042_v11 = vadd.f32 %v6041_v48, %v6040_v29  ;;  %v6043_v47 = vpop.f32.mrb[78].mxu1 }
 0x67e   :  { %v2171_v13 = vpack.c.bf16 %v2157_v18, %v2156_v33  ;;  %v6044_v58 = vpop.f32.mrb[79].mxu1 }
 0x67f   :  { %v2076_v1 = vadd.f32 %v8491_v27, %v6042_v11  ;;  %v6045_v5 = vadd.f32 %v6044_v58, %v6043_v47 }
 0x680   :  { %6745 = vmatmul.mubr.bf16.vlgmr.msra.gmra.mrb[128].mxu0 %v2171_v13 }
 0x681   :  { %v2142_v62 = vmul.f32 0.2, %v2076_v1  ;;  %v2079_v4 = vadd.f32 %v8491_v27, %v6045_v5  ;;  %2461 = vmatpush1.bf16.msra.mxu0 %v8218_v24  ;;  %vm2126_vm12 = vcmp.gt.f32.partialorder %v2076_v1, 0.0 }
 0x682   :  { %2462 = vmatprep.subr.bf16.mxu0 %v8221_v21 }
 0x683   :  { %vm2127_vm13 = vcmp.gt.f32.partialorder %v2079_v4, 0.0  ;;  %v2143_v9 = vmul.f32 0.2, %v2079_v4  ;;  %v6046_v32 = vpop.f32.mrb[80].mxu1  ;;  %v2158_v25 = vsel %vm2126_vm12, %v2076_v1, %v2142_v62 }
 0x684   :  { %v6047_v37 = vpop.f32.mrb[81].mxu1 }
 0x685   :  { %v6048_v31 = vadd.f32 %v6047_v37, %v6046_v32  ;;  %v6049_v40 = vpop.f32.mrb[82].mxu1  ;;  %v2159_v10 = vsel %vm2127_vm13, %v2079_v4, %v2143_v9  ;;  %2463 = vmatpush1.bf16.msra.mxu0 %v8224_v44 }
 0x686   :  { %v6050_v6 = vpop.f32.mrb[83].mxu1  ;;  %v2172_v60 = vpack.c.bf16 %v2159_v10, %v2158_v25  ;;  %2464 = vmatprep.subr.bf16.mxu0 %v8227_v49 }
 0x687   :  { %v2084_v7 = vadd.f32 %v8491_v27, %v6048_v31  ;;  %v6051_v24 = vadd.f32 %v6050_v6, %v6049_v40 }
 0x688   :  { %6748 = vmatprep.mubr.bf16.mxu0 %v2172_v60 }
 0x689   :  { %v2144_v12 = vmul.f32 0.2, %v2084_v7  ;;  %v2087_v21 = vadd.f32 %v8491_v27, %v6051_v24  ;;  %2465 = vmatpush1.bf16.msra.mxu0 %v8232_v39  ;;  %vm2128_vm14 = vcmp.gt.f32.partialorder %v2084_v7, 0.0 }
 0x68a   :  { %2466 = vmatprep.subr.bf16.mxu0 %v8235_v34 }
 0x68b   :  { %vm2129_vm15 = vcmp.gt.f32.partialorder %v2087_v21, 0.0  ;;  %v2145_v50 = vmul.f32 0.2, %v2087_v21  ;;  %v6052_v3 = vpop.f32.mrb[84].mxu1  ;;  %v2160_v15 = vsel %vm2128_vm14, %v2084_v7, %v2144_v12 }
 0x68c   :  { %v6053_v44 = vpop.f32.mrb[85].mxu1 }
 0x68d   :  { %v6054_v36 = vadd.f32 %v6053_v44, %v6052_v3  ;;  %v6055_v59 = vpop.f32.mrb[86].mxu1  ;;  %v2161_v49 = vsel %vm2129_vm15, %v2087_v21, %v2145_v50  ;;  %2467 = vmatpush1.bf16.msra.mxu0 %v8238_v51 }
 0x68e   :  { %v6056_v35 = vpop.f32.mrb[87].mxu1  ;;  %v2173_v8 = vpack.c.bf16 %v2161_v49, %v2160_v15  ;;  %2468 = vmatprep.subr.bf16.mxu0 %v8241_v41  ;;  %v7409_v15 = vld [vmem:[#allocation3 + $0xc8] sm:$0xff]  }
 0x68f   :  { %v2092_v20 = vadd.f32 %v8491_v27, %v6054_v36  ;;  %v6057_v39 = vadd.f32 %v6056_v35, %v6055_v59  ;;  %v7408_v36 = vld [vmem:[#allocation3 + $0xc0] sm:$0xff]   ;;  %v9887_v49 = vld [vmem:[#allocation16_spill] sm:$0xff]  ;;  %v7410_v35 = vld [vmem:[#allocation3 + $0xd0] sm:$0xff]  }
 0x690   :  { %6749 = vmatmul.mubr.bf16.gmra.mrb[132].mxu0 %v2173_v8  ;;  %v8525_v59 = vld [vmem:[#allocation9] sm:$0xff]   ;;  %v9888_v8 = vld [vmem:[#allocation17_spill] sm:$0xff] }
 0x691   :  { %v2146_v22 = vmul.f32 0.2, %v2092_v20  ;;  %v2095_v34 = vadd.f32 %v8491_v27, %v6057_v39  ;;  %2469 = vmatpush1.bf16.msra.mxu0 %v8246_v0  ;;  %vm2130_vm1 = vcmp.gt.f32.partialorder %v2092_v20, 0.0  ;;  %v9890_v39 = vld [vmem:[#allocation19_spill] sm:$0xff] }
 0x692   :  { %2470 = vmatprep.subr.bf16.mxu0 %v8249_v43 }
 0x693   :  { %vm2131_vm2 = vcmp.gt.f32.partialorder %v2095_v34, 0.0  ;;  %v2147_v30 = vmul.f32 0.2, %v2095_v34  ;;  %v6058_v19 = vpop.f32.mrb[88].mxu1  ;;  %v2162_v14 = vsel %vm2130_vm1, %v2092_v20, %v2146_v22  ;;  %v7411_v20 = vld [vmem:[#allocation3 + $0xd8] sm:$0xff]   ;;  %v7412_v22 = vld [vmem:[#allocation3 + $0xe0] sm:$0xff]  }
 0x694   :  { %v6059_v51 = vpop.f32.mrb[89].mxu1 }
 0x695   :  { %v6060_v26 = vadd.f32 %v6059_v51, %v6058_v19  ;;  %v6061_v57 = vpop.f32.mrb[90].mxu1  ;;  %v2163_v41 = vsel %vm2131_vm2, %v2095_v34, %v2147_v30  ;;  %2471 = vmatpush1.bf16.msra.mxu0 %v8252_v56  ;;  %v9892_v34 = vld [vmem:[#allocation21_spill] sm:$0xff]  ;;  %v7413_v30 = vld [vmem:[#allocation3 + $0xe8] sm:$0xff]   ;;  %v7415_v51 = vld [vmem:[#allocation3 + $0xf8] sm:$0xff]  }
 0x696   :  { %v6062_v29 = vpop.f32.mrb[91].mxu1  ;;  %v2174_v48 = vpack.c.bf16 %v2163_v41, %v2162_v14  ;;  %2472 = vmatprep.subr.bf16.mxu0 %v8255_v63  ;;  %v7414_v19 = vld [vmem:[#allocation3 + $0xf0] sm:$0xff]  }
 0x697   :  { %v2100_v33 = vadd.f32 %v8491_v27, %v6060_v26  ;;  %v6063_v0 = vadd.f32 %v6062_v29, %v6061_v57 }
 0x698   :  { %6752 = vmatprep.mubr.bf16.mxu0 %v2174_v48 }
 0x699   :  { %v2148_v18 = vmul.f32 0.2, %v2100_v33  ;;  %v2103_v43 = vadd.f32 %v8491_v27, %v6063_v0  ;;  %2473 = vmatpush1.bf16.msra.mxu0 %v8260_v38  ;;  %vm2132_vm3 = vcmp.gt.f32.partialorder %v2100_v33, 0.0 }
 0x69a   :  { %2474 = vmatprep.subr.bf16.mxu0 %v8263_v52 }
 0x69b   :  { %vm2133_vm4 = vcmp.gt.f32.partialorder %v2103_v43, 0.0  ;;  %v2149_v11 = vmul.f32 0.2, %v2103_v43  ;;  %v6064_v47 = vpop.f32.mrb[92].mxu1  ;;  %v2164_v1 = vsel %vm2132_vm3, %v2100_v33, %v2148_v18 }
 0x69c   :  { %v6065_v56 = vpop.f32.mrb[93].mxu1 }
 0x69d   :  { %v6066_v13 = vadd.f32 %v6065_v56, %v6064_v47  ;;  %v6067_v58 = vpop.f32.mrb[94].mxu1  ;;  %v2165_v63 = vsel %vm2133_vm4, %v2103_v43, %v2149_v11  ;;  %2475 = vmatpush1.bf16.msra.mxu0 %v8266_v23 }
 0x69e   :  { %v6068_v5 = vpop.f32.mrb[95].mxu1  ;;  %v2175_v62 = vpack.c.bf16 %v2165_v63, %v2164_v1  ;;  %6795 = vmatprep.subr.bf16.mxu0 %v8269_v2 }
 0x69f   :  { %v2108_v4 = vadd.f32 %v8491_v27, %v6066_v13  ;;  %v6069_v38 = vadd.f32 %v6068_v5, %v6067_v58 }
 0x6a0   :  { %6753 = vmatmul.mubr.bf16.gmra.mrb[136].mxu0 %v2175_v62 }
 0x6a1   :  { %v2150_v9 = vmul.f32 0.2, %v2108_v4  ;;  %v2111_v52 = vadd.f32 %v8491_v27, %v6069_v38  ;;  %vm2134_vm5 = vcmp.gt.f32.partialorder %v2108_v4, 0.0 }
 0x6a3   :  { %vm2135_vm6 = vcmp.gt.f32.partialorder %v2111_v52, 0.0  ;;  %v2151_v32 = vmul.f32 0.2, %v2111_v52  ;;  %v6070_v37 = vpop.f32.mrb[96].mxu1  ;;  %v2166_v10 = vsel %vm2134_vm5, %v2108_v4, %v2150_v9  ;;  %v8557_v4 = vld [vmem:[%s9830_s6] ss:$0 sm:$0xff] }
 0x6a4   :  { %v6071_v31 = vpop.f32.mrb[97].mxu1 }
 0x6a5   :  { %v6072_v40 = vadd.f32 %v6071_v31, %v6070_v37  ;;  %v6073_v25 = vpop.f32.mrb[98].mxu1  ;;  %v2167_v23 = vsel %vm2135_vm6, %v2111_v52, %v2151_v32 }
 0x6a6   :  { %v6074_v6 = vpop.f32.mrb[99].mxu1  ;;  %v2176_v60 = vpack.c.bf16 %v2167_v23, %v2166_v10 }
 0x6a7   :  { %v2116_v2 = vadd.f32 %v8491_v27, %v6072_v40  ;;  %v6075_v7 = vadd.f32 %v6074_v6, %v6073_v25 }
 0x6a8   :  { %6756 = vmatprep.mubr.bf16.mxu0 %v2176_v60 }
 0x6a9   :  { %v2152_v24 = vmul.f32 0.2, %v2116_v2  ;;  %v2119_v12 = vadd.f32 %v8491_v27, %v6075_v7  ;;  %vm2136_vm7 = vcmp.gt.f32.partialorder %v2116_v2, 0.0 }
 0x6ab   :  { %vm2137_vm8 = vcmp.gt.f32.partialorder %v2119_v12, 0.0  ;;  %v2153_v21 = vmul.f32 0.2, %v2119_v12  ;;  %v2168_v50 = vsel %vm2136_vm7, %v2116_v2, %v2152_v24 }
 0x6ad   :  { %v2169_v3 = vsel %vm2137_vm8, %v2119_v12, %v2153_v21 }
 0x6ae   :  { %v2177_v44 = vpack.c.bf16 %v2169_v3, %v2168_v50 }
 0x6b0   :  { %6757 = vmatmul.mubr.bf16.gmra.mrb[140].mxu0 %v2177_v44 }
 0x6b1   :  { %2492 = vmatprep.mubr.bf16.mxu0 %v9872_v45 }
 0x6b8   :  { %2493 = vmatmul.mubr.bf16.vlgmr.msra.gmra.mrb[144].mxu0 %v7408_v36 }
 0x6b9   :  { %2502 = vmatprep.mubr.bf16.mxu0 %v9872_v45  ;;  %6796 = vmatpush3.bf16.msra.mxu0 %v8525_v59 }
 0x6ba   :  { %6797 = vmatprep.subr.bf16.mxu0 %v8279_v61 }
 0x6bd   :  { %6798 = vmatpush3.bf16.msra.mxu0 %v8279_v61  ;;  %v9889_v61 = vld [vmem:[#allocation18_spill] sm:$0xff] }
 0x6be   :  { %6799 = vmatprep.subr.bf16.mxu0 %v8283_v42 }
 0x6c0   :  { %2503 = vmatmul.mubr.bf16.gmra.mrb[148].mxu0 %v7409_v15 }
 0x6c1   :  { %2512 = vmatprep.mubr.bf16.mxu0 %v9872_v45  ;;  %6800 = vmatpush3.bf16.msra.mxu0 %v8283_v42  ;;  %v9891_v42 = vld [vmem:[#allocation20_spill] sm:$0xff] }
 0x6c2   :  { %6801 = vmatprep.subr.bf16.mxu0 %v9887_v49 }
 0x6c5   :  { %6802 = vmatpush3.bf16.msra.mxu0 %v9887_v49 }
 0x6c6   :  { %6803 = vmatprep.subr.bf16.mxu0 %v9888_v8 }
 0x6c8   :  { %2513 = vmatmul.mubr.bf16.gmra.mrb[152].mxu0 %v7410_v35 }
 0x6c9   :  { %2522 = vmatprep.mubr.bf16.mxu0 %v9872_v45  ;;  %6804 = vmatpush3.bf16.msra.mxu0 %v9888_v8 }
 0x6ca   :  { %6805 = vmatprep.subr.bf16.mxu0 %v9889_v61 }
 0x6cd   :  { %6806 = vmatpush3.bf16.msra.mxu0 %v9889_v61 }
 0x6ce   :  { %6807 = vmatprep.subr.bf16.mxu0 %v9890_v39 }
 0x6d0   :  { %2523 = vmatmul.mubr.bf16.gmra.mrb[156].mxu0 %v7411_v20 }
 0x6d1   :  { %2532 = vmatprep.mubr.bf16.mxu0 %v9872_v45  ;;  %6808 = vmatpush3.bf16.msra.mxu0 %v9890_v39 }
 0x6d2   :  { %6809 = vmatprep.subr.bf16.mxu0 %v9891_v42 }
 0x6d5   :  { %6810 = vmatpush3.bf16.msra.mxu0 %v9891_v42 }
 0x6d6   :  { %3120 = vmatprep.subr.bf16.mxu0 %v9892_v34 }
 0x6d8   :  { %2533 = vmatmul.mubr.bf16.gmra.mrb[160].mxu0 %v7412_v22 }
 0x6d9   :  { %2542 = vmatprep.mubr.bf16.mxu0 %v9872_v45 }
 0x6e0   :  { %2543 = vmatmul.mubr.bf16.gmra.mrb[164].mxu0 %v7413_v30 }
 0x6e1   :  { %2552 = vmatprep.mubr.bf16.mxu0 %v9872_v45 }
 0x6e8   :  { %2553 = vmatmul.mubr.bf16.gmra.mrb[168].mxu0 %v7414_v19 }
 0x6e9   :  { %2562 = vmatprep.mubr.bf16.mxu0 %v9872_v45 }
 0x6f0   :  { %2563 = vmatmul.mubr.bf16.gmra.mrb[172].mxu0 %v7415_v51 }
 0x753   :  { %v6746_v26 = vpop.f32.mrb[128].mxu0 }
 0x754   :  { %v2221_v57 = vadd.f32 %v8321_v16, %v6746_v26  ;;  %v2212_v14 = vpop.f32.mrb[129].mxu0 }
 0x755   :  { %v2213_v41 = vadd.f32 %v8321_v16, %v2212_v14  ;;  %v6747_v29 = vpop.f32.mrb[130].mxu0 }
 0x756   :  { %v2293_v48 = vmul.f32 0.2, %v2221_v57  ;;  %v2224_v33 = vadd.f32 %v8321_v16, %v6747_v29  ;;  %v2215_v0 = vpop.f32.mrb[131].mxu0  ;;  %vm2277_vm9 = vcmp.gt.f32.partialorder %v2221_v57, 0.0 }
 0x757   :  { %v2291_v18 = vmul.f32 0.2, %v2213_v41  ;;  %v2216_v43 = vadd.f32 %v8321_v16, %v2215_v0  ;;  %vm2275_vm10 = vcmp.gt.f32.partialorder %v2213_v41, 0.0 }
 0x758   :  { %vm2278_vm11 = vcmp.gt.f32.partialorder %v2224_v33, 0.0  ;;  %v2294_v11 = vmul.f32 0.2, %v2224_v33  ;;  %v2309_v56 = vsel %vm2277_vm9, %v2221_v57, %v2293_v48 }
 0x759   :  { %vm2276_vm12 = vcmp.gt.f32.partialorder %v2216_v43, 0.0  ;;  %v2292_v47 = vmul.f32 0.2, %v2216_v43  ;;  %v2307_v58 = vsel %vm2275_vm10, %v2213_v41, %v2291_v18 }
 0x75a   :  { %v2310_v13 = vsel %vm2278_vm11, %v2224_v33, %v2294_v11 }
 0x75b   :  { %v7182_v1 = vpack.c.bf16 %v2310_v13, %v2309_v56  ;;  %v2308_v63 = vsel %vm2276_vm12, %v2216_v43, %v2292_v47 }
 0x75c   :  { %v7179_v5 = vpack.c.bf16 %v2308_v63, %v2307_v58 }
 0x75e   :  { %7180 = vmatpush3.bf16.xpose.msra.mxu1 %v7179_v5 }
 0x75f   :  { %7181 = vmatprep.subr.bf16.mxu1 %v7745_v46 }
 0x763   :  { %v6750_v62 = vpop.f32.mrb[132].mxu0 }
 0x764   :  { %v2237_v16 = vadd.f32 %v8557_v4, %v6750_v62  ;;  %v2228_v38 = vpop.f32.mrb[133].mxu0 }
 0x765   :  { %v2229_v9 = vadd.f32 %v8557_v4, %v2228_v38  ;;  %v6751_v52 = vpop.f32.mrb[134].mxu0 }
 0x766   :  { %v2297_v32 = vmul.f32 0.2, %v2237_v16  ;;  %v2240_v37 = vadd.f32 %v8557_v4, %v6751_v52  ;;  %v2231_v31 = vpop.f32.mrb[135].mxu0  ;;  %7183 = vmatpush3.bf16.xpose.msra.mxu1 %v7182_v1  ;;  %vm2281_vm13 = vcmp.gt.f32.partialorder %v2237_v16, 0.0 }
 0x767   :  { %v2295_v40 = vmul.f32 0.2, %v2229_v9  ;;  %v2232_v25 = vadd.f32 %v8557_v4, %v2231_v31  ;;  %7184 = vmatprep.subr.bf16.mxu1 %v7745_v46  ;;  %vm2279_vm14 = vcmp.gt.f32.partialorder %v2229_v9, 0.0 }
 0x768   :  { %vm2282_vm15 = vcmp.gt.f32.partialorder %v2240_v37, 0.0  ;;  %v2298_v10 = vmul.f32 0.2, %v2240_v37  ;;  %v2313_v6 = vsel %vm2281_vm13, %v2237_v16, %v2297_v32 }
 0x769   :  { %vm2280_vm1 = vcmp.gt.f32.partialorder %v2232_v25, 0.0  ;;  %v2296_v23 = vmul.f32 0.2, %v2232_v25  ;;  %v2311_v2 = vsel %vm2279_vm14, %v2229_v9, %v2295_v40 }
 0x76a   :  { %v2314_v60 = vsel %vm2282_vm15, %v2240_v37, %v2298_v10 }
 0x76b   :  { %v7188_v7 = vpack.c.bf16 %v2314_v60, %v2313_v6  ;;  %v2312_v24 = vsel %vm2280_vm1, %v2232_v25, %v2296_v23 }
 0x76c   :  { %v7185_v12 = vpack.c.bf16 %v2312_v24, %v2311_v2 }
 0x76e   :  { %7186 = vmatpush3.bf16.xpose.msra.mxu1 %v7185_v12 }
 0x76f   :  { %7187 = vmatprep.subr.bf16.mxu1 %v7745_v46 }
 0x773   :  { %v6754_v21 = vpop.f32.mrb[136].mxu0 }
 0x774   :  { %v2253_v50 = vadd.f32 %v8557_v4, %v6754_v21  ;;  %v2244_v3 = vpop.f32.mrb[137].mxu0 }
 0x775   :  { %v2245_v44 = vadd.f32 %v8557_v4, %v2244_v3  ;;  %v6755_v36 = vpop.f32.mrb[138].mxu0 }
 0x776   :  { %v2301_v15 = vmul.f32 0.2, %v2253_v50  ;;  %v2256_v49 = vadd.f32 %v8557_v4, %v6755_v36  ;;  %v2247_v35 = vpop.f32.mrb[139].mxu0  ;;  %7189 = vmatpush3.bf16.xpose.msra.mxu1 %v7188_v7  ;;  %vm2285_vm2 = vcmp.gt.f32.partialorder %v2253_v50, 0.0 }
 0x777   :  { %v2299_v8 = vmul.f32 0.2, %v2245_v44  ;;  %v2248_v61 = vadd.f32 %v8557_v4, %v2247_v35  ;;  %7190 = vmatprep.subr.bf16.mxu1 %v7745_v46  ;;  %vm2283_vm3 = vcmp.gt.f32.partialorder %v2245_v44, 0.0 }
 0x778   :  { %vm2286_vm4 = vcmp.gt.f32.partialorder %v2256_v49, 0.0  ;;  %v2302_v20 = vmul.f32 0.2, %v2256_v49  ;;  %v2317_v42 = vsel %vm2285_vm2, %v2253_v50, %v2301_v15 }
 0x779   :  { %vm2284_vm5 = vcmp.gt.f32.partialorder %v2248_v61, 0.0  ;;  %v2300_v39 = vmul.f32 0.2, %v2248_v61  ;;  %v2315_v34 = vsel %vm2283_vm3, %v2245_v44, %v2299_v8  ;;  %v8590_v8 = vld [vmem:[#allocation8 + $0x40] sm:$0xff]  }
 0x77a   :  { %v2318_v22 = vsel %vm2286_vm4, %v2256_v49, %v2302_v20 }
 0x77b   :  { %v7194_v30 = vpack.c.bf16 %v2318_v22, %v2317_v42  ;;  %v2316_v19 = vsel %vm2284_vm5, %v2248_v61, %v2300_v39 }
 0x77c   :  { %v7191_v51 = vpack.c.bf16 %v2316_v19, %v2315_v34 }
 0x77e   :  { %7192 = vmatpush3.bf16.xpose.msra.mxu1 %v7191_v51 }
 0x77f   :  { %7193 = vmatprep.subr.bf16.mxu1 %v7745_v46 }
 0x783   :  { %v6758_v26 = vpop.f32.mrb[140].mxu0 }
 0x784   :  { %v2269_v57 = vadd.f32 %v8557_v4, %v6758_v26  ;;  %v2260_v14 = vpop.f32.mrb[141].mxu0 }
 0x785   :  { %v2261_v41 = vadd.f32 %v8557_v4, %v2260_v14  ;;  %v6759_v29 = vpop.f32.mrb[142].mxu0 }
 0x786   :  { %v2305_v48 = vmul.f32 0.2, %v2269_v57  ;;  %v2272_v33 = vadd.f32 %v8557_v4, %v6759_v29  ;;  %v2263_v0 = vpop.f32.mrb[143].mxu0  ;;  %7195 = vmatpush3.bf16.xpose.msra.mxu1 %v7194_v30  ;;  %vm2289_vm6 = vcmp.gt.f32.partialorder %v2269_v57, 0.0 }
 0x787   :  { %v2303_v18 = vmul.f32 0.2, %v2261_v41  ;;  %v2264_v43 = vadd.f32 %v8557_v4, %v2263_v0  ;;  %7196 = vmatprep.subr.bf16.mxu1 %v7745_v46  ;;  %vm2287_vm7 = vcmp.gt.f32.partialorder %v2261_v41, 0.0 }
 0x788   :  { %vm2290_vm8 = vcmp.gt.f32.partialorder %v2272_v33, 0.0  ;;  %v2306_v11 = vmul.f32 0.2, %v2272_v33  ;;  %v2321_v56 = vsel %vm2289_vm6, %v2269_v57, %v2305_v48 }
 0x789   :  { %vm2288_vm9 = vcmp.gt.f32.partialorder %v2264_v43, 0.0  ;;  %v2304_v47 = vmul.f32 0.2, %v2264_v43  ;;  %v2319_v58 = vsel %vm2287_vm7, %v2261_v41, %v2303_v18 }
 0x78a   :  { %v2322_v13 = vsel %vm2290_vm8, %v2272_v33, %v2306_v11  ;;  %v8609_v33 = vld [vmem:[#allocation8] sm:$0xff]   ;;  %v8613_v11 = vld [vmem:[#allocation8 + $0x48] sm:$0xff]  }
 0x78b   :  { %v7200_v1 = vpack.c.bf16 %v2322_v13, %v2321_v56  ;;  %v2320_v63 = vsel %vm2288_vm9, %v2264_v43, %v2304_v47  ;;  %v2494_v5 = vpop.f32.mrb[144].mxu0 }
 0x78c   :  { %v7197_v62 = vpack.c.bf16 %v2320_v63, %v2319_v58  ;;  %v2495_v16 = vadd.f32 %v2494_v5, %v7911_v53  ;;  %v2496_v38 = vpop.f32.mrb[145].mxu0  ;;  %v8621_v63 = vld [vmem:[#allocation8 + $0x8] sm:$0xff]  }
 0x78d   :  { %v2497_v9 = vadd.f32 %v2496_v38, %v7913_v54  ;;  %v2498_v52 = vpop.f32.mrb[146].mxu0 }
 0x78e   :  { %7198 = vmatpush3.bf16.xpose.msra.mxu1 %v7197_v62  ;;  %vm2573_vm10 = vcmp.gt.f32.partialorder %v2495_v16, 0.0  ;;  %v2605_v32 = vmul.f32 0.2, %v2495_v16  ;;  %v2499_v37 = vadd.f32 %v2498_v52, %v7911_v53  ;;  %v2500_v31 = vpop.f32.mrb[147].mxu0  ;;  %v8626_v62 = vld [vmem:[#allocation8 + $0x50] sm:$0xff]  }
 0x78f   :  { %7199 = vmatprep.subr.bf16.mxu1 %v7745_v46  ;;  %vm2574_vm11 = vcmp.gt.f32.partialorder %v2497_v9, 0.0  ;;  %v2606_v40 = vmul.f32 0.2, %v2497_v9  ;;  %v2501_v25 = vadd.f32 %v2500_v31, %v7913_v54 }
 0x790   :  { %v8581_v10 = vsel %vm2573_vm10, %v2495_v16, %v2605_v32  ;;  %vm2575_vm12 = vcmp.gt.f32.partialorder %v2499_v37, 0.0  ;;  %v2607_v23 = vmul.f32 0.2, %v2499_v37 }
 0x791   :  { %vm2576_vm13 = vcmp.gt.f32.partialorder %v2501_v25, 0.0  ;;  %v2608_v6 = vmul.f32 0.2, %v2501_v25  ;;  %v2638_v60 = vsel %vm2574_vm11, %v2497_v9, %v2606_v40 }
 0x792   :  { %v8583_v2 = vsel %vm2575_vm12, %v2499_v37, %v2607_v23 }
 0x793   :  { %v2669_v7 = vpack.c.bf16 %v8583_v2, %v8581_v10  ;;  %v2504_v24 = vpop.f32.mrb[148].mxu0  ;;  %v2640_v12 = vsel %vm2576_vm13, %v2501_v25, %v2608_v6  ;;  %v8637_v25 = vld [vmem:[#allocation8 + $0x10] sm:$0xff]  }
 0x794   :  { %v2505_v21 = vadd.f32 %v2504_v24, %v7911_v53  ;;  %v2506_v50 = vpop.f32.mrb[149].mxu0  ;;  %v2670_v3 = vpack.c.bf16 %v2640_v12, %v2638_v60  ;;  %v8641_v24 = vld [vmem:[#allocation8 + $0x58] sm:$0xff]  }
 0x795   :  { %v2507_v44 = vadd.f32 %v2506_v50, %v7913_v54  ;;  %v2508_v36 = vpop.f32.mrb[150].mxu0 }
 0x796   :  { %7201 = vmatpush3.bf16.xpose.msra.mxu1 %v7200_v1  ;;  %vm2577_vm14 = vcmp.gt.f32.partialorder %v2505_v21, 0.0  ;;  %v2609_v15 = vmul.f32 0.2, %v2505_v21  ;;  %v2509_v49 = vadd.f32 %v2508_v36, %v7911_v53  ;;  %v2510_v35 = vpop.f32.mrb[151].mxu0 }
 0x797   :  { %6109 = vmatprep.subr.bf16.mxu1 %v8590_v8  ;;  %vm2578_vm15 = vcmp.gt.f32.partialorder %v2507_v44, 0.0  ;;  %v2610_v61 = vmul.f32 0.2, %v2507_v44  ;;  %v2511_v20 = vadd.f32 %v2510_v35, %v7913_v54  ;;  %v8654_v35 = vld [vmem:[#allocation8 + $0x60] sm:$0xff]  }
 0x798   :  { %vm2579_vm1 = vcmp.gt.f32.partialorder %v2509_v49, 0.0  ;;  %v2611_v39 = vmul.f32 0.2, %v2509_v49  ;;  %v8594_v42 = vsel %vm2577_vm14, %v2505_v21, %v2609_v15  ;;  %v8649_v15 = vld [vmem:[#allocation8 + $0x18] sm:$0xff]  }
 0x799   :  { %vm2580_vm2 = vcmp.gt.f32.partialorder %v2511_v20, 0.0  ;;  %v2612_v22 = vmul.f32 0.2, %v2511_v20  ;;  %v8596_v34 = vsel %vm2578_vm15, %v2507_v44, %v2610_v61 }
 0x79a   :  { %v8598_v30 = vsel %vm2579_vm1, %v2509_v49, %v2611_v39 }
 0x79b   :  { %v2514_v19 = vpop.f32.mrb[152].mxu0  ;;  %v8600_v51 = vsel %vm2580_vm2, %v2511_v20, %v2612_v22  ;;  %v2671_v26 = vpack.c.bf16 %v8598_v30, %v8594_v42 }
 0x79c   :  { %v2515_v57 = vadd.f32 %v2514_v19, %v7911_v53  ;;  %v2516_v14 = vpop.f32.mrb[153].mxu0  ;;  %v2672_v41 = vpack.c.bf16 %v8600_v51, %v8596_v34 }
 0x79d   :  { %6793 = vmatmul.mubr.f32.vlgmr.msra.gmra.mrb[100].mxu1 %v8375_v55  ;;  %v2517_v29 = vadd.f32 %v2516_v14, %v7913_v54  ;;  %v2518_v48 = vpop.f32.mrb[154].mxu0 }
 0x79e   :  { %6110 = vmatpush3.bf16.msra.mxu1 %v8609_v33  ;;  %2717 = vmatprep.mubr.bf16.mxu1 %v2670_v3  ;;  %vm2581_vm3 = vcmp.gt.f32.partialorder %v2515_v57, 0.0  ;;  %v2613_v0 = vmul.f32 0.2, %v2515_v57  ;;  %v2519_v18 = vadd.f32 %v2518_v48, %v7911_v53  ;;  %v2520_v43 = vpop.f32.mrb[155].mxu0  ;;  %v8665_v48 = vld [vmem:[#allocation8 + $0x20] sm:$0xff]  }
 0x79f   :  { %6111 = vmatprep.subr.bf16.mxu1 %v8613_v11  ;;  %vm2582_vm4 = vcmp.gt.f32.partialorder %v2517_v29, 0.0  ;;  %v2614_v47 = vmul.f32 0.2, %v2517_v29  ;;  %v2521_v55 = vadd.f32 %v2520_v43, %v7913_v54 }
 0x7a0   :  { %vm2583_vm5 = vcmp.gt.f32.partialorder %v2519_v18, 0.0  ;;  %v2615_v56 = vmul.f32 0.2, %v2519_v18  ;;  %v8617_v13 = vsel %vm2581_vm3, %v2515_v57, %v2613_v0 }
 0x7a1   :  { %vm2584_vm6 = vcmp.gt.f32.partialorder %v2521_v55, 0.0  ;;  %v2616_v58 = vmul.f32 0.2, %v2521_v55  ;;  %v8619_v1 = vsel %vm2582_vm4, %v2517_v29, %v2614_v47  ;;  %v8669_v47 = vld [vmem:[#allocation8 + $0x68] sm:$0xff]  }
 0x7a2   :  { %6112 = vmatpush3.bf16.msra.mxu1 %v8621_v63  ;;  %v8624_v5 = vsel %vm2583_vm5, %v2519_v18, %v2615_v56 }
 0x7a3   :  { %6113 = vmatprep.subr.bf16.mxu1 %v8626_v62  ;;  %v2524_v16 = vpop.f32.mrb[156].mxu0  ;;  %v8629_v38 = vsel %vm2584_vm6, %v2521_v55, %v2616_v58 }
 0x7a4   :  { %v2525_v52 = vadd.f32 %v2524_v16, %v7911_v53  ;;  %v2526_v32 = vpop.f32.mrb[157].mxu0  ;;  %v2674_v37 = vpack.c.bf16 %v8629_v38, %v8619_v1  ;;  %v9893_v38 = vpack.c.bf16 %v8624_v5, %v8617_v13 }
 0x7a5   :  { %v2527_v31 = vadd.f32 %v2526_v32, %v7913_v54  ;;  %v2528_v40 = vpop.f32.mrb[158].mxu0 }
 0x7a6   :  { %6114 = vmatpush3.bf16.msra.mxu1 %v8637_v25  ;;  %vm2585_vm7 = vcmp.gt.f32.partialorder %v2525_v52, 0.0  ;;  %v2617_v23 = vmul.f32 0.2, %v2525_v52  ;;  %v2529_v6 = vadd.f32 %v2528_v40, %v7911_v53  ;;  %v2530_v60 = vpop.f32.mrb[159].mxu0 }
 0x7a7   :  { %6115 = vmatprep.subr.bf16.mxu1 %v8641_v24  ;;  %vm2586_vm8 = vcmp.gt.f32.partialorder %v2527_v31, 0.0  ;;  %v2618_v12 = vmul.f32 0.2, %v2527_v31  ;;  %v2531_v21 = vadd.f32 %v2530_v60, %v7913_v54 }
 0x7a8   :  { %vm2587_vm9 = vcmp.gt.f32.partialorder %v2529_v6, 0.0  ;;  %v2619_v50 = vmul.f32 0.2, %v2529_v6  ;;  %v8645_v3 = vsel %vm2585_vm7, %v2525_v52, %v2617_v23  ;;  %v8682_v23 = vld [vmem:[#allocation8 + $0x70] sm:$0xff]  }
 0x7a9   :  { %vm2588_vm10 = vcmp.gt.f32.partialorder %v2531_v21, 0.0  ;;  %v2620_v44 = vmul.f32 0.2, %v2531_v21  ;;  %v8647_v36 = vsel %vm2586_vm8, %v2527_v31, %v2618_v12  ;;  %v8677_v31 = vld [vmem:[#allocation8 + $0x28] sm:$0xff]  }
 0x7aa   :  { %6116 = vmatpush3.bf16.msra.mxu1 %v8649_v15  ;;  %v8652_v49 = vsel %vm2587_vm9, %v2529_v6, %v2619_v50 }
 0x7ab   :  { %6117 = vmatprep.subr.bf16.mxu1 %v8654_v35  ;;  %v2534_v61 = vpop.f32.mrb[160].mxu0  ;;  %v8657_v20 = vsel %vm2588_vm10, %v2531_v21, %v2620_v44 }
 0x7ac   :  { %v2535_v22 = vadd.f32 %v2534_v61, %v7911_v53  ;;  %v2536_v19 = vpop.f32.mrb[161].mxu0 }
 0x7ad   :  { %v2537_v14 = vadd.f32 %v2536_v19, %v7913_v54  ;;  %v2538_v29 = vpop.f32.mrb[162].mxu0  ;;  %v8693_v19 = vld [vmem:[#allocation8 + $0x30] sm:$0xff]  }
 0x7ae   :  { %6118 = vmatpush3.bf16.msra.mxu1 %v8665_v48  ;;  %vm2589_vm11 = vcmp.gt.f32.partialorder %v2535_v22, 0.0  ;;  %v2621_v0 = vmul.f32 0.2, %v2535_v22  ;;  %v2539_v18 = vadd.f32 %v2538_v29, %v7911_v53  ;;  %v2540_v43 = vpop.f32.mrb[163].mxu0 }
 0x7af   :  { %6119 = vmatprep.subr.bf16.mxu1 %v8669_v47  ;;  %vm2590_vm12 = vcmp.gt.f32.partialorder %v2537_v14, 0.0  ;;  %v2622_v55 = vmul.f32 0.2, %v2537_v14  ;;  %v2541_v56 = vadd.f32 %v2540_v43, %v7913_v54 }
 0x7b0   :  { %vm2591_vm13 = vcmp.gt.f32.partialorder %v2539_v18, 0.0  ;;  %v2623_v58 = vmul.f32 0.2, %v2539_v18  ;;  %v8673_v16 = vsel %vm2589_vm11, %v2535_v22, %v2621_v0 }
 0x7b1   :  { %vm2592_vm14 = vcmp.gt.f32.partialorder %v2541_v56, 0.0  ;;  %v2624_v52 = vmul.f32 0.2, %v2541_v56  ;;  %v8675_v32 = vsel %vm2590_vm12, %v2537_v14, %v2622_v55 }
 0x7b2   :  { %6120 = vmatpush3.bf16.msra.mxu1 %v8677_v31  ;;  %v8680_v40 = vsel %vm2591_vm13, %v2539_v18, %v2623_v58  ;;  %v8697_v18 = vld [vmem:[#allocation8 + $0x78] sm:$0xff]  }
 0x7b3   :  { %6121 = vmatprep.subr.bf16.mxu1 %v8682_v23  ;;  %v2544_v6 = vpop.f32.mrb[164].mxu0  ;;  %v8685_v60 = vsel %vm2592_vm14, %v2541_v56, %v2624_v52 }
 0x7b4   :  { %v2545_v21 = vadd.f32 %v2544_v6, %v7911_v53  ;;  %v2546_v50 = vpop.f32.mrb[165].mxu0 }
 0x7b5   :  { %v2547_v61 = vadd.f32 %v2546_v50, %v7913_v54  ;;  %v2548_v22 = vpop.f32.mrb[166].mxu0  ;;  %v8703_v50 = vld [vmem:[#allocation8 + $0x38] sm:$0xff]  }
 0x7b6   :  { %6122 = vmatpush3.bf16.msra.mxu1 %v8693_v19  ;;  %vm2593_vm15 = vcmp.gt.f32.partialorder %v2545_v21, 0.0  ;;  %v2625_v14 = vmul.f32 0.2, %v2545_v21  ;;  %v2549_v29 = vadd.f32 %v2548_v22, %v7911_v53  ;;  %v2550_v0 = vpop.f32.mrb[167].mxu0 }
 0x7b7   :  { %6123 = vmatprep.subr.bf16.mxu1 %v8697_v18  ;;  %vm2594_vm1 = vcmp.gt.f32.partialorder %v2547_v61, 0.0  ;;  %v2626_v43 = vmul.f32 0.2, %v2547_v61  ;;  %v2551_v55 = vadd.f32 %v2550_v0, %v7913_v54 }
 0x7b8   :  { %vm2595_vm2 = vcmp.gt.f32.partialorder %v2549_v29, 0.0  ;;  %v2627_v56 = vmul.f32 0.2, %v2549_v29  ;;  %v8701_v58 = vsel %vm2593_vm15, %v2545_v21, %v2625_v14 }
 0x7b9   :  { %vm2596_vm3 = vcmp.gt.f32.partialorder %v2551_v55, 0.0  ;;  %v2628_v52 = vmul.f32 0.2, %v2551_v55  ;;  %v2658_v6 = vsel %vm2594_vm1, %v2547_v61, %v2626_v43 }
 0x7ba   :  { %6124 = vmatpush3.bf16.msra.mxu1 %v8703_v50  ;;  %v2659_v22 = vsel %vm2595_vm2, %v2549_v29, %v2627_v56 }
 0x7bb   :  { %v2554_v12 = vpop.f32.mrb[168].mxu0  ;;  %v2660_v44 = vsel %vm2596_vm3, %v2551_v55, %v2628_v52  ;;  %v2679_v39 = vpack.c.bf16 %v2659_v22, %v8701_v58  ;;  %7202 = vmatprep.subr.bf16.mxu1 %v7745_v46 }
 0x7bc   :  { %v2555_v0 = vadd.f32 %v2554_v12, %v7911_v53  ;;  %v2556_v57 = vpop.f32.mrb[169].mxu0  ;;  %v2680_v9 = vpack.c.bf16 %v2660_v44, %v2658_v6 }
 0x7bd   :  { %2718 = vmatmul.mubr.bf16.vlgmr.msra.gmra.mrb[104].mxu1 %v2669_v7  ;;  %v2557_v21 = vadd.f32 %v2556_v57, %v7913_v54  ;;  %v2558_v61 = vpop.f32.mrb[170].mxu0 }
 0x7be   :  { %2725 = vmatprep.mubr.bf16.mxu1 %v2672_v41  ;;  %vm2597_vm4 = vcmp.gt.f32.partialorder %v2555_v0, 0.0  ;;  %v2629_v14 = vmul.f32 0.2, %v2555_v0  ;;  %v2559_v29 = vadd.f32 %v2558_v61, %v7911_v53  ;;  %v2560_v43 = vpop.f32.mrb[171].mxu0 }
 0x7bf   :  { %vm2598_vm5 = vcmp.gt.f32.partialorder %v2557_v21, 0.0  ;;  %v2630_v12 = vmul.f32 0.2, %v2557_v21  ;;  %v2561_v44 = vadd.f32 %v2560_v43, %v7913_v54 }
 0x7c0   :  { %vm2599_vm6 = vcmp.gt.f32.partialorder %v2559_v29, 0.0  ;;  %v2631_v55 = vmul.f32 0.2, %v2559_v29  ;;  %v2661_v10 = vsel %vm2597_vm4, %v2555_v0, %v2629_v14 }
 0x7c1   :  { %vm2600_vm7 = vcmp.gt.f32.partialorder %v2561_v44, 0.0  ;;  %v2632_v2 = vmul.f32 0.2, %v2561_v44  ;;  %v2662_v7 = vsel %vm2598_vm5, %v2557_v21, %v2630_v12 }
 0x7c2   :  { %v2663_v57 = vsel %vm2599_vm6, %v2559_v29, %v2631_v55 }
 0x7c3   :  { %v2564_v56 = vpop.f32.mrb[172].mxu0  ;;  %v2664_v58 = vsel %vm2600_vm7, %v2561_v44, %v2632_v2  ;;  %v2681_v34 = vpack.c.bf16 %v2663_v57, %v2661_v10  ;;  %v9895_v10 = vpack.c.bf16 %v8652_v49, %v8645_v3  ;;  %v9896_v2 = vpack.c.bf16 %v8685_v60, %v8675_v32 }
 0x7c4   :  { %v2565_v51 = vadd.f32 %v2564_v56, %v7911_v53  ;;  %v2566_v41 = vpop.f32.mrb[173].mxu0  ;;  %v2682_v52 = vpack.c.bf16 %v2664_v58, %v2662_v7  ;;  %v9897_v7 = vpack.c.bf16 %v8680_v40, %v8673_v16 }
 0x7c5   :  { %2726 = vmatmul.mubr.bf16.gmra.mrb[108].mxu1 %v2671_v26  ;;  %v2567_v6 = vadd.f32 %v2566_v41, %v7913_v54  ;;  %v2568_v22 = vpop.f32.mrb[174].mxu0 }
 0x7c6   :  { %2733 = vmatprep.mubr.bf16.mxu1 %v2674_v37  ;;  %vm2601_vm8 = vcmp.gt.f32.partialorder %v2565_v51, 0.0  ;;  %v2633_v0 = vmul.f32 0.2, %v2565_v51  ;;  %v2569_v21 = vadd.f32 %v2568_v22, %v7911_v53  ;;  %v2570_v61 = vpop.f32.mrb[175].mxu0  ;;  %v9894_v37 = vpack.c.bf16 %v8657_v20, %v8647_v36 }
 0x7c7   :  { %vm2602_vm9 = vcmp.gt.f32.partialorder %v2567_v6, 0.0  ;;  %v2634_v14 = vmul.f32 0.2, %v2567_v6  ;;  %v2571_v29 = vadd.f32 %v2570_v61, %v7913_v54 }
 0x7c8   :  { %vm2603_vm10 = vcmp.gt.f32.partialorder %v2569_v21, 0.0  ;;  %v2635_v43 = vmul.f32 0.2, %v2569_v21  ;;  %v2665_v42 = vsel %vm2601_vm8, %v2565_v51, %v2633_v0 }
 0x7c9   :  { %vm2604_vm11 = vcmp.gt.f32.partialorder %v2571_v29, 0.0  ;;  %v2636_v30 = vmul.f32 0.2, %v2571_v29  ;;  %v2666_v26 = vsel %vm2602_vm9, %v2567_v6, %v2634_v14 }
 0x7ca   :  { %v2667_v12 = vsel %vm2603_vm10, %v2569_v21, %v2635_v43 }
 0x7cb   :  { %v2668_v44 = vsel %vm2604_vm11, %v2571_v29, %v2636_v30  ;;  %v2683_v55 = vpack.c.bf16 %v2667_v12, %v2665_v42 }
 0x7cc   :  { %v2684_v1 = vpack.c.bf16 %v2668_v44, %v2666_v26 }
 0x7cd   :  { %2734 = vmatmul.mubr.bf16.gmra.mrb[112].mxu1 %v9893_v38  ;;  %v8753_v38 = vld [vmem:[%s9828_s4] ss:$0 sm:$0xff] }
 0x7ce   :  { %2741 = vmatprep.mubr.bf16.mxu1 %v9894_v37 }
 0x7d5   :  { %2742 = vmatmul.mubr.bf16.gmra.mrb[116].mxu1 %v9895_v10 }
 0x7d6   :  { %2749 = vmatprep.mubr.bf16.mxu1 %v9896_v2 }
 0x7dd   :  { %2750 = vmatmul.mubr.bf16.gmra.mrb[120].mxu1 %v9897_v7  ;;  %v8757_v7 = vld [vmem:[#allocation6] ss:$8 sps:$4 sm:$0xff]  }
 0x7de   :  { %2757 = vmatprep.mubr.bf16.mxu1 %v2680_v9 }
 0x7e5   :  { %2758 = vmatmul.mubr.bf16.gmra.mrb[124].mxu1 %v2679_v39 }
 0x7e6   :  { %2765 = vmatprep.mubr.bf16.mxu1 %v2682_v52 }
 0x7ed   :  { %2766 = vmatmul.mubr.bf16.gmra.mrb[128].mxu1 %v2681_v34 }
 0x7ee   :  { %2773 = vmatprep.mubr.bf16.mxu1 %v2684_v1 }
 0x7f5   :  { %2774 = vmatmul.mubr.bf16.gmra.mrb[132].mxu1 %v2683_v55 }
 0x7f6   :  { %6859 = vmatprep.mubr.msk.f32.mxu1 %vm7746_vm0, %v9870_v17 }
 0x870   :  { %v2389_v13 = vpop.f32.mrb[100].mxu1 }
 0x871   :  { %v2393_v5 = vadd.f32 %v2389_v13, %v8204_v28  ;;  %v6794_v3 = vpop.f32.mrb[101].mxu1  ;;  %v8760_v13 = vld [vmem:[#allocation6 + $0x14] ss:$8 sps:$4 sm:$0xff]  }
 0x873   :  { %2394 = vst [vmem:[#allocation11 + $0x2] sm:$0x1] %v2393_v5 }
 0x890   :  { %v6125_v36 = vpop.f32.mrb[104].mxu1 }
 0x891   :  { %v6126_v49 = vpop.f32.mrb[105].mxu1 }
 0x892   :  { %v6127_v20 = vadd.f32 %v6126_v49, %v6125_v36  ;;  %v6128_v32 = vpop.f32.mrb[106].mxu1 }
 0x893   :  { %v6129_v16 = vpop.f32.mrb[107].mxu1 }
 0x894   :  { %v2720_v9 = vadd.f32 %v8491_v27, %v6127_v20  ;;  %v6130_v39 = vadd.f32 %v6129_v16, %v6128_v32 }
 0x896   :  { %v2798_v40 = vmul.f32 0.2, %v2720_v9  ;;  %v2723_v60 = vadd.f32 %v8491_v27, %v6130_v39  ;;  %vm2782_vm12 = vcmp.gt.f32.partialorder %v2720_v9, 0.0 }
 0x898   :  { %vm2783_vm13 = vcmp.gt.f32.partialorder %v2723_v60, 0.0  ;;  %v2799_v57 = vmul.f32 0.2, %v2723_v60  ;;  %v6131_v56 = vpop.f32.mrb[108].mxu1  ;;  %v2814_v41 = vsel %vm2782_vm12, %v2720_v9, %v2798_v40  ;;  %v8763_v9 = vld [vmem:[#allocation6 + $0x10] ss:$8 sps:$4 sm:$0xff]  }
 0x899   :  { %v6132_v58 = vpop.f32.mrb[109].mxu1 }
 0x89a   :  { %v6133_v34 = vadd.f32 %v6132_v58, %v6131_v56  ;;  %v6134_v51 = vpop.f32.mrb[110].mxu1  ;;  %v2815_v52 = vsel %vm2783_vm13, %v2723_v60, %v2799_v57  ;;  %v8766_v60 = vld [vmem:[#allocation6 + $0x24] ss:$8 sps:$4 sm:$0xff]  }
 0x89b   :  { %v6135_v6 = vpop.f32.mrb[111].mxu1  ;;  %v2830_v22 = vpack.c.bf16 %v2815_v52, %v2814_v41  ;;  %v8774_v41 = vld [vmem:[#allocation6 + $0x34] ss:$8 sps:$4 sm:$0xff]  }
 0x89c   :  { %v2728_v0 = vadd.f32 %v8491_v27, %v6133_v34  ;;  %v6136_v21 = vadd.f32 %v6135_v6, %v6134_v51  ;;  %v8771_v51 = vld [vmem:[#allocation6 + $0x20] ss:$8 sps:$4 sm:$0xff]  }
 0x89d   :  { %6811 = vmatprep.mubr.bf16.mxu0 %v2830_v22 }
 0x89e   :  { %v2800_v61 = vmul.f32 0.2, %v2728_v0  ;;  %v2731_v14 = vadd.f32 %v8491_v27, %v6136_v21  ;;  %vm2784_vm14 = vcmp.gt.f32.partialorder %v2728_v0, 0.0 }
 0x8a0   :  { %vm2785_vm15 = vcmp.gt.f32.partialorder %v2731_v14, 0.0  ;;  %v2801_v29 = vmul.f32 0.2, %v2731_v14  ;;  %v6137_v43 = vpop.f32.mrb[112].mxu1  ;;  %v2816_v30 = vsel %vm2784_vm14, %v2728_v0, %v2800_v61 }
 0x8a1   :  { %v6138_v42 = vpop.f32.mrb[113].mxu1 }
 0x8a2   :  { %v2817_v26 = vsel %vm2785_vm15, %v2731_v14, %v2801_v29  ;;  %v6139_v12 = vadd.f32 %v6138_v42, %v6137_v43  ;;  %v6140_v44 = vpop.f32.mrb[114].mxu1  ;;  %v8777_v29 = vld [vmem:[#allocation6 + $0x30] ss:$8 sps:$4 sm:$0xff]  }
 0x8a3   :  { %v2831_v55 = vpack.c.bf16 %v2817_v26, %v2816_v30  ;;  %v6141_v1 = vpop.f32.mrb[115].mxu1  ;;  %v8780_v30 = vld [vmem:[#allocation6 + $0x44] ss:$8 sps:$4 sm:$0xff]  }
 0x8a4   :  { %v2736_v37 = vadd.f32 %v8753_v38, %v6139_v12  ;;  %v6142_v10 = vadd.f32 %v6141_v1, %v6140_v44  ;;  %v8785_v1 = vld [vmem:[#allocation6 + $0x40] ss:$8 sps:$4 sm:$0xff]  }
 0x8a5   :  { %6812 = vmatmul.mubr.bf16.vlgmr.msra.gmra.mrb[176].mxu0 %v2831_v55 }
 0x8a6   :  { %v2802_v27 = vmul.f32 0.2, %v2736_v37  ;;  %v2739_v2 = vadd.f32 %v8753_v38, %v6142_v10  ;;  %3121 = vmatpush1.bf16.msra.mxu0 %v8757_v7  ;;  %vm2786_vm1 = vcmp.gt.f32.partialorder %v2736_v37, 0.0 }
 0x8a7   :  { %3122 = vmatprep.subr.bf16.mxu0 %v8760_v13 }
 0x8a8   :  { %vm2787_vm2 = vcmp.gt.f32.partialorder %v2739_v2, 0.0  ;;  %v2803_v5 = vmul.f32 0.2, %v2739_v2  ;;  %v6143_v3 = vpop.f32.mrb[116].mxu1  ;;  %v2818_v32 = vsel %vm2786_vm1, %v2736_v37, %v2802_v27  ;;  %v8788_v37 = vld [vmem:[#allocation6 + $0x54] ss:$8 sps:$4 sm:$0xff]  }
 0x8a9   :  { %v6144_v36 = vpop.f32.mrb[117].mxu1 }
 0x8aa   :  { %v6145_v49 = vadd.f32 %v6144_v36, %v6143_v3  ;;  %v6146_v20 = vpop.f32.mrb[118].mxu1  ;;  %v2819_v16 = vsel %vm2787_vm2, %v2739_v2, %v2803_v5  ;;  %3123 = vmatpush1.bf16.msra.mxu0 %v8763_v9 }
 0x8ab   :  { %v6147_v39 = vpop.f32.mrb[119].mxu1  ;;  %v2832_v40 = vpack.c.bf16 %v2819_v16, %v2818_v32  ;;  %3124 = vmatprep.subr.bf16.mxu0 %v8766_v60 }
 0x8ac   :  { %v2744_v57 = vadd.f32 %v8753_v38, %v6145_v49  ;;  %v6148_v56 = vadd.f32 %v6147_v39, %v6146_v20  ;;  %v8791_v20 = vld [vmem:[#allocation6 + $0x50] ss:$8 sps:$4 sm:$0xff]   ;;  %v8794_v39 = vld [vmem:[#allocation6 + $0x64] ss:$8 sps:$4 sm:$0xff]  }
 0x8ad   :  { %6815 = vmatprep.mubr.bf16.mxu0 %v2832_v40 }
 0x8ae   :  { %v2804_v58 = vmul.f32 0.2, %v2744_v57  ;;  %v2747_v34 = vadd.f32 %v8753_v38, %v6148_v56  ;;  %3125 = vmatpush1.bf16.msra.mxu0 %v8771_v51  ;;  %vm2788_vm3 = vcmp.gt.f32.partialorder %v2744_v57, 0.0 }
 0x8af   :  { %3126 = vmatprep.subr.bf16.mxu0 %v8774_v41 }
 0x8b0   :  { %vm2789_vm4 = vcmp.gt.f32.partialorder %v2747_v34, 0.0  ;;  %v2805_v52 = vmul.f32 0.2, %v2747_v34  ;;  %v6149_v6 = vpop.f32.mrb[120].mxu1  ;;  %v2820_v61 = vsel %vm2788_vm3, %v2744_v57, %v2804_v58 }
 0x8b1   :  { %v6150_v22 = vpop.f32.mrb[121].mxu1 }
 0x8b2   :  { %v6151_v0 = vadd.f32 %v6150_v22, %v6149_v6  ;;  %v6152_v21 = vpop.f32.mrb[122].mxu1  ;;  %v2821_v14 = vsel %vm2789_vm4, %v2747_v34, %v2805_v52  ;;  %3127 = vmatpush1.bf16.msra.mxu0 %v8777_v29  ;;  %v8799_v34 = vld [vmem:[#allocation6 + $0x60] ss:$8 sps:$4 sm:$0xff]   ;;  %v8802_v52 = vld [vmem:[#allocation6 + $0x74] ss:$8 sps:$4 sm:$0xff]  }
 0x8b3   :  { %v6153_v43 = vpop.f32.mrb[123].mxu1  ;;  %v2833_v42 = vpack.c.bf16 %v2821_v14, %v2820_v61  ;;  %3128 = vmatprep.subr.bf16.mxu0 %v8780_v30 }
 0x8b4   :  { %v2752_v26 = vadd.f32 %v8753_v38, %v6151_v0  ;;  %v6154_v12 = vadd.f32 %v6153_v43, %v6152_v21 }
 0x8b5   :  { %6816 = vmatmul.mubr.bf16.gmra.mrb[180].mxu0 %v2833_v42  ;;  %v8805_v42 = vld [vmem:[#allocation6 + $0x70] ss:$8 sps:$4 sm:$0xff]  }
 0x8b6   :  { %v2806_v44 = vmul.f32 0.2, %v2752_v26  ;;  %v2755_v55 = vadd.f32 %v8753_v38, %v6154_v12  ;;  %3129 = vmatpush1.bf16.msra.mxu0 %v8785_v1  ;;  %vm2790_vm5 = vcmp.gt.f32.partialorder %v2752_v26, 0.0 }
 0x8b7   :  { %3130 = vmatprep.subr.bf16.mxu0 %v8788_v37 }
 0x8b8   :  { %vm2791_vm6 = vcmp.gt.f32.partialorder %v2755_v55, 0.0  ;;  %v2807_v10 = vmul.f32 0.2, %v2755_v55  ;;  %v6155_v27 = vpop.f32.mrb[124].mxu1  ;;  %v2822_v36 = vsel %vm2790_vm5, %v2752_v26, %v2806_v44 }
 0x8b9   :  { %v6156_v2 = vpop.f32.mrb[125].mxu1 }
 0x8ba   :  { %v6157_v5 = vadd.f32 %v6156_v2, %v6155_v27  ;;  %v6158_v3 = vpop.f32.mrb[126].mxu1  ;;  %v2823_v49 = vsel %vm2791_vm6, %v2755_v55, %v2807_v10  ;;  %3131 = vmatpush1.bf16.msra.mxu0 %v8791_v20 }
 0x8bb   :  { %v6159_v32 = vpop.f32.mrb[127].mxu1  ;;  %v2834_v16 = vpack.c.bf16 %v2823_v49, %v2822_v36  ;;  %3132 = vmatprep.subr.bf16.mxu0 %v8794_v39 }
 0x8bc   :  { %v2760_v40 = vadd.f32 %v8753_v38, %v6157_v5  ;;  %v6160_v57 = vadd.f32 %v6159_v32, %v6158_v3 }
 0x8bd   :  { %6819 = vmatprep.mubr.bf16.mxu0 %v2834_v16 }
 0x8be   :  { %v2808_v56 = vmul.f32 0.2, %v2760_v40  ;;  %v2763_v58 = vadd.f32 %v8753_v38, %v6160_v57  ;;  %3133 = vmatpush1.bf16.msra.mxu0 %v8799_v34  ;;  %vm2792_vm7 = vcmp.gt.f32.partialorder %v2760_v40, 0.0 }
 0x8bf   :  { %3134 = vmatprep.subr.bf16.mxu0 %v8802_v52 }
 0x8c0   :  { %vm2793_vm8 = vcmp.gt.f32.partialorder %v2763_v58, 0.0  ;;  %v2809_v6 = vmul.f32 0.2, %v2763_v58  ;;  %v6161_v22 = vpop.f32.mrb[128].mxu1  ;;  %v2824_v14 = vsel %vm2792_vm7, %v2760_v40, %v2808_v56 }
 0x8c1   :  { %v6162_v0 = vpop.f32.mrb[129].mxu1 }
 0x8c2   :  { %v6163_v21 = vadd.f32 %v6162_v0, %v6161_v22  ;;  %v6164_v61 = vpop.f32.mrb[130].mxu1  ;;  %v2825_v43 = vsel %vm2793_vm8, %v2763_v58, %v2809_v6  ;;  %3135 = vmatpush1.bf16.msra.mxu0 %v8805_v42 }
 0x8c3   :  { %v6165_v26 = vpop.f32.mrb[131].mxu1  ;;  %v2835_v12 = vpack.c.bf16 %v2825_v43, %v2824_v14  ;;  %6862 = vmatprep.subr.bf16.mxu0 %v8525_v59  ;;  %v7416_v43 = vld [vmem:[#allocation3 + $0x100] sm:$0xff]  }
 0x8c4   :  { %v2768_v44 = vadd.f32 %v8753_v38, %v6163_v21  ;;  %v6166_v55 = vadd.f32 %v6165_v26, %v6164_v61  ;;  %v8816_v26 = vld [vmem:[#allocation9 + $0x8] sm:$0xff]  }
 0x8c5   :  { %6820 = vmatmul.mubr.bf16.gmra.mrb[184].mxu0 %v2835_v12  ;;  %v7417_v12 = vld [vmem:[#allocation3 + $0x108] sm:$0xff]  }
 0x8c6   :  { %v2810_v10 = vmul.f32 0.2, %v2768_v44  ;;  %v2771_v27 = vadd.f32 %v8753_v38, %v6166_v55  ;;  %vm2794_vm9 = vcmp.gt.f32.partialorder %v2768_v44, 0.0  ;;  %v8825_v55 = vld [vmem:[#allocation9 + $0x18] sm:$0xff]  }
 0x8c8   :  { %vm2795_vm10 = vcmp.gt.f32.partialorder %v2771_v27, 0.0  ;;  %v2811_v2 = vmul.f32 0.2, %v2771_v27  ;;  %v6167_v5 = vpop.f32.mrb[132].mxu1  ;;  %v2826_v32 = vsel %vm2794_vm9, %v2768_v44, %v2810_v10  ;;  %v8820_v44 = vld [vmem:[#allocation9 + $0x10] sm:$0xff]   ;;  %v8829_v10 = vld [vmem:[#allocation9 + $0x20] sm:$0xff]  }
 0x8c9   :  { %v6168_v3 = vpop.f32.mrb[133].mxu1  ;;  %9898 = vst [vmem:[#allocation16_spill] sm:$0xff] %v8829_v10 }
 0x8ca   :  { %v6169_v36 = vadd.f32 %v6168_v3, %v6167_v5  ;;  %v6170_v49 = vpop.f32.mrb[134].mxu1  ;;  %v2827_v16 = vsel %vm2795_vm10, %v2771_v27, %v2811_v2  ;;  %v8834_v27 = vld [vmem:[#allocation9 + $0x28] sm:$0xff]   ;;  %v7419_v2 = vld [vmem:[#allocation3 + $0x118] sm:$0xff]   ;;  %v8838_v5 = vld [vmem:[#allocation9 + $0x30] sm:$0xff]  }
 0x8cb   :  { %v6171_v40 = vpop.f32.mrb[135].mxu1  ;;  %v2836_v57 = vpack.c.bf16 %v2827_v16, %v2826_v32  ;;  %9899 = vst [vmem:[#allocation17_spill] sm:$0xff] %v8834_v27  ;;  %9900 = vst [vmem:[#allocation18_spill] sm:$0xff] %v8838_v5  ;;  %v8843_v3 = vld [vmem:[#allocation9 + $0x38] sm:$0xff]   ;;  %v7421_v32 = vld [vmem:[#allocation3 + $0x128] sm:$0xff]  }
 0x8cc   :  { %v2776_v56 = vadd.f32 %v8753_v38, %v6169_v36  ;;  %v6172_v58 = vadd.f32 %v6171_v40, %v6170_v49  ;;  %9901 = vst [vmem:[#allocation19_spill] sm:$0xff] %v8843_v3  ;;  %v7420_v36 = vld [vmem:[#allocation3 + $0x120] sm:$0xff]   ;;  %v7422_v16 = vld [vmem:[#allocation3 + $0x130] sm:$0xff]   ;;  %v7423_v40 = vld [vmem:[#allocation3 + $0x138] sm:$0xff]  }
 0x8cd   :  { %6823 = vmatprep.mubr.bf16.mxu0 %v2836_v57  ;;  %v8847_v49 = vld [vmem:[#allocation6 + $0x4] ss:$8 sps:$4 sm:$0xff]  }
 0x8ce   :  { %v2812_v6 = vmul.f32 0.2, %v2776_v56  ;;  %v2779_v22 = vadd.f32 %v8753_v38, %v6172_v58  ;;  %vm2796_vm11 = vcmp.gt.f32.partialorder %v2776_v56, 0.0  ;;  %9902 = vst [vmem:[#allocation20_spill] sm:$0xff] %v8847_v49 }
 0x8d0   :  { %vm2797_vm12 = vcmp.gt.f32.partialorder %v2779_v22, 0.0  ;;  %v2813_v0 = vmul.f32 0.2, %v2779_v22  ;;  %v2828_v21 = vsel %vm2796_vm11, %v2776_v56, %v2812_v6 }
 0x8d2   :  { %v2829_v61 = vsel %vm2797_vm12, %v2779_v22, %v2813_v0 }
 0x8d3   :  { %v2837_v14 = vpack.c.bf16 %v2829_v61, %v2828_v21 }
 0x8d5   :  { %6824 = vmatmul.mubr.bf16.gmra.mrb[188].mxu0 %v2837_v14 }
 0x8d6   :  { %3152 = vmatprep.mubr.bf16.mxu0 %v9872_v45 }
 0x8dd   :  { %3153 = vmatmul.mubr.bf16.vlgmr.msra.gmra.mrb[192].mxu0 %v7416_v43 }
 0x8de   :  { %3162 = vmatprep.mubr.bf16.mxu0 %v9872_v45  ;;  %6863 = vmatpush3.bf16.msra.mxu0 %v8525_v59  ;;  %v7418_v59 = vld [vmem:[#allocation3 + $0x110] sm:$0xff]  }
 0x8df   :  { %6864 = vmatprep.subr.bf16.mxu0 %v8816_v26 }
 0x8e2   :  { %6865 = vmatpush3.bf16.msra.mxu0 %v8816_v26 }
 0x8e3   :  { %6866 = vmatprep.subr.bf16.mxu0 %v8820_v44 }
 0x8e5   :  { %3163 = vmatmul.mubr.bf16.gmra.mrb[196].mxu0 %v7417_v12 }
 0x8e6   :  { %3172 = vmatprep.mubr.bf16.mxu0 %v9872_v45  ;;  %6867 = vmatpush3.bf16.msra.mxu0 %v8820_v44 }
 0x8e7   :  { %6868 = vmatprep.subr.bf16.mxu0 %v8825_v55 }
 0x8ea   :  { %6869 = vmatpush3.bf16.msra.mxu0 %v8825_v55 }
 0x8eb   :  { %6870 = vmatprep.subr.bf16.mxu0 %v8829_v10 }
 0x8ed   :  { %3173 = vmatmul.mubr.bf16.gmra.mrb[200].mxu0 %v7418_v59 }
 0x8ee   :  { %3182 = vmatprep.mubr.bf16.mxu0 %v9872_v45  ;;  %6871 = vmatpush3.bf16.msra.mxu0 %v8829_v10 }
 0x8ef   :  { %6872 = vmatprep.subr.bf16.mxu0 %v8834_v27 }
 0x8f2   :  { %6873 = vmatpush3.bf16.msra.mxu0 %v8834_v27 }
 0x8f3   :  { %6874 = vmatprep.subr.bf16.mxu0 %v8838_v5 }
 0x8f5   :  { %3183 = vmatmul.mubr.bf16.gmra.mrb[204].mxu0 %v7419_v2 }
 0x8f6   :  { %3192 = vmatprep.mubr.bf16.mxu0 %v9872_v45  ;;  %6875 = vmatpush3.bf16.msra.mxu0 %v8838_v5 }
 0x8f7   :  { %6876 = vmatprep.subr.bf16.mxu0 %v8843_v3 }
 0x8fa   :  { %6877 = vmatpush3.bf16.msra.mxu0 %v8843_v3 }
 0x8fb   :  { %3780 = vmatprep.subr.bf16.mxu0 %v8847_v49 }
 0x8fd   :  { %3193 = vmatmul.mubr.bf16.gmra.mrb[208].mxu0 %v7420_v36 }
 0x8fe   :  { %3202 = vmatprep.mubr.bf16.mxu0 %v9872_v45 }
 0x905   :  { %3203 = vmatmul.mubr.bf16.gmra.mrb[212].mxu0 %v7421_v32 }
 0x906   :  { %3212 = vmatprep.mubr.bf16.mxu0 %v9872_v45 }
 0x90d   :  { %3213 = vmatmul.mubr.bf16.gmra.mrb[216].mxu0 %v7422_v16 }
 0x90e   :  { %3222 = vmatprep.mubr.bf16.mxu0 %v9872_v45 }
 0x915   :  { %3223 = vmatmul.mubr.bf16.gmra.mrb[220].mxu0 %v7423_v40 }
 0x978   :  { %v6813_v57 = vpop.f32.mrb[176].mxu0 }
 0x979   :  { %v2881_v56 = vadd.f32 %v8557_v4, %v6813_v57  ;;  %v2872_v58 = vpop.f32.mrb[177].mxu0 }
 0x97a   :  { %v2873_v6 = vadd.f32 %v8557_v4, %v2872_v58  ;;  %v6814_v22 = vpop.f32.mrb[178].mxu0 }
 0x97b   :  { %v2953_v0 = vmul.f32 0.2, %v2881_v56  ;;  %v2884_v21 = vadd.f32 %v8557_v4, %v6814_v22  ;;  %v2875_v61 = vpop.f32.mrb[179].mxu0  ;;  %vm2937_vm13 = vcmp.gt.f32.partialorder %v2881_v56, 0.0 }
 0x97c   :  { %v2951_v14 = vmul.f32 0.2, %v2873_v6  ;;  %v2876_v43 = vadd.f32 %v8557_v4, %v2875_v61  ;;  %vm2935_vm14 = vcmp.gt.f32.partialorder %v2873_v6, 0.0 }
 0x97d   :  { %vm2938_vm15 = vcmp.gt.f32.partialorder %v2884_v21, 0.0  ;;  %v2954_v12 = vmul.f32 0.2, %v2884_v21  ;;  %v2969_v2 = vsel %vm2937_vm13, %v2881_v56, %v2953_v0 }
 0x97e   :  { %vm2936_vm1 = vcmp.gt.f32.partialorder %v2876_v43, 0.0  ;;  %v2952_v59 = vmul.f32 0.2, %v2876_v43  ;;  %v2967_v32 = vsel %vm2935_vm14, %v2873_v6, %v2951_v14  ;;  %v8864_v6 = vld [vmem:[%s9830_s6] ss:$0 sm:$0xff] }
 0x97f   :  { %v2970_v36 = vsel %vm2938_vm15, %v2884_v21, %v2954_v12 }
 0x980   :  { %v7206_v16 = vpack.c.bf16 %v2970_v36, %v2969_v2  ;;  %v2968_v40 = vsel %vm2936_vm1, %v2876_v43, %v2952_v59 }
 0x981   :  { %v7203_v57 = vpack.c.bf16 %v2968_v40, %v2967_v32 }
 0x983   :  { %7204 = vmatpush3.bf16.xpose.msra.mxu1 %v7203_v57 }
 0x984   :  { %7205 = vmatprep.subr.bf16.mxu1 %v7745_v46 }
 0x988   :  { %v6817_v58 = vpop.f32.mrb[180].mxu0 }
 0x989   :  { %v2897_v22 = vadd.f32 %v8557_v4, %v6817_v58  ;;  %v2888_v49 = vpop.f32.mrb[181].mxu0 }
 0x98a   :  { %v2889_v61 = vadd.f32 %v8557_v4, %v2888_v49  ;;  %v6818_v3 = vpop.f32.mrb[182].mxu0 }
 0x98b   :  { %v2957_v5 = vmul.f32 0.2, %v2897_v22  ;;  %v2900_v27 = vadd.f32 %v8557_v4, %v6818_v3  ;;  %v2891_v10 = vpop.f32.mrb[183].mxu0  ;;  %7207 = vmatpush3.bf16.xpose.msra.mxu1 %v7206_v16  ;;  %vm2941_vm2 = vcmp.gt.f32.partialorder %v2897_v22, 0.0 }
 0x98c   :  { %v2955_v56 = vmul.f32 0.2, %v2889_v61  ;;  %v2892_v0 = vadd.f32 %v8864_v6, %v2891_v10  ;;  %7208 = vmatprep.subr.bf16.mxu1 %v7745_v46  ;;  %vm2939_vm3 = vcmp.gt.f32.partialorder %v2889_v61, 0.0 }
 0x98d   :  { %vm2942_vm4 = vcmp.gt.f32.partialorder %v2900_v27, 0.0  ;;  %v2958_v49 = vmul.f32 0.2, %v2900_v27  ;;  %v2973_v14 = vsel %vm2941_vm2, %v2897_v22, %v2957_v5 }
 0x98e   :  { %vm2940_vm5 = vcmp.gt.f32.partialorder %v2892_v0, 0.0  ;;  %v2956_v21 = vmul.f32 0.2, %v2892_v0  ;;  %v2971_v3 = vsel %vm2939_vm3, %v2889_v61, %v2955_v56 }
 0x98f   :  { %v2974_v4 = vsel %vm2942_vm4, %v2900_v27, %v2958_v49 }
 0x990   :  { %v7212_v43 = vpack.c.bf16 %v2974_v4, %v2973_v14  ;;  %v2972_v12 = vsel %vm2940_vm5, %v2892_v0, %v2956_v21 }
 0x991   :  { %v7209_v59 = vpack.c.bf16 %v2972_v12, %v2971_v3 }
 0x993   :  { %7210 = vmatpush3.bf16.xpose.msra.mxu1 %v7209_v59 }
 0x994   :  { %7211 = vmatprep.subr.bf16.mxu1 %v7745_v46 }
 0x998   :  { %v6821_v2 = vpop.f32.mrb[184].mxu0 }
 0x999   :  { %v2913_v36 = vadd.f32 %v8864_v6, %v6821_v2  ;;  %v2904_v10 = vpop.f32.mrb[185].mxu0 }
 0x99a   :  { %v2905_v32 = vadd.f32 %v8864_v6, %v2904_v10  ;;  %v6822_v16 = vpop.f32.mrb[186].mxu0 }
 0x99b   :  { %v2961_v40 = vmul.f32 0.2, %v2913_v36  ;;  %v2916_v57 = vadd.f32 %v8864_v6, %v6822_v16  ;;  %v2907_v58 = vpop.f32.mrb[187].mxu0  ;;  %7213 = vmatpush3.bf16.xpose.msra.mxu1 %v7212_v43  ;;  %vm2945_vm6 = vcmp.gt.f32.partialorder %v2913_v36, 0.0 }
 0x99c   :  { %v2959_v27 = vmul.f32 0.2, %v2905_v32  ;;  %v2908_v5 = vadd.f32 %v8864_v6, %v2907_v58  ;;  %7214 = vmatprep.subr.bf16.mxu1 %v7745_v46  ;;  %vm2943_vm7 = vcmp.gt.f32.partialorder %v2905_v32, 0.0 }
 0x99d   :  { %vm2946_vm8 = vcmp.gt.f32.partialorder %v2916_v57, 0.0  ;;  %v2962_v22 = vmul.f32 0.2, %v2916_v57  ;;  %v2977_v56 = vsel %vm2945_vm6, %v2913_v36, %v2961_v40 }
 0x99e   :  { %vm2944_vm9 = vcmp.gt.f32.partialorder %v2908_v5, 0.0  ;;  %v2960_v61 = vmul.f32 0.2, %v2908_v5  ;;  %v2975_v49 = vsel %vm2943_vm7, %v2905_v32, %v2959_v27 }
 0x99f   :  { %v2978_v0 = vsel %vm2946_vm8, %v2916_v57, %v2962_v22 }
 0x9a0   :  { %v7218_v21 = vpack.c.bf16 %v2978_v0, %v2977_v56  ;;  %v2976_v14 = vsel %vm2944_vm9, %v2908_v5, %v2960_v61 }
 0x9a1   :  { %v7215_v4 = vpack.c.bf16 %v2976_v14, %v2975_v49 }
 0x9a3   :  { %7216 = vmatpush3.bf16.xpose.msra.mxu1 %v7215_v4 }
 0x9a4   :  { %7217 = vmatprep.subr.bf16.mxu1 %v7745_v46 }
 0x9a8   :  { %v6825_v3 = vpop.f32.mrb[188].mxu0 }
 0x9a9   :  { %v2929_v43 = vadd.f32 %v8864_v6, %v6825_v3  ;;  %v2920_v12 = vpop.f32.mrb[189].mxu0 }
 0x9aa   :  { %v2921_v59 = vadd.f32 %v8864_v6, %v2920_v12  ;;  %v6826_v2 = vpop.f32.mrb[190].mxu0 }
 0x9ab   :  { %v2965_v10 = vmul.f32 0.2, %v2929_v43  ;;  %v2932_v16 = vadd.f32 %v8864_v6, %v6826_v2  ;;  %v2923_v58 = vpop.f32.mrb[191].mxu0  ;;  %7219 = vmatpush3.bf16.xpose.msra.mxu1 %v7218_v21  ;;  %vm2949_vm10 = vcmp.gt.f32.partialorder %v2929_v43, 0.0 }
 0x9ac   :  { %v2963_v36 = vmul.f32 0.2, %v2921_v59  ;;  %v2924_v32 = vadd.f32 %v8864_v6, %v2923_v58  ;;  %7220 = vmatprep.subr.bf16.mxu1 %v7745_v46  ;;  %vm2947_vm11 = vcmp.gt.f32.partialorder %v2921_v59, 0.0 }
 0x9ad   :  { %vm2950_vm12 = vcmp.gt.f32.partialorder %v2932_v16, 0.0  ;;  %v2966_v40 = vmul.f32 0.2, %v2932_v16  ;;  %v2981_v27 = vsel %vm2949_vm10, %v2929_v43, %v2965_v10 }
 0x9ae   :  { %vm2948_vm13 = vcmp.gt.f32.partialorder %v2924_v32, 0.0  ;;  %v2964_v57 = vmul.f32 0.2, %v2924_v32  ;;  %v2979_v22 = vsel %vm2947_vm11, %v2921_v59, %v2963_v36 }
 0x9af   :  { %v2982_v5 = vsel %vm2950_vm12, %v2932_v16, %v2966_v40 }
 0x9b0   :  { %v7224_v61 = vpack.c.bf16 %v2982_v5, %v2981_v27  ;;  %v2980_v56 = vsel %vm2948_vm13, %v2924_v32, %v2964_v57  ;;  %v3154_v0 = vpop.f32.mrb[192].mxu0 }
 0x9b1   :  { %v7221_v49 = vpack.c.bf16 %v2980_v56, %v2979_v22  ;;  %v3155_v21 = vadd.f32 %v3154_v0, %v7911_v53  ;;  %v3156_v14 = vpop.f32.mrb[193].mxu0 }
 0x9b2   :  { %v3157_v4 = vadd.f32 %v3156_v14, %v7913_v54  ;;  %v3158_v3 = vpop.f32.mrb[194].mxu0 }
 0x9b3   :  { %7222 = vmatpush3.bf16.xpose.msra.mxu1 %v7221_v49  ;;  %vm3233_vm14 = vcmp.gt.f32.partialorder %v3155_v21, 0.0  ;;  %v3265_v12 = vmul.f32 0.2, %v3155_v21  ;;  %v3159_v2 = vadd.f32 %v3158_v3, %v7911_v53  ;;  %v3160_v58 = vpop.f32.mrb[195].mxu0 }
 0x9b4   :  { %7223 = vmatprep.subr.bf16.mxu1 %v7745_v46  ;;  %vm3234_vm15 = vcmp.gt.f32.partialorder %v3157_v4, 0.0  ;;  %v3266_v43 = vmul.f32 0.2, %v3157_v4  ;;  %v3161_v59 = vadd.f32 %v3160_v58, %v7913_v54 }
 0x9b5   :  { %v8885_v10 = vsel %vm3233_vm14, %v3155_v21, %v3265_v12  ;;  %vm3235_vm1 = vcmp.gt.f32.partialorder %v3159_v2, 0.0  ;;  %v3267_v16 = vmul.f32 0.2, %v3159_v2 }
 0x9b6   :  { %vm3236_vm2 = vcmp.gt.f32.partialorder %v3161_v59, 0.0  ;;  %v3268_v36 = vmul.f32 0.2, %v3161_v59  ;;  %v3298_v32 = vsel %vm3234_vm15, %v3157_v4, %v3266_v43 }
 0x9b7   :  { %v8887_v40 = vsel %vm3235_vm1, %v3159_v2, %v3267_v16 }
 0x9b8   :  { %v3329_v57 = vpack.c.bf16 %v8887_v40, %v8885_v10  ;;  %v3164_v27 = vpop.f32.mrb[196].mxu0  ;;  %v3300_v5 = vsel %vm3236_vm2, %v3161_v59, %v3268_v36 }
 0x9b9   :  { %v3165_v22 = vadd.f32 %v3164_v27, %v7911_v53  ;;  %v3166_v56 = vpop.f32.mrb[197].mxu0  ;;  %v3330_v0 = vpack.c.bf16 %v3300_v5, %v3298_v32 }
 0x9ba   :  { %v3167_v49 = vadd.f32 %v3166_v56, %v7913_v54  ;;  %v3168_v21 = vpop.f32.mrb[198].mxu0 }
 0x9bb   :  { %7225 = vmatpush3.bf16.xpose.msra.mxu1 %v7224_v61  ;;  %vm3237_vm3 = vcmp.gt.f32.partialorder %v3165_v22, 0.0  ;;  %v3269_v14 = vmul.f32 0.2, %v3165_v22  ;;  %v3169_v3 = vadd.f32 %v3168_v21, %v7911_v53  ;;  %v3170_v4 = vpop.f32.mrb[199].mxu0 }
 0x9bc   :  { %6206 = vmatprep.subr.bf16.mxu1 %v8590_v8  ;;  %vm3238_vm4 = vcmp.gt.f32.partialorder %v3167_v49, 0.0  ;;  %v3270_v12 = vmul.f32 0.2, %v3167_v49  ;;  %v3171_v2 = vadd.f32 %v3170_v4, %v7913_v54 }
 0x9bd   :  { %vm3239_vm5 = vcmp.gt.f32.partialorder %v3169_v3, 0.0  ;;  %v3271_v58 = vmul.f32 0.2, %v3169_v3  ;;  %v8896_v43 = vsel %vm3237_vm3, %v3165_v22, %v3269_v14  ;;  %v8912_v22 = vld [vmem:[%s9831_s7] sm:$0xff] }
 0x9be   :  { %vm3240_vm6 = vcmp.gt.f32.partialorder %v3171_v2, 0.0  ;;  %v3272_v59 = vmul.f32 0.2, %v3171_v2  ;;  %v8898_v16 = vsel %vm3238_vm4, %v3167_v49, %v3270_v12 }
 0x9bf   :  { %v8900_v61 = vsel %vm3239_vm5, %v3169_v3, %v3271_v58 }
 0x9c0   :  { %v3174_v36 = vpop.f32.mrb[200].mxu0  ;;  %v8902_v32 = vsel %vm3240_vm6, %v3171_v2, %v3272_v59 }
 0x9c1   :  { %v3175_v27 = vadd.f32 %v3174_v36, %v7911_v53  ;;  %v3176_v5 = vpop.f32.mrb[201].mxu0 }
 0x9c2   :  { %6860 = vmatmul.mubr.f32.vlgmr.msra.gmra.mrb[102].mxu1 %v8912_v22  ;;  %v3177_v49 = vadd.f32 %v3176_v5, %v7913_v54  ;;  %v3178_v21 = vpop.f32.mrb[202].mxu0 }
 0x9c3   :  { %6207 = vmatpush3.bf16.msra.mxu1 %v8609_v33  ;;  %3377 = vmatprep.mubr.bf16.mxu1 %v3330_v0  ;;  %vm3241_vm7 = vcmp.gt.f32.partialorder %v3175_v27, 0.0  ;;  %v3273_v14 = vmul.f32 0.2, %v3175_v27  ;;  %v3179_v3 = vadd.f32 %v3178_v21, %v7911_v53  ;;  %v3180_v4 = vpop.f32.mrb[203].mxu0 }
 0x9c4   :  { %6208 = vmatprep.subr.bf16.mxu1 %v8613_v11  ;;  %vm3242_vm8 = vcmp.gt.f32.partialorder %v3177_v49, 0.0  ;;  %v3274_v12 = vmul.f32 0.2, %v3177_v49  ;;  %v3181_v2 = vadd.f32 %v3180_v4, %v7913_v54 }
 0x9c5   :  { %vm3243_vm9 = vcmp.gt.f32.partialorder %v3179_v3, 0.0  ;;  %v3275_v58 = vmul.f32 0.2, %v3179_v3  ;;  %v8920_v59 = vsel %vm3241_vm7, %v3175_v27, %v3273_v14 }
 0x9c6   :  { %vm3244_vm10 = vcmp.gt.f32.partialorder %v3181_v2, 0.0  ;;  %v3276_v36 = vmul.f32 0.2, %v3181_v2  ;;  %v8922_v5 = vsel %vm3242_vm8, %v3177_v49, %v3274_v12 }
 0x9c7   :  { %6209 = vmatpush3.bf16.msra.mxu1 %v8621_v63  ;;  %v8925_v33 = vsel %vm3243_vm9, %v3179_v3, %v3275_v58 }
 0x9c8   :  { %6210 = vmatprep.subr.bf16.mxu1 %v8626_v62  ;;  %v3184_v0 = vpop.f32.mrb[204].mxu0  ;;  %v8928_v11 = vsel %vm3244_vm10, %v3181_v2, %v3276_v36 }
 0x9c9   :  { %v3185_v4 = vadd.f32 %v3184_v0, %v7911_v53  ;;  %v3186_v27 = vpop.f32.mrb[205].mxu0 }
 0x9ca   :  { %v3187_v49 = vadd.f32 %v3186_v27, %v7913_v54  ;;  %v3188_v12 = vpop.f32.mrb[206].mxu0 }
 0x9cb   :  { %6211 = vmatpush3.bf16.msra.mxu1 %v8637_v25  ;;  %vm3245_vm11 = vcmp.gt.f32.partialorder %v3185_v4, 0.0  ;;  %v3277_v63 = vmul.f32 0.2, %v3185_v4  ;;  %v3189_v62 = vadd.f32 %v3188_v12, %v7911_v53  ;;  %v3190_v3 = vpop.f32.mrb[207].mxu0 }
 0x9cc   :  { %6212 = vmatprep.subr.bf16.mxu1 %v8641_v24  ;;  %vm3246_vm12 = vcmp.gt.f32.partialorder %v3187_v49, 0.0  ;;  %v3278_v2 = vmul.f32 0.2, %v3187_v49  ;;  %v3191_v58 = vadd.f32 %v3190_v3, %v7913_v54 }
 0x9cd   :  { %vm3247_vm13 = vcmp.gt.f32.partialorder %v3189_v62, 0.0  ;;  %v3279_v36 = vmul.f32 0.2, %v3189_v62  ;;  %v8940_v0 = vsel %vm3245_vm11, %v3185_v4, %v3277_v63 }
 0x9ce   :  { %vm3248_vm14 = vcmp.gt.f32.partialorder %v3191_v58, 0.0  ;;  %v3280_v27 = vmul.f32 0.2, %v3191_v58  ;;  %v8942_v21 = vsel %vm3246_vm12, %v3187_v49, %v3278_v2 }
 0x9cf   :  { %6213 = vmatpush3.bf16.msra.mxu1 %v8649_v15  ;;  %v8945_v25 = vsel %vm3247_vm13, %v3189_v62, %v3279_v36 }
 0x9d0   :  { %6214 = vmatprep.subr.bf16.mxu1 %v8654_v35  ;;  %v3194_v12 = vpop.f32.mrb[208].mxu0  ;;  %v8948_v24 = vsel %vm3248_vm14, %v3191_v58, %v3280_v27 }
 0x9d1   :  { %v3195_v14 = vadd.f32 %v3194_v12, %v7911_v53  ;;  %v3196_v4 = vpop.f32.mrb[209].mxu0 }
 0x9d2   :  { %v3197_v49 = vadd.f32 %v3196_v4, %v7913_v54  ;;  %v3198_v2 = vpop.f32.mrb[210].mxu0 }
 0x9d3   :  { %6215 = vmatpush3.bf16.msra.mxu1 %v8665_v48  ;;  %vm3249_vm15 = vcmp.gt.f32.partialorder %v3195_v14, 0.0  ;;  %v3281_v15 = vmul.f32 0.2, %v3195_v14  ;;  %v3199_v35 = vadd.f32 %v3198_v2, %v7911_v53  ;;  %v3200_v62 = vpop.f32.mrb[211].mxu0 }
 0x9d4   :  { %6216 = vmatprep.subr.bf16.mxu1 %v8669_v47  ;;  %vm3250_vm1 = vcmp.gt.f32.partialorder %v3197_v49, 0.0  ;;  %v3282_v58 = vmul.f32 0.2, %v3197_v49  ;;  %v3201_v36 = vadd.f32 %v3200_v62, %v7913_v54 }
 0x9d5   :  { %vm3251_vm2 = vcmp.gt.f32.partialorder %v3199_v35, 0.0  ;;  %v3283_v27 = vmul.f32 0.2, %v3199_v35  ;;  %v8960_v12 = vsel %vm3249_vm15, %v3195_v14, %v3281_v15 }
 0x9d6   :  { %vm3252_vm3 = vcmp.gt.f32.partialorder %v3201_v36, 0.0  ;;  %v3284_v4 = vmul.f32 0.2, %v3201_v36  ;;  %v8962_v3 = vsel %vm3250_vm1, %v3197_v49, %v3282_v58 }
 0x9d7   :  { %6217 = vmatpush3.bf16.msra.mxu1 %v8677_v31  ;;  %v8965_v48 = vsel %vm3251_vm2, %v3199_v35, %v3283_v27 }
 0x9d8   :  { %6218 = vmatprep.subr.bf16.mxu1 %v8682_v23  ;;  %v3204_v2 = vpop.f32.mrb[212].mxu0  ;;  %v8968_v47 = vsel %vm3252_vm3, %v3201_v36, %v3284_v4 }
 0x9d9   :  { %v3205_v63 = vadd.f32 %v3204_v2, %v7911_v53  ;;  %v3206_v14 = vpop.f32.mrb[213].mxu0 }
 0x9da   :  { %v3207_v49 = vadd.f32 %v3206_v14, %v7913_v54  ;;  %v3208_v58 = vpop.f32.mrb[214].mxu0 }
 0x9db   :  { %6219 = vmatpush3.bf16.msra.mxu1 %v8693_v19  ;;  %vm3253_vm4 = vcmp.gt.f32.partialorder %v3205_v63, 0.0  ;;  %v3285_v31 = vmul.f32 0.2, %v3205_v63  ;;  %v3209_v23 = vadd.f32 %v3208_v58, %v7911_v53  ;;  %v3210_v35 = vpop.f32.mrb[215].mxu0 }
 0x9dc   :  { %6220 = vmatprep.subr.bf16.mxu1 %v8697_v18  ;;  %vm3254_vm5 = vcmp.gt.f32.partialorder %v3207_v49, 0.0  ;;  %v3286_v36 = vmul.f32 0.2, %v3207_v49  ;;  %v3211_v27 = vadd.f32 %v3210_v35, %v7913_v54 }
 0x9dd   :  { %vm3255_vm6 = vcmp.gt.f32.partialorder %v3209_v23, 0.0  ;;  %v3287_v4 = vmul.f32 0.2, %v3209_v23  ;;  %v8980_v2 = vsel %vm3253_vm4, %v3205_v63, %v3285_v31 }
 0x9de   :  { %vm3256_vm7 = vcmp.gt.f32.partialorder %v3211_v27, 0.0  ;;  %v3288_v14 = vmul.f32 0.2, %v3211_v27  ;;  %v3318_v62 = vsel %vm3254_vm5, %v3207_v49, %v3286_v36 }
 0x9df   :  { %6221 = vmatpush3.bf16.msra.mxu1 %v8703_v50  ;;  %v3319_v19 = vsel %vm3255_vm6, %v3209_v23, %v3287_v4  ;;  %v9903_v50 = vpack.c.bf16 %v8902_v32, %v8898_v16 }
 0x9e0   :  { %v3214_v15 = vpop.f32.mrb[216].mxu0  ;;  %v3320_v8 = vsel %vm3256_vm7, %v3211_v27, %v3288_v14  ;;  %v3339_v58 = vpack.c.bf16 %v3319_v19, %v8980_v2  ;;  %7226 = vmatprep.subr.bf16.mxu1 %v7745_v46  ;;  %v9904_v19 = vpack.c.bf16 %v8900_v61, %v8896_v43 }
 0x9e1   :  { %v3215_v18 = vadd.f32 %v3214_v15, %v7911_v53  ;;  %v3216_v56 = vpop.f32.mrb[217].mxu0  ;;  %v3340_v35 = vpack.c.bf16 %v3320_v8, %v3318_v62 }
 0x9e2   :  { %3378 = vmatmul.mubr.bf16.vlgmr.msra.gmra.mrb[136].mxu1 %v3329_v57  ;;  %v3217_v63 = vadd.f32 %v3216_v56, %v7913_v54  ;;  %v3218_v49 = vpop.f32.mrb[218].mxu0 }
 0x9e3   :  { %3385 = vmatprep.mubr.bf16.mxu1 %v9903_v50  ;;  %vm3257_vm8 = vcmp.gt.f32.partialorder %v3215_v18, 0.0  ;;  %v3289_v31 = vmul.f32 0.2, %v3215_v18  ;;  %v3219_v23 = vadd.f32 %v3218_v49, %v7911_v53  ;;  %v3220_v36 = vpop.f32.mrb[219].mxu0 }
 0x9e4   :  { %vm3258_vm9 = vcmp.gt.f32.partialorder %v3217_v63, 0.0  ;;  %v3290_v15 = vmul.f32 0.2, %v3217_v63  ;;  %v3221_v8 = vadd.f32 %v3220_v36, %v7913_v54 }
 0x9e5   :  { %vm3259_vm10 = vcmp.gt.f32.partialorder %v3219_v23, 0.0  ;;  %v3291_v62 = vmul.f32 0.2, %v3219_v23  ;;  %v3321_v10 = vsel %vm3257_vm8, %v3215_v18, %v3289_v31  ;;  %v9905_v18 = vpack.c.bf16 %v8928_v11, %v8922_v5 }
 0x9e6   :  { %vm3260_vm11 = vcmp.gt.f32.partialorder %v3221_v8, 0.0  ;;  %v3292_v40 = vmul.f32 0.2, %v3221_v8  ;;  %v3322_v57 = vsel %vm3258_vm9, %v3217_v63, %v3290_v15  ;;  %v9906_v11 = vpack.c.bf16 %v8925_v33, %v8920_v59 }
 0x9e7   :  { %v3323_v56 = vsel %vm3259_vm10, %v3219_v23, %v3291_v62 }
 0x9e8   :  { %v3224_v27 = vpop.f32.mrb[220].mxu0  ;;  %v3324_v4 = vsel %vm3260_vm11, %v3221_v8, %v3292_v40  ;;  %v3341_v16 = vpack.c.bf16 %v3323_v56, %v3321_v10  ;;  %v9907_v56 = vpack.c.bf16 %v8948_v24, %v8942_v21 }
 0x9e9   :  { %v3225_v32 = vadd.f32 %v3224_v27, %v7911_v53  ;;  %v3226_v2 = vpop.f32.mrb[221].mxu0  ;;  %v3342_v14 = vpack.c.bf16 %v3324_v4, %v3322_v57  ;;  %v9908_v27 = vpack.c.bf16 %v8945_v25, %v8940_v0  ;;  %v9909_v4 = vpack.c.bf16 %v8968_v47, %v8962_v3 }
 0x9ea   :  { %3386 = vmatmul.mubr.bf16.gmra.mrb[140].mxu1 %v9904_v19  ;;  %v3227_v49 = vadd.f32 %v3226_v2, %v7913_v54  ;;  %v3228_v50 = vpop.f32.mrb[222].mxu0 }
 0x9eb   :  { %3393 = vmatprep.mubr.bf16.mxu1 %v9905_v18  ;;  %vm3261_vm12 = vcmp.gt.f32.partialorder %v3225_v32, 0.0  ;;  %v3293_v63 = vmul.f32 0.2, %v3225_v32  ;;  %v3229_v31 = vadd.f32 %v3228_v50, %v7911_v53  ;;  %v3230_v23 = vpop.f32.mrb[223].mxu0 }
 0x9ec   :  { %vm3262_vm13 = vcmp.gt.f32.partialorder %v3227_v49, 0.0  ;;  %v3294_v36 = vmul.f32 0.2, %v3227_v49  ;;  %v3231_v15 = vadd.f32 %v3230_v23, %v7913_v54 }
 0x9ed   :  { %vm3263_vm14 = vcmp.gt.f32.partialorder %v3229_v31, 0.0  ;;  %v3295_v8 = vmul.f32 0.2, %v3229_v31  ;;  %v3325_v43 = vsel %vm3261_vm12, %v3225_v32, %v3293_v63  ;;  %v9910_v32 = vpack.c.bf16 %v8965_v48, %v8960_v12 }
 0x9ee   :  { %vm3264_vm15 = vcmp.gt.f32.partialorder %v3231_v15, 0.0  ;;  %v3296_v61 = vmul.f32 0.2, %v3231_v15  ;;  %v3326_v62 = vsel %vm3262_vm13, %v3227_v49, %v3294_v36 }
 0x9ef   :  { %v3327_v10 = vsel %vm3263_vm14, %v3229_v31, %v3295_v8 }
 0x9f0   :  { %v3328_v40 = vsel %vm3264_vm15, %v3231_v15, %v3296_v61  ;;  %v3343_v57 = vpack.c.bf16 %v3327_v10, %v3325_v43 }
 0x9f1   :  { %v3344_v5 = vpack.c.bf16 %v3328_v40, %v3326_v62 }
 0x9f2   :  { %3394 = vmatmul.mubr.bf16.gmra.mrb[144].mxu1 %v9906_v11 }
 0x9f3   :  { %3401 = vmatprep.mubr.bf16.mxu1 %v9907_v56 }
 0x9fa   :  { %3402 = vmatmul.mubr.bf16.gmra.mrb[148].mxu1 %v9908_v27 }
 0x9fb   :  { %3409 = vmatprep.mubr.bf16.mxu1 %v9909_v4 }
 0xa02   :  { %3410 = vmatmul.mubr.bf16.gmra.mrb[152].mxu1 %v9910_v32 }
 0xa03   :  { %3417 = vmatprep.mubr.bf16.mxu1 %v3340_v35 }
 0xa0a   :  { %3418 = vmatmul.mubr.bf16.gmra.mrb[156].mxu1 %v3339_v58 }
 0xa0b   :  { %3425 = vmatprep.mubr.bf16.mxu1 %v3342_v14 }
 0xa12   :  { %3426 = vmatmul.mubr.bf16.gmra.mrb[160].mxu1 %v3341_v16 }
 0xa13   :  { %3433 = vmatprep.mubr.bf16.mxu1 %v3344_v5 }
 0xa1a   :  { %3434 = vmatmul.mubr.bf16.gmra.mrb[164].mxu1 %v3343_v57 }
 0xa1b   :  { %6926 = vmatprep.mubr.msk.f32.mxu1 %vm7746_vm0, %v9870_v17 }
 0xa95   :  { %v3049_v59 = vpop.f32.mrb[102].mxu1 }
 0xa96   :  { %v3053_v33 = vadd.f32 %v3049_v59, %v8204_v28  ;;  %v6861_v21 = vpop.f32.mrb[103].mxu1 }
 0xa98   :  { %3054 = vst [vmem:[#allocation11 + $0x3] sm:$0x1] %v3053_v33 }
 0xab5   :  { %v6222_v0 = vpop.f32.mrb[136].mxu1 }
 0xab6   :  { %v6223_v25 = vpop.f32.mrb[137].mxu1 }
 0xab7   :  { %v6224_v24 = vadd.f32 %v6223_v25, %v6222_v0  ;;  %v6225_v3 = vpop.f32.mrb[138].mxu1 }
 0xab8   :  { %v6226_v12 = vpop.f32.mrb[139].mxu1 }
 0xab9   :  { %v3380_v48 = vadd.f32 %v8753_v38, %v6224_v24  ;;  %v6227_v47 = vadd.f32 %v6226_v12, %v6225_v3 }
 0xabb   :  { %v3458_v58 = vmul.f32 0.2, %v3380_v48  ;;  %v3383_v35 = vadd.f32 %v8753_v38, %v6227_v47  ;;  %vm3442_vm1 = vcmp.gt.f32.partialorder %v3380_v48, 0.0 }
 0xabd   :  { %vm3443_vm2 = vcmp.gt.f32.partialorder %v3383_v35, 0.0  ;;  %v3459_v16 = vmul.f32 0.2, %v3383_v35  ;;  %v6228_v2 = vpop.f32.mrb[140].mxu1  ;;  %v3474_v50 = vsel %vm3442_vm1, %v3380_v48, %v3458_v58 }
 0xabe   :  { %v6229_v14 = vpop.f32.mrb[141].mxu1 }
 0xabf   :  { %v6230_v19 = vadd.f32 %v6229_v14, %v6228_v2  ;;  %v6231_v49 = vpop.f32.mrb[142].mxu1  ;;  %v3475_v18 = vsel %vm3443_vm2, %v3383_v35, %v3459_v16 }
 0xac0   :  { %v6232_v63 = vpop.f32.mrb[143].mxu1  ;;  %v3490_v31 = vpack.c.bf16 %v3475_v18, %v3474_v50 }
 0xac1   :  { %v3388_v23 = vadd.f32 %v8753_v38, %v6230_v19  ;;  %v6233_v36 = vadd.f32 %v6232_v63, %v6231_v49 }
 0xac2   :  { %6878 = vmatprep.mubr.bf16.mxu0 %v3490_v31 }
 0xac3   :  { %v3460_v15 = vmul.f32 0.2, %v3388_v23  ;;  %v3391_v8 = vadd.f32 %v8753_v38, %v6233_v36  ;;  %vm3444_vm3 = vcmp.gt.f32.partialorder %v3388_v23, 0.0 }
 0xac5   :  { %vm3445_vm4 = vcmp.gt.f32.partialorder %v3391_v8, 0.0  ;;  %v3461_v43 = vmul.f32 0.2, %v3391_v8  ;;  %v6234_v61 = vpop.f32.mrb[144].mxu1  ;;  %v3476_v10 = vsel %vm3444_vm3, %v3388_v23, %v3460_v15 }
 0xac6   :  { %v6235_v62 = vpop.f32.mrb[145].mxu1 }
 0xac7   :  { %v3477_v40 = vsel %vm3445_vm4, %v3391_v8, %v3461_v43  ;;  %v6236_v57 = vadd.f32 %v6235_v62, %v6234_v61  ;;  %v6237_v5 = vpop.f32.mrb[146].mxu1 }
 0xac8   :  { %v3491_v11 = vpack.c.bf16 %v3477_v40, %v3476_v10  ;;  %v6238_v56 = vpop.f32.mrb[147].mxu1 }
 0xac9   :  { %v3396_v27 = vadd.f32 %v8753_v38, %v6236_v57  ;;  %v6239_v4 = vadd.f32 %v6238_v56, %v6237_v5 }
 0xaca   :  { %6879 = vmatmul.mubr.bf16.vlgmr.msra.gmra.mrb[224].mxu0 %v3491_v11 }
 0xacb   :  { %v3462_v32 = vmul.f32 0.2, %v3396_v27  ;;  %v3399_v59 = vadd.f32 %v8753_v38, %v6239_v4  ;;  %3781 = vmatpush1.bf16.msra.mxu0 %v8757_v7  ;;  %vm3446_vm5 = vcmp.gt.f32.partialorder %v3396_v27, 0.0  ;;  %v9036_v38 = vld [vmem:[%s9828_s4] ss:$0 sm:$0xff] }
 0xacc   :  { %3782 = vmatprep.subr.bf16.mxu0 %v8760_v13 }
 0xacd   :  { %vm3447_vm6 = vcmp.gt.f32.partialorder %v3399_v59, 0.0  ;;  %v3463_v33 = vmul.f32 0.2, %v3399_v59  ;;  %v6240_v21 = vpop.f32.mrb[148].mxu1  ;;  %v3478_v3 = vsel %vm3446_vm5, %v3396_v27, %v3462_v32 }
 0xace   :  { %v6241_v0 = vpop.f32.mrb[149].mxu1 }
 0xacf   :  { %v6242_v25 = vadd.f32 %v6241_v0, %v6240_v21  ;;  %v6243_v24 = vpop.f32.mrb[150].mxu1  ;;  %v3479_v12 = vsel %vm3447_vm6, %v3399_v59, %v3463_v33  ;;  %3783 = vmatpush1.bf16.msra.mxu0 %v8763_v9  ;;  %v9055_v59 = vld [vmem:[#allocation9] sm:$0xff]  }
 0xad0   :  { %v6244_v48 = vpop.f32.mrb[151].mxu1  ;;  %v3492_v47 = vpack.c.bf16 %v3479_v12, %v3478_v3  ;;  %3784 = vmatprep.subr.bf16.mxu0 %v8766_v60 }
 0xad1   :  { %v3404_v7 = vadd.f32 %v9036_v38, %v6242_v25  ;;  %v6245_v13 = vadd.f32 %v6244_v48, %v6243_v24 }
 0xad2   :  { %6882 = vmatprep.mubr.bf16.mxu0 %v3492_v47 }
 0xad3   :  { %v3464_v58 = vmul.f32 0.2, %v3404_v7  ;;  %v3407_v35 = vadd.f32 %v9036_v38, %v6245_v13  ;;  %3785 = vmatpush1.bf16.msra.mxu0 %v8771_v51  ;;  %vm3448_vm7 = vcmp.gt.f32.partialorder %v3404_v7, 0.0 }
 0xad4   :  { %3786 = vmatprep.subr.bf16.mxu0 %v8774_v41 }
 0xad5   :  { %vm3449_vm8 = vcmp.gt.f32.partialorder %v3407_v35, 0.0  ;;  %v3465_v9 = vmul.f32 0.2, %v3407_v35  ;;  %v6246_v60 = vpop.f32.mrb[152].mxu1  ;;  %v3480_v19 = vsel %vm3448_vm7, %v3404_v7, %v3464_v58 }
 0xad6   :  { %v6247_v16 = vpop.f32.mrb[153].mxu1 }
 0xad7   :  { %v6248_v2 = vadd.f32 %v6247_v16, %v6246_v60  ;;  %v6249_v14 = vpop.f32.mrb[154].mxu1  ;;  %v3481_v49 = vsel %vm3449_vm8, %v3407_v35, %v3465_v9  ;;  %3787 = vmatpush1.bf16.msra.mxu0 %v8777_v29 }
 0xad8   :  { %v6250_v50 = vpop.f32.mrb[155].mxu1  ;;  %v3493_v18 = vpack.c.bf16 %v3481_v49, %v3480_v19  ;;  %3788 = vmatprep.subr.bf16.mxu0 %v8780_v30  ;;  %v7424_v19 = vld [vmem:[#allocation3 + $0x140] sm:$0xff]   ;;  %v7425_v49 = vld [vmem:[#allocation3 + $0x148] sm:$0xff]  }
 0xad9   :  { %v3412_v63 = vadd.f32 %v9036_v38, %v6248_v2  ;;  %v6251_v51 = vadd.f32 %v6250_v50, %v6249_v14  ;;  %v7426_v50 = vld [vmem:[#allocation3 + $0x150] sm:$0xff]  }
 0xada   :  { %6883 = vmatmul.mubr.bf16.gmra.mrb[228].mxu0 %v3493_v18  ;;  %v9911_v18 = vld [vmem:[#allocation16_spill] sm:$0xff] }
 0xadb   :  { %v3466_v31 = vmul.f32 0.2, %v3412_v63  ;;  %v3415_v41 = vadd.f32 %v9036_v38, %v6251_v51  ;;  %3789 = vmatpush1.bf16.msra.mxu0 %v8785_v1  ;;  %vm3450_vm9 = vcmp.gt.f32.partialorder %v3412_v63, 0.0  ;;  %v9913_v51 = vld [vmem:[#allocation18_spill] sm:$0xff] }
 0xadc   :  { %3790 = vmatprep.subr.bf16.mxu0 %v8788_v37 }
 0xadd   :  { %vm3451_vm10 = vcmp.gt.f32.partialorder %v3415_v41, 0.0  ;;  %v3467_v23 = vmul.f32 0.2, %v3415_v41  ;;  %v6252_v36 = vpop.f32.mrb[156].mxu1  ;;  %v3482_v43 = vsel %vm3450_vm9, %v3412_v63, %v3466_v31  ;;  %v7427_v63 = vld [vmem:[#allocation3 + $0x158] sm:$0xff]   ;;  %v9915_v31 = vld [vmem:[#allocation20_spill] sm:$0xff] }
 0xade   :  { %v6253_v29 = vpop.f32.mrb[157].mxu1 }
 0xadf   :  { %v6254_v15 = vadd.f32 %v6253_v29, %v6252_v36  ;;  %v6255_v8 = vpop.f32.mrb[158].mxu1  ;;  %v3483_v30 = vsel %vm3451_vm10, %v3415_v41, %v3467_v23  ;;  %3791 = vmatpush1.bf16.msra.mxu0 %v8791_v20  ;;  %v7429_v41 = vld [vmem:[#allocation3 + $0x168] sm:$0xff]   ;;  %v7430_v23 = vld [vmem:[#allocation3 + $0x170] sm:$0xff]   ;;  %v7431_v36 = vld [vmem:[#allocation3 + $0x178] sm:$0xff]  }
 0xae0   :  { %v6256_v61 = vpop.f32.mrb[159].mxu1  ;;  %v3494_v62 = vpack.c.bf16 %v3483_v30, %v3482_v43  ;;  %3792 = vmatprep.subr.bf16.mxu0 %v8794_v39 }
 0xae1   :  { %v3420_v10 = vadd.f32 %v9036_v38, %v6254_v15  ;;  %v6257_v1 = vadd.f32 %v6256_v61, %v6255_v8 }
 0xae2   :  { %6886 = vmatprep.mubr.bf16.mxu0 %v3494_v62 }
 0xae3   :  { %v3468_v40 = vmul.f32 0.2, %v3420_v10  ;;  %v3423_v37 = vadd.f32 %v9036_v38, %v6257_v1  ;;  %3793 = vmatpush1.bf16.msra.mxu0 %v8799_v34  ;;  %vm3452_vm11 = vcmp.gt.f32.partialorder %v3420_v10, 0.0 }
 0xae4   :  { %3794 = vmatprep.subr.bf16.mxu0 %v8802_v52 }
 0xae5   :  { %vm3453_vm12 = vcmp.gt.f32.partialorder %v3423_v37, 0.0  ;;  %v3469_v57 = vmul.f32 0.2, %v3423_v37  ;;  %v6258_v5 = vpop.f32.mrb[160].mxu1  ;;  %v3484_v27 = vsel %vm3452_vm11, %v3420_v10, %v3468_v40 }
 0xae6   :  { %v6259_v20 = vpop.f32.mrb[161].mxu1 }
 0xae7   :  { %v6260_v11 = vadd.f32 %v6259_v20, %v6258_v5  ;;  %v6261_v56 = vpop.f32.mrb[162].mxu1  ;;  %v3485_v39 = vsel %vm3453_vm12, %v3423_v37, %v3469_v57  ;;  %3795 = vmatpush1.bf16.msra.mxu0 %v8805_v42 }
 0xae8   :  { %v6262_v4 = vpop.f32.mrb[163].mxu1  ;;  %v3495_v32 = vpack.c.bf16 %v3485_v39, %v3484_v27  ;;  %6929 = vmatprep.subr.bf16.mxu0 %v9055_v59 }
 0xae9   :  { %v3428_v34 = vadd.f32 %v9036_v38, %v6260_v11  ;;  %v6263_v33 = vadd.f32 %v6262_v4, %v6261_v56 }
 0xaea   :  { %6887 = vmatmul.mubr.bf16.gmra.mrb[232].mxu0 %v3495_v32 }
 0xaeb   :  { %v3470_v52 = vmul.f32 0.2, %v3428_v34  ;;  %v3431_v21 = vadd.f32 %v9036_v38, %v6263_v33  ;;  %vm3454_vm13 = vcmp.gt.f32.partialorder %v3428_v34, 0.0 }
 0xaed   :  { %vm3455_vm14 = vcmp.gt.f32.partialorder %v3431_v21, 0.0  ;;  %v3471_v0 = vmul.f32 0.2, %v3431_v21  ;;  %v6264_v25 = vpop.f32.mrb[164].mxu1  ;;  %v3486_v12 = vsel %vm3454_vm13, %v3428_v34, %v3470_v52 }
 0xaee   :  { %v6265_v24 = vpop.f32.mrb[165].mxu1 }
 0xaef   :  { %v6266_v3 = vadd.f32 %v6265_v24, %v6264_v25  ;;  %v6267_v42 = vpop.f32.mrb[166].mxu1  ;;  %v3487_v48 = vsel %vm3455_vm14, %v3431_v21, %v3471_v0 }
 0xaf0   :  { %v6268_v47 = vpop.f32.mrb[167].mxu1  ;;  %v3496_v7 = vpack.c.bf16 %v3487_v48, %v3486_v12 }
 0xaf1   :  { %v3436_v13 = vadd.f32 %v9036_v38, %v6266_v3  ;;  %v6269_v58 = vadd.f32 %v6268_v47, %v6267_v42 }
 0xaf2   :  { %6890 = vmatprep.mubr.bf16.mxu0 %v3496_v7 }
 0xaf3   :  { %v3472_v35 = vmul.f32 0.2, %v3436_v13  ;;  %v3439_v9 = vadd.f32 %v9036_v38, %v6269_v58  ;;  %vm3456_vm15 = vcmp.gt.f32.partialorder %v3436_v13, 0.0 }
 0xaf5   :  { %vm3457_vm1 = vcmp.gt.f32.partialorder %v3439_v9, 0.0  ;;  %v3473_v60 = vmul.f32 0.2, %v3439_v9  ;;  %v3488_v16 = vsel %vm3456_vm15, %v3436_v13, %v3472_v35 }
 0xaf7   :  { %v3489_v2 = vsel %vm3457_vm1, %v3439_v9, %v3473_v60 }
 0xaf8   :  { %v3497_v14 = vpack.c.bf16 %v3489_v2, %v3488_v16 }
 0xafa   :  { %6891 = vmatmul.mubr.bf16.gmra.mrb[236].mxu0 %v3497_v14 }
 0xafb   :  { %3812 = vmatprep.mubr.bf16.mxu0 %v9872_v45 }
 0xb02   :  { %3813 = vmatmul.mubr.bf16.vlgmr.msra.gmra.mrb[240].mxu0 %v7424_v19 }
 0xb03   :  { %3822 = vmatprep.mubr.bf16.mxu0 %v9872_v45  ;;  %6930 = vmatpush3.bf16.msra.mxu0 %v9055_v59 }
 0xb04   :  { %6931 = vmatprep.subr.bf16.mxu0 %v8816_v26 }
 0xb07   :  { %6932 = vmatpush3.bf16.msra.mxu0 %v8816_v26  ;;  %v9912_v26 = vld [vmem:[#allocation17_spill] sm:$0xff] }
 0xb08   :  { %6933 = vmatprep.subr.bf16.mxu0 %v8820_v44 }
 0xb0a   :  { %3823 = vmatmul.mubr.bf16.gmra.mrb[244].mxu0 %v7425_v49 }
 0xb0b   :  { %3832 = vmatprep.mubr.bf16.mxu0 %v9872_v45  ;;  %6934 = vmatpush3.bf16.msra.mxu0 %v8820_v44  ;;  %v9914_v44 = vld [vmem:[#allocation19_spill] sm:$0xff] }
 0xb0c   :  { %6935 = vmatprep.subr.bf16.mxu0 %v8825_v55 }
 0xb0f   :  { %6936 = vmatpush3.bf16.msra.mxu0 %v8825_v55  ;;  %v7428_v55 = vld [vmem:[#allocation3 + $0x160] sm:$0xff]  }
 0xb10   :  { %6937 = vmatprep.subr.bf16.mxu0 %v9911_v18 }
 0xb12   :  { %3833 = vmatmul.mubr.bf16.gmra.mrb[248].mxu0 %v7426_v50 }
 0xb13   :  { %3842 = vmatprep.mubr.bf16.mxu0 %v9872_v45  ;;  %6938 = vmatpush3.bf16.msra.mxu0 %v9911_v18 }
 0xb14   :  { %6939 = vmatprep.subr.bf16.mxu0 %v9912_v26 }
 0xb17   :  { %6940 = vmatpush3.bf16.msra.mxu0 %v9912_v26 }
 0xb18   :  { %6941 = vmatprep.subr.bf16.mxu0 %v9913_v51 }
 0xb1a   :  { %3843 = vmatmul.mubr.bf16.gmra.mrb[252].mxu0 %v7427_v63 }
 0xb1b   :  { %3852 = vmatprep.mubr.bf16.mxu0 %v9872_v45  ;;  %6942 = vmatpush3.bf16.msra.mxu0 %v9913_v51 }
 0xb1c   :  { %6943 = vmatprep.subr.bf16.mxu0 %v9914_v44 }
 0xb1f   :  { %6944 = vmatpush3.bf16.msra.mxu0 %v9914_v44 }
 0xb20   :  { %4440 = vmatprep.subr.bf16.mxu0 %v9915_v31 }
 0xb22   :  { %3853 = vmatmul.mubr.bf16.gmra.mrb[0].mxu0 %v7428_v55 }
 0xb23   :  { %3862 = vmatprep.mubr.bf16.mxu0 %v9872_v45 }
 0xb2a   :  { %3863 = vmatmul.mubr.bf16.gmra.mrb[4].mxu0 %v7429_v41 }
 0xb2b   :  { %3872 = vmatprep.mubr.bf16.mxu0 %v9872_v45 }
 0xb32   :  { %3873 = vmatmul.mubr.bf16.gmra.mrb[8].mxu0 %v7430_v23 }
 0xb33   :  { %3882 = vmatprep.mubr.bf16.mxu0 %v9872_v45 }
 0xb3a   :  { %3883 = vmatmul.mubr.bf16.gmra.mrb[12].mxu0 %v7431_v36 }
 0xb9d   :  { %v6880_v29 = vpop.f32.mrb[224].mxu0 }
 0xb9e   :  { %v3541_v15 = vadd.f32 %v8864_v6, %v6880_v29  ;;  %v3532_v8 = vpop.f32.mrb[225].mxu0 }
 0xb9f   :  { %v3533_v43 = vadd.f32 %v8864_v6, %v3532_v8  ;;  %v6881_v30 = vpop.f32.mrb[226].mxu0 }
 0xba0   :  { %v3613_v61 = vmul.f32 0.2, %v3541_v15  ;;  %v3544_v62 = vadd.f32 %v8864_v6, %v6881_v30  ;;  %v3535_v10 = vpop.f32.mrb[227].mxu0  ;;  %vm3597_vm2 = vcmp.gt.f32.partialorder %v3541_v15, 0.0 }
 0xba1   :  { %v3611_v1 = vmul.f32 0.2, %v3533_v43  ;;  %v3536_v40 = vadd.f32 %v8864_v6, %v3535_v10  ;;  %vm3595_vm3 = vcmp.gt.f32.partialorder %v3533_v43, 0.0 }
 0xba2   :  { %vm3598_vm4 = vcmp.gt.f32.partialorder %v3544_v62, 0.0  ;;  %v3614_v37 = vmul.f32 0.2, %v3544_v62  ;;  %v3629_v5 = vsel %vm3597_vm2, %v3541_v15, %v3613_v61 }
 0xba3   :  { %vm3596_vm5 = vcmp.gt.f32.partialorder %v3536_v40, 0.0  ;;  %v3612_v57 = vmul.f32 0.2, %v3536_v40  ;;  %v3627_v11 = vsel %vm3595_vm3, %v3533_v43, %v3611_v1 }
 0xba4   :  { %v3630_v20 = vsel %vm3598_vm4, %v3544_v62, %v3614_v37 }
 0xba5   :  { %v7230_v56 = vpack.c.bf16 %v3630_v20, %v3629_v5  ;;  %v3628_v27 = vsel %vm3596_vm5, %v3536_v40, %v3612_v57 }
 0xba6   :  { %v7227_v39 = vpack.c.bf16 %v3628_v27, %v3627_v11 }
 0xba8   :  { %7228 = vmatpush3.bf16.xpose.msra.mxu1 %v7227_v39 }
 0xba9   :  { %7229 = vmatprep.subr.bf16.mxu1 %v7745_v46 }
 0xbad   :  { %v6884_v4 = vpop.f32.mrb[228].mxu0 }
 0xbae   :  { %v3557_v32 = vadd.f32 %v8864_v6, %v6884_v4  ;;  %v3548_v34 = vpop.f32.mrb[229].mxu0 }
 0xbaf   :  { %v3549_v33 = vadd.f32 %v8864_v6, %v3548_v34  ;;  %v6885_v52 = vpop.f32.mrb[230].mxu0 }
 0xbb0   :  { %v3617_v21 = vmul.f32 0.2, %v3557_v32  ;;  %v3560_v0 = vadd.f32 %v8864_v6, %v6885_v52  ;;  %v3551_v25 = vpop.f32.mrb[231].mxu0  ;;  %7231 = vmatpush3.bf16.xpose.msra.mxu1 %v7230_v56  ;;  %vm3601_vm6 = vcmp.gt.f32.partialorder %v3557_v32, 0.0 }
 0xbb1   :  { %v3615_v24 = vmul.f32 0.2, %v3549_v33  ;;  %v3552_v3 = vadd.f32 %v8864_v6, %v3551_v25  ;;  %7232 = vmatprep.subr.bf16.mxu1 %v7745_v46  ;;  %vm3599_vm7 = vcmp.gt.f32.partialorder %v3549_v33, 0.0  ;;  %v9100_v6 = vld [vmem:[%s9830_s6] ss:$0 sm:$0xff] }
 0xbb2   :  { %vm3602_vm8 = vcmp.gt.f32.partialorder %v3560_v0, 0.0  ;;  %v3618_v42 = vmul.f32 0.2, %v3560_v0  ;;  %v3633_v48 = vsel %vm3601_vm6, %v3557_v32, %v3617_v21 }
 0xbb3   :  { %vm3600_vm9 = vcmp.gt.f32.partialorder %v3552_v3, 0.0  ;;  %v3616_v12 = vmul.f32 0.2, %v3552_v3  ;;  %v3631_v7 = vsel %vm3599_vm7, %v3549_v33, %v3615_v24 }
 0xbb4   :  { %v3634_v47 = vsel %vm3602_vm8, %v3560_v0, %v3618_v42 }
 0xbb5   :  { %v7236_v13 = vpack.c.bf16 %v3634_v47, %v3633_v48  ;;  %v3632_v58 = vsel %vm3600_vm9, %v3552_v3, %v3616_v12 }
 0xbb6   :  { %v7233_v35 = vpack.c.bf16 %v3632_v58, %v3631_v7 }
 0xbb8   :  { %7234 = vmatpush3.bf16.xpose.msra.mxu1 %v7233_v35 }
 0xbb9   :  { %7235 = vmatprep.subr.bf16.mxu1 %v7745_v46 }
 0xbbd   :  { %v6888_v9 = vpop.f32.mrb[232].mxu0 }
 0xbbe   :  { %v3573_v60 = vadd.f32 %v9100_v6, %v6888_v9  ;;  %v3564_v16 = vpop.f32.mrb[233].mxu0 }
 0xbbf   :  { %v3565_v2 = vadd.f32 %v9100_v6, %v3564_v16  ;;  %v6889_v14 = vpop.f32.mrb[234].mxu0 }
 0xbc0   :  { %v3621_v19 = vmul.f32 0.2, %v3573_v60  ;;  %v3576_v49 = vadd.f32 %v9100_v6, %v6889_v14  ;;  %v3567_v50 = vpop.f32.mrb[235].mxu0  ;;  %7237 = vmatpush3.bf16.xpose.msra.mxu1 %v7236_v13  ;;  %vm3605_vm10 = vcmp.gt.f32.partialorder %v3573_v60, 0.0 }
 0xbc1   :  { %v3619_v18 = vmul.f32 0.2, %v3565_v2  ;;  %v3568_v26 = vadd.f32 %v9100_v6, %v3567_v50  ;;  %7238 = vmatprep.subr.bf16.mxu1 %v7745_v46  ;;  %vm3603_vm11 = vcmp.gt.f32.partialorder %v3565_v2, 0.0 }
 0xbc2   :  { %vm3606_vm12 = vcmp.gt.f32.partialorder %v3576_v49, 0.0  ;;  %v3622_v63 = vmul.f32 0.2, %v3576_v49  ;;  %v3637_v44 = vsel %vm3605_vm10, %v3573_v60, %v3621_v19 }
 0xbc3   :  { %vm3604_vm13 = vcmp.gt.f32.partialorder %v3568_v26, 0.0  ;;  %v3620_v51 = vmul.f32 0.2, %v3568_v26  ;;  %v3635_v31 = vsel %vm3603_vm11, %v3565_v2, %v3619_v18  ;;  %v9127_v18 = vld [vmem:[#allocation8 + $0x40] sm:$0xff]  }
 0xbc4   :  { %v3638_v55 = vsel %vm3606_vm12, %v3576_v49, %v3622_v63 }
 0xbc5   :  { %v7242_v41 = vpack.c.bf16 %v3638_v55, %v3637_v44  ;;  %v3636_v23 = vsel %vm3604_vm13, %v3568_v26, %v3620_v51 }
 0xbc6   :  { %v7239_v36 = vpack.c.bf16 %v3636_v23, %v3635_v31 }
 0xbc8   :  { %7240 = vmatpush3.bf16.xpose.msra.mxu1 %v7239_v36 }
 0xbc9   :  { %7241 = vmatprep.subr.bf16.mxu1 %v7745_v46 }
 0xbcd   :  { %v6892_v29 = vpop.f32.mrb[236].mxu0 }
 0xbce   :  { %v3589_v15 = vadd.f32 %v9100_v6, %v6892_v29  ;;  %v3580_v8 = vpop.f32.mrb[237].mxu0 }
 0xbcf   :  { %v3581_v43 = vadd.f32 %v9100_v6, %v3580_v8  ;;  %v6893_v30 = vpop.f32.mrb[238].mxu0 }
 0xbd0   :  { %v3625_v61 = vmul.f32 0.2, %v3589_v15  ;;  %v3592_v62 = vadd.f32 %v9100_v6, %v6893_v30  ;;  %v3583_v10 = vpop.f32.mrb[239].mxu0  ;;  %7243 = vmatpush3.bf16.xpose.msra.mxu1 %v7242_v41  ;;  %vm3609_vm14 = vcmp.gt.f32.partialorder %v3589_v15, 0.0 }
 0xbd1   :  { %v3623_v1 = vmul.f32 0.2, %v3581_v43  ;;  %v3584_v40 = vadd.f32 %v9100_v6, %v3583_v10  ;;  %7244 = vmatprep.subr.bf16.mxu1 %v7745_v46  ;;  %vm3607_vm15 = vcmp.gt.f32.partialorder %v3581_v43, 0.0 }
 0xbd2   :  { %vm3610_vm1 = vcmp.gt.f32.partialorder %v3592_v62, 0.0  ;;  %v3626_v37 = vmul.f32 0.2, %v3592_v62  ;;  %v3641_v5 = vsel %vm3609_vm14, %v3589_v15, %v3625_v61 }
 0xbd3   :  { %vm3608_vm2 = vcmp.gt.f32.partialorder %v3584_v40, 0.0  ;;  %v3624_v57 = vmul.f32 0.2, %v3584_v40  ;;  %v3639_v11 = vsel %vm3607_vm15, %v3581_v43, %v3623_v1 }
 0xbd4   :  { %v3642_v20 = vsel %vm3610_vm1, %v3592_v62, %v3626_v37  ;;  %v9146_v62 = vld [vmem:[#allocation8] sm:$0xff]   ;;  %v9150_v37 = vld [vmem:[#allocation8 + $0x48] sm:$0xff]  }
 0xbd5   :  { %v7248_v56 = vpack.c.bf16 %v3642_v20, %v3641_v5  ;;  %v3640_v27 = vsel %vm3608_vm2, %v3584_v40, %v3624_v57  ;;  %v3814_v39 = vpop.f32.mrb[240].mxu0 }
 0xbd6   :  { %v7245_v4 = vpack.c.bf16 %v3640_v27, %v3639_v11  ;;  %v3815_v32 = vadd.f32 %v3814_v39, %v7911_v53  ;;  %v3816_v34 = vpop.f32.mrb[241].mxu0  ;;  %v9158_v27 = vld [vmem:[#allocation8 + $0x8] sm:$0xff]  }
 0xbd7   :  { %v3817_v33 = vadd.f32 %v3816_v34, %v7913_v54  ;;  %v3818_v52 = vpop.f32.mrb[242].mxu0 }
 0xbd8   :  { %7246 = vmatpush3.bf16.xpose.msra.mxu1 %v7245_v4  ;;  %vm3893_vm3 = vcmp.gt.f32.partialorder %v3815_v32, 0.0  ;;  %v3925_v21 = vmul.f32 0.2, %v3815_v32  ;;  %v3819_v0 = vadd.f32 %v3818_v52, %v7911_v53  ;;  %v3820_v25 = vpop.f32.mrb[243].mxu0  ;;  %v9163_v4 = vld [vmem:[#allocation8 + $0x50] sm:$0xff]  }
 0xbd9   :  { %7247 = vmatprep.subr.bf16.mxu1 %v7745_v46  ;;  %vm3894_vm4 = vcmp.gt.f32.partialorder %v3817_v33, 0.0  ;;  %v3926_v24 = vmul.f32 0.2, %v3817_v33  ;;  %v3821_v3 = vadd.f32 %v3820_v25, %v7913_v54 }
 0xbda   :  { %v9118_v42 = vsel %vm3893_vm3, %v3815_v32, %v3925_v21  ;;  %vm3895_vm5 = vcmp.gt.f32.partialorder %v3819_v0, 0.0  ;;  %v3927_v12 = vmul.f32 0.2, %v3819_v0 }
 0xbdb   :  { %vm3896_vm6 = vcmp.gt.f32.partialorder %v3821_v3, 0.0  ;;  %v3928_v48 = vmul.f32 0.2, %v3821_v3  ;;  %v3958_v47 = vsel %vm3894_vm4, %v3817_v33, %v3926_v24 }
 0xbdc   :  { %v9120_v7 = vsel %vm3895_vm5, %v3819_v0, %v3927_v12 }
 0xbdd   :  { %v3989_v13 = vpack.c.bf16 %v9120_v7, %v9118_v42  ;;  %v3824_v58 = vpop.f32.mrb[244].mxu0  ;;  %v3960_v35 = vsel %vm3896_vm6, %v3821_v3, %v3928_v48  ;;  %v9174_v3 = vld [vmem:[#allocation8 + $0x10] sm:$0xff]  }
 0xbde   :  { %v3825_v9 = vadd.f32 %v3824_v58, %v7911_v53  ;;  %v3826_v60 = vpop.f32.mrb[245].mxu0  ;;  %v3990_v16 = vpack.c.bf16 %v3960_v35, %v3958_v47  ;;  %v9178_v58 = vld [vmem:[#allocation8 + $0x58] sm:$0xff]  }
 0xbdf   :  { %v3827_v2 = vadd.f32 %v3826_v60, %v7913_v54  ;;  %v3828_v14 = vpop.f32.mrb[246].mxu0 }
 0xbe0   :  { %7249 = vmatpush3.bf16.xpose.msra.mxu1 %v7248_v56  ;;  %vm3897_vm7 = vcmp.gt.f32.partialorder %v3825_v9, 0.0  ;;  %v3929_v19 = vmul.f32 0.2, %v3825_v9  ;;  %v3829_v49 = vadd.f32 %v3828_v14, %v7911_v53  ;;  %v3830_v50 = vpop.f32.mrb[247].mxu0 }
 0xbe1   :  { %6303 = vmatprep.subr.bf16.mxu1 %v9127_v18  ;;  %vm3898_vm8 = vcmp.gt.f32.partialorder %v3827_v2, 0.0  ;;  %v3930_v26 = vmul.f32 0.2, %v3827_v2  ;;  %v3831_v63 = vadd.f32 %v3830_v50, %v7913_v54  ;;  %v9191_v50 = vld [vmem:[#allocation8 + $0x60] sm:$0xff]  }
 0xbe2   :  { %vm3899_vm9 = vcmp.gt.f32.partialorder %v3829_v49, 0.0  ;;  %v3931_v51 = vmul.f32 0.2, %v3829_v49  ;;  %v9131_v44 = vsel %vm3897_vm7, %v3825_v9, %v3929_v19  ;;  %v9186_v19 = vld [vmem:[#allocation8 + $0x18] sm:$0xff]  }
 0xbe3   :  { %vm3900_vm10 = vcmp.gt.f32.partialorder %v3831_v63, 0.0  ;;  %v3932_v55 = vmul.f32 0.2, %v3831_v63  ;;  %v9133_v31 = vsel %vm3898_vm8, %v3827_v2, %v3930_v26 }
 0xbe4   :  { %v9135_v41 = vsel %vm3899_vm9, %v3829_v49, %v3931_v51 }
 0xbe5   :  { %v3834_v23 = vpop.f32.mrb[248].mxu0  ;;  %v9137_v36 = vsel %vm3900_vm10, %v3831_v63, %v3932_v55  ;;  %v3991_v29 = vpack.c.bf16 %v9135_v41, %v9131_v44 }
 0xbe6   :  { %v3835_v15 = vadd.f32 %v3834_v23, %v7911_v53  ;;  %v3836_v8 = vpop.f32.mrb[249].mxu0  ;;  %v3992_v43 = vpack.c.bf16 %v9137_v36, %v9133_v31 }
 0xbe7   :  { %6927 = vmatmul.mubr.f32.vlgmr.msra.gmra.mrb[168].mxu1 %v8912_v22  ;;  %v3837_v30 = vadd.f32 %v3836_v8, %v7913_v54  ;;  %v3838_v61 = vpop.f32.mrb[250].mxu0 }
 0xbe8   :  { %6304 = vmatpush3.bf16.msra.mxu1 %v9146_v62  ;;  %4037 = vmatprep.mubr.bf16.mxu1 %v3990_v16  ;;  %vm3901_vm11 = vcmp.gt.f32.partialorder %v3835_v15, 0.0  ;;  %v3933_v10 = vmul.f32 0.2, %v3835_v15  ;;  %v3839_v1 = vadd.f32 %v3838_v61, %v7911_v53  ;;  %v3840_v40 = vpop.f32.mrb[251].mxu0  ;;  %v9202_v61 = vld [vmem:[#allocation8 + $0x20] sm:$0xff]  }
 0xbe9   :  { %6305 = vmatprep.subr.bf16.mxu1 %v9150_v37  ;;  %vm3902_vm12 = vcmp.gt.f32.partialorder %v3837_v30, 0.0  ;;  %v3934_v57 = vmul.f32 0.2, %v3837_v30  ;;  %v3841_v22 = vadd.f32 %v3840_v40, %v7913_v54 }
 0xbea   :  { %vm3903_vm13 = vcmp.gt.f32.partialorder %v3839_v1, 0.0  ;;  %v3935_v5 = vmul.f32 0.2, %v3839_v1  ;;  %v9154_v20 = vsel %vm3901_vm11, %v3835_v15, %v3933_v10 }
 0xbeb   :  { %vm3904_vm14 = vcmp.gt.f32.partialorder %v3841_v22, 0.0  ;;  %v3936_v11 = vmul.f32 0.2, %v3841_v22  ;;  %v9156_v56 = vsel %vm3902_vm12, %v3837_v30, %v3934_v57  ;;  %v9206_v57 = vld [vmem:[#allocation8 + $0x68] sm:$0xff]  }
 0xbec   :  { %6306 = vmatpush3.bf16.msra.mxu1 %v9158_v27  ;;  %v9161_v39 = vsel %vm3903_vm13, %v3839_v1, %v3935_v5 }
 0xbed   :  { %6307 = vmatprep.subr.bf16.mxu1 %v9163_v4  ;;  %v3844_v32 = vpop.f32.mrb[252].mxu0  ;;  %v9166_v34 = vsel %vm3904_vm14, %v3841_v22, %v3936_v11 }
 0xbee   :  { %v3845_v52 = vadd.f32 %v3844_v32, %v7911_v53  ;;  %v3846_v21 = vpop.f32.mrb[253].mxu0  ;;  %v3994_v0 = vpack.c.bf16 %v9166_v34, %v9156_v56  ;;  %v9916_v34 = vpack.c.bf16 %v9161_v39, %v9154_v20 }
 0xbef   :  { %v3847_v25 = vadd.f32 %v3846_v21, %v7913_v54  ;;  %v3848_v24 = vpop.f32.mrb[254].mxu0 }
 0xbf0   :  { %6308 = vmatpush3.bf16.msra.mxu1 %v9174_v3  ;;  %vm3905_vm15 = vcmp.gt.f32.partialorder %v3845_v52, 0.0  ;;  %v3937_v12 = vmul.f32 0.2, %v3845_v52  ;;  %v3849_v48 = vadd.f32 %v3848_v24, %v7911_v53  ;;  %v3850_v47 = vpop.f32.mrb[255].mxu0 }
 0xbf1   :  { %6309 = vmatprep.subr.bf16.mxu1 %v9178_v58  ;;  %vm3906_vm1 = vcmp.gt.f32.partialorder %v3847_v25, 0.0  ;;  %v3938_v35 = vmul.f32 0.2, %v3847_v25  ;;  %v3851_v9 = vadd.f32 %v3850_v47, %v7913_v54 }
 0xbf2   :  { %vm3907_vm2 = vcmp.gt.f32.partialorder %v3849_v48, 0.0  ;;  %v3939_v60 = vmul.f32 0.2, %v3849_v48  ;;  %v9182_v16 = vsel %vm3905_vm15, %v3845_v52, %v3937_v12  ;;  %v9219_v12 = vld [vmem:[#allocation8 + $0x70] sm:$0xff]  }
 0xbf3   :  { %vm3908_vm3 = vcmp.gt.f32.partialorder %v3851_v9, 0.0  ;;  %v3940_v2 = vmul.f32 0.2, %v3851_v9  ;;  %v9184_v14 = vsel %vm3906_vm1, %v3847_v25, %v3938_v35  ;;  %v9214_v25 = vld [vmem:[#allocation8 + $0x28] sm:$0xff]  }
 0xbf4   :  { %6310 = vmatpush3.bf16.msra.mxu1 %v9186_v19  ;;  %v9189_v49 = vsel %vm3907_vm2, %v3849_v48, %v3939_v60 }
 0xbf5   :  { %6311 = vmatprep.subr.bf16.mxu1 %v9191_v50  ;;  %v3854_v26 = vpop.f32.mrb[0].mxu0  ;;  %v9194_v63 = vsel %vm3908_vm3, %v3851_v9, %v3940_v2 }
 0xbf6   :  { %v3855_v55 = vadd.f32 %v3854_v26, %v7911_v53  ;;  %v3856_v23 = vpop.f32.mrb[1].mxu0 }
 0xbf7   :  { %v3857_v8 = vadd.f32 %v3856_v23, %v7913_v54  ;;  %v3858_v30 = vpop.f32.mrb[2].mxu0  ;;  %v9230_v23 = vld [vmem:[#allocation8 + $0x30] sm:$0xff]  }
 0xbf8   :  { %6312 = vmatpush3.bf16.msra.mxu1 %v9202_v61  ;;  %vm3909_vm4 = vcmp.gt.f32.partialorder %v3855_v55, 0.0  ;;  %v3941_v10 = vmul.f32 0.2, %v3855_v55  ;;  %v3859_v1 = vadd.f32 %v3858_v30, %v7911_v53  ;;  %v3860_v40 = vpop.f32.mrb[3].mxu0 }
 0xbf9   :  { %6313 = vmatprep.subr.bf16.mxu1 %v9206_v57  ;;  %vm3910_vm5 = vcmp.gt.f32.partialorder %v3857_v8, 0.0  ;;  %v3942_v22 = vmul.f32 0.2, %v3857_v8  ;;  %v3861_v5 = vadd.f32 %v3860_v40, %v7913_v54 }
 0xbfa   :  { %vm3911_vm6 = vcmp.gt.f32.partialorder %v3859_v1, 0.0  ;;  %v3943_v11 = vmul.f32 0.2, %v3859_v1  ;;  %v9210_v32 = vsel %vm3909_vm4, %v3855_v55, %v3941_v10 }
 0xbfb   :  { %vm3912_vm7 = vcmp.gt.f32.partialorder %v3861_v5, 0.0  ;;  %v3944_v52 = vmul.f32 0.2, %v3861_v5  ;;  %v9212_v21 = vsel %vm3910_vm5, %v3857_v8, %v3942_v22 }
 0xbfc   :  { %6314 = vmatpush3.bf16.msra.mxu1 %v9214_v25  ;;  %v9217_v24 = vsel %vm3911_vm6, %v3859_v1, %v3943_v11  ;;  %v9234_v1 = vld [vmem:[#allocation8 + $0x78] sm:$0xff]  }
 0xbfd   :  { %6315 = vmatprep.subr.bf16.mxu1 %v9219_v12  ;;  %v3864_v48 = vpop.f32.mrb[4].mxu0  ;;  %v9222_v47 = vsel %vm3912_vm7, %v3861_v5, %v3944_v52 }
 0xbfe   :  { %v3865_v9 = vadd.f32 %v3864_v48, %v7911_v53  ;;  %v3866_v60 = vpop.f32.mrb[5].mxu0 }
 0xbff   :  { %v3867_v26 = vadd.f32 %v3866_v60, %v7913_v54  ;;  %v3868_v55 = vpop.f32.mrb[6].mxu0  ;;  %v9240_v60 = vld [vmem:[#allocation8 + $0x38] sm:$0xff]  }
 0xc00   :  { %6316 = vmatpush3.bf16.msra.mxu1 %v9230_v23  ;;  %vm3913_vm8 = vcmp.gt.f32.partialorder %v3865_v9, 0.0  ;;  %v3945_v8 = vmul.f32 0.2, %v3865_v9  ;;  %v3869_v30 = vadd.f32 %v3868_v55, %v7911_v53  ;;  %v3870_v10 = vpop.f32.mrb[7].mxu0 }
 0xc01   :  { %6317 = vmatprep.subr.bf16.mxu1 %v9234_v1  ;;  %vm3914_vm9 = vcmp.gt.f32.partialorder %v3867_v26, 0.0  ;;  %v3946_v40 = vmul.f32 0.2, %v3867_v26  ;;  %v3871_v22 = vadd.f32 %v3870_v10, %v7913_v54 }
 0xc02   :  { %vm3915_vm10 = vcmp.gt.f32.partialorder %v3869_v30, 0.0  ;;  %v3947_v5 = vmul.f32 0.2, %v3869_v30  ;;  %v9238_v11 = vsel %vm3913_vm8, %v3865_v9, %v3945_v8 }
 0xc03   :  { %vm3916_vm11 = vcmp.gt.f32.partialorder %v3871_v22, 0.0  ;;  %v3948_v52 = vmul.f32 0.2, %v3871_v22  ;;  %v3978_v48 = vsel %vm3914_vm9, %v3867_v26, %v3946_v40 }
 0xc04   :  { %6318 = vmatpush3.bf16.msra.mxu1 %v9240_v60  ;;  %v3979_v55 = vsel %vm3915_vm10, %v3869_v30, %v3947_v5 }
 0xc05   :  { %v3874_v35 = vpop.f32.mrb[8].mxu0  ;;  %v3980_v2 = vsel %vm3916_vm11, %v3871_v22, %v3948_v52  ;;  %v3999_v51 = vpack.c.bf16 %v3979_v55, %v9238_v11  ;;  %7250 = vmatprep.subr.bf16.mxu1 %v7745_v46 }
 0xc06   :  { %v3875_v10 = vadd.f32 %v3874_v35, %v7911_v53  ;;  %v3876_v15 = vpop.f32.mrb[9].mxu0  ;;  %v4000_v33 = vpack.c.bf16 %v3980_v2, %v3978_v48 }
 0xc07   :  { %4038 = vmatmul.mubr.bf16.vlgmr.msra.gmra.mrb[172].mxu1 %v3989_v13  ;;  %v3877_v9 = vadd.f32 %v3876_v15, %v7913_v54  ;;  %v3878_v26 = vpop.f32.mrb[10].mxu0 }
 0xc08   :  { %4045 = vmatprep.mubr.bf16.mxu1 %v3992_v43  ;;  %vm3917_vm12 = vcmp.gt.f32.partialorder %v3875_v10, 0.0  ;;  %v3949_v8 = vmul.f32 0.2, %v3875_v10  ;;  %v3879_v30 = vadd.f32 %v3878_v26, %v7911_v53  ;;  %v3880_v40 = vpop.f32.mrb[11].mxu0 }
 0xc09   :  { %vm3918_vm13 = vcmp.gt.f32.partialorder %v3877_v9, 0.0  ;;  %v3950_v35 = vmul.f32 0.2, %v3877_v9  ;;  %v3881_v2 = vadd.f32 %v3880_v40, %v7913_v54 }
 0xc0a   :  { %vm3919_vm14 = vcmp.gt.f32.partialorder %v3879_v30, 0.0  ;;  %v3951_v22 = vmul.f32 0.2, %v3879_v30  ;;  %v3981_v42 = vsel %vm3917_vm12, %v3875_v10, %v3949_v8 }
 0xc0b   :  { %vm3920_vm15 = vcmp.gt.f32.partialorder %v3881_v2, 0.0  ;;  %v3952_v7 = vmul.f32 0.2, %v3881_v2  ;;  %v3982_v13 = vsel %vm3918_vm13, %v3877_v9, %v3950_v35 }
 0xc0c   :  { %v3983_v15 = vsel %vm3919_vm14, %v3879_v30, %v3951_v22 }
 0xc0d   :  { %v3884_v5 = vpop.f32.mrb[12].mxu0  ;;  %v3984_v11 = vsel %vm3920_vm15, %v3881_v2, %v3952_v7  ;;  %v4001_v31 = vpack.c.bf16 %v3983_v15, %v3981_v42  ;;  %v9918_v42 = vpack.c.bf16 %v9189_v49, %v9182_v16  ;;  %v9919_v7 = vpack.c.bf16 %v9222_v47, %v9212_v21 }
 0xc0e   :  { %v3885_v36 = vadd.f32 %v3884_v5, %v7911_v53  ;;  %v3886_v43 = vpop.f32.mrb[13].mxu0  ;;  %v4002_v52 = vpack.c.bf16 %v3984_v11, %v3982_v13  ;;  %v9920_v13 = vpack.c.bf16 %v9217_v24, %v9210_v32 }
 0xc0f   :  { %4046 = vmatmul.mubr.bf16.gmra.mrb[176].mxu1 %v3991_v29  ;;  %v3887_v48 = vadd.f32 %v3886_v43, %v7913_v54  ;;  %v3888_v55 = vpop.f32.mrb[14].mxu0 }
 0xc10   :  { %4053 = vmatprep.mubr.bf16.mxu1 %v3994_v0  ;;  %vm3921_vm1 = vcmp.gt.f32.partialorder %v3885_v36, 0.0  ;;  %v3953_v10 = vmul.f32 0.2, %v3885_v36  ;;  %v3889_v9 = vadd.f32 %v3888_v55, %v7911_v53  ;;  %v3890_v26 = vpop.f32.mrb[15].mxu0  ;;  %v9917_v0 = vpack.c.bf16 %v9194_v63, %v9184_v14 }
 0xc11   :  { %vm3922_vm2 = vcmp.gt.f32.partialorder %v3887_v48, 0.0  ;;  %v3954_v8 = vmul.f32 0.2, %v3887_v48  ;;  %v3891_v30 = vadd.f32 %v3890_v26, %v7913_v54 }
 0xc12   :  { %vm3923_vm3 = vcmp.gt.f32.partialorder %v3889_v9, 0.0  ;;  %v3955_v40 = vmul.f32 0.2, %v3889_v9  ;;  %v3985_v44 = vsel %vm3921_vm1, %v3885_v36, %v3953_v10 }
 0xc13   :  { %vm3924_vm4 = vcmp.gt.f32.partialorder %v3891_v30, 0.0  ;;  %v3956_v41 = vmul.f32 0.2, %v3891_v30  ;;  %v3986_v29 = vsel %vm3922_vm2, %v3887_v48, %v3954_v8 }
 0xc14   :  { %v3987_v35 = vsel %vm3923_vm3, %v3889_v9, %v3955_v40 }
 0xc15   :  { %v3988_v2 = vsel %vm3924_vm4, %v3891_v30, %v3956_v41  ;;  %v4003_v22 = vpack.c.bf16 %v3987_v35, %v3985_v44 }
 0xc16   :  { %v4004_v56 = vpack.c.bf16 %v3988_v2, %v3986_v29 }
 0xc17   :  { %4054 = vmatmul.mubr.bf16.gmra.mrb[180].mxu1 %v9916_v34 }
 0xc18   :  { %4061 = vmatprep.mubr.bf16.mxu1 %v9917_v0 }
 0xc1f   :  { %4062 = vmatmul.mubr.bf16.gmra.mrb[184].mxu1 %v9918_v42 }
 0xc20   :  { %4069 = vmatprep.mubr.bf16.mxu1 %v9919_v7 }
 0xc27   :  { %4070 = vmatmul.mubr.bf16.gmra.mrb[188].mxu1 %v9920_v13  ;;  %v9289_v13 = vld [vmem:[#allocation6] ss:$8 sps:$4 sm:$0xff]  }
 0xc28   :  { %4077 = vmatprep.mubr.bf16.mxu1 %v4000_v33 }
 0xc2f   :  { %4078 = vmatmul.mubr.bf16.gmra.mrb[192].mxu1 %v3999_v51 }
 0xc30   :  { %4085 = vmatprep.mubr.bf16.mxu1 %v4002_v52 }
 0xc37   :  { %4086 = vmatmul.mubr.bf16.gmra.mrb[196].mxu1 %v4001_v31 }
 0xc38   :  { %4093 = vmatprep.mubr.bf16.mxu1 %v4004_v56 }
 0xc3f   :  { %4094 = vmatmul.mubr.bf16.gmra.mrb[200].mxu1 %v4003_v22 }
 0xc40   :  { %6993 = vmatprep.mubr.msk.f32.mxu1 %vm7746_vm0, %v9870_v17 }
 0xcba   :  { %v3709_v20 = vpop.f32.mrb[168].mxu1 }
 0xcbb   :  { %v3713_v39 = vadd.f32 %v3709_v20, %v8204_v28  ;;  %v6928_v16 = vpop.f32.mrb[169].mxu1  ;;  %v9292_v20 = vld [vmem:[#allocation6 + $0x14] ss:$8 sps:$4 sm:$0xff]  }
 0xcbd   :  { %3714 = vst [vmem:[#allocation11 + $0x4] sm:$0x1] %v3713_v39 }
 0xcda   :  { %v6319_v14 = vpop.f32.mrb[172].mxu1 }
 0xcdb   :  { %v6320_v49 = vpop.f32.mrb[173].mxu1 }
 0xcdc   :  { %v6321_v63 = vadd.f32 %v6320_v49, %v6319_v14  ;;  %v6322_v21 = vpop.f32.mrb[174].mxu1 }
 0xcdd   :  { %v6323_v32 = vpop.f32.mrb[175].mxu1 }
 0xcde   :  { %v4040_v33 = vadd.f32 %v9036_v38, %v6321_v63  ;;  %v6324_v51 = vadd.f32 %v6323_v32, %v6322_v21 }
 0xce0   :  { %v4118_v24 = vmul.f32 0.2, %v4040_v33  ;;  %v4043_v47 = vadd.f32 %v9036_v38, %v6324_v51  ;;  %vm4102_vm5 = vcmp.gt.f32.partialorder %v4040_v33, 0.0 }
 0xce2   :  { %vm4103_vm6 = vcmp.gt.f32.partialorder %v4043_v47, 0.0  ;;  %v4119_v15 = vmul.f32 0.2, %v4043_v47  ;;  %v6325_v5 = vpop.f32.mrb[176].mxu1  ;;  %v4134_v43 = vsel %vm4102_vm5, %v4040_v33, %v4118_v24  ;;  %v9295_v33 = vld [vmem:[#allocation6 + $0x10] ss:$8 sps:$4 sm:$0xff]  }
 0xce3   :  { %v6326_v11 = vpop.f32.mrb[177].mxu1 }
 0xce4   :  { %v6327_v31 = vadd.f32 %v6326_v11, %v6325_v5  ;;  %v6328_v36 = vpop.f32.mrb[178].mxu1  ;;  %v4135_v52 = vsel %vm4103_vm6, %v4043_v47, %v4119_v15  ;;  %v9298_v47 = vld [vmem:[#allocation6 + $0x24] ss:$8 sps:$4 sm:$0xff]  }
 0xce5   :  { %v6329_v48 = vpop.f32.mrb[179].mxu1  ;;  %v4150_v55 = vpack.c.bf16 %v4135_v52, %v4134_v43  ;;  %v9306_v43 = vld [vmem:[#allocation6 + $0x34] ss:$8 sps:$4 sm:$0xff]  }
 0xce6   :  { %v4048_v10 = vadd.f32 %v9036_v38, %v6327_v31  ;;  %v6330_v9 = vadd.f32 %v6329_v48, %v6328_v36  ;;  %v9303_v36 = vld [vmem:[#allocation6 + $0x20] ss:$8 sps:$4 sm:$0xff]  }
 0xce7   :  { %6945 = vmatprep.mubr.bf16.mxu0 %v4150_v55 }
 0xce8   :  { %v4120_v26 = vmul.f32 0.2, %v4048_v10  ;;  %v4051_v8 = vadd.f32 %v9036_v38, %v6330_v9  ;;  %vm4104_vm7 = vcmp.gt.f32.partialorder %v4048_v10, 0.0 }
 0xcea   :  { %vm4105_vm8 = vcmp.gt.f32.partialorder %v4051_v8, 0.0  ;;  %v4121_v30 = vmul.f32 0.2, %v4051_v8  ;;  %v6331_v40 = vpop.f32.mrb[180].mxu1  ;;  %v4136_v41 = vsel %vm4104_vm7, %v4048_v10, %v4120_v26 }
 0xceb   :  { %v6332_v44 = vpop.f32.mrb[181].mxu1 }
 0xcec   :  { %v4137_v29 = vsel %vm4105_vm8, %v4051_v8, %v4121_v30  ;;  %v6333_v35 = vadd.f32 %v6332_v44, %v6331_v40  ;;  %v6334_v2 = vpop.f32.mrb[182].mxu1  ;;  %v9309_v30 = vld [vmem:[#allocation6 + $0x30] ss:$8 sps:$4 sm:$0xff]   ;;  %v9312_v44 = vld [vmem:[#allocation6 + $0x44] ss:$8 sps:$4 sm:$0xff]  }
 0xced   :  { %v4151_v22 = vpack.c.bf16 %v4137_v29, %v4136_v41  ;;  %v6335_v56 = vpop.f32.mrb[183].mxu1  ;;  %v9318_v41 = vld [vmem:[%s9828_s4] ss:$0 sm:$0xff] }
 0xcee   :  { %v4056_v34 = vadd.f32 %v9036_v38, %v6333_v35  ;;  %v6336_v0 = vadd.f32 %v6335_v56, %v6334_v2  ;;  %v9322_v56 = vld [vmem:[#allocation6 + $0x40] ss:$8 sps:$4 sm:$0xff]  }
 0xcef   :  { %6946 = vmatmul.mubr.bf16.vlgmr.msra.gmra.mrb[16].mxu0 %v4151_v22 }
 0xcf0   :  { %v4122_v42 = vmul.f32 0.2, %v4056_v34  ;;  %v4059_v7 = vadd.f32 %v9036_v38, %v6336_v0  ;;  %4441 = vmatpush1.bf16.msra.mxu0 %v9289_v13  ;;  %vm4106_vm9 = vcmp.gt.f32.partialorder %v4056_v34, 0.0 }
 0xcf1   :  { %4442 = vmatprep.subr.bf16.mxu0 %v9292_v20 }
 0xcf2   :  { %vm4107_vm10 = vcmp.gt.f32.partialorder %v4059_v7, 0.0  ;;  %v4123_v39 = vmul.f32 0.2, %v4059_v7  ;;  %v6337_v16 = vpop.f32.mrb[184].mxu1  ;;  %v4138_v21 = vsel %vm4106_vm9, %v4056_v34, %v4122_v42  ;;  %v9325_v34 = vld [vmem:[#allocation6 + $0x54] ss:$8 sps:$4 sm:$0xff]  }
 0xcf3   :  { %v6338_v14 = vpop.f32.mrb[185].mxu1 }
 0xcf4   :  { %v6339_v49 = vadd.f32 %v6338_v14, %v6337_v16  ;;  %v6340_v63 = vpop.f32.mrb[186].mxu1  ;;  %v4139_v32 = vsel %vm4107_vm10, %v4059_v7, %v4123_v39  ;;  %4443 = vmatpush1.bf16.msra.mxu0 %v9295_v33 }
 0xcf5   :  { %v6341_v51 = vpop.f32.mrb[187].mxu1  ;;  %v4152_v24 = vpack.c.bf16 %v4139_v32, %v4138_v21  ;;  %4444 = vmatprep.subr.bf16.mxu0 %v9298_v47 }
 0xcf6   :  { %v4064_v15 = vadd.f32 %v9036_v38, %v6339_v49  ;;  %v6342_v5 = vadd.f32 %v6341_v51, %v6340_v63  ;;  %v9328_v63 = vld [vmem:[#allocation6 + $0x50] ss:$8 sps:$4 sm:$0xff]   ;;  %v9331_v51 = vld [vmem:[#allocation6 + $0x64] ss:$8 sps:$4 sm:$0xff]  }
 0xcf7   :  { %6949 = vmatprep.mubr.bf16.mxu0 %v4152_v24 }
 0xcf8   :  { %v4124_v11 = vmul.f32 0.2, %v4064_v15  ;;  %v4067_v31 = vadd.f32 %v9036_v38, %v6342_v5  ;;  %4445 = vmatpush1.bf16.msra.mxu0 %v9303_v36  ;;  %vm4108_vm11 = vcmp.gt.f32.partialorder %v4064_v15, 0.0 }
 0xcf9   :  { %4446 = vmatprep.subr.bf16.mxu0 %v9306_v43 }
 0xcfa   :  { %vm4109_vm12 = vcmp.gt.f32.partialorder %v4067_v31, 0.0  ;;  %v4125_v52 = vmul.f32 0.2, %v4067_v31  ;;  %v6343_v48 = vpop.f32.mrb[188].mxu1  ;;  %v4140_v10 = vsel %vm4108_vm11, %v4064_v15, %v4124_v11 }
 0xcfb   :  { %v6344_v55 = vpop.f32.mrb[189].mxu1 }
 0xcfc   :  { %v4141_v9 = vsel %vm4109_vm12, %v4067_v31, %v4125_v52  ;;  %v6345_v26 = vadd.f32 %v6344_v55, %v6343_v48  ;;  %v6346_v8 = vpop.f32.mrb[190].mxu1  ;;  %4447 = vmatpush1.bf16.msra.mxu0 %v9309_v30  ;;  %v9336_v31 = vld [vmem:[#allocation6 + $0x60] ss:$8 sps:$4 sm:$0xff]   ;;  %v9339_v52 = vld [vmem:[#allocation6 + $0x74] ss:$8 sps:$4 sm:$0xff]  }
 0xcfd   :  { %v4153_v38 = vpack.c.bf16 %v4141_v9, %v4140_v10  ;;  %v6347_v40 = vpop.f32.mrb[191].mxu1  ;;  %4448 = vmatprep.subr.bf16.mxu0 %v9312_v44 }
 0xcfe   :  { %v4072_v29 = vadd.f32 %v9318_v41, %v6345_v26  ;;  %v6348_v35 = vadd.f32 %v6347_v40, %v6346_v8  ;;  %v9342_v40 = vld [vmem:[#allocation6 + $0x70] ss:$8 sps:$4 sm:$0xff]  }
 0xcff   :  { %6950 = vmatmul.mubr.bf16.gmra.mrb[20].mxu0 %v4153_v38 }
 0xd00   :  { %v4126_v2 = vmul.f32 0.2, %v4072_v29  ;;  %v4075_v22 = vadd.f32 %v9318_v41, %v6348_v35  ;;  %4449 = vmatpush1.bf16.msra.mxu0 %v9322_v56  ;;  %vm4110_vm13 = vcmp.gt.f32.partialorder %v4072_v29, 0.0 }
 0xd01   :  { %4450 = vmatprep.subr.bf16.mxu0 %v9325_v34 }
 0xd02   :  { %vm4111_vm14 = vcmp.gt.f32.partialorder %v4075_v22, 0.0  ;;  %v4127_v0 = vmul.f32 0.2, %v4075_v22  ;;  %v6349_v42 = vpop.f32.mrb[192].mxu1  ;;  %v4142_v14 = vsel %vm4110_vm13, %v4072_v29, %v4126_v2 }
 0xd03   :  { %v6350_v7 = vpop.f32.mrb[193].mxu1 }
 0xd04   :  { %v6351_v39 = vadd.f32 %v6350_v7, %v6349_v42  ;;  %v6352_v16 = vpop.f32.mrb[194].mxu1  ;;  %v4143_v49 = vsel %vm4111_vm14, %v4075_v22, %v4127_v0  ;;  %4451 = vmatpush1.bf16.msra.mxu0 %v9328_v63 }
 0xd05   :  { %v6353_v21 = vpop.f32.mrb[195].mxu1  ;;  %v4154_v32 = vpack.c.bf16 %v4143_v49, %v4142_v14  ;;  %4452 = vmatprep.subr.bf16.mxu0 %v9331_v51 }
 0xd06   :  { %v4080_v24 = vadd.f32 %v9318_v41, %v6351_v39  ;;  %v6354_v15 = vadd.f32 %v6353_v21, %v6352_v16 }
 0xd07   :  { %6953 = vmatprep.mubr.bf16.mxu0 %v4154_v32 }
 0xd08   :  { %v4128_v5 = vmul.f32 0.2, %v4080_v24  ;;  %v4083_v11 = vadd.f32 %v9318_v41, %v6354_v15  ;;  %4453 = vmatpush1.bf16.msra.mxu0 %v9336_v31  ;;  %vm4112_vm15 = vcmp.gt.f32.partialorder %v4080_v24, 0.0 }
 0xd09   :  { %4454 = vmatprep.subr.bf16.mxu0 %v9339_v52 }
 0xd0a   :  { %vm4113_vm1 = vcmp.gt.f32.partialorder %v4083_v11, 0.0  ;;  %v4129_v48 = vmul.f32 0.2, %v4083_v11  ;;  %v6355_v55 = vpop.f32.mrb[196].mxu1  ;;  %v4144_v9 = vsel %vm4112_vm15, %v4080_v24, %v4128_v5 }
 0xd0b   :  { %v6356_v10 = vpop.f32.mrb[197].mxu1 }
 0xd0c   :  { %v4145_v26 = vsel %vm4113_vm1, %v4083_v11, %v4129_v48  ;;  %v6357_v8 = vadd.f32 %v6356_v10, %v6355_v55  ;;  %v6358_v38 = vpop.f32.mrb[198].mxu1  ;;  %4455 = vmatpush1.bf16.msra.mxu0 %v9342_v40 }
 0xd0d   :  { %v4155_v29 = vpack.c.bf16 %v4145_v26, %v4144_v9  ;;  %v6359_v35 = vpop.f32.mrb[199].mxu1  ;;  %6996 = vmatprep.subr.bf16.mxu0 %v9055_v59 }
 0xd0e   :  { %v4088_v2 = vadd.f32 %v9318_v41, %v6357_v8  ;;  %v6360_v22 = vadd.f32 %v6359_v35, %v6358_v38  ;;  %v7432_v8 = vld [vmem:[#allocation3 + $0x180] sm:$0xff]   ;;  %v7433_v35 = vld [vmem:[#allocation3 + $0x188] sm:$0xff]  }
 0xd0f   :  { %6954 = vmatmul.mubr.bf16.gmra.mrb[24].mxu0 %v4155_v29  ;;  %v9352_v38 = vld [vmem:[#allocation9] sm:$0xff]   ;;  %v9355_v29 = vld [vmem:[#allocation9 + $0x8] sm:$0xff]  }
 0xd10   :  { %v4130_v0 = vmul.f32 0.2, %v4088_v2  ;;  %v4091_v42 = vadd.f32 %v9318_v41, %v6360_v22  ;;  %vm4114_vm2 = vcmp.gt.f32.partialorder %v4088_v2, 0.0  ;;  %v9364_v22 = vld [vmem:[#allocation9 + $0x18] sm:$0xff]  }
 0xd11   :  { %9921 = vst [vmem:[#allocation21_spill] sm:$0xff] %v9364_v22 }
 0xd12   :  { %vm4115_vm3 = vcmp.gt.f32.partialorder %v4091_v42, 0.0  ;;  %v4131_v7 = vmul.f32 0.2, %v4091_v42  ;;  %v6361_v39 = vpop.f32.mrb[200].mxu1  ;;  %v4146_v21 = vsel %vm4114_vm2, %v4088_v2, %v4130_v0  ;;  %v9359_v2 = vld [vmem:[#allocation9 + $0x10] sm:$0xff]  }
 0xd13   :  { %v6362_v16 = vpop.f32.mrb[201].mxu1  ;;  %v7434_v0 = vld [vmem:[#allocation3 + $0x190] sm:$0xff]  }
 0xd14   :  { %v6363_v14 = vadd.f32 %v6362_v16, %v6361_v39  ;;  %v6364_v49 = vpop.f32.mrb[202].mxu1  ;;  %v4147_v32 = vsel %vm4115_vm3, %v4091_v42, %v4131_v7  ;;  %v9368_v42 = vld [vmem:[#allocation9 + $0x20] sm:$0xff]   ;;  %v9373_v7 = vld [vmem:[#allocation9 + $0x28] sm:$0xff]   ;;  %v7435_v39 = vld [vmem:[#allocation3 + $0x198] sm:$0xff]  }
 0xd15   :  { %v6365_v24 = vpop.f32.mrb[203].mxu1  ;;  %v4156_v15 = vpack.c.bf16 %v4147_v32, %v4146_v21  ;;  %9922 = vst [vmem:[#allocation16_spill] sm:$0xff] %v9368_v42  ;;  %9923 = vst [vmem:[#allocation17_spill] sm:$0xff] %v9373_v7  ;;  %v9377_v16 = vld [vmem:[#allocation9 + $0x30] sm:$0xff]   ;;  %v7595_v21 = vld [vmem:[#allocation6 + $0x4] ss:$8 sps:$4 sm:$0xff]  }
 0xd16   :  { %v4096_v59 = vadd.f32 %v9318_v41, %v6363_v14  ;;  %v6366_v5 = vadd.f32 %v6365_v24, %v6364_v49  ;;  %9924 = vst [vmem:[#allocation18_spill] sm:$0xff] %v9377_v16  ;;  %v9382_v14 = vld [vmem:[#allocation9 + $0x38] sm:$0xff]   ;;  %v7436_v49 = vld [vmem:[#allocation3 + $0x1a0] sm:$0xff]   ;;  %v7437_v32 = vld [vmem:[#allocation3 + $0x1a8] sm:$0xff]  }
 0xd17   :  { %6957 = vmatprep.mubr.bf16.mxu0 %v4156_v15  ;;  %9925 = vst [vmem:[#allocation19_spill] sm:$0xff] %v9382_v14  ;;  %v7438_v24 = vld [vmem:[#allocation3 + $0x1b0] sm:$0xff]   ;;  %v7439_v15 = vld [vmem:[#allocation3 + $0x1b8] sm:$0xff]  }
 0xd18   :  { %v4132_v11 = vmul.f32 0.2, %v4096_v59  ;;  %v4099_v48 = vadd.f32 %v9318_v41, %v6366_v5  ;;  %vm4116_vm4 = vcmp.gt.f32.partialorder %v4096_v59, 0.0 }
 0xd1a   :  { %vm4117_vm5 = vcmp.gt.f32.partialorder %v4099_v48, 0.0  ;;  %v4133_v55 = vmul.f32 0.2, %v4099_v48  ;;  %v4148_v10 = vsel %vm4116_vm4, %v4096_v59, %v4132_v11 }
 0xd1c   :  { %v4149_v9 = vsel %vm4117_vm5, %v4099_v48, %v4133_v55 }
 0xd1d   :  { %v4157_v26 = vpack.c.bf16 %v4149_v9, %v4148_v10 }
 0xd1f   :  { %6958 = vmatmul.mubr.bf16.gmra.mrb[28].mxu0 %v4157_v26 }
 0xd20   :  { %4472 = vmatprep.mubr.bf16.mxu0 %v9872_v45 }
 0xd27   :  { %4473 = vmatmul.mubr.bf16.vlgmr.msra.gmra.mrb[32].mxu0 %v7432_v8 }
 0xd28   :  { %4482 = vmatprep.mubr.bf16.mxu0 %v9872_v45  ;;  %6997 = vmatpush3.bf16.msra.mxu0 %v9352_v38 }
 0xd29   :  { %6998 = vmatprep.subr.bf16.mxu0 %v9355_v29 }
 0xd2c   :  { %6999 = vmatpush3.bf16.msra.mxu0 %v9355_v29 }
 0xd2d   :  { %7000 = vmatprep.subr.bf16.mxu0 %v9359_v2 }
 0xd2f   :  { %4483 = vmatmul.mubr.bf16.gmra.mrb[36].mxu0 %v7433_v35 }
 0xd30   :  { %4492 = vmatprep.mubr.bf16.mxu0 %v9872_v45  ;;  %7001 = vmatpush3.bf16.msra.mxu0 %v9359_v2 }
 0xd31   :  { %7002 = vmatprep.subr.bf16.mxu0 %v9364_v22 }
 0xd34   :  { %7003 = vmatpush3.bf16.msra.mxu0 %v9364_v22 }
 0xd35   :  { %7004 = vmatprep.subr.bf16.mxu0 %v9368_v42 }
 0xd37   :  { %4493 = vmatmul.mubr.bf16.gmra.mrb[40].mxu0 %v7434_v0 }
 0xd38   :  { %4502 = vmatprep.mubr.bf16.mxu0 %v9872_v45  ;;  %7005 = vmatpush3.bf16.msra.mxu0 %v9368_v42 }
 0xd39   :  { %7006 = vmatprep.subr.bf16.mxu0 %v9373_v7 }
 0xd3c   :  { %7007 = vmatpush3.bf16.msra.mxu0 %v9373_v7 }
 0xd3d   :  { %7008 = vmatprep.subr.bf16.mxu0 %v9377_v16 }
 0xd3f   :  { %4503 = vmatmul.mubr.bf16.gmra.mrb[44].mxu0 %v7435_v39 }
 0xd40   :  { %4512 = vmatprep.mubr.bf16.mxu0 %v9872_v45  ;;  %7009 = vmatpush3.bf16.msra.mxu0 %v9377_v16 }
 0xd41   :  { %7010 = vmatprep.subr.bf16.mxu0 %v9382_v14 }
 0xd44   :  { %7011 = vmatpush3.bf16.msra.mxu0 %v9382_v14 }
 0xd45   :  { %5100 = vmatprep.subr.bf16.mxu0 %v7595_v21 }
 0xd47   :  { %4513 = vmatmul.mubr.bf16.gmra.mrb[48].mxu0 %v7436_v49 }
 0xd48   :  { %4522 = vmatprep.mubr.bf16.mxu0 %v9872_v45 }
 0xd4f   :  { %4523 = vmatmul.mubr.bf16.gmra.mrb[52].mxu0 %v7437_v32 }
 0xd50   :  { %4532 = vmatprep.mubr.bf16.mxu0 %v9872_v45 }
 0xd57   :  { %4533 = vmatmul.mubr.bf16.gmra.mrb[56].mxu0 %v7438_v24 }
 0xd58   :  { %4542 = vmatprep.mubr.bf16.mxu0 %v9872_v45 }
 0xd5f   :  { %4543 = vmatmul.mubr.bf16.gmra.mrb[60].mxu0 %v7439_v15 }
 0xdc2   :  { %v6947_v59 = vpop.f32.mrb[16].mxu0 }
 0xdc3   :  { %v4201_v5 = vadd.f32 %v9100_v6, %v6947_v59  ;;  %v4192_v11 = vpop.f32.mrb[17].mxu0 }
 0xdc4   :  { %v4193_v48 = vadd.f32 %v9100_v6, %v4192_v11  ;;  %v6948_v55 = vpop.f32.mrb[18].mxu0 }
 0xdc5   :  { %v4273_v10 = vmul.f32 0.2, %v4201_v5  ;;  %v4204_v9 = vadd.f32 %v9100_v6, %v6948_v55  ;;  %v4195_v26 = vpop.f32.mrb[19].mxu0  ;;  %vm4257_vm6 = vcmp.gt.f32.partialorder %v4201_v5, 0.0 }
 0xdc6   :  { %v4271_v8 = vmul.f32 0.2, %v4193_v48  ;;  %v4196_v35 = vadd.f32 %v9100_v6, %v4195_v26  ;;  %vm4255_vm7 = vcmp.gt.f32.partialorder %v4193_v48, 0.0 }
 0xdc7   :  { %vm4258_vm8 = vcmp.gt.f32.partialorder %v4204_v9, 0.0  ;;  %v4274_v0 = vmul.f32 0.2, %v4204_v9  ;;  %v4289_v49 = vsel %vm4257_vm6, %v4201_v5, %v4273_v10 }
 0xdc8   :  { %vm4256_vm9 = vcmp.gt.f32.partialorder %v4196_v35, 0.0  ;;  %v4272_v39 = vmul.f32 0.2, %v4196_v35  ;;  %v4287_v32 = vsel %vm4255_vm7, %v4193_v48, %v4271_v8 }
 0xdc9   :  { %v4290_v21 = vsel %vm4258_vm8, %v4204_v9, %v4274_v0 }
 0xdca   :  { %v7254_v24 = vpack.c.bf16 %v4290_v21, %v4289_v49  ;;  %v4288_v15 = vsel %vm4256_vm9, %v4196_v35, %v4272_v39 }
 0xdcb   :  { %v7251_v59 = vpack.c.bf16 %v4288_v15, %v4287_v32 }
 0xdcd   :  { %7252 = vmatpush3.bf16.xpose.msra.mxu1 %v7251_v59 }
 0xdce   :  { %7253 = vmatprep.subr.bf16.mxu1 %v7745_v46 }
 0xdd2   :  { %v6951_v11 = vpop.f32.mrb[20].mxu0 }
 0xdd3   :  { %v4217_v55 = vadd.f32 %v9100_v6, %v6951_v11  ;;  %v4208_v14 = vpop.f32.mrb[21].mxu0 }
 0xdd4   :  { %v4209_v26 = vadd.f32 %v9100_v6, %v4208_v14  ;;  %v6952_v16 = vpop.f32.mrb[22].mxu0 }
 0xdd5   :  { %v4277_v7 = vmul.f32 0.2, %v4217_v55  ;;  %v4220_v42 = vadd.f32 %v9100_v6, %v6952_v16  ;;  %v4211_v22 = vpop.f32.mrb[23].mxu0  ;;  %7255 = vmatpush3.bf16.xpose.msra.mxu1 %v7254_v24  ;;  %vm4261_vm10 = vcmp.gt.f32.partialorder %v4217_v55, 0.0 }
 0xdd6   :  { %v4275_v5 = vmul.f32 0.2, %v4209_v26  ;;  %v4212_v48 = vadd.f32 %v9100_v6, %v4211_v22  ;;  %7256 = vmatprep.subr.bf16.mxu1 %v7745_v46  ;;  %vm4259_vm11 = vcmp.gt.f32.partialorder %v4209_v26, 0.0 }
 0xdd7   :  { %vm4262_vm12 = vcmp.gt.f32.partialorder %v4220_v42, 0.0  ;;  %v4278_v10 = vmul.f32 0.2, %v4220_v42  ;;  %v4293_v8 = vsel %vm4261_vm10, %v4217_v55, %v4277_v7  ;;  %v9406_v7 = vld [vmem:[%s9830_s6] ss:$0 sm:$0xff] }
 0xdd8   :  { %vm4260_vm13 = vcmp.gt.f32.partialorder %v4212_v48, 0.0  ;;  %v4276_v9 = vmul.f32 0.2, %v4212_v48  ;;  %v4291_v14 = vsel %vm4259_vm11, %v4209_v26, %v4275_v5 }
 0xdd9   :  { %v4294_v35 = vsel %vm4262_vm12, %v4220_v42, %v4278_v10 }
 0xdda   :  { %v7260_v0 = vpack.c.bf16 %v4294_v35, %v4293_v8  ;;  %v4292_v39 = vsel %vm4260_vm13, %v4212_v48, %v4276_v9 }
 0xddb   :  { %v7257_v49 = vpack.c.bf16 %v4292_v39, %v4291_v14 }
 0xddd   :  { %7258 = vmatpush3.bf16.xpose.msra.mxu1 %v7257_v49 }
 0xdde   :  { %7259 = vmatprep.subr.bf16.mxu1 %v7745_v46 }
 0xde2   :  { %v6955_v16 = vpop.f32.mrb[24].mxu0 }
 0xde3   :  { %v4233_v21 = vadd.f32 %v9100_v6, %v6955_v16  ;;  %v4224_v22 = vpop.f32.mrb[25].mxu0 }
 0xde4   :  { %v4225_v32 = vadd.f32 %v9100_v6, %v4224_v22  ;;  %v6956_v24 = vpop.f32.mrb[26].mxu0 }
 0xde5   :  { %v4281_v15 = vmul.f32 0.2, %v4233_v21  ;;  %v4236_v59 = vadd.f32 %v9100_v6, %v6956_v24  ;;  %v4227_v11 = vpop.f32.mrb[27].mxu0  ;;  %7261 = vmatpush3.bf16.xpose.msra.mxu1 %v7260_v0  ;;  %vm4265_vm14 = vcmp.gt.f32.partialorder %v4233_v21, 0.0 }
 0xde6   :  { %v4279_v42 = vmul.f32 0.2, %v4225_v32  ;;  %v4228_v55 = vadd.f32 %v9406_v7, %v4227_v11  ;;  %7262 = vmatprep.subr.bf16.mxu1 %v7745_v46  ;;  %vm4263_vm15 = vcmp.gt.f32.partialorder %v4225_v32, 0.0 }
 0xde7   :  { %vm4266_vm1 = vcmp.gt.f32.partialorder %v4236_v59, 0.0  ;;  %v4282_v26 = vmul.f32 0.2, %v4236_v59  ;;  %v4297_v48 = vsel %vm4265_vm14, %v4233_v21, %v4281_v15 }
 0xde8   :  { %vm4264_vm2 = vcmp.gt.f32.partialorder %v4228_v55, 0.0  ;;  %v4280_v5 = vmul.f32 0.2, %v4228_v55  ;;  %v4295_v10 = vsel %vm4263_vm15, %v4225_v32, %v4279_v42 }
 0xde9   :  { %v4298_v6 = vsel %vm4266_vm1, %v4236_v59, %v4282_v26 }
 0xdea   :  { %v7266_v9 = vpack.c.bf16 %v4298_v6, %v4297_v48  ;;  %v4296_v8 = vsel %vm4264_vm2, %v4228_v55, %v4280_v5 }
 0xdeb   :  { %v7263_v35 = vpack.c.bf16 %v4296_v8, %v4295_v10 }
 0xded   :  { %7264 = vmatpush3.bf16.xpose.msra.mxu1 %v7263_v35 }
 0xdee   :  { %7265 = vmatprep.subr.bf16.mxu1 %v7745_v46 }
 0xdf2   :  { %v6959_v14 = vpop.f32.mrb[28].mxu0 }
 0xdf3   :  { %v4249_v0 = vadd.f32 %v9406_v7, %v6959_v14  ;;  %v4240_v39 = vpop.f32.mrb[29].mxu0 }
 0xdf4   :  { %v4241_v49 = vadd.f32 %v9406_v7, %v4240_v39  ;;  %v6960_v16 = vpop.f32.mrb[30].mxu0 }
 0xdf5   :  { %v4285_v22 = vmul.f32 0.2, %v4249_v0  ;;  %v4252_v24 = vadd.f32 %v9406_v7, %v6960_v16  ;;  %v4243_v11 = vpop.f32.mrb[31].mxu0  ;;  %7267 = vmatpush3.bf16.xpose.msra.mxu1 %v7266_v9  ;;  %vm4269_vm3 = vcmp.gt.f32.partialorder %v4249_v0, 0.0 }
 0xdf6   :  { %v4283_v21 = vmul.f32 0.2, %v4241_v49  ;;  %v4244_v32 = vadd.f32 %v9406_v7, %v4243_v11  ;;  %7268 = vmatprep.subr.bf16.mxu1 %v7745_v46  ;;  %vm4267_vm4 = vcmp.gt.f32.partialorder %v4241_v49, 0.0 }
 0xdf7   :  { %vm4270_vm5 = vcmp.gt.f32.partialorder %v4252_v24, 0.0  ;;  %v4286_v15 = vmul.f32 0.2, %v4252_v24  ;;  %v4301_v42 = vsel %vm4269_vm3, %v4249_v0, %v4285_v22 }
 0xdf8   :  { %vm4268_vm6 = vcmp.gt.f32.partialorder %v4244_v32, 0.0  ;;  %v4284_v59 = vmul.f32 0.2, %v4244_v32  ;;  %v4299_v26 = vsel %vm4267_vm4, %v4241_v49, %v4283_v21 }
 0xdf9   :  { %v4302_v55 = vsel %vm4270_vm5, %v4252_v24, %v4286_v15 }
 0xdfa   :  { %v7272_v5 = vpack.c.bf16 %v4302_v55, %v4301_v42  ;;  %v4300_v48 = vsel %vm4268_vm6, %v4244_v32, %v4284_v59  ;;  %v4474_v6 = vpop.f32.mrb[32].mxu0 }
 0xdfb   :  { %v7269_v10 = vpack.c.bf16 %v4300_v48, %v4299_v26  ;;  %v4475_v9 = vadd.f32 %v4474_v6, %v7911_v53  ;;  %v4476_v8 = vpop.f32.mrb[33].mxu0 }
 0xdfc   :  { %v4477_v35 = vadd.f32 %v4476_v8, %v7913_v54  ;;  %v4478_v14 = vpop.f32.mrb[34].mxu0 }
 0xdfd   :  { %7270 = vmatpush3.bf16.xpose.msra.mxu1 %v7269_v10  ;;  %vm4553_vm7 = vcmp.gt.f32.partialorder %v4475_v9, 0.0  ;;  %v4585_v39 = vmul.f32 0.2, %v4475_v9  ;;  %v4479_v16 = vadd.f32 %v4478_v14, %v7911_v53  ;;  %v4480_v11 = vpop.f32.mrb[35].mxu0 }
 0xdfe   :  { %7271 = vmatprep.subr.bf16.mxu1 %v7745_v46  ;;  %vm4554_vm8 = vcmp.gt.f32.partialorder %v4477_v35, 0.0  ;;  %v4586_v0 = vmul.f32 0.2, %v4477_v35  ;;  %v4481_v49 = vadd.f32 %v4480_v11, %v7913_v54 }
 0xdff   :  { %v9421_v22 = vsel %vm4553_vm7, %v4475_v9, %v4585_v39  ;;  %vm4555_vm9 = vcmp.gt.f32.partialorder %v4479_v16, 0.0  ;;  %v4587_v24 = vmul.f32 0.2, %v4479_v16 }
 0xe00   :  { %vm4556_vm10 = vcmp.gt.f32.partialorder %v4481_v49, 0.0  ;;  %v4588_v21 = vmul.f32 0.2, %v4481_v49  ;;  %v4618_v32 = vsel %vm4554_vm8, %v4477_v35, %v4586_v0 }
 0xe01   :  { %v9423_v15 = vsel %vm4555_vm9, %v4479_v16, %v4587_v24 }
 0xe02   :  { %v4649_v59 = vpack.c.bf16 %v9423_v15, %v9421_v22  ;;  %v4484_v42 = vpop.f32.mrb[36].mxu0  ;;  %v4620_v55 = vsel %vm4556_vm10, %v4481_v49, %v4588_v21 }
 0xe03   :  { %v4485_v26 = vadd.f32 %v4484_v42, %v7911_v53  ;;  %v4486_v48 = vpop.f32.mrb[37].mxu0  ;;  %v4650_v6 = vpack.c.bf16 %v4620_v55, %v4618_v32 }
 0xe04   :  { %v4487_v10 = vadd.f32 %v4486_v48, %v7913_v54  ;;  %v4488_v9 = vpop.f32.mrb[38].mxu0 }
 0xe05   :  { %7273 = vmatpush3.bf16.xpose.msra.mxu1 %v7272_v5  ;;  %vm4557_vm11 = vcmp.gt.f32.partialorder %v4485_v26, 0.0  ;;  %v4589_v8 = vmul.f32 0.2, %v4485_v26  ;;  %v4489_v14 = vadd.f32 %v4488_v9, %v7911_v53  ;;  %v4490_v35 = vpop.f32.mrb[39].mxu0 }
 0xe06   :  { %6400 = vmatprep.subr.bf16.mxu1 %v9127_v18  ;;  %vm4558_vm12 = vcmp.gt.f32.partialorder %v4487_v10, 0.0  ;;  %v4590_v39 = vmul.f32 0.2, %v4487_v10  ;;  %v4491_v16 = vadd.f32 %v4490_v35, %v7913_v54 }
 0xe07   :  { %vm4559_vm13 = vcmp.gt.f32.partialorder %v4489_v14, 0.0  ;;  %v4591_v11 = vmul.f32 0.2, %v4489_v14  ;;  %v9432_v0 = vsel %vm4557_vm11, %v4485_v26, %v4589_v8  ;;  %v9448_v26 = vld [vmem:[%s9831_s7] sm:$0xff] }
 0xe08   :  { %vm4560_vm14 = vcmp.gt.f32.partialorder %v4491_v16, 0.0  ;;  %v4592_v49 = vmul.f32 0.2, %v4491_v16  ;;  %v9434_v24 = vsel %vm4558_vm12, %v4487_v10, %v4590_v39 }
 0xe09   :  { %v9436_v5 = vsel %vm4559_vm13, %v4489_v14, %v4591_v11 }
 0xe0a   :  { %v4494_v21 = vpop.f32.mrb[40].mxu0  ;;  %v9438_v32 = vsel %vm4560_vm14, %v4491_v16, %v4592_v49 }
 0xe0b   :  { %v4495_v42 = vadd.f32 %v4494_v21, %v7911_v53  ;;  %v4496_v55 = vpop.f32.mrb[41].mxu0 }
 0xe0c   :  { %6994 = vmatmul.mubr.f32.vlgmr.msra.gmra.mrb[170].mxu1 %v9448_v26  ;;  %v4497_v10 = vadd.f32 %v4496_v55, %v7913_v54  ;;  %v4498_v9 = vpop.f32.mrb[42].mxu0 }
 0xe0d   :  { %6401 = vmatpush3.bf16.msra.mxu1 %v9146_v62  ;;  %4697 = vmatprep.mubr.bf16.mxu1 %v4650_v6  ;;  %vm4561_vm15 = vcmp.gt.f32.partialorder %v4495_v42, 0.0  ;;  %v4593_v8 = vmul.f32 0.2, %v4495_v42  ;;  %v4499_v14 = vadd.f32 %v4498_v9, %v7911_v53  ;;  %v4500_v35 = vpop.f32.mrb[43].mxu0 }
 0xe0e   :  { %6402 = vmatprep.subr.bf16.mxu1 %v9150_v37  ;;  %vm4562_vm1 = vcmp.gt.f32.partialorder %v4497_v10, 0.0  ;;  %v4594_v39 = vmul.f32 0.2, %v4497_v10  ;;  %v4501_v16 = vadd.f32 %v4500_v35, %v7913_v54 }
 0xe0f   :  { %vm4563_vm2 = vcmp.gt.f32.partialorder %v4499_v14, 0.0  ;;  %v4595_v11 = vmul.f32 0.2, %v4499_v14  ;;  %v9456_v49 = vsel %vm4561_vm15, %v4495_v42, %v4593_v8 }
 0xe10   :  { %vm4564_vm3 = vcmp.gt.f32.partialorder %v4501_v16, 0.0  ;;  %v4596_v21 = vmul.f32 0.2, %v4501_v16  ;;  %v9458_v55 = vsel %vm4562_vm1, %v4497_v10, %v4594_v39 }
 0xe11   :  { %6403 = vmatpush3.bf16.msra.mxu1 %v9158_v27  ;;  %v9461_v62 = vsel %vm4563_vm2, %v4499_v14, %v4595_v11 }
 0xe12   :  { %6404 = vmatprep.subr.bf16.mxu1 %v9163_v4  ;;  %v4504_v6 = vpop.f32.mrb[44].mxu0  ;;  %v9464_v37 = vsel %vm4564_vm3, %v4501_v16, %v4596_v21 }
 0xe13   :  { %v4505_v35 = vadd.f32 %v4504_v6, %v7911_v53  ;;  %v4506_v42 = vpop.f32.mrb[45].mxu0 }
 0xe14   :  { %v4507_v10 = vadd.f32 %v4506_v42, %v7913_v54  ;;  %v4508_v39 = vpop.f32.mrb[46].mxu0 }
 0xe15   :  { %6405 = vmatpush3.bf16.msra.mxu1 %v9174_v3  ;;  %vm4565_vm4 = vcmp.gt.f32.partialorder %v4505_v35, 0.0  ;;  %v4597_v27 = vmul.f32 0.2, %v4505_v35  ;;  %v4509_v4 = vadd.f32 %v4508_v39, %v7911_v53  ;;  %v4510_v14 = vpop.f32.mrb[47].mxu0 }
 0xe16   :  { %6406 = vmatprep.subr.bf16.mxu1 %v9178_v58  ;;  %vm4566_vm5 = vcmp.gt.f32.partialorder %v4507_v10, 0.0  ;;  %v4598_v16 = vmul.f32 0.2, %v4507_v10  ;;  %v4511_v11 = vadd.f32 %v4510_v14, %v7913_v54 }
 0xe17   :  { %vm4567_vm6 = vcmp.gt.f32.partialorder %v4509_v4, 0.0  ;;  %v4599_v21 = vmul.f32 0.2, %v4509_v4  ;;  %v9476_v6 = vsel %vm4565_vm4, %v4505_v35, %v4597_v27 }
 0xe18   :  { %vm4568_vm7 = vcmp.gt.f32.partialorder %v4511_v11, 0.0  ;;  %v4600_v42 = vmul.f32 0.2, %v4511_v11  ;;  %v9478_v9 = vsel %vm4566_vm5, %v4507_v10, %v4598_v16 }
 0xe19   :  { %6407 = vmatpush3.bf16.msra.mxu1 %v9186_v19  ;;  %v9481_v3 = vsel %vm4567_vm6, %v4509_v4, %v4599_v21 }
 0xe1a   :  { %6408 = vmatprep.subr.bf16.mxu1 %v9191_v50  ;;  %v4514_v39 = vpop.f32.mrb[48].mxu0  ;;  %v9484_v58 = vsel %vm4568_vm7, %v4511_v11, %v4600_v42 }
 0xe1b   :  { %v4515_v8 = vadd.f32 %v4514_v39, %v7911_v53  ;;  %v4516_v35 = vpop.f32.mrb[49].mxu0 }
 0xe1c   :  { %v4517_v10 = vadd.f32 %v4516_v35, %v7913_v54  ;;  %v4518_v16 = vpop.f32.mrb[50].mxu0 }
 0xe1d   :  { %6409 = vmatpush3.bf16.msra.mxu1 %v9202_v61  ;;  %vm4569_vm8 = vcmp.gt.f32.partialorder %v4515_v8, 0.0  ;;  %v4601_v19 = vmul.f32 0.2, %v4515_v8  ;;  %v4519_v50 = vadd.f32 %v4518_v16, %v7911_v53  ;;  %v4520_v4 = vpop.f32.mrb[51].mxu0 }
 0xe1e   :  { %6410 = vmatprep.subr.bf16.mxu1 %v9206_v57  ;;  %vm4570_vm9 = vcmp.gt.f32.partialorder %v4517_v10, 0.0  ;;  %v4602_v11 = vmul.f32 0.2, %v4517_v10  ;;  %v4521_v21 = vadd.f32 %v4520_v4, %v7913_v54 }
 0xe1f   :  { %vm4571_vm10 = vcmp.gt.f32.partialorder %v4519_v50, 0.0  ;;  %v4603_v42 = vmul.f32 0.2, %v4519_v50  ;;  %v9496_v39 = vsel %vm4569_vm8, %v4515_v8, %v4601_v19 }
 0xe20   :  { %vm4572_vm11 = vcmp.gt.f32.partialorder %v4521_v21, 0.0  ;;  %v4604_v35 = vmul.f32 0.2, %v4521_v21  ;;  %v9498_v14 = vsel %vm4570_vm9, %v4517_v10, %v4602_v11 }
 0xe21   :  { %6411 = vmatpush3.bf16.msra.mxu1 %v9214_v25  ;;  %v9501_v61 = vsel %vm4571_vm10, %v4519_v50, %v4603_v42 }
 0xe22   :  { %6412 = vmatprep.subr.bf16.mxu1 %v9219_v12  ;;  %v4524_v16 = vpop.f32.mrb[52].mxu0  ;;  %v9504_v57 = vsel %vm4572_vm11, %v4521_v21, %v4604_v35 }
 0xe23   :  { %v4525_v27 = vadd.f32 %v4524_v16, %v7911_v53  ;;  %v4526_v8 = vpop.f32.mrb[53].mxu0 }
 0xe24   :  { %v4527_v10 = vadd.f32 %v4526_v8, %v7913_v54  ;;  %v4528_v11 = vpop.f32.mrb[54].mxu0 }
 0xe25   :  { %6413 = vmatpush3.bf16.msra.mxu1 %v9230_v23  ;;  %vm4573_vm12 = vcmp.gt.f32.partialorder %v4525_v27, 0.0  ;;  %v4605_v25 = vmul.f32 0.2, %v4525_v27  ;;  %v4529_v12 = vadd.f32 %v4528_v11, %v7911_v53  ;;  %v4530_v50 = vpop.f32.mrb[55].mxu0 }
 0xe26   :  { %6414 = vmatprep.subr.bf16.mxu1 %v9234_v1  ;;  %vm4574_vm13 = vcmp.gt.f32.partialorder %v4527_v10, 0.0  ;;  %v4606_v21 = vmul.f32 0.2, %v4527_v10  ;;  %v4531_v42 = vadd.f32 %v4530_v50, %v7913_v54 }
 0xe27   :  { %vm4575_vm14 = vcmp.gt.f32.partialorder %v4529_v12, 0.0  ;;  %v4607_v35 = vmul.f32 0.2, %v4529_v12  ;;  %v9516_v16 = vsel %vm4573_vm12, %v4525_v27, %v4605_v25 }
 0xe28   :  { %vm4576_vm15 = vcmp.gt.f32.partialorder %v4531_v42, 0.0  ;;  %v4608_v8 = vmul.f32 0.2, %v4531_v42  ;;  %v4638_v4 = vsel %vm4574_vm13, %v4527_v10, %v4606_v21 }
 0xe29   :  { %6415 = vmatpush3.bf16.msra.mxu1 %v9240_v60  ;;  %v4639_v23 = vsel %vm4575_vm14, %v4529_v12, %v4607_v35  ;;  %v9926_v60 = vpack.c.bf16 %v9438_v32, %v9434_v24 }
 0xe2a   :  { %v4534_v19 = vpop.f32.mrb[56].mxu0  ;;  %v4640_v18 = vsel %vm4576_vm15, %v4531_v42, %v4608_v8  ;;  %v4659_v11 = vpack.c.bf16 %v4639_v23, %v9516_v16  ;;  %7274 = vmatprep.subr.bf16.mxu1 %v7745_v46  ;;  %v9927_v23 = vpack.c.bf16 %v9436_v5, %v9432_v0 }
 0xe2b   :  { %v4535_v1 = vadd.f32 %v4534_v19, %v7911_v53  ;;  %v4536_v48 = vpop.f32.mrb[57].mxu0  ;;  %v4660_v50 = vpack.c.bf16 %v4640_v18, %v4638_v4 }
 0xe2c   :  { %4698 = vmatmul.mubr.bf16.vlgmr.msra.gmra.mrb[204].mxu1 %v4649_v59  ;;  %v4537_v27 = vadd.f32 %v4536_v48, %v7913_v54  ;;  %v4538_v10 = vpop.f32.mrb[58].mxu0 }
 0xe2d   :  { %4705 = vmatprep.mubr.bf16.mxu1 %v9926_v60  ;;  %vm4577_vm1 = vcmp.gt.f32.partialorder %v4535_v1, 0.0  ;;  %v4609_v25 = vmul.f32 0.2, %v4535_v1  ;;  %v4539_v12 = vadd.f32 %v4538_v10, %v7911_v53  ;;  %v4540_v21 = vpop.f32.mrb[59].mxu0 }
 0xe2e   :  { %vm4578_vm2 = vcmp.gt.f32.partialorder %v4537_v27, 0.0  ;;  %v4610_v19 = vmul.f32 0.2, %v4537_v27  ;;  %v4541_v18 = vadd.f32 %v4540_v21, %v7913_v54 }
 0xe2f   :  { %vm4579_vm3 = vcmp.gt.f32.partialorder %v4539_v12, 0.0  ;;  %v4611_v4 = vmul.f32 0.2, %v4539_v12  ;;  %v4641_v22 = vsel %vm4577_vm1, %v4535_v1, %v4609_v25  ;;  %v9928_v1 = vpack.c.bf16 %v9464_v37, %v9458_v55 }
 0xe30   :  { %vm4580_vm4 = vcmp.gt.f32.partialorder %v4541_v18, 0.0  ;;  %v4612_v15 = vmul.f32 0.2, %v4541_v18  ;;  %v4642_v59 = vsel %vm4578_vm2, %v4537_v27, %v4610_v19  ;;  %v9929_v37 = vpack.c.bf16 %v9461_v62, %v9456_v49 }
 0xe31   :  { %v4643_v48 = vsel %vm4579_vm3, %v4539_v12, %v4611_v4 }
 0xe32   :  { %v4544_v42 = vpop.f32.mrb[60].mxu0  ;;  %v4644_v35 = vsel %vm4580_vm4, %v4541_v18, %v4612_v15  ;;  %v4661_v24 = vpack.c.bf16 %v4643_v48, %v4641_v22  ;;  %v9930_v48 = vpack.c.bf16 %v9484_v58, %v9478_v9 }
 0xe33   :  { %v4545_v32 = vadd.f32 %v4544_v42, %v7911_v53  ;;  %v4546_v16 = vpop.f32.mrb[61].mxu0  ;;  %v4662_v8 = vpack.c.bf16 %v4644_v35, %v4642_v59  ;;  %v9931_v42 = vpack.c.bf16 %v9481_v3, %v9476_v6  ;;  %v9932_v35 = vpack.c.bf16 %v9504_v57, %v9498_v14 }
 0xe34   :  { %4706 = vmatmul.mubr.bf16.gmra.mrb[208].mxu1 %v9927_v23  ;;  %v4547_v10 = vadd.f32 %v4546_v16, %v7913_v54  ;;  %v4548_v60 = vpop.f32.mrb[62].mxu0 }
 0xe35   :  { %4713 = vmatprep.mubr.bf16.mxu1 %v9928_v1  ;;  %vm4581_vm5 = vcmp.gt.f32.partialorder %v4545_v32, 0.0  ;;  %v4613_v27 = vmul.f32 0.2, %v4545_v32  ;;  %v4549_v25 = vadd.f32 %v4548_v60, %v7911_v53  ;;  %v4550_v12 = vpop.f32.mrb[63].mxu0 }
 0xe36   :  { %vm4582_vm6 = vcmp.gt.f32.partialorder %v4547_v10, 0.0  ;;  %v4614_v21 = vmul.f32 0.2, %v4547_v10  ;;  %v4551_v19 = vadd.f32 %v4550_v12, %v7913_v54 }
 0xe37   :  { %vm4583_vm7 = vcmp.gt.f32.partialorder %v4549_v25, 0.0  ;;  %v4615_v18 = vmul.f32 0.2, %v4549_v25  ;;  %v4645_v0 = vsel %vm4581_vm5, %v4545_v32, %v4613_v27  ;;  %v9933_v32 = vpack.c.bf16 %v9501_v61, %v9496_v39 }
 0xe38   :  { %vm4584_vm8 = vcmp.gt.f32.partialorder %v4551_v19, 0.0  ;;  %v4616_v5 = vmul.f32 0.2, %v4551_v19  ;;  %v4646_v4 = vsel %vm4582_vm6, %v4547_v10, %v4614_v21 }
 0xe39   :  { %v4647_v22 = vsel %vm4583_vm7, %v4549_v25, %v4615_v18 }
 0xe3a   :  { %v4648_v15 = vsel %vm4584_vm8, %v4551_v19, %v4616_v5  ;;  %v4663_v59 = vpack.c.bf16 %v4647_v22, %v4645_v0 }
 0xe3b   :  { %v4664_v55 = vpack.c.bf16 %v4648_v15, %v4646_v4 }
 0xe3c   :  { %4714 = vmatmul.mubr.bf16.gmra.mrb[212].mxu1 %v9929_v37 }
 0xe3d   :  { %4721 = vmatprep.mubr.bf16.mxu1 %v9930_v48 }
 0xe44   :  { %4722 = vmatmul.mubr.bf16.gmra.mrb[216].mxu1 %v9931_v42 }
 0xe45   :  { %4729 = vmatprep.mubr.bf16.mxu1 %v9932_v35 }
 0xe4c   :  { %4730 = vmatmul.mubr.bf16.gmra.mrb[220].mxu1 %v9933_v32 }
 0xe4d   :  { %4737 = vmatprep.mubr.bf16.mxu1 %v4660_v50 }
 0xe54   :  { %4738 = vmatmul.mubr.bf16.gmra.mrb[224].mxu1 %v4659_v11 }
 0xe55   :  { %4745 = vmatprep.mubr.bf16.mxu1 %v4662_v8 }
 0xe5c   :  { %4746 = vmatmul.mubr.bf16.gmra.mrb[228].mxu1 %v4661_v24 }
 0xe5d   :  { %4753 = vmatprep.mubr.bf16.mxu1 %v4664_v55 }
 0xe64   :  { %4754 = vmatmul.mubr.bf16.gmra.mrb[232].mxu1 %v4663_v59 }
 0xe65   :  { %7060 = vmatprep.mubr.msk.f32.mxu1 %vm7746_vm0, %v9870_v17 }
 0xedf   :  { %v4369_v49 = vpop.f32.mrb[170].mxu1 }
 0xee0   :  { %v4373_v62 = vadd.f32 %v4369_v49, %v8204_v28  ;;  %v6995_v9 = vpop.f32.mrb[171].mxu1 }
 0xee2   :  { %4374 = vst [vmem:[#allocation11 + $0x5] sm:$0x1] %v4373_v62 }
 0xeff   :  { %v6416_v6 = vpop.f32.mrb[204].mxu1 }
 0xf00   :  { %v6417_v3 = vpop.f32.mrb[205].mxu1 }
 0xf01   :  { %v6418_v58 = vadd.f32 %v6417_v3, %v6416_v6  ;;  %v6419_v14 = vpop.f32.mrb[206].mxu1 }
 0xf02   :  { %v6420_v39 = vpop.f32.mrb[207].mxu1 }
 0xf03   :  { %v4700_v61 = vadd.f32 %v9318_v41, %v6418_v58  ;;  %v6421_v57 = vadd.f32 %v6420_v39, %v6419_v14 }
 0xf05   :  { %v4778_v11 = vmul.f32 0.2, %v4700_v61  ;;  %v4703_v50 = vadd.f32 %v9318_v41, %v6421_v57  ;;  %vm4762_vm9 = vcmp.gt.f32.partialorder %v4700_v61, 0.0 }
 0xf07   :  { %vm4763_vm10 = vcmp.gt.f32.partialorder %v4703_v50, 0.0  ;;  %v4779_v24 = vmul.f32 0.2, %v4703_v50  ;;  %v6422_v16 = vpop.f32.mrb[208].mxu1  ;;  %v4794_v60 = vsel %vm4762_vm9, %v4700_v61, %v4778_v11 }
 0xf08   :  { %v6423_v8 = vpop.f32.mrb[209].mxu1 }
 0xf09   :  { %v6424_v23 = vadd.f32 %v6423_v8, %v6422_v16  ;;  %v6425_v10 = vpop.f32.mrb[210].mxu1  ;;  %v4795_v1 = vsel %vm4763_vm10, %v4703_v50, %v4779_v24 }
 0xf0a   :  { %v6426_v27 = vpop.f32.mrb[211].mxu1  ;;  %v4810_v25 = vpack.c.bf16 %v4795_v1, %v4794_v60 }
 0xf0b   :  { %v4708_v12 = vadd.f32 %v9318_v41, %v6424_v23  ;;  %v6427_v21 = vadd.f32 %v6426_v27, %v6425_v10 }
 0xf0c   :  { %7012 = vmatprep.mubr.bf16.mxu0 %v4810_v25 }
 0xf0d   :  { %v4780_v19 = vmul.f32 0.2, %v4708_v12  ;;  %v4711_v18 = vadd.f32 %v9318_v41, %v6427_v21  ;;  %vm4764_vm11 = vcmp.gt.f32.partialorder %v4708_v12, 0.0 }
 0xf0f   :  { %vm4765_vm12 = vcmp.gt.f32.partialorder %v4711_v18, 0.0  ;;  %v4781_v0 = vmul.f32 0.2, %v4711_v18  ;;  %v6428_v5 = vpop.f32.mrb[212].mxu1  ;;  %v4796_v22 = vsel %vm4764_vm11, %v4708_v12, %v4780_v19 }
 0xf10   :  { %v6429_v4 = vpop.f32.mrb[213].mxu1 }
 0xf11   :  { %v4797_v15 = vsel %vm4765_vm12, %v4711_v18, %v4781_v0  ;;  %v6430_v59 = vadd.f32 %v6429_v4, %v6428_v5  ;;  %v6431_v55 = vpop.f32.mrb[214].mxu1 }
 0xf12   :  { %v4811_v37 = vpack.c.bf16 %v4797_v15, %v4796_v22  ;;  %v6432_v48 = vpop.f32.mrb[215].mxu1 }
 0xf13   :  { %v4716_v42 = vadd.f32 %v9318_v41, %v6430_v59  ;;  %v6433_v35 = vadd.f32 %v6432_v48, %v6431_v55 }
 0xf14   :  { %7013 = vmatmul.mubr.bf16.vlgmr.msra.gmra.mrb[64].mxu0 %v4811_v37 }
 0xf15   :  { %v4782_v32 = vmul.f32 0.2, %v4716_v42  ;;  %v4719_v49 = vadd.f32 %v9318_v41, %v6433_v35  ;;  %5101 = vmatpush1.bf16.msra.mxu0 %v9289_v13  ;;  %vm4766_vm13 = vcmp.gt.f32.partialorder %v4716_v42, 0.0 }
 0xf16   :  { %5102 = vmatprep.subr.bf16.mxu0 %v9292_v20 }
 0xf17   :  { %vm4767_vm14 = vcmp.gt.f32.partialorder %v4719_v49, 0.0  ;;  %v4783_v62 = vmul.f32 0.2, %v4719_v49  ;;  %v6434_v9 = vpop.f32.mrb[216].mxu1  ;;  %v4798_v14 = vsel %vm4766_vm13, %v4716_v42, %v4782_v32 }
 0xf18   :  { %v6435_v6 = vpop.f32.mrb[217].mxu1 }
 0xf19   :  { %v6436_v3 = vadd.f32 %v6435_v6, %v6434_v9  ;;  %v6437_v58 = vpop.f32.mrb[218].mxu1  ;;  %v4799_v39 = vsel %vm4767_vm14, %v4719_v49, %v4783_v62  ;;  %5103 = vmatpush1.bf16.msra.mxu0 %v9295_v33 }
 0xf1a   :  { %v6438_v61 = vpop.f32.mrb[219].mxu1  ;;  %v4812_v57 = vpack.c.bf16 %v4799_v39, %v4798_v14  ;;  %5104 = vmatprep.subr.bf16.mxu0 %v9298_v47 }
 0xf1b   :  { %v4724_v11 = vadd.f32 %v9318_v41, %v6436_v3  ;;  %v6439_v13 = vadd.f32 %v6438_v61, %v6437_v58 }
 0xf1c   :  { %7016 = vmatprep.mubr.bf16.mxu0 %v4812_v57 }
 0xf1d   :  { %v4784_v50 = vmul.f32 0.2, %v4724_v11  ;;  %v4727_v20 = vadd.f32 %v9318_v41, %v6439_v13  ;;  %5105 = vmatpush1.bf16.msra.mxu0 %v9303_v36  ;;  %vm4768_vm15 = vcmp.gt.f32.partialorder %v4724_v11, 0.0 }
 0xf1e   :  { %5106 = vmatprep.subr.bf16.mxu0 %v9306_v43 }
 0xf1f   :  { %vm4769_vm1 = vcmp.gt.f32.partialorder %v4727_v20, 0.0  ;;  %v4785_v24 = vmul.f32 0.2, %v4727_v20  ;;  %v6440_v16 = vpop.f32.mrb[220].mxu1  ;;  %v4800_v8 = vsel %vm4768_vm15, %v4724_v11, %v4784_v50 }
 0xf20   :  { %v6441_v33 = vpop.f32.mrb[221].mxu1 }
 0xf21   :  { %v4801_v23 = vsel %vm4769_vm1, %v4727_v20, %v4785_v24  ;;  %v6442_v10 = vadd.f32 %v6441_v33, %v6440_v16  ;;  %v6443_v47 = vpop.f32.mrb[222].mxu1  ;;  %5107 = vmatpush1.bf16.msra.mxu0 %v9309_v30 }
 0xf22   :  { %v4813_v60 = vpack.c.bf16 %v4801_v23, %v4800_v8  ;;  %v6444_v1 = vpop.f32.mrb[223].mxu1  ;;  %5108 = vmatprep.subr.bf16.mxu0 %v9312_v44  ;;  %v7440_v23 = vld [vmem:[#allocation3 + $0x1c0] sm:$0xff]  }
 0xf23   :  { %v4732_v27 = vadd.f32 %v9318_v41, %v6442_v10  ;;  %v6445_v36 = vadd.f32 %v6444_v1, %v6443_v47  ;;  %v7441_v10 = vld [vmem:[#allocation3 + $0x1c8] sm:$0xff]   ;;  %v9934_v47 = vld [vmem:[#allocation21_spill] sm:$0xff] }
 0xf24   :  { %7017 = vmatmul.mubr.bf16.gmra.mrb[68].mxu0 %v4813_v60  ;;  %v7442_v60 = vld [vmem:[#allocation3 + $0x1d0] sm:$0xff]   ;;  %v9935_v1 = vld [vmem:[#allocation16_spill] sm:$0xff] }
 0xf25   :  { %v4786_v25 = vmul.f32 0.2, %v4732_v27  ;;  %v4735_v43 = vadd.f32 %v9318_v41, %v6445_v36  ;;  %5109 = vmatpush1.bf16.msra.mxu0 %v9322_v56  ;;  %vm4770_vm2 = vcmp.gt.f32.partialorder %v4732_v27, 0.0  ;;  %v9584_v41 = vld [vmem:[%s9828_s4] ss:$0 sm:$0xff]  ;;  %v7444_v36 = vld [vmem:[#allocation3 + $0x1e0] sm:$0xff]  }
 0xf26   :  { %5110 = vmatprep.subr.bf16.mxu0 %v9325_v34 }
 0xf27   :  { %vm4771_vm3 = vcmp.gt.f32.partialorder %v4735_v43, 0.0  ;;  %v4787_v12 = vmul.f32 0.2, %v4735_v43  ;;  %v6446_v21 = vpop.f32.mrb[224].mxu1  ;;  %v4802_v0 = vsel %vm4770_vm2, %v4732_v27, %v4786_v25  ;;  %v9937_v27 = vld [vmem:[#allocation18_spill] sm:$0xff]  ;;  %v7445_v25 = vld [vmem:[#allocation3 + $0x1e8] sm:$0xff]  }
 0xf28   :  { %v6447_v30 = vpop.f32.mrb[225].mxu1 }
 0xf29   :  { %v6448_v19 = vadd.f32 %v6447_v30, %v6446_v21  ;;  %v6449_v18 = vpop.f32.mrb[226].mxu1  ;;  %v4803_v44 = vsel %vm4771_vm3, %v4735_v43, %v4787_v12  ;;  %5111 = vmatpush1.bf16.msra.mxu0 %v9328_v63  ;;  %v7446_v43 = vld [vmem:[#allocation3 + $0x1f0] sm:$0xff]   ;;  %v7447_v12 = vld [vmem:[#allocation3 + $0x1f8] sm:$0xff]  }
 0xf2a   :  { %v6450_v5 = vpop.f32.mrb[227].mxu1  ;;  %v4814_v4 = vpack.c.bf16 %v4803_v44, %v4802_v0  ;;  %5112 = vmatprep.subr.bf16.mxu0 %v9331_v51 }
 0xf2b   :  { %v4740_v56 = vadd.f32 %v9584_v41, %v6448_v19  ;;  %v6451_v34 = vadd.f32 %v6450_v5, %v6449_v18 }
 0xf2c   :  { %7020 = vmatprep.mubr.bf16.mxu0 %v4814_v4 }
 0xf2d   :  { %v4788_v22 = vmul.f32 0.2, %v4740_v56  ;;  %v4743_v15 = vadd.f32 %v9584_v41, %v6451_v34  ;;  %5113 = vmatpush1.bf16.msra.mxu0 %v9336_v31  ;;  %vm4772_vm4 = vcmp.gt.f32.partialorder %v4740_v56, 0.0 }
 0xf2e   :  { %5114 = vmatprep.subr.bf16.mxu0 %v9339_v52 }
 0xf2f   :  { %vm4773_vm5 = vcmp.gt.f32.partialorder %v4743_v15, 0.0  ;;  %v4789_v63 = vmul.f32 0.2, %v4743_v15  ;;  %v6452_v51 = vpop.f32.mrb[228].mxu1  ;;  %v4804_v55 = vsel %vm4772_vm4, %v4740_v56, %v4788_v22 }
 0xf30   :  { %v6453_v59 = vpop.f32.mrb[229].mxu1 }
 0xf31   :  { %v4805_v37 = vsel %vm4773_vm5, %v4743_v15, %v4789_v63  ;;  %v6454_v48 = vadd.f32 %v6453_v59, %v6452_v51  ;;  %v6455_v42 = vpop.f32.mrb[230].mxu1  ;;  %5115 = vmatpush1.bf16.msra.mxu0 %v9342_v40 }
 0xf32   :  { %v4815_v35 = vpack.c.bf16 %v4805_v37, %v4804_v55  ;;  %v6456_v32 = vpop.f32.mrb[231].mxu1  ;;  %7063 = vmatprep.subr.bf16.mxu0 %v9352_v38 }
 0xf33   :  { %v4748_v49 = vadd.f32 %v9584_v41, %v6454_v48  ;;  %v6457_v31 = vadd.f32 %v6456_v32, %v6455_v42 }
 0xf34   :  { %7021 = vmatmul.mubr.bf16.gmra.mrb[72].mxu0 %v4815_v35 }
 0xf35   :  { %v4790_v62 = vmul.f32 0.2, %v4748_v49  ;;  %v4751_v52 = vadd.f32 %v9584_v41, %v6457_v31  ;;  %vm4774_vm6 = vcmp.gt.f32.partialorder %v4748_v49, 0.0 }
 0xf37   :  { %vm4775_vm7 = vcmp.gt.f32.partialorder %v4751_v52, 0.0  ;;  %v4791_v9 = vmul.f32 0.2, %v4751_v52  ;;  %v6458_v6 = vpop.f32.mrb[232].mxu1  ;;  %v4806_v39 = vsel %vm4774_vm6, %v4748_v49, %v4790_v62 }
 0xf38   :  { %v6459_v3 = vpop.f32.mrb[233].mxu1 }
 0xf39   :  { %v6460_v58 = vadd.f32 %v6459_v3, %v6458_v6  ;;  %v6461_v14 = vpop.f32.mrb[234].mxu1  ;;  %v4807_v40 = vsel %vm4775_vm7, %v4751_v52, %v4791_v9 }
 0xf3a   :  { %v6462_v61 = vpop.f32.mrb[235].mxu1  ;;  %v4816_v57 = vpack.c.bf16 %v4807_v40, %v4806_v39 }
 0xf3b   :  { %v4756_v11 = vadd.f32 %v9584_v41, %v6460_v58  ;;  %v6463_v13 = vadd.f32 %v6462_v61, %v6461_v14 }
 0xf3c   :  { %7024 = vmatprep.mubr.bf16.mxu0 %v4816_v57 }
 0xf3d   :  { %v4792_v50 = vmul.f32 0.2, %v4756_v11  ;;  %v4759_v20 = vadd.f32 %v9584_v41, %v6463_v13  ;;  %vm4776_vm8 = vcmp.gt.f32.partialorder %v4756_v11, 0.0 }
 0xf3f   :  { %vm4777_vm9 = vcmp.gt.f32.partialorder %v4759_v20, 0.0  ;;  %v4793_v24 = vmul.f32 0.2, %v4759_v20  ;;  %v4808_v16 = vsel %vm4776_vm8, %v4756_v11, %v4792_v50 }
 0xf41   :  { %v4809_v33 = vsel %vm4777_vm9, %v4759_v20, %v4793_v24 }
 0xf42   :  { %v4817_v8 = vpack.c.bf16 %v4809_v33, %v4808_v16 }
 0xf44   :  { %7025 = vmatmul.mubr.bf16.gmra.mrb[76].mxu0 %v4817_v8 }
 0xf45   :  { %5132 = vmatprep.mubr.bf16.mxu0 %v9872_v45 }
 0xf4c   :  { %5133 = vmatmul.mubr.bf16.vlgmr.msra.gmra.mrb[80].mxu0 %v7440_v23 }
 0xf4d   :  { %5142 = vmatprep.mubr.bf16.mxu0 %v9872_v45  ;;  %7064 = vmatpush3.bf16.msra.mxu0 %v9352_v38  ;;  %v9936_v38 = vld [vmem:[#allocation17_spill] sm:$0xff] }
 0xf4e   :  { %7065 = vmatprep.subr.bf16.mxu0 %v9355_v29 }
 0xf51   :  { %7066 = vmatpush3.bf16.msra.mxu0 %v9355_v29  ;;  %v7443_v29 = vld [vmem:[#allocation3 + $0x1d8] sm:$0xff]  }
 0xf52   :  { %7067 = vmatprep.subr.bf16.mxu0 %v9359_v2 }
 0xf54   :  { %5143 = vmatmul.mubr.bf16.gmra.mrb[84].mxu0 %v7441_v10 }
 0xf55   :  { %5152 = vmatprep.mubr.bf16.mxu0 %v9872_v45  ;;  %7068 = vmatpush3.bf16.msra.mxu0 %v9359_v2  ;;  %v9938_v2 = vld [vmem:[#allocation19_spill] sm:$0xff] }
 0xf56   :  { %7069 = vmatprep.subr.bf16.mxu0 %v9934_v47 }
 0xf59   :  { %7070 = vmatpush3.bf16.msra.mxu0 %v9934_v47 }
 0xf5a   :  { %7071 = vmatprep.subr.bf16.mxu0 %v9935_v1 }
 0xf5c   :  { %5153 = vmatmul.mubr.bf16.gmra.mrb[88].mxu0 %v7442_v60 }
 0xf5d   :  { %5162 = vmatprep.mubr.bf16.mxu0 %v9872_v45  ;;  %7072 = vmatpush3.bf16.msra.mxu0 %v9935_v1 }
 0xf5e   :  { %7073 = vmatprep.subr.bf16.mxu0 %v9936_v38 }
 0xf61   :  { %7074 = vmatpush3.bf16.msra.mxu0 %v9936_v38 }
 0xf62   :  { %7075 = vmatprep.subr.bf16.mxu0 %v9937_v27 }
 0xf64   :  { %5163 = vmatmul.mubr.bf16.gmra.mrb[92].mxu0 %v7443_v29 }
 0xf65   :  { %5172 = vmatprep.mubr.bf16.mxu0 %v9872_v45  ;;  %7076 = vmatpush3.bf16.msra.mxu0 %v9937_v27 }
 0xf66   :  { %7077 = vmatprep.subr.bf16.mxu0 %v9938_v2 }
 0xf69   :  { %7078 = vmatpush3.bf16.msra.mxu0 %v9938_v2 }
 0xf6c   :  { %5173 = vmatmul.mubr.bf16.gmra.mrb[96].mxu0 %v7444_v36 }
 0xf6d   :  { %5182 = vmatprep.mubr.bf16.mxu0 %v9872_v45 }
 0xf74   :  { %5183 = vmatmul.mubr.bf16.gmra.mrb[100].mxu0 %v7445_v25 }
 0xf75   :  { %5192 = vmatprep.mubr.bf16.mxu0 %v9872_v45 }
 0xf7c   :  { %5193 = vmatmul.mubr.bf16.gmra.mrb[104].mxu0 %v7446_v43 }
 0xf7d   :  { %5202 = vmatprep.mubr.bf16.mxu0 %v9872_v45 }
 0xf84   :  { %5203 = vmatmul.mubr.bf16.gmra.mrb[108].mxu0 %v7447_v12 }
 0xfe7   :  { %v7014_v21 = vpop.f32.mrb[64].mxu0 }
 0xfe8   :  { %v4861_v30 = vadd.f32 %v9406_v7, %v7014_v21  ;;  %v4852_v19 = vpop.f32.mrb[65].mxu0 }
 0xfe9   :  { %v4853_v18 = vadd.f32 %v9406_v7, %v4852_v19  ;;  %v7015_v0 = vpop.f32.mrb[66].mxu0 }
 0xfea   :  { %v4933_v44 = vmul.f32 0.2, %v4861_v30  ;;  %v4864_v5 = vadd.f32 %v9406_v7, %v7015_v0  ;;  %v4855_v4 = vpop.f32.mrb[67].mxu0  ;;  %vm4917_vm10 = vcmp.gt.f32.partialorder %v4861_v30, 0.0 }
 0xfeb   :  { %v4931_v56 = vmul.f32 0.2, %v4853_v18  ;;  %v4856_v34 = vadd.f32 %v9406_v7, %v4855_v4  ;;  %vm4915_vm11 = vcmp.gt.f32.partialorder %v4853_v18, 0.0 }
 0xfec   :  { %vm4918_vm12 = vcmp.gt.f32.partialorder %v4864_v5, 0.0  ;;  %v4934_v45 = vmul.f32 0.2, %v4864_v5  ;;  %v4949_v15 = vsel %vm4917_vm10, %v4861_v30, %v4933_v44 }
 0xfed   :  { %vm4916_vm13 = vcmp.gt.f32.partialorder %v4856_v34, 0.0  ;;  %v4932_v22 = vmul.f32 0.2, %v4856_v34  ;;  %v4947_v51 = vsel %vm4915_vm11, %v4853_v18, %v4931_v56 }
 0xfee   :  { %v4950_v63 = vsel %vm4918_vm12, %v4864_v5, %v4934_v45 }
 0xfef   :  { %v7278_v59 = vpack.c.bf16 %v4950_v63, %v4949_v15  ;;  %v4948_v55 = vsel %vm4916_vm13, %v4856_v34, %v4932_v22 }
 0xff0   :  { %v7275_v37 = vpack.c.bf16 %v4948_v55, %v4947_v51 }
 0xff2   :  { %7276 = vmatpush3.bf16.xpose.msra.mxu1 %v7275_v37 }
 0xff3   :  { %7277 = vmatprep.subr.bf16.mxu1 %v7745_v46 }
 0xff7   :  { %v7018_v48 = vpop.f32.mrb[68].mxu0 }
 0xff8   :  { %v4877_v42 = vadd.f32 %v9406_v7, %v7018_v48  ;;  %v4868_v35 = vpop.f32.mrb[69].mxu0 }
 0xff9   :  { %v4869_v32 = vadd.f32 %v9406_v7, %v4868_v35  ;;  %v7019_v49 = vpop.f32.mrb[70].mxu0 }
 0xffa   :  { %v4937_v31 = vmul.f32 0.2, %v4877_v42  ;;  %v4880_v62 = vadd.f32 %v9406_v7, %v7019_v49  ;;  %v4871_v52 = vpop.f32.mrb[71].mxu0  ;;  %7279 = vmatpush3.bf16.xpose.msra.mxu1 %v7278_v59  ;;  %vm4921_vm14 = vcmp.gt.f32.partialorder %v4877_v42, 0.0 }
 0xffb   :  { %v4935_v9 = vmul.f32 0.2, %v4869_v32  ;;  %v4872_v6 = vadd.f32 %v9406_v7, %v4871_v52  ;;  %7280 = vmatprep.subr.bf16.mxu1 %v7745_v46  ;;  %vm4919_vm15 = vcmp.gt.f32.partialorder %v4869_v32, 0.0 }
 0xffc   :  { %vm4922_vm1 = vcmp.gt.f32.partialorder %v4880_v62, 0.0  ;;  %v4938_v3 = vmul.f32 0.2, %v4880_v62  ;;  %v4953_v14 = vsel %vm4921_vm14, %v4877_v42, %v4937_v31 }
 0xffd   :  { %vm4920_vm2 = vcmp.gt.f32.partialorder %v4872_v6, 0.0  ;;  %v4936_v58 = vmul.f32 0.2, %v4872_v6  ;;  %v4951_v40 = vsel %vm4919_vm15, %v4869_v32, %v4935_v9 }
 0xffe   :  { %v4954_v39 = vsel %vm4922_vm1, %v4880_v62, %v4938_v3 }
 0xfff   :  { %v7284_v61 = vpack.c.bf16 %v4954_v39, %v4953_v14  ;;  %v4952_v57 = vsel %vm4920_vm2, %v4872_v6, %v4936_v58 }
0x1000   :  { %v7281_v11 = vpack.c.bf16 %v4952_v57, %v4951_v40 }
0x1002   :  { %7282 = vmatpush3.bf16.xpose.msra.mxu1 %v7281_v11 }
0x1003   :  { %7283 = vmatprep.subr.bf16.mxu1 %v7745_v46 }
0x1007   :  { %v7022_v13 = vpop.f32.mrb[72].mxu0 }
0x1008   :  { %v4893_v50 = vadd.f32 %v9406_v7, %v7022_v13  ;;  %v4884_v20 = vpop.f32.mrb[73].mxu0 }
0x1009   :  { %v4885_v24 = vadd.f32 %v9406_v7, %v4884_v20  ;;  %v7023_v16 = vpop.f32.mrb[74].mxu0 }
0x100a   :  { %v4941_v33 = vmul.f32 0.2, %v4893_v50  ;;  %v4896_v8 = vadd.f32 %v9406_v7, %v7023_v16  ;;  %v4887_v23 = vpop.f32.mrb[75].mxu0  ;;  %7285 = vmatpush3.bf16.xpose.msra.mxu1 %v7284_v61  ;;  %vm4925_vm3 = vcmp.gt.f32.partialorder %v4893_v50, 0.0 }
0x100b   :  { %v4939_v10 = vmul.f32 0.2, %v4885_v24  ;;  %v4888_v47 = vadd.f32 %v9406_v7, %v4887_v23  ;;  %7286 = vmatprep.subr.bf16.mxu1 %v7745_v46  ;;  %vm4923_vm4 = vcmp.gt.f32.partialorder %v4885_v24, 0.0  ;;  %v9639_v7 = vld [vmem:[%s9830_s6] ss:$0 sm:$0xff] }
0x100c   :  { %vm4926_vm5 = vcmp.gt.f32.partialorder %v4896_v8, 0.0  ;;  %v4942_v60 = vmul.f32 0.2, %v4896_v8  ;;  %v4957_v38 = vsel %vm4925_vm3, %v4893_v50, %v4941_v33 }
0x100d   :  { %vm4924_vm6 = vcmp.gt.f32.partialorder %v4888_v47, 0.0  ;;  %v4940_v1 = vmul.f32 0.2, %v4888_v47  ;;  %v4955_v27 = vsel %vm4923_vm4, %v4885_v24, %v4939_v10 }
0x100e   :  { %v4958_v29 = vsel %vm4926_vm5, %v4896_v8, %v4942_v60  ;;  %v7600_v8 = vld [vmem:[#allocation8 + $0x40] sm:$0xff]  }
0x100f   :  { %v7290_v2 = vpack.c.bf16 %v4958_v29, %v4957_v38  ;;  %v4956_v36 = vsel %vm4924_vm6, %v4888_v47, %v4940_v1 }
0x1010   :  { %v7287_v25 = vpack.c.bf16 %v4956_v36, %v4955_v27 }
0x1012   :  { %7288 = vmatpush3.bf16.xpose.msra.mxu1 %v7287_v25 }
0x1013   :  { %7289 = vmatprep.subr.bf16.mxu1 %v7745_v46 }
0x1017   :  { %v7026_v43 = vpop.f32.mrb[76].mxu0 }
0x1018   :  { %v4909_v12 = vadd.f32 %v9639_v7, %v7026_v43  ;;  %v4900_v21 = vpop.f32.mrb[77].mxu0 }
0x1019   :  { %v4901_v30 = vadd.f32 %v9639_v7, %v4900_v21  ;;  %v7027_v19 = vpop.f32.mrb[78].mxu0 }
0x101a   :  { %v4945_v18 = vmul.f32 0.2, %v4909_v12  ;;  %v4912_v0 = vadd.f32 %v9639_v7, %v7027_v19  ;;  %v4903_v44 = vpop.f32.mrb[79].mxu0  ;;  %7291 = vmatpush3.bf16.xpose.msra.mxu1 %v7290_v2  ;;  %vm4929_vm7 = vcmp.gt.f32.partialorder %v4909_v12, 0.0  ;;  %v7601_v19 = vld [vmem:[#allocation8] sm:$0xff]  }
0x101b   :  { %v4943_v5 = vmul.f32 0.2, %v4901_v30  ;;  %v4904_v4 = vadd.f32 %v9639_v7, %v4903_v44  ;;  %7292 = vmatprep.subr.bf16.mxu1 %v7745_v46  ;;  %vm4927_vm8 = vcmp.gt.f32.partialorder %v4901_v30, 0.0 }
0x101c   :  { %vm4930_vm9 = vcmp.gt.f32.partialorder %v4912_v0, 0.0  ;;  %v4946_v56 = vmul.f32 0.2, %v4912_v0  ;;  %v4961_v45 = vsel %vm4929_vm7, %v4909_v12, %v4945_v18 }
0x101d   :  { %vm4928_vm10 = vcmp.gt.f32.partialorder %v4904_v4, 0.0  ;;  %v4944_v34 = vmul.f32 0.2, %v4904_v4  ;;  %v4959_v15 = vsel %vm4927_vm8, %v4901_v30, %v4943_v5  ;;  %v7602_v5 = vld [vmem:[#allocation8 + $0x48] sm:$0xff]  }
0x101e   :  { %v4962_v22 = vsel %vm4930_vm9, %v4912_v0, %v4946_v56 }
0x101f   :  { %v7296_v63 = vpack.c.bf16 %v4962_v22, %v4961_v45  ;;  %v4960_v51 = vsel %vm4928_vm10, %v4904_v4, %v4944_v34  ;;  %v5134_v59 = vpop.f32.mrb[80].mxu0 }
0x1020   :  { %v7293_v55 = vpack.c.bf16 %v4960_v51, %v4959_v15  ;;  %v5135_v37 = vadd.f32 %v5134_v59, %v7911_v53  ;;  %v5136_v48 = vpop.f32.mrb[81].mxu0  ;;  %v7603_v15 = vld [vmem:[#allocation8 + $0x8] sm:$0xff]   ;;  %v7604_v51 = vld [vmem:[#allocation8 + $0x50] sm:$0xff]  }
0x1021   :  { %v5137_v42 = vadd.f32 %v5136_v48, %v7913_v54  ;;  %v5138_v35 = vpop.f32.mrb[82].mxu0 }
0x1022   :  { %7294 = vmatpush3.bf16.xpose.msra.mxu1 %v7293_v55  ;;  %vm5213_vm11 = vcmp.gt.f32.partialorder %v5135_v37, 0.0  ;;  %v5245_v32 = vmul.f32 0.2, %v5135_v37  ;;  %v5139_v49 = vadd.f32 %v5138_v35, %v7911_v53  ;;  %v5140_v31 = vpop.f32.mrb[83].mxu0 }
0x1023   :  { %7295 = vmatprep.subr.bf16.mxu1 %v7745_v46  ;;  %vm5214_vm12 = vcmp.gt.f32.partialorder %v5137_v42, 0.0  ;;  %v5246_v62 = vmul.f32 0.2, %v5137_v42  ;;  %v5141_v52 = vadd.f32 %v5140_v31, %v7913_v54  ;;  %v7605_v31 = vld [vmem:[#allocation8 + $0x10] sm:$0xff]  }
0x1024   :  { %v9651_v9 = vsel %vm5213_vm11, %v5135_v37, %v5245_v32  ;;  %vm5215_vm13 = vcmp.gt.f32.partialorder %v5139_v49, 0.0  ;;  %v5247_v6 = vmul.f32 0.2, %v5139_v49 }
0x1025   :  { %vm5216_vm14 = vcmp.gt.f32.partialorder %v5141_v52, 0.0  ;;  %v5248_v3 = vmul.f32 0.2, %v5141_v52  ;;  %v5278_v58 = vsel %vm5214_vm12, %v5137_v42, %v5246_v62 }
0x1026   :  { %v9653_v14 = vsel %vm5215_vm13, %v5139_v49, %v5247_v6 }
0x1027   :  { %v5309_v39 = vpack.c.bf16 %v9653_v14, %v9651_v9  ;;  %v5144_v40 = vpop.f32.mrb[84].mxu0  ;;  %v5280_v61 = vsel %vm5216_vm14, %v5141_v52, %v5248_v3  ;;  %v7606_v3 = vld [vmem:[#allocation8 + $0x58] sm:$0xff]  }
0x1028   :  { %v5145_v57 = vadd.f32 %v5144_v40, %v7911_v53  ;;  %v5146_v11 = vpop.f32.mrb[85].mxu0  ;;  %v5310_v13 = vpack.c.bf16 %v5280_v61, %v5278_v58 }
0x1029   :  { %v5147_v50 = vadd.f32 %v5146_v11, %v7913_v54  ;;  %v5148_v20 = vpop.f32.mrb[86].mxu0 }
0x102a   :  { %7297 = vmatpush3.bf16.xpose.msra.mxu1 %v7296_v63  ;;  %vm5217_vm15 = vcmp.gt.f32.partialorder %v5145_v57, 0.0  ;;  %v5249_v24 = vmul.f32 0.2, %v5145_v57  ;;  %v5149_v16 = vadd.f32 %v5148_v20, %v7911_v53  ;;  %v5150_v33 = vpop.f32.mrb[87].mxu0 }
0x102b   :  { %6497 = vmatprep.subr.bf16.mxu1 %v7600_v8  ;;  %vm5218_vm1 = vcmp.gt.f32.partialorder %v5147_v50, 0.0  ;;  %v5250_v23 = vmul.f32 0.2, %v5147_v50  ;;  %v5151_v10 = vadd.f32 %v5150_v33, %v7913_v54 }
0x102c   :  { %vm5219_vm2 = vcmp.gt.f32.partialorder %v5149_v16, 0.0  ;;  %v5251_v47 = vmul.f32 0.2, %v5149_v16  ;;  %v9661_v60 = vsel %vm5217_vm15, %v5145_v57, %v5249_v24  ;;  %v7608_v24 = vld [vmem:[#allocation8 + $0x60] sm:$0xff]  }
0x102d   :  { %vm5220_vm3 = vcmp.gt.f32.partialorder %v5151_v10, 0.0  ;;  %v5252_v1 = vmul.f32 0.2, %v5151_v10  ;;  %v9663_v38 = vsel %vm5218_vm1, %v5147_v50, %v5250_v23  ;;  %v7607_v50 = vld [vmem:[#allocation8 + $0x18] sm:$0xff]  }
0x102e   :  { %v9665_v29 = vsel %vm5219_vm2, %v5149_v16, %v5251_v47 }
0x102f   :  { %v5154_v27 = vpop.f32.mrb[88].mxu0  ;;  %v9667_v2 = vsel %vm5220_vm3, %v5151_v10, %v5252_v1  ;;  %v5311_v36 = vpack.c.bf16 %v9665_v29, %v9661_v60 }
0x1030   :  { %v5155_v25 = vadd.f32 %v5154_v27, %v7911_v53  ;;  %v5156_v43 = vpop.f32.mrb[89].mxu0  ;;  %v5312_v12 = vpack.c.bf16 %v9667_v2, %v9663_v38 }
0x1031   :  { %7061 = vmatmul.mubr.f32.vlgmr.msra.gmra.mrb[236].mxu1 %v9448_v26  ;;  %v5157_v21 = vadd.f32 %v5156_v43, %v7913_v54  ;;  %v5158_v30 = vpop.f32.mrb[90].mxu0 }
0x1032   :  { %6498 = vmatpush3.bf16.msra.mxu1 %v7601_v19  ;;  %5357 = vmatprep.mubr.bf16.mxu1 %v5310_v13  ;;  %vm5221_vm4 = vcmp.gt.f32.partialorder %v5155_v25, 0.0  ;;  %v5253_v18 = vmul.f32 0.2, %v5155_v25  ;;  %v5159_v0 = vadd.f32 %v5158_v30, %v7911_v53  ;;  %v5160_v44 = vpop.f32.mrb[91].mxu0  ;;  %v7610_v19 = vld [vmem:[#allocation8 + $0x68] sm:$0xff]  }
0x1033   :  { %6499 = vmatprep.subr.bf16.mxu1 %v7602_v5  ;;  %vm5222_vm5 = vcmp.gt.f32.partialorder %v5157_v21, 0.0  ;;  %v5254_v4 = vmul.f32 0.2, %v5157_v21  ;;  %v5161_v56 = vadd.f32 %v5160_v44, %v7913_v54 }
0x1034   :  { %vm5223_vm6 = vcmp.gt.f32.partialorder %v5159_v0, 0.0  ;;  %v5255_v34 = vmul.f32 0.2, %v5159_v0  ;;  %v9678_v26 = vsel %vm5221_vm4, %v5155_v25, %v5253_v18  ;;  %v7609_v25 = vld [vmem:[#allocation8 + $0x20] sm:$0xff]  }
0x1035   :  { %vm5224_vm7 = vcmp.gt.f32.partialorder %v5161_v56, 0.0  ;;  %v5256_v45 = vmul.f32 0.2, %v5161_v56  ;;  %v9680_v22 = vsel %vm5222_vm5, %v5157_v21, %v5254_v4 }
0x1036   :  { %6500 = vmatpush3.bf16.msra.mxu1 %v7603_v15  ;;  %v9682_v63 = vsel %vm5223_vm6, %v5159_v0, %v5255_v34  ;;  %v7611_v34 = vld [vmem:[#allocation8 + $0x28] sm:$0xff]   ;;  %v7612_v15 = vld [vmem:[#allocation8 + $0x70] sm:$0xff]  }
0x1037   :  { %6501 = vmatprep.subr.bf16.mxu1 %v7604_v51  ;;  %v5164_v59 = vpop.f32.mrb[92].mxu0  ;;  %v9684_v55 = vsel %vm5224_vm7, %v5161_v56, %v5256_v45  ;;  %v5313_v37 = vpack.c.bf16 %v9682_v63, %v9678_v26 }
0x1038   :  { %v5165_v48 = vadd.f32 %v5164_v59, %v7911_v53  ;;  %v5166_v42 = vpop.f32.mrb[93].mxu0  ;;  %v5314_v35 = vpack.c.bf16 %v9684_v55, %v9680_v22 }
0x1039   :  { %v5167_v32 = vadd.f32 %v5166_v42, %v7913_v54  ;;  %v5168_v49 = vpop.f32.mrb[94].mxu0 }
0x103a   :  { %6502 = vmatpush3.bf16.msra.mxu1 %v7605_v31  ;;  %vm5225_vm8 = vcmp.gt.f32.partialorder %v5165_v48, 0.0  ;;  %v5257_v62 = vmul.f32 0.2, %v5165_v48  ;;  %v5169_v52 = vadd.f32 %v5168_v49, %v7911_v53  ;;  %v5170_v6 = vpop.f32.mrb[95].mxu0 }
0x103b   :  { %6503 = vmatprep.subr.bf16.mxu1 %v7606_v3  ;;  %vm5226_vm9 = vcmp.gt.f32.partialorder %v5167_v32, 0.0  ;;  %v5258_v58 = vmul.f32 0.2, %v5167_v32  ;;  %v5171_v40 = vadd.f32 %v5170_v6, %v7913_v54 }
0x103c   :  { %vm5227_vm10 = vcmp.gt.f32.partialorder %v5169_v52, 0.0  ;;  %v5259_v61 = vmul.f32 0.2, %v5169_v52  ;;  %v9694_v57 = vsel %vm5225_vm8, %v5165_v48, %v5257_v62 }
0x103d   :  { %vm5228_vm11 = vcmp.gt.f32.partialorder %v5171_v40, 0.0  ;;  %v5260_v11 = vmul.f32 0.2, %v5171_v40  ;;  %v9696_v13 = vsel %vm5226_vm9, %v5167_v32, %v5258_v58 }
0x103e   :  { %6504 = vmatpush3.bf16.msra.mxu1 %v7607_v50  ;;  %v9698_v20 = vsel %vm5227_vm10, %v5169_v52, %v5259_v61  ;;  %v7613_v52 = vld [vmem:[#allocation8 + $0x30] sm:$0xff]  }
0x103f   :  { %6505 = vmatprep.subr.bf16.mxu1 %v7608_v24  ;;  %v5174_v16 = vpop.f32.mrb[96].mxu0  ;;  %v9700_v33 = vsel %vm5228_vm11, %v5171_v40, %v5260_v11  ;;  %v5315_v8 = vpack.c.bf16 %v9698_v20, %v9694_v57  ;;  %v7614_v40 = vld [vmem:[#allocation8 + $0x78] sm:$0xff]  }
0x1040   :  { %v5175_v23 = vadd.f32 %v5174_v16, %v7911_v53  ;;  %v5176_v10 = vpop.f32.mrb[97].mxu0  ;;  %v5316_v47 = vpack.c.bf16 %v9700_v33, %v9696_v13 }
0x1041   :  { %v5177_v1 = vadd.f32 %v5176_v10, %v7913_v54  ;;  %v5178_v27 = vpop.f32.mrb[98].mxu0  ;;  %v7615_v10 = vld [vmem:[#allocation8 + $0x38] sm:$0xff]  }
0x1042   :  { %6506 = vmatpush3.bf16.msra.mxu1 %v7609_v25  ;;  %vm5229_vm12 = vcmp.gt.f32.partialorder %v5175_v23, 0.0  ;;  %v5261_v43 = vmul.f32 0.2, %v5175_v23  ;;  %v5179_v21 = vadd.f32 %v5178_v27, %v7911_v53  ;;  %v5180_v30 = vpop.f32.mrb[99].mxu0 }
0x1043   :  { %6507 = vmatprep.subr.bf16.mxu1 %v7610_v19  ;;  %vm5230_vm13 = vcmp.gt.f32.partialorder %v5177_v1, 0.0  ;;  %v5262_v18 = vmul.f32 0.2, %v5177_v1  ;;  %v5181_v0 = vadd.f32 %v5180_v30, %v7913_v54 }
0x1044   :  { %v9710_v44 = vsel %vm5229_vm12, %v5175_v23, %v5261_v43  ;;  %vm5231_vm14 = vcmp.gt.f32.partialorder %v5179_v21, 0.0  ;;  %v5263_v5 = vmul.f32 0.2, %v5179_v21 }
0x1045   :  { %vm5232_vm15 = vcmp.gt.f32.partialorder %v5181_v0, 0.0  ;;  %v5264_v4 = vmul.f32 0.2, %v5181_v0  ;;  %v9712_v56 = vsel %vm5230_vm13, %v5177_v1, %v5262_v18 }
0x1046   :  { %6508 = vmatpush3.bf16.msra.mxu1 %v7611_v34  ;;  %v9714_v45 = vsel %vm5231_vm14, %v5179_v21, %v5263_v5 }
0x1047   :  { %6509 = vmatprep.subr.bf16.mxu1 %v7612_v15  ;;  %v5317_v51 = vpack.c.bf16 %v9714_v45, %v9710_v44  ;;  %v5184_v59 = vpop.f32.mrb[100].mxu0  ;;  %v9718_v48 = vsel %vm5232_vm15, %v5181_v0, %v5264_v4 }
0x1048   :  { %v5185_v42 = vadd.f32 %v5184_v59, %v7911_v53  ;;  %v5186_v32 = vpop.f32.mrb[101].mxu0  ;;  %v5318_v49 = vpack.c.bf16 %v9718_v48, %v9712_v56 }
0x1049   :  { %v5187_v31 = vadd.f32 %v5186_v32, %v7913_v54  ;;  %v5188_v62 = vpop.f32.mrb[102].mxu0 }
0x104a   :  { %6510 = vmatpush3.bf16.msra.mxu1 %v7613_v52  ;;  %vm5233_vm1 = vcmp.gt.f32.partialorder %v5185_v42, 0.0  ;;  %v5265_v6 = vmul.f32 0.2, %v5185_v42  ;;  %v5189_v3 = vadd.f32 %v5188_v62, %v7911_v53  ;;  %v5190_v58 = vpop.f32.mrb[103].mxu0 }
0x104b   :  { %6511 = vmatprep.subr.bf16.mxu1 %v7614_v40  ;;  %vm5234_vm2 = vcmp.gt.f32.partialorder %v5187_v31, 0.0  ;;  %v5266_v61 = vmul.f32 0.2, %v5187_v31  ;;  %v5191_v11 = vadd.f32 %v5190_v58, %v7913_v54 }
0x104c   :  { %v9726_v50 = vsel %vm5233_vm1, %v5185_v42, %v5265_v6  ;;  %vm5235_vm3 = vcmp.gt.f32.partialorder %v5189_v3, 0.0  ;;  %v5267_v24 = vmul.f32 0.2, %v5189_v3 }
0x104d   :  { %vm5236_vm4 = vcmp.gt.f32.partialorder %v5191_v11, 0.0  ;;  %v5268_v16 = vmul.f32 0.2, %v5191_v11  ;;  %v5298_v23 = vsel %vm5234_vm2, %v5187_v31, %v5266_v61 }
0x104e   :  { %6512 = vmatpush3.bf16.msra.mxu1 %v7615_v10  ;;  %v5299_v1 = vsel %vm5235_vm3, %v5189_v3, %v5267_v24 }
0x104f   :  { %v5319_v27 = vpack.c.bf16 %v5299_v1, %v9726_v50  ;;  %v5194_v25 = vpop.f32.mrb[104].mxu0  ;;  %v5300_v43 = vsel %vm5236_vm4, %v5191_v11, %v5268_v16  ;;  %7298 = vmatprep.subr.bf16.mxu1 %v7745_v46 }
0x1050   :  { %v5195_v21 = vadd.f32 %v5194_v25, %v7911_v53  ;;  %v5196_v30 = vpop.f32.mrb[105].mxu0  ;;  %v5320_v19 = vpack.c.bf16 %v5300_v43, %v5298_v23 }
0x1051   :  { %5358 = vmatmul.mubr.bf16.vlgmr.msra.gmra.mrb[240].mxu1 %v5309_v39  ;;  %v5197_v18 = vadd.f32 %v5196_v30, %v7913_v54  ;;  %v5198_v0 = vpop.f32.mrb[106].mxu0 }
0x1052   :  { %5365 = vmatprep.mubr.bf16.mxu1 %v5312_v12  ;;  %vm5237_vm5 = vcmp.gt.f32.partialorder %v5195_v21, 0.0  ;;  %v5269_v5 = vmul.f32 0.2, %v5195_v21  ;;  %v5199_v4 = vadd.f32 %v5198_v0, %v7911_v53  ;;  %v5200_v34 = vpop.f32.mrb[107].mxu0 }
0x1053   :  { %vm5238_vm6 = vcmp.gt.f32.partialorder %v5197_v18, 0.0  ;;  %v5270_v15 = vmul.f32 0.2, %v5197_v18  ;;  %v5201_v59 = vadd.f32 %v5200_v34, %v7913_v54 }
0x1054   :  { %v5301_v42 = vsel %vm5237_vm5, %v5195_v21, %v5269_v5  ;;  %vm5239_vm7 = vcmp.gt.f32.partialorder %v5199_v4, 0.0  ;;  %v5271_v9 = vmul.f32 0.2, %v5199_v4 }
0x1055   :  { %vm5240_vm8 = vcmp.gt.f32.partialorder %v5201_v59, 0.0  ;;  %v5272_v14 = vmul.f32 0.2, %v5201_v59  ;;  %v5302_v39 = vsel %vm5238_vm6, %v5197_v18, %v5270_v15 }
0x1056   :  { %v5303_v32 = vsel %vm5239_vm7, %v5199_v4, %v5271_v9 }
0x1057   :  { %v5321_v31 = vpack.c.bf16 %v5303_v32, %v5301_v42  ;;  %v5204_v62 = vpop.f32.mrb[108].mxu0  ;;  %v5304_v38 = vsel %vm5240_vm8, %v5201_v59, %v5272_v14 }
0x1058   :  { %v5205_v2 = vadd.f32 %v5204_v62, %v7911_v53  ;;  %v5206_v12 = vpop.f32.mrb[109].mxu0  ;;  %v5322_v52 = vpack.c.bf16 %v5304_v38, %v5302_v39 }
0x1059   :  { %5366 = vmatmul.mubr.bf16.gmra.mrb[244].mxu1 %v5311_v36  ;;  %v5207_v6 = vadd.f32 %v5206_v12, %v7913_v54  ;;  %v5208_v3 = vpop.f32.mrb[110].mxu0 }
0x105a   :  { %5373 = vmatprep.mubr.bf16.mxu1 %v5314_v35  ;;  %vm5241_vm9 = vcmp.gt.f32.partialorder %v5205_v2, 0.0  ;;  %v5273_v58 = vmul.f32 0.2, %v5205_v2  ;;  %v5209_v40 = vadd.f32 %v5208_v3, %v7911_v53  ;;  %v5210_v61 = vpop.f32.mrb[111].mxu0 }
0x105b   :  { %vm5242_vm10 = vcmp.gt.f32.partialorder %v5207_v6, 0.0  ;;  %v5274_v11 = vmul.f32 0.2, %v5207_v6  ;;  %v5211_v50 = vadd.f32 %v5210_v61, %v7913_v54 }
0x105c   :  { %v5305_v24 = vsel %vm5241_vm9, %v5205_v2, %v5273_v58  ;;  %vm5243_vm11 = vcmp.gt.f32.partialorder %v5209_v40, 0.0  ;;  %v5275_v60 = vmul.f32 0.2, %v5209_v40 }
0x105d   :  { %vm5244_vm12 = vcmp.gt.f32.partialorder %v5211_v50, 0.0  ;;  %v5276_v29 = vmul.f32 0.2, %v5211_v50  ;;  %v5306_v36 = vsel %vm5242_vm10, %v5207_v6, %v5274_v11 }
0x105e   :  { %v5307_v16 = vsel %vm5243_vm11, %v5209_v40, %v5275_v60 }
0x105f   :  { %v5323_v23 = vpack.c.bf16 %v5307_v16, %v5305_v24  ;;  %v5308_v10 = vsel %vm5244_vm12, %v5211_v50, %v5276_v29 }
0x1060   :  { %v5324_v22 = vpack.c.bf16 %v5308_v10, %v5306_v36 }
0x1061   :  { %5374 = vmatmul.mubr.bf16.gmra.mrb[248].mxu1 %v5313_v37 }
0x1062   :  { %5381 = vmatprep.mubr.bf16.mxu1 %v5316_v47 }
0x1069   :  { %5382 = vmatmul.mubr.bf16.gmra.mrb[252].mxu1 %v5315_v8 }
0x106a   :  { %5389 = vmatprep.mubr.bf16.mxu1 %v5318_v49 }
0x1071   :  { %5390 = vmatmul.mubr.bf16.gmra.mrb[0].mxu1 %v5317_v51 }
0x1072   :  { %5397 = vmatprep.mubr.bf16.mxu1 %v5320_v19 }
0x1079   :  { %5398 = vmatmul.mubr.bf16.gmra.mrb[4].mxu1 %v5319_v27 }
0x107a   :  { %5405 = vmatprep.mubr.bf16.mxu1 %v5322_v52 }
0x1081   :  { %5406 = vmatmul.mubr.bf16.gmra.mrb[8].mxu1 %v5321_v31 }
0x1082   :  { %5413 = vmatprep.mubr.bf16.mxu1 %v5324_v22 }
0x1089   :  { %5414 = vmatmul.mubr.bf16.gmra.mrb[12].mxu1 %v5323_v23 }
0x108a   :  { %7127 = vmatprep.mubr.msk.f32.mxu1 %vm7746_vm0, %v9870_v17 }
0x1104   :  { %v5029_v53 = vpop.f32.mrb[236].mxu1 }
0x1105   :  { %v5033_v54 = vadd.f32 %v5029_v53, %v8204_v28  ;;  %v7062_v26 = vpop.f32.mrb[237].mxu1 }
0x1107   :  { %5034 = vst [vmem:[#allocation11 + $0x6] sm:$0x1] %v5033_v54 }
0x1124   :  { %v6513_v63 = vpop.f32.mrb[240].mxu1 }
0x1125   :  { %v6514_v55 = vpop.f32.mrb[241].mxu1 }
0x1126   :  { %v6515_v37 = vadd.f32 %v6514_v55, %v6513_v63  ;;  %v6516_v35 = vpop.f32.mrb[242].mxu1 }
0x1127   :  { %v6517_v57 = vpop.f32.mrb[243].mxu1 }
0x1128   :  { %v5360_v13 = vadd.f32 %v9584_v41, %v6515_v37  ;;  %v6518_v20 = vadd.f32 %v6517_v57, %v6516_v35 }
0x112a   :  { %v5438_v33 = vmul.f32 0.2, %v5360_v13  ;;  %v5363_v8 = vadd.f32 %v9584_v41, %v6518_v20  ;;  %vm5422_vm13 = vcmp.gt.f32.partialorder %v5360_v13, 0.0 }
0x112c   :  { %vm5423_vm14 = vcmp.gt.f32.partialorder %v5363_v8, 0.0  ;;  %v5439_v47 = vmul.f32 0.2, %v5363_v8  ;;  %v6519_v17 = vpop.f32.mrb[244].mxu1  ;;  %v5454_v51 = vsel %vm5422_vm13, %v5360_v13, %v5438_v33 }
0x112d   :  { %v6520_v44 = vpop.f32.mrb[245].mxu1 }
0x112e   :  { %v6521_v56 = vadd.f32 %v6520_v44, %v6519_v17  ;;  %v6522_v45 = vpop.f32.mrb[246].mxu1  ;;  %v5455_v48 = vsel %vm5423_vm14, %v5363_v8, %v5439_v47 }
0x112f   :  { %v6523_v49 = vpop.f32.mrb[247].mxu1  ;;  %v5470_v1 = vpack.c.bf16 %v5455_v48, %v5454_v51 }
0x1130   :  { %v5368_v27 = vadd.f32 %v9584_v41, %v6521_v56  ;;  %v6524_v25 = vadd.f32 %v6523_v49, %v6522_v45 }
0x1131   :  { %7079 = vmatprep.mubr.bf16.mxu0 %v5470_v1 }
0x1132   :  { %v5440_v43 = vmul.f32 0.2, %v5368_v27  ;;  %v5371_v21 = vadd.f32 %v9584_v41, %v6524_v25  ;;  %vm5424_vm0 = vcmp.gt.f32.partialorder %v5368_v27, 0.0 }
0x1134   :  { %vm5425_vm15 = vcmp.gt.f32.partialorder %v5371_v21, 0.0  ;;  %v5441_v30 = vmul.f32 0.2, %v5371_v21  ;;  %v6525_v19 = vpop.f32.mrb[248].mxu1  ;;  %v5456_v0 = vsel %vm5424_vm0, %v5368_v27, %v5440_v43 }
0x1135   :  { %v6526_v18 = vpop.f32.mrb[249].mxu1 }
0x1136   :  { %v5457_v5 = vsel %vm5425_vm15, %v5371_v21, %v5441_v30  ;;  %v6527_v4 = vadd.f32 %v6526_v18, %v6525_v19  ;;  %v6528_v34 = vpop.f32.mrb[250].mxu1 }
0x1137   :  { %v5471_v15 = vpack.c.bf16 %v5457_v5, %v5456_v0  ;;  %v6529_v59 = vpop.f32.mrb[251].mxu1 }
0x1138   :  { %v5376_v42 = vadd.f32 %v9584_v41, %v6527_v4  ;;  %v6530_v9 = vadd.f32 %v6529_v59, %v6528_v34 }
0x1139   :  { %7080 = vmatmul.mubr.bf16.vlgmr.msra.gmra.mrb[112].mxu0 %v5471_v15 }
0x113a   :  { %v5442_v14 = vmul.f32 0.2, %v5376_v42  ;;  %v5379_v39 = vadd.f32 %v9584_v41, %v6530_v9  ;;  %vm5426_vm1 = vcmp.gt.f32.partialorder %v5376_v42, 0.0 }
0x113c   :  { %vm5427_vm2 = vcmp.gt.f32.partialorder %v5379_v39, 0.0  ;;  %v5443_v32 = vmul.f32 0.2, %v5379_v39  ;;  %v6531_v31 = vpop.f32.mrb[252].mxu1  ;;  %v5458_v12 = vsel %vm5426_vm1, %v5376_v42, %v5442_v14 }
0x113d   :  { %v6532_v62 = vpop.f32.mrb[253].mxu1 }
0x113e   :  { %v6533_v38 = vadd.f32 %v6532_v62, %v6531_v31  ;;  %v6534_v2 = vpop.f32.mrb[254].mxu1  ;;  %v5459_v52 = vsel %vm5427_vm2, %v5379_v39, %v5443_v32  ;;  %v7616_v31 = vld [vmem:[%s9828_s4] ss:$0 sm:$0xff] }
0x113f   :  { %v6535_v6 = vpop.f32.mrb[255].mxu1  ;;  %v5472_v3 = vpack.c.bf16 %v5459_v52, %v5458_v12 }
0x1140   :  { %v5384_v58 = vadd.f32 %v9584_v41, %v6533_v38  ;;  %v6536_v40 = vadd.f32 %v6535_v6, %v6534_v2 }
0x1141   :  { %7083 = vmatprep.mubr.bf16.mxu0 %v5472_v3 }
0x1142   :  { %v5444_v61 = vmul.f32 0.2, %v5384_v58  ;;  %v5387_v11 = vadd.f32 %v9584_v41, %v6536_v40  ;;  %vm5428_vm3 = vcmp.gt.f32.partialorder %v5384_v58, 0.0 }
0x1144   :  { %vm5429_vm4 = vcmp.gt.f32.partialorder %v5387_v11, 0.0  ;;  %v5445_v50 = vmul.f32 0.2, %v5387_v11  ;;  %v6537_v24 = vpop.f32.mrb[0].mxu1  ;;  %v5460_v29 = vsel %vm5428_vm3, %v5384_v58, %v5444_v61 }
0x1145   :  { %v6538_v60 = vpop.f32.mrb[1].mxu1 }
0x1146   :  { %v5461_v36 = vsel %vm5429_vm4, %v5387_v11, %v5445_v50  ;;  %v6539_v16 = vadd.f32 %v6538_v60, %v6537_v24  ;;  %v6540_v23 = vpop.f32.mrb[2].mxu1 }
0x1147   :  { %v5473_v10 = vpack.c.bf16 %v5461_v36, %v5460_v29  ;;  %v6541_v22 = vpop.f32.mrb[3].mxu1 }
0x1148   :  { %v5392_v53 = vadd.f32 %v9584_v41, %v6539_v16  ;;  %v6542_v54 = vadd.f32 %v6541_v22, %v6540_v23 }
0x1149   :  { %7084 = vmatmul.mubr.bf16.gmra.mrb[116].mxu0 %v5473_v10 }
0x114a   :  { %v5446_v26 = vmul.f32 0.2, %v5392_v53  ;;  %v5395_v63 = vadd.f32 %v9584_v41, %v6542_v54  ;;  %vm5430_vm5 = vcmp.gt.f32.partialorder %v5392_v53, 0.0 }
0x114c   :  { %vm5431_vm6 = vcmp.gt.f32.partialorder %v5395_v63, 0.0  ;;  %v5447_v55 = vmul.f32 0.2, %v5395_v63  ;;  %v6543_v37 = vpop.f32.mrb[4].mxu1  ;;  %v5462_v20 = vsel %vm5430_vm5, %v5392_v53, %v5446_v26 }
0x114d   :  { %v6544_v35 = vpop.f32.mrb[5].mxu1 }
0x114e   :  { %v6545_v57 = vadd.f32 %v6544_v35, %v6543_v37  ;;  %v6546_v13 = vpop.f32.mrb[6].mxu1  ;;  %v5463_v33 = vsel %vm5431_vm6, %v5395_v63, %v5447_v55 }
0x114f   :  { %v6547_v8 = vpop.f32.mrb[7].mxu1  ;;  %v5474_v47 = vpack.c.bf16 %v5463_v33, %v5462_v20 }
0x1150   :  { %v5400_v17 = vadd.f32 %v9584_v41, %v6545_v57  ;;  %v6548_v44 = vadd.f32 %v6547_v8, %v6546_v13 }
0x1151   :  { %7087 = vmatprep.mubr.bf16.mxu0 %v5474_v47 }
0x1152   :  { %v5448_v56 = vmul.f32 0.2, %v5400_v17  ;;  %v5403_v45 = vadd.f32 %v9584_v41, %v6548_v44  ;;  %vm5432_vm7 = vcmp.gt.f32.partialorder %v5400_v17, 0.0 }
0x1154   :  { %vm5433_vm8 = vcmp.gt.f32.partialorder %v5403_v45, 0.0  ;;  %v5449_v51 = vmul.f32 0.2, %v5403_v45  ;;  %v6549_v48 = vpop.f32.mrb[8].mxu1  ;;  %v5464_v1 = vsel %vm5432_vm7, %v5400_v17, %v5448_v56 }
0x1155   :  { %v6550_v49 = vpop.f32.mrb[9].mxu1 }
0x1156   :  { %v5465_v27 = vsel %vm5433_vm8, %v5403_v45, %v5449_v51  ;;  %v6551_v25 = vadd.f32 %v6550_v49, %v6549_v48  ;;  %v6552_v43 = vpop.f32.mrb[10].mxu1 }
0x1157   :  { %v5475_v21 = vpack.c.bf16 %v5465_v27, %v5464_v1  ;;  %v6553_v30 = vpop.f32.mrb[11].mxu1 }
0x1158   :  { %v5408_v19 = vadd.f32 %v9584_v41, %v6551_v25  ;;  %v6554_v18 = vadd.f32 %v6553_v30, %v6552_v43 }
0x1159   :  { %7088 = vmatmul.mubr.bf16.gmra.mrb[120].mxu0 %v5475_v21 }
0x115a   :  { %v5450_v0 = vmul.f32 0.2, %v5408_v19  ;;  %v5411_v5 = vadd.f32 %v9584_v41, %v6554_v18  ;;  %vm5434_vm9 = vcmp.gt.f32.partialorder %v5408_v19, 0.0 }
0x115c   :  { %vm5435_vm10 = vcmp.gt.f32.partialorder %v5411_v5, 0.0  ;;  %v5451_v4 = vmul.f32 0.2, %v5411_v5  ;;  %v6555_v34 = vpop.f32.mrb[12].mxu1  ;;  %v5466_v9 = vsel %vm5434_vm9, %v5408_v19, %v5450_v0 }
0x115d   :  { %v6556_v15 = vpop.f32.mrb[13].mxu1 }
0x115e   :  { %v6557_v59 = vadd.f32 %v6556_v15, %v6555_v34  ;;  %v6558_v42 = vpop.f32.mrb[14].mxu1  ;;  %v5467_v14 = vsel %vm5435_vm10, %v5411_v5, %v5451_v4 }
0x115f   :  { %v6559_v39 = vpop.f32.mrb[15].mxu1  ;;  %v5476_v32 = vpack.c.bf16 %v5467_v14, %v5466_v9 }
0x1160   :  { %v5416_v62 = vadd.f32 %v7616_v31, %v6557_v59  ;;  %v6560_v38 = vadd.f32 %v6559_v39, %v6558_v42 }
0x1161   :  { %7091 = vmatprep.mubr.bf16.mxu0 %v5476_v32 }
0x1162   :  { %v5452_v2 = vmul.f32 0.2, %v5416_v62  ;;  %v5419_v41 = vadd.f32 %v7616_v31, %v6560_v38  ;;  %vm5436_vm11 = vcmp.gt.f32.partialorder %v5416_v62, 0.0 }
0x1164   :  { %vm5437_vm12 = vcmp.gt.f32.partialorder %v5419_v41, 0.0  ;;  %v5453_v12 = vmul.f32 0.2, %v5419_v41  ;;  %v5468_v52 = vsel %vm5436_vm11, %v5416_v62, %v5452_v2 }
0x1166   :  { %v5469_v6 = vsel %vm5437_vm12, %v5419_v41, %v5453_v12 }
0x1167   :  { %v5477_v3 = vpack.c.bf16 %v5469_v6, %v5468_v52 }
0x1169   :  { %7092 = vmatmul.mubr.bf16.gmra.mrb[124].mxu0 %v5477_v3 }
0x120c   :  { %v7081_v58 = vpop.f32.mrb[112].mxu0 }
0x120d   :  { %v5521_v40 = vadd.f32 %v9639_v7, %v7081_v58  ;;  %v5512_v61 = vpop.f32.mrb[113].mxu0 }
0x120e   :  { %v5513_v11 = vadd.f32 %v9639_v7, %v5512_v61  ;;  %v7082_v50 = vpop.f32.mrb[114].mxu0 }
0x120f   :  { %v5593_v24 = vmul.f32 0.2, %v5521_v40  ;;  %v5524_v60 = vadd.f32 %v9639_v7, %v7082_v50  ;;  %v5515_v29 = vpop.f32.mrb[115].mxu0  ;;  %vm5577_vm13 = vcmp.gt.f32.partialorder %v5521_v40, 0.0 }
0x1210   :  { %v5591_v36 = vmul.f32 0.2, %v5513_v11  ;;  %v5516_v16 = vadd.f32 %v9639_v7, %v5515_v29  ;;  %vm5575_vm14 = vcmp.gt.f32.partialorder %v5513_v11, 0.0 }
0x1211   :  { %vm5578_vm0 = vcmp.gt.f32.partialorder %v5524_v60, 0.0  ;;  %v5594_v23 = vmul.f32 0.2, %v5524_v60  ;;  %v5609_v22 = vsel %vm5577_vm13, %v5521_v40, %v5593_v24 }
0x1212   :  { %vm5576_vm15 = vcmp.gt.f32.partialorder %v5516_v16, 0.0  ;;  %v5592_v10 = vmul.f32 0.2, %v5516_v16  ;;  %v5607_v54 = vsel %vm5575_vm14, %v5513_v11, %v5591_v36 }
0x1213   :  { %v5610_v53 = vsel %vm5578_vm0, %v5524_v60, %v5594_v23 }
0x1214   :  { %v7302_v26 = vpack.c.bf16 %v5610_v53, %v5609_v22  ;;  %v5608_v63 = vsel %vm5576_vm15, %v5516_v16, %v5592_v10 }
0x1215   :  { %v7299_v55 = vpack.c.bf16 %v5608_v63, %v5607_v54 }
0x1217   :  { %7300 = vmatpush3.bf16.xpose.msra.mxu1 %v7299_v55 }
0x1218   :  { %7301 = vmatprep.subr.bf16.mxu1 %v7745_v46 }
0x121c   :  { %v7085_v37 = vpop.f32.mrb[116].mxu0 }
0x121d   :  { %v5537_v35 = vadd.f32 %v9639_v7, %v7085_v37  ;;  %v5528_v57 = vpop.f32.mrb[117].mxu0 }
0x121e   :  { %v5529_v13 = vadd.f32 %v9639_v7, %v5528_v57  ;;  %v7086_v20 = vpop.f32.mrb[118].mxu0 }
0x121f   :  { %v5597_v33 = vmul.f32 0.2, %v5537_v35  ;;  %v5540_v8 = vadd.f32 %v9639_v7, %v7086_v20  ;;  %v5531_v47 = vpop.f32.mrb[119].mxu0  ;;  %7303 = vmatpush3.bf16.xpose.msra.mxu1 %v7302_v26  ;;  %vm5581_vm1 = vcmp.gt.f32.partialorder %v5537_v35, 0.0 }
0x1220   :  { %v5595_v17 = vmul.f32 0.2, %v5529_v13  ;;  %v5532_v44 = vadd.f32 %v9639_v7, %v5531_v47  ;;  %7304 = vmatprep.subr.bf16.mxu1 %v7745_v46  ;;  %vm5579_vm2 = vcmp.gt.f32.partialorder %v5529_v13, 0.0 }
0x1221   :  { %vm5582_vm3 = vcmp.gt.f32.partialorder %v5540_v8, 0.0  ;;  %v5598_v56 = vmul.f32 0.2, %v5540_v8  ;;  %v5613_v51 = vsel %vm5581_vm1, %v5537_v35, %v5597_v33 }
0x1222   :  { %vm5580_vm4 = vcmp.gt.f32.partialorder %v5532_v44, 0.0  ;;  %v5596_v45 = vmul.f32 0.2, %v5532_v44  ;;  %v5611_v49 = vsel %vm5579_vm2, %v5529_v13, %v5595_v17 }
0x1223   :  { %v5614_v48 = vsel %vm5582_vm3, %v5540_v8, %v5598_v56 }
0x1224   :  { %v7308_v1 = vpack.c.bf16 %v5614_v48, %v5613_v51  ;;  %v5612_v27 = vsel %vm5580_vm4, %v5532_v44, %v5596_v45 }
0x1225   :  { %v7305_v25 = vpack.c.bf16 %v5612_v27, %v5611_v49 }
0x1227   :  { %7306 = vmatpush3.bf16.xpose.msra.mxu1 %v7305_v25 }
0x1228   :  { %7307 = vmatprep.subr.bf16.mxu1 %v7745_v46 }
0x122c   :  { %v7089_v43 = vpop.f32.mrb[120].mxu0 }
0x122d   :  { %v5553_v21 = vadd.f32 %v9639_v7, %v7089_v43  ;;  %v5544_v30 = vpop.f32.mrb[121].mxu0 }
0x122e   :  { %v5545_v19 = vadd.f32 %v9639_v7, %v5544_v30  ;;  %v7090_v18 = vpop.f32.mrb[122].mxu0 }
0x122f   :  { %v5601_v0 = vmul.f32 0.2, %v5553_v21  ;;  %v5556_v5 = vadd.f32 %v9639_v7, %v7090_v18  ;;  %v5547_v4 = vpop.f32.mrb[123].mxu0  ;;  %7309 = vmatpush3.bf16.xpose.msra.mxu1 %v7308_v1  ;;  %vm5585_vm5 = vcmp.gt.f32.partialorder %v5553_v21, 0.0 }
0x1230   :  { %v5599_v34 = vmul.f32 0.2, %v5545_v19  ;;  %v5548_v15 = vadd.f32 %v9639_v7, %v5547_v4  ;;  %7310 = vmatprep.subr.bf16.mxu1 %v7745_v46  ;;  %vm5583_vm6 = vcmp.gt.f32.partialorder %v5545_v19, 0.0 }
0x1231   :  { %vm5586_vm7 = vcmp.gt.f32.partialorder %v5556_v5, 0.0  ;;  %v5602_v59 = vmul.f32 0.2, %v5556_v5  ;;  %v5617_v9 = vsel %vm5585_vm5, %v5553_v21, %v5601_v0 }
0x1232   :  { %vm5584_vm8 = vcmp.gt.f32.partialorder %v5548_v15, 0.0  ;;  %v5600_v42 = vmul.f32 0.2, %v5548_v15  ;;  %v5615_v39 = vsel %vm5583_vm6, %v5545_v19, %v5599_v34 }
0x1233   :  { %v5618_v14 = vsel %vm5586_vm7, %v5556_v5, %v5602_v59 }
0x1234   :  { %v7314_v32 = vpack.c.bf16 %v5618_v14, %v5617_v9  ;;  %v5616_v31 = vsel %vm5584_vm8, %v5548_v15, %v5600_v42 }
0x1235   :  { %v7311_v62 = vpack.c.bf16 %v5616_v31, %v5615_v39 }
0x1237   :  { %7312 = vmatpush3.bf16.xpose.msra.mxu1 %v7311_v62 }
0x1238   :  { %7313 = vmatprep.subr.bf16.mxu1 %v7745_v46 }
0x123c   :  { %v7093_v38 = vpop.f32.mrb[124].mxu0 }
0x123d   :  { %v5569_v2 = vadd.f32 %v9639_v7, %v7093_v38  ;;  %v5560_v41 = vpop.f32.mrb[125].mxu0 }
0x123e   :  { %v5561_v12 = vadd.f32 %v9639_v7, %v5560_v41  ;;  %v7094_v52 = vpop.f32.mrb[126].mxu0 }
0x123f   :  { %v5605_v6 = vmul.f32 0.2, %v5569_v2  ;;  %v5572_v3 = vadd.f32 %v9639_v7, %v7094_v52  ;;  %v5563_v58 = vpop.f32.mrb[127].mxu0  ;;  %7315 = vmatpush3.bf16.xpose.msra.mxu1 %v7314_v32  ;;  %vm5589_vm9 = vcmp.gt.f32.partialorder %v5569_v2, 0.0 }
0x1240   :  { %v5603_v40 = vmul.f32 0.2, %v5561_v12  ;;  %v5564_v61 = vadd.f32 %v9639_v7, %v5563_v58  ;;  %7316 = vmatprep.subr.bf16.mxu1 %v7745_v46  ;;  %vm5587_vm10 = vcmp.gt.f32.partialorder %v5561_v12, 0.0  ;;  %v7617_v7 = vld [vmem:[%s9831_s7] sm:$0xff] }
0x1241   :  { %vm5590_vm11 = vcmp.gt.f32.partialorder %v5572_v3, 0.0  ;;  %v5606_v11 = vmul.f32 0.2, %v5572_v3  ;;  %v5621_v24 = vsel %vm5589_vm9, %v5569_v2, %v5605_v6 }
0x1242   :  { %vm5588_vm12 = vcmp.gt.f32.partialorder %v5564_v61, 0.0  ;;  %v5604_v50 = vmul.f32 0.2, %v5564_v61  ;;  %v5619_v29 = vsel %vm5587_vm10, %v5561_v12, %v5603_v40 }
0x1243   :  { %v5622_v60 = vsel %vm5590_vm11, %v5572_v3, %v5606_v11 }
0x1244   :  { %v7320_v36 = vpack.c.bf16 %v5622_v60, %v5621_v24  ;;  %v5620_v16 = vsel %vm5588_vm12, %v5564_v61, %v5604_v50 }
0x1245   :  { %v7317_v23 = vpack.c.bf16 %v5620_v16, %v5619_v29 }
0x1247   :  { %7318 = vmatpush3.bf16.xpose.msra.mxu1 %v7317_v23 }
0x1248   :  { %7319 = vmatprep.subr.bf16.mxu1 %v7745_v46 }
0x124f   :  { %7321 = vmatpush3.bf16.xpose.msra.mxu1 %v7320_v36 }
0x1256   :  { %7128 = vmatmul.mubr.f32.vlgmr.msra.gmra.mrb[238].mxu1 %v7617_v7 }
0x1329   :  { %v5689_v10 = vpop.f32.mrb[238].mxu1 }
0x132a   :  { %v5693_v22 = vadd.f32 %v5689_v10, %v8204_v28  ;;  %v7129_v53 = vpop.f32.mrb[239].mxu1 }
0x132c   :  { %5694 = vst [vmem:[#allocation11 + $0x7] sm:$0x1] %v5693_v22 }
0x132d   :  { %7717 = shalt.err (!%p7714_p8)
}
0x132e   :  { %s7718_s7 = scalar_lea.hbm %s9833_s9, 128 }
0x132f   :  { %p7719_p9 = scmp.ne.s32.totalorder %s9833_s9, %s7718_s7  ;;  %p7722_p10 = scmp.lt.u32.totalorder %s7718_s7, %s9833_s9 }
0x1331   :  { %p7724_p11 = pnand %p7722_p10, %p7719_p9 }
0x1333   :  { %7727 = shalt.err (!%p7724_p11)
}
0x1334   :  { %5704 = dma.vmem_to_hbm [thread:$0]  %s5702_s0, 128, %s9833_s9, [#allocation5]  }
0x1335   :  { %7734 = dma.done.wait [#allocation5], 128  }
0x1336   :  { %7735 = vsyncadd [#allocation5], 4294967168 }
0x1337   :  { %5708 = vsyncpa [#allocation4], 1 }
0x1338   :  { %5709 = vsyncpa [#allocation7], 1 }
0x1339   :  { %5710 = vsyncpa [#allocation10], 1 }
0x133a   :  { %5711 = vsyncpa [#allocation5], 1 }

</bundles_post_ra>
